<compile_context>
chip_gen: v7x
topology: tpu7x:2x2x1
jax: 0.10.0
libtpu: 0.0.40
codegen_flags: <defaults>
</compile_context>

<pallas_src>
import jax
import jax.numpy as jnp
import numpy as np
from jax.experimental import pallas as pl
from jax.experimental.pallas import tpu as pltpu


# -----------------------------------------------------------------------------
# Pallas kernel
# -----------------------------------------------------------------------------
def decoder_block_kernel(x_ref, w1_ref, g1_ref, be1_ref,
                         wall_ref, g2_ref, be2_ref,
                         w3b_ref, g3_ref, be3_ref,
                         out_ref):
    eps = 1e-5
    N, H, W, Cin = x_ref.shape
    Cmid = w1_ref.shape[1]
    Cout = w3b_ref.shape[1] // 4
    P = N * H * W

    # ---- conv1: 1x1 conv == channel matmul (bf16 in, f32 acc). Bias dropped:
    #      it is cancelled by the BN1 batch-mean subtraction below.
    h = jnp.dot(x_ref[...].reshape(P, Cin), w1_ref[...],
                preferred_element_type=jnp.float32)                 # (P, Cmid) f32

    # ---- norm1 + relu1: single-pass batch stats, affine folded to one FMA -----
    mu1 = jnp.mean(h, axis=0, keepdims=True)
    var1 = jnp.mean(h * h, axis=0, keepdims=True) - mu1 * mu1
    sc1 = jax.lax.rsqrt(var1 + eps) * g1_ref[...]
    h = jnp.maximum(h * sc1 + (be1_ref[...] - mu1 * sc1), 0.0)

    # ---- deconv2: ConvTranspose2d(3,3,stride=2,pad=1,out_pad=1) ---------------
    # All nine 3x3 taps in ONE wide matmul; Wall column block k = tap (ky,kx),
    # k = ky*3 + kx, each (Cmid_in, Cmid_out).
    t = jnp.dot(h.astype(jnp.bfloat16), wall_ref[...],
                preferred_element_type=jnp.float32)                 # (P, 9*Cmid)
    t = t.reshape(N, H, W, 9 * Cmid)

    def tap(k):
        return t[..., k * Cmid:(k + 1) * Cmid]

    def shift_w(a):   # a[m, l+1]; zero at l = W-1
        return jnp.concatenate([a[:, :, 1:, :], jnp.zeros_like(a[:, :, :1, :])],
                               axis=2)

    def shift_h(a):   # a[m+1, l]; zero at m = H-1
        return jnp.concatenate([a[:, 1:, :, :], jnp.zeros_like(a[:, :1, :, :])],
                               axis=1)

    # out[2m  , 2l  ] = T4[m,l]
    # out[2m  , 2l+1] = T5[m,l] + T3[m,l+1]
    # out[2m+1, 2l  ] = T7[m,l] + T1[m+1,l]
    # out[2m+1, 2l+1] = T8[m,l] + T6[m,l+1] + T2[m+1,l] + T0[m+1,l+1]
    y00 = tap(4)
    y01 = tap(5) + shift_w(tap(3))
    y10 = tap(7) + shift_h(tap(1))
    y11 = tap(8) + shift_w(tap(6)) + shift_h(tap(2) + shift_w(tap(0)))

    # Pack parity subgrids along the lane axis: (P, 4*Cmid) = [y00|y01|y10|y11].
    y = jnp.concatenate([y00, y01, y10, y11], axis=-1).reshape(P, 4 * Cmid)

    # ---- norm2 + relu2: per-channel stats over rows AND the 4 parity groups ---
    inv_cnt = 1.0 / (4.0 * P)
    s2 = jnp.sum(y, axis=0, keepdims=True)                          # (1, 4*Cmid)
    q2 = jnp.sum(y * y, axis=0, keepdims=True)
    mu2 = (s2[:, 0:Cmid] + s2[:, Cmid:2 * Cmid]
           + s2[:, 2 * Cmid:3 * Cmid] + s2[:, 3 * Cmid:4 * Cmid]) * inv_cnt
    ex2 = (q2[:, 0:Cmid] + q2[:, Cmid:2 * Cmid]
           + q2[:, 2 * Cmid:3 * Cmid] + q2[:, 3 * Cmid:4 * Cmid]) * inv_cnt
    var2 = ex2 - mu2 * mu2
    sc2 = jax.lax.rsqrt(var2 + eps) * g2_ref[...]
    sh2 = be2_ref[...] - mu2 * sc2
    sc2p = jnp.concatenate([sc2, sc2, sc2, sc2], axis=1)            # (1, 4*Cmid)
    sh2p = jnp.concatenate([sh2, sh2, sh2, sh2], axis=1)
    y = jnp.maximum(y * sc2p + sh2p, 0.0)

    # ---- conv3 on the packed tensor via a block-diagonal weight: one MXU launch,
    #      output already in the packed [z00|z01|z10|z11] lane layout. ----------
    z = jnp.dot(y.astype(jnp.bfloat16), w3b_ref[...],
                preferred_element_type=jnp.float32)                 # (P, 4*Cout)

    # ---- norm3 + relu3 (same grouped single-pass stats over Cout channels) ----
    s3 = jnp.sum(z, axis=0, keepdims=True)
    q3 = jnp.sum(z * z, axis=0, keepdims=True)
    mu3 = (s3[:, 0:Cout] + s3[:, Cout:2 * Cout]
           + s3[:, 2 * Cout:3 * Cout] + s3[:, 3 * Cout:4 * Cout]) * inv_cnt
    ex3 = (q3[:, 0:Cout] + q3[:, Cout:2 * Cout]
           + q3[:, 2 * Cout:3 * Cout] + q3[:, 3 * Cout:4 * Cout]) * inv_cnt
    var3 = ex3 - mu3 * mu3
    sc3 = jax.lax.rsqrt(var3 + eps) * g3_ref[...]
    sh3 = be3_ref[...] - mu3 * sc3
    sc3p = jnp.concatenate([sc3, sc3, sc3, sc3], axis=1)            # (1, 4*Cout)
    sh3p = jnp.concatenate([sh3, sh3, sh3, sh3], axis=1)
    z = jnp.maximum(z * sc3p + sh3p, 0.0)

    out_ref[...] = z.reshape(N, H, W, 4 * Cout)


# -----------------------------------------------------------------------------
# Wrapper
# -----------------------------------------------------------------------------
def decoder_block(x_nchw, params):
    N, Cin, H, W = x_nchw.shape
    Cmid = params["w1"].shape[1]
    Cout = params["w3"].shape[1]

    # NCHW -> NHWC; matmul operands in bf16 (kernel accumulates in f32).
    x = jnp.transpose(x_nchw, (0, 2, 3, 1)).astype(jnp.bfloat16)

    w1 = params["w1"].astype(jnp.bfloat16)                               # (Cin, Cmid)
    # All nine deconv taps packed into one wide weight: Wall[:, k*Cmid:(k+1)*Cmid] = wt[k].
    wall = jnp.transpose(params["wt"], (1, 0, 2)).reshape(Cmid, 9 * Cmid) \
              .astype(jnp.bfloat16)
    # Block-diagonal conv3 weight -> one matmul yields the packed output layout.
    w3b = jnp.kron(jnp.eye(4, dtype=params["w3"].dtype),
                   params["w3"]).astype(jnp.bfloat16)                    # (4Cmid, 4Cout)

    f32 = lambda a: a.astype(jnp.float32)
    # NOTE: conv biases b1/bt/b3 are intentionally NOT passed — training-mode BN
    # subtracts the batch mean right after each conv, so they cancel exactly.
    inputs = (x, w1, f32(params["g1"]), f32(params["be1"]),
              wall, f32(params["g2"]), f32(params["be2"]),
              w3b, f32(params["g3"]), f32(params["be3"]))

    def full_spec(shape):
        nd = len(shape)
        return pl.BlockSpec(shape, lambda i, nd=nd: (0,) * nd)

    out_sd = jax.ShapeDtypeStruct((N, H, W, 4 * Cout), jnp.float32)

    # TODO(synk): at production channel counts on v7x (64 MiB VMEM/TC) this
    # single-invocation body should become a tiled two-pass-BN pipeline
    # (pass 1: per-tile sum/sumsq, pass 2: normalize + matmul) with 'parallel'
    # batch/spatial grid axes so both TensorCores share the work.
    packed = pl.pallas_call(
        decoder_block_kernel,
        out_shape=out_sd,
        grid=(1,),
        in_specs=[full_spec(a.shape) for a in inputs],
        out_specs=full_spec((N, H, W, 4 * Cout)),
        compiler_params=pltpu.CompilerParams(
            dimension_semantics=("arbitrary",),
            vmem_limit_bytes=32 * 1024 * 1024),   # explicit scoped-VMEM headroom
    )(*inputs)

    # Single fused relayout: 2x2 pixel interleave of the parity subgrids and
    # NHWC -> NCHW done with ONE transpose.
    y = packed.reshape(N, H, W, 2, 2, Cout)          # (n, m, l, dy, dx, c)
    y = jnp.transpose(y, (0, 5, 1, 3, 2, 4))         # (n, c, m, dy, l, dx)
    return y.reshape(N, Cout, 2 * H, 2 * W)


# -----------------------------------------------------------------------------
# Plain-JAX reference (PyTorch semantics, NCHW, f32, with biases) for verification
# -----------------------------------------------------------------------------
def decoder_block_reference(x, params):
    eps = 1e-5

    def bn_relu(h, g, b):
        mu = jnp.mean(h, axis=(0, 2, 3), keepdims=True)
        var = jnp.mean(jnp.square(h - mu), axis=(0, 2, 3), keepdims=True)
        h = (h - mu) * jax.lax.rsqrt(var + eps) * g.reshape(1, -1, 1, 1) \
            + b.reshape(1, -1, 1, 1)
        return jnp.maximum(h, 0.0)

    Cmid = params["w1"].shape[1]
    h = jnp.einsum("nchw,cd->ndhw", x, params["w1"]) + params["b1"].reshape(1, -1, 1, 1)
    h = bn_relu(h, params["g1"], params["be1"])

    # ConvTranspose2d(3,3,stride=2,pad=1,out_pad=1) == dilated direct conv with
    # flipped kernel, lhs_dilation=2, padding=(k-1-p, k-1-p+out_pad) = (1,2).
    wt = params["wt"].reshape(3, 3, Cmid, Cmid)          # [ky, kx, cin, cout]
    wdir = jnp.flip(jnp.flip(wt, axis=0), axis=1)        # spatial flip
    wdir = jnp.transpose(wdir, (3, 2, 0, 1))             # OIHW
    h = jax.lax.conv_general_dilated(
        h, wdir, window_strides=(1, 1), padding=((1, 2), (1, 2)),
        lhs_dilation=(2, 2),
        dimension_numbers=("NCHW", "OIHW", "NCHW")) + params["bt"].reshape(1, -1, 1, 1)
    h = bn_relu(h, params["g2"], params["be2"])

    h = jnp.einsum("nchw,cd->ndhw", h, params["w3"]) + params["b3"].reshape(1, -1, 1, 1)
    h = bn_relu(h, params["g3"], params["be3"])
    return h


# -----------------------------------------------------------------------------
def make_params(key, in_channels, n_filters):
    Cmid = in_channels // 4
    ks = jax.random.split(key, 12)
    p = {
        # conv1: PyTorch weight [Cmid, Cin, 1, 1] stored transposed as [Cin, Cmid]
        "w1": 0.3 * jax.random.normal(ks[0], (in_channels, Cmid), jnp.float32),
        "b1": 0.1 * jax.random.normal(ks[1], (1, Cmid), jnp.float32),
        "g1": 1.0 + 0.1 * jax.random.normal(ks[2], (1, Cmid), jnp.float32),
        "be1": 0.1 * jax.random.normal(ks[3], (1, Cmid), jnp.float32),
        # deconv2: PyTorch weight [Cmid_in, Cmid_out, 3, 3] stored as wt[ky*3+kx, cin, cout]
        "wt": 0.3 * jax.random.normal(ks[4], (9, Cmid, Cmid), jnp.float32),
        "bt": 0.1 * jax.random.normal(ks[5], (1, Cmid), jnp.float32),
        "g2": 1.0 + 0.1 * jax.random.normal(ks[6], (1, Cmid), jnp.float32),
        "be2": 0.1 * jax.random.normal(ks[7], (1, Cmid), jnp.float32),
        # conv3: PyTorch weight [Cout, Cmid, 1, 1] stored transposed as [Cmid, Cout]
        "w3": 0.3 * jax.random.normal(ks[8], (Cmid, n_filters), jnp.float32),
        "b3": 0.1 * jax.random.normal(ks[9], (1, n_filters), jnp.float32),
        "g3": 1.0 + 0.1 * jax.random.normal(ks[10], (1, n_filters), jnp.float32),
        "be3": 0.1 * jax.random.normal(ks[11], (1, n_filters), jnp.float32),
    }
    return p


if __name__ == "__main__":
    key = jax.random.PRNGKey(0)
    k_x, k_p = jax.random.split(key)

    N, in_channels, H, W = 2, 16, 16, 16
    n_filters = 8

    x = jax.random.normal(k_x, (N, in_channels, H, W), jnp.float32)  # NCHW
    params = make_params(k_p, in_channels, n_filters)

    out = decoder_block(x, params)
    jax.block_until_ready(out)

    ref = decoder_block_reference(x, params)
    assert out.shape == (N, n_filters, 2 * H, 2 * W), out.shape

    # Tolerance accounts for bf16 MXU operands (f32 accumulation): expected
    # rounding noise is ~0.3-0.5% of unit-variance activations, so 3e-2 is a
    # ~8-10 sigma bound; the mean-error check guards against masking real bugs.
    out_np, ref_np = np.asarray(out), np.asarray(ref)
    np.testing.assert_allclose(out_np, ref_np, atol=3e-2, rtol=3e-2)
    assert float(np.mean(np.abs(out_np - ref_np))) < 5e-3

    print("KERNEL_OK")
</pallas_src>

<mosaic_0001>
module attributes {stable_mosaic.version = 11 : i64} {
  func.func @decoder_block_kernel(%arg0: i32, %arg1: memref<2x16x16x16xbf16, #tpu.memory_space<vmem>>, %arg2: memref<16x4xbf16, #tpu.memory_space<vmem>>, %arg3: memref<1x4xf32, #tpu.memory_space<vmem>>, %arg4: memref<1x4xf32, #tpu.memory_space<vmem>>, %arg5: memref<4x36xbf16, #tpu.memory_space<vmem>>, %arg6: memref<1x4xf32, #tpu.memory_space<vmem>>, %arg7: memref<1x4xf32, #tpu.memory_space<vmem>>, %arg8: memref<16x32xbf16, #tpu.memory_space<vmem>>, %arg9: memref<1x8xf32, #tpu.memory_space<vmem>>, %arg10: memref<1x8xf32, #tpu.memory_space<vmem>>, %arg11: memref<2x16x16x32xf32, #tpu.memory_space<vmem>>) attributes {dimension_semantics = [#tpu.dimension_semantics<arbitrary>], iteration_bounds = array<i64: 1>, scalar_prefetch = 0 : i64, scratch_operands = 0 : i64, tpu.core_type = #tpu.core_type<tc>, window_params = [{pipeline_mode = #tpu.pipeline_mode<synchronous>, transform_indices = @transform_0, window_bounds = array<i64: 2, 16, 16, 16>}, {pipeline_mode = #tpu.pipeline_mode<synchronous>, transform_indices = @transform_1, window_bounds = array<i64: 16, 4>}, {pipeline_mode = #tpu.pipeline_mode<synchronous>, transform_indices = @transform_2, window_bounds = array<i64: 1, 4>}, {pipeline_mode = #tpu.pipeline_mode<synchronous>, transform_indices = @transform_3, window_bounds = array<i64: 1, 4>}, {pipeline_mode = #tpu.pipeline_mode<synchronous>, transform_indices = @transform_4, window_bounds = array<i64: 4, 36>}, {pipeline_mode = #tpu.pipeline_mode<synchronous>, transform_indices = @transform_5, window_bounds = array<i64: 1, 4>}, {pipeline_mode = #tpu.pipeline_mode<synchronous>, transform_indices = @transform_6, window_bounds = array<i64: 1, 4>}, {pipeline_mode = #tpu.pipeline_mode<synchronous>, transform_indices = @transform_7, window_bounds = array<i64: 16, 32>}, {pipeline_mode = #tpu.pipeline_mode<synchronous>, transform_indices = @transform_8, window_bounds = array<i64: 1, 8>}, {pipeline_mode = #tpu.pipeline_mode<synchronous>, transform_indices = @transform_9, window_bounds = array<i64: 1, 8>}, {pipeline_mode = #tpu.pipeline_mode<synchronous>, transform_indices = @transform_10, window_bounds = array<i64: 2, 16, 16, 32>}]} {
    %c0 = arith.constant 0 : index
    %c0_0 = arith.constant 0 : index
    %c0_1 = arith.constant 0 : index
    %c0_2 = arith.constant 0 : index
    %0 = vector.load %arg1[%c0, %c0_0, %c0_1, %c0_2] : memref<2x16x16x16xbf16, #tpu.memory_space<vmem>>, vector<2x16x16x16xbf16>
    %1 = vector.shape_cast %0 : vector<2x16x16x16xbf16> to vector<512x16xbf16>
    %c0_3 = arith.constant 0 : index
    %c0_4 = arith.constant 0 : index
    %2 = vector.load %arg2[%c0_3, %c0_4] : memref<16x4xbf16, #tpu.memory_space<vmem>>, vector<16x4xbf16>
    %cst = arith.constant dense<0.000000e+00> : vector<512x4xf32>
    %3 = tpu.matmul %1, %2, %cst {dimension_numbers = #tpu.dot_dimension_numbers<[1], [0], [0], [1], [0, 0, 1, 1], [], []>} : vector<512x16xbf16>, vector<16x4xbf16>, vector<512x4xf32> -> vector<512x4xf32>
    %cst_5 = arith.constant dense<0.000000e+00> : vector<4xf32>
    %4 = vector.multi_reduction <add>, %3, %cst_5 [0] : vector<512x4xf32> to vector<4xf32>
    %5 = vector.shape_cast %4 : vector<4xf32> to vector<1x4xf32>
    %cst_6 = arith.constant 5.120000e+02 : f32
    %6 = vector.broadcast %cst_6 : f32 to vector<1x4xf32>
    %7 = arith.divf %5, %6 : vector<1x4xf32>
    %8 = arith.mulf %3, %3 : vector<512x4xf32>
    %cst_7 = arith.constant dense<0.000000e+00> : vector<4xf32>
    %9 = vector.multi_reduction <add>, %8, %cst_7 [0] : vector<512x4xf32> to vector<4xf32>
    %10 = vector.shape_cast %9 : vector<4xf32> to vector<1x4xf32>
    %cst_8 = arith.constant 5.120000e+02 : f32
    %11 = vector.broadcast %cst_8 : f32 to vector<1x4xf32>
    %12 = arith.divf %10, %11 : vector<1x4xf32>
    %13 = arith.mulf %7, %7 : vector<1x4xf32>
    %14 = arith.subf %12, %13 : vector<1x4xf32>
    %cst_9 = arith.constant 9.99999974E-6 : f32
    %15 = vector.broadcast %cst_9 : f32 to vector<1x4xf32>
    %16 = arith.addf %14, %15 : vector<1x4xf32>
    %17 = math.rsqrt %16 : vector<1x4xf32>
    %c0_10 = arith.constant 0 : index
    %c0_11 = arith.constant 0 : index
    %18 = vector.load %arg3[%c0_10, %c0_11] : memref<1x4xf32, #tpu.memory_space<vmem>>, vector<1x4xf32>
    %19 = arith.mulf %17, %18 : vector<1x4xf32>
    %20 = vector.broadcast %19 : vector<1x4xf32> to vector<512x4xf32>
    %21 = arith.mulf %3, %20 : vector<512x4xf32>
    %c0_12 = arith.constant 0 : index
    %c0_13 = arith.constant 0 : index
    %22 = vector.load %arg4[%c0_12, %c0_13] : memref<1x4xf32, #tpu.memory_space<vmem>>, vector<1x4xf32>
    %23 = arith.mulf %7, %19 : vector<1x4xf32>
    %24 = arith.subf %22, %23 : vector<1x4xf32>
    %25 = vector.broadcast %24 : vector<1x4xf32> to vector<512x4xf32>
    %26 = arith.addf %21, %25 : vector<512x4xf32>
    %cst_14 = arith.constant 0.000000e+00 : f32
    %27 = vector.broadcast %cst_14 : f32 to vector<512x4xf32>
    %28 = arith.maximumf %26, %27 : vector<512x4xf32>
    %29 = arith.truncf %28 : vector<512x4xf32> to vector<512x4xbf16>
    %c0_15 = arith.constant 0 : index
    %c0_16 = arith.constant 0 : index
    %30 = vector.load %arg5[%c0_15, %c0_16] : memref<4x36xbf16, #tpu.memory_space<vmem>>, vector<4x36xbf16>
    %cst_17 = arith.constant dense<0.000000e+00> : vector<512x36xf32>
    %31 = tpu.matmul %29, %30, %cst_17 {dimension_numbers = #tpu.dot_dimension_numbers<[1], [0], [0], [1], [0, 0, 1, 1], [], []>} : vector<512x4xbf16>, vector<4x36xbf16>, vector<512x36xf32> -> vector<512x36xf32>
    %32 = vector.shape_cast %31 : vector<512x36xf32> to vector<2x16x16x36xf32>
    %33 = vector.extract_strided_slice %32 {offsets = [0, 0, 0, 16], sizes = [2, 16, 16, 4], strides = [1, 1, 1, 1]} : vector<2x16x16x36xf32> to vector<2x16x16x4xf32>
    %34 = vector.extract_strided_slice %32 {offsets = [0, 0, 0, 20], sizes = [2, 16, 16, 4], strides = [1, 1, 1, 1]} : vector<2x16x16x36xf32> to vector<2x16x16x4xf32>
    %35 = vector.extract_strided_slice %32 {offsets = [0, 0, 0, 12], sizes = [2, 16, 16, 4], strides = [1, 1, 1, 1]} : vector<2x16x16x36xf32> to vector<2x16x16x4xf32>
    %36 = vector.extract_strided_slice %35 {offsets = [0, 0, 1, 0], sizes = [2, 16, 15, 4], strides = [1, 1, 1, 1]} : vector<2x16x16x4xf32> to vector<2x16x15x4xf32>
    %cst_18 = arith.constant 0.000000e+00 : f32
    %37 = vector.broadcast %cst_18 : f32 to vector<2x16x1x4xf32>
    %38 = tpu.concatenate %36, %37 in 2 : vector<2x16x15x4xf32>, vector<2x16x1x4xf32> -> vector<2x16x16x4xf32>
    %39 = arith.addf %34, %38 : vector<2x16x16x4xf32>
    %40 = vector.extract_strided_slice %32 {offsets = [0, 0, 0, 28], sizes = [2, 16, 16, 4], strides = [1, 1, 1, 1]} : vector<2x16x16x36xf32> to vector<2x16x16x4xf32>
    %41 = vector.extract_strided_slice %32 {offsets = [0, 0, 0, 4], sizes = [2, 16, 16, 4], strides = [1, 1, 1, 1]} : vector<2x16x16x36xf32> to vector<2x16x16x4xf32>
    %42 = vector.extract_strided_slice %41 {offsets = [0, 1, 0, 0], sizes = [2, 15, 16, 4], strides = [1, 1, 1, 1]} : vector<2x16x16x4xf32> to vector<2x15x16x4xf32>
    %cst_19 = arith.constant 0.000000e+00 : f32
    %43 = vector.broadcast %cst_19 : f32 to vector<2x1x16x4xf32>
    %44 = tpu.concatenate %42, %43 in 1 : vector<2x15x16x4xf32>, vector<2x1x16x4xf32> -> vector<2x16x16x4xf32>
    %45 = arith.addf %40, %44 : vector<2x16x16x4xf32>
    %46 = vector.extract_strided_slice %32 {offsets = [0, 0, 0, 32], sizes = [2, 16, 16, 4], strides = [1, 1, 1, 1]} : vector<2x16x16x36xf32> to vector<2x16x16x4xf32>
    %47 = vector.extract_strided_slice %32 {offsets = [0, 0, 0, 24], sizes = [2, 16, 16, 4], strides = [1, 1, 1, 1]} : vector<2x16x16x36xf32> to vector<2x16x16x4xf32>
    %48 = vector.extract_strided_slice %47 {offsets = [0, 0, 1, 0], sizes = [2, 16, 15, 4], strides = [1, 1, 1, 1]} : vector<2x16x16x4xf32> to vector<2x16x15x4xf32>
    %cst_20 = arith.constant 0.000000e+00 : f32
    %49 = vector.broadcast %cst_20 : f32 to vector<2x16x1x4xf32>
    %50 = tpu.concatenate %48, %49 in 2 : vector<2x16x15x4xf32>, vector<2x16x1x4xf32> -> vector<2x16x16x4xf32>
    %51 = arith.addf %46, %50 : vector<2x16x16x4xf32>
    %52 = vector.extract_strided_slice %32 {offsets = [0, 0, 0, 8], sizes = [2, 16, 16, 4], strides = [1, 1, 1, 1]} : vector<2x16x16x36xf32> to vector<2x16x16x4xf32>
    %53 = vector.extract_strided_slice %32 {offsets = [0, 0, 0, 0], sizes = [2, 16, 16, 4], strides = [1, 1, 1, 1]} : vector<2x16x16x36xf32> to vector<2x16x16x4xf32>
    %54 = vector.extract_strided_slice %53 {offsets = [0, 0, 1, 0], sizes = [2, 16, 15, 4], strides = [1, 1, 1, 1]} : vector<2x16x16x4xf32> to vector<2x16x15x4xf32>
    %cst_21 = arith.constant 0.000000e+00 : f32
    %55 = vector.broadcast %cst_21 : f32 to vector<2x16x1x4xf32>
    %56 = tpu.concatenate %54, %55 in 2 : vector<2x16x15x4xf32>, vector<2x16x1x4xf32> -> vector<2x16x16x4xf32>
    %57 = arith.addf %52, %56 : vector<2x16x16x4xf32>
    %58 = vector.extract_strided_slice %57 {offsets = [0, 1, 0, 0], sizes = [2, 15, 16, 4], strides = [1, 1, 1, 1]} : vector<2x16x16x4xf32> to vector<2x15x16x4xf32>
    %cst_22 = arith.constant 0.000000e+00 : f32
    %59 = vector.broadcast %cst_22 : f32 to vector<2x1x16x4xf32>
    %60 = tpu.concatenate %58, %59 in 1 : vector<2x15x16x4xf32>, vector<2x1x16x4xf32> -> vector<2x16x16x4xf32>
    %61 = arith.addf %51, %60 : vector<2x16x16x4xf32>
    %62 = tpu.concatenate %33, %39, %45, %61 in 3 : vector<2x16x16x4xf32>, vector<2x16x16x4xf32>, vector<2x16x16x4xf32>, vector<2x16x16x4xf32> -> vector<2x16x16x16xf32>
    %63 = vector.shape_cast %62 : vector<2x16x16x16xf32> to vector<512x16xf32>
    %cst_23 = arith.constant dense<0.000000e+00> : vector<16xf32>
    %64 = vector.multi_reduction <add>, %63, %cst_23 [0] : vector<512x16xf32> to vector<16xf32>
    %65 = vector.shape_cast %64 : vector<16xf32> to vector<1x16xf32>
    %66 = arith.mulf %63, %63 : vector<512x16xf32>
    %cst_24 = arith.constant dense<0.000000e+00> : vector<16xf32>
    %67 = vector.multi_reduction <add>, %66, %cst_24 [0] : vector<512x16xf32> to vector<16xf32>
    %68 = vector.shape_cast %67 : vector<16xf32> to vector<1x16xf32>
    %69 = vector.extract_strided_slice %65 {offsets = [0, 0], sizes = [1, 4], strides = [1, 1]} : vector<1x16xf32> to vector<1x4xf32>
    %70 = vector.extract_strided_slice %65 {offsets = [0, 4], sizes = [1, 4], strides = [1, 1]} : vector<1x16xf32> to vector<1x4xf32>
    %71 = arith.addf %69, %70 : vector<1x4xf32>
    %72 = vector.extract_strided_slice %65 {offsets = [0, 8], sizes = [1, 4], strides = [1, 1]} : vector<1x16xf32> to vector<1x4xf32>
    %73 = arith.addf %71, %72 : vector<1x4xf32>
    %74 = vector.extract_strided_slice %65 {offsets = [0, 12], sizes = [1, 4], strides = [1, 1]} : vector<1x16xf32> to vector<1x4xf32>
    %75 = arith.addf %73, %74 : vector<1x4xf32>
    %cst_25 = arith.constant 4.8828125E-4 : f32
    %76 = vector.broadcast %cst_25 : f32 to vector<1x4xf32>
    %77 = arith.mulf %75, %76 : vector<1x4xf32>
    %78 = vector.extract_strided_slice %68 {offsets = [0, 0], sizes = [1, 4], strides = [1, 1]} : vector<1x16xf32> to vector<1x4xf32>
    %79 = vector.extract_strided_slice %68 {offsets = [0, 4], sizes = [1, 4], strides = [1, 1]} : vector<1x16xf32> to vector<1x4xf32>
    %80 = arith.addf %78, %79 : vector<1x4xf32>
    %81 = vector.extract_strided_slice %68 {offsets = [0, 8], sizes = [1, 4], strides = [1, 1]} : vector<1x16xf32> to vector<1x4xf32>
    %82 = arith.addf %80, %81 : vector<1x4xf32>
    %83 = vector.extract_strided_slice %68 {offsets = [0, 12], sizes = [1, 4], strides = [1, 1]} : vector<1x16xf32> to vector<1x4xf32>
    %84 = arith.addf %82, %83 : vector<1x4xf32>
    %cst_26 = arith.constant 4.8828125E-4 : f32
    %85 = vector.broadcast %cst_26 : f32 to vector<1x4xf32>
    %86 = arith.mulf %84, %85 : vector<1x4xf32>
    %87 = arith.mulf %77, %77 : vector<1x4xf32>
    %88 = arith.subf %86, %87 : vector<1x4xf32>
    %cst_27 = arith.constant 9.99999974E-6 : f32
    %89 = vector.broadcast %cst_27 : f32 to vector<1x4xf32>
    %90 = arith.addf %88, %89 : vector<1x4xf32>
    %91 = math.rsqrt %90 : vector<1x4xf32>
    %c0_28 = arith.constant 0 : index
    %c0_29 = arith.constant 0 : index
    %92 = vector.load %arg6[%c0_28, %c0_29] : memref<1x4xf32, #tpu.memory_space<vmem>>, vector<1x4xf32>
    %93 = arith.mulf %91, %92 : vector<1x4xf32>
    %c0_30 = arith.constant 0 : index
    %c0_31 = arith.constant 0 : index
    %94 = vector.load %arg7[%c0_30, %c0_31] : memref<1x4xf32, #tpu.memory_space<vmem>>, vector<1x4xf32>
    %95 = arith.mulf %77, %93 : vector<1x4xf32>
    %96 = arith.subf %94, %95 : vector<1x4xf32>
    %97 = tpu.concatenate %93, %93, %93, %93 in 1 : vector<1x4xf32>, vector<1x4xf32>, vector<1x4xf32>, vector<1x4xf32> -> vector<1x16xf32>
    %98 = tpu.concatenate %96, %96, %96, %96 in 1 : vector<1x4xf32>, vector<1x4xf32>, vector<1x4xf32>, vector<1x4xf32> -> vector<1x16xf32>
    %99 = vector.broadcast %97 : vector<1x16xf32> to vector<512x16xf32>
    %100 = arith.mulf %63, %99 : vector<512x16xf32>
    %101 = vector.broadcast %98 : vector<1x16xf32> to vector<512x16xf32>
    %102 = arith.addf %100, %101 : vector<512x16xf32>
    %cst_32 = arith.constant 0.000000e+00 : f32
    %103 = vector.broadcast %cst_32 : f32 to vector<512x16xf32>
    %104 = arith.maximumf %102, %103 : vector<512x16xf32>
    %105 = arith.truncf %104 : vector<512x16xf32> to vector<512x16xbf16>
    %c0_33 = arith.constant 0 : index
    %c0_34 = arith.constant 0 : index
    %106 = vector.load %arg8[%c0_33, %c0_34] : memref<16x32xbf16, #tpu.memory_space<vmem>>, vector<16x32xbf16>
    %cst_35 = arith.constant dense<0.000000e+00> : vector<512x32xf32>
    %107 = tpu.matmul %105, %106, %cst_35 {dimension_numbers = #tpu.dot_dimension_numbers<[1], [0], [0], [1], [0, 0, 1, 1], [], []>} : vector<512x16xbf16>, vector<16x32xbf16>, vector<512x32xf32> -> vector<512x32xf32>
    %cst_36 = arith.constant dense<0.000000e+00> : vector<32xf32>
    %108 = vector.multi_reduction <add>, %107, %cst_36 [0] : vector<512x32xf32> to vector<32xf32>
    %109 = vector.shape_cast %108 : vector<32xf32> to vector<1x32xf32>
    %110 = arith.mulf %107, %107 : vector<512x32xf32>
    %cst_37 = arith.constant dense<0.000000e+00> : vector<32xf32>
    %111 = vector.multi_reduction <add>, %110, %cst_37 [0] : vector<512x32xf32> to vector<32xf32>
    %112 = vector.shape_cast %111 : vector<32xf32> to vector<1x32xf32>
    %113 = vector.extract_strided_slice %109 {offsets = [0, 0], sizes = [1, 8], strides = [1, 1]} : vector<1x32xf32> to vector<1x8xf32>
    %114 = vector.extract_strided_slice %109 {offsets = [0, 8], sizes = [1, 8], strides = [1, 1]} : vector<1x32xf32> to vector<1x8xf32>
    %115 = arith.addf %113, %114 : vector<1x8xf32>
    %116 = vector.extract_strided_slice %109 {offsets = [0, 16], sizes = [1, 8], strides = [1, 1]} : vector<1x32xf32> to vector<1x8xf32>
    %117 = arith.addf %115, %116 : vector<1x8xf32>
    %118 = vector.extract_strided_slice %109 {offsets = [0, 24], sizes = [1, 8], strides = [1, 1]} : vector<1x32xf32> to vector<1x8xf32>
    %119 = arith.addf %117, %118 : vector<1x8xf32>
    %cst_38 = arith.constant 4.8828125E-4 : f32
    %120 = vector.broadcast %cst_38 : f32 to vector<1x8xf32>
    %121 = arith.mulf %119, %120 : vector<1x8xf32>
    %122 = vector.extract_strided_slice %112 {offsets = [0, 0], sizes = [1, 8], strides = [1, 1]} : vector<1x32xf32> to vector<1x8xf32>
    %123 = vector.extract_strided_slice %112 {offsets = [0, 8], sizes = [1, 8], strides = [1, 1]} : vector<1x32xf32> to vector<1x8xf32>
    %124 = arith.addf %122, %123 : vector<1x8xf32>
    %125 = vector.extract_strided_slice %112 {offsets = [0, 16], sizes = [1, 8], strides = [1, 1]} : vector<1x32xf32> to vector<1x8xf32>
    %126 = arith.addf %124, %125 : vector<1x8xf32>
    %127 = vector.extract_strided_slice %112 {offsets = [0, 24], sizes = [1, 8], strides = [1, 1]} : vector<1x32xf32> to vector<1x8xf32>
    %128 = arith.addf %126, %127 : vector<1x8xf32>
    %cst_39 = arith.constant 4.8828125E-4 : f32
    %129 = vector.broadcast %cst_39 : f32 to vector<1x8xf32>
    %130 = arith.mulf %128, %129 : vector<1x8xf32>
    %131 = arith.mulf %121, %121 : vector<1x8xf32>
    %132 = arith.subf %130, %131 : vector<1x8xf32>
    %cst_40 = arith.constant 9.99999974E-6 : f32
    %133 = vector.broadcast %cst_40 : f32 to vector<1x8xf32>
    %134 = arith.addf %132, %133 : vector<1x8xf32>
    %135 = math.rsqrt %134 : vector<1x8xf32>
    %c0_41 = arith.constant 0 : index
    %c0_42 = arith.constant 0 : index
    %136 = vector.load %arg9[%c0_41, %c0_42] : memref<1x8xf32, #tpu.memory_space<vmem>>, vector<1x8xf32>
    %137 = arith.mulf %135, %136 : vector<1x8xf32>
    %c0_43 = arith.constant 0 : index
    %c0_44 = arith.constant 0 : index
    %138 = vector.load %arg10[%c0_43, %c0_44] : memref<1x8xf32, #tpu.memory_space<vmem>>, vector<1x8xf32>
    %139 = arith.mulf %121, %137 : vector<1x8xf32>
    %140 = arith.subf %138, %139 : vector<1x8xf32>
    %141 = tpu.concatenate %137, %137, %137, %137 in 1 : vector<1x8xf32>, vector<1x8xf32>, vector<1x8xf32>, vector<1x8xf32> -> vector<1x32xf32>
    %142 = tpu.concatenate %140, %140, %140, %140 in 1 : vector<1x8xf32>, vector<1x8xf32>, vector<1x8xf32>, vector<1x8xf32> -> vector<1x32xf32>
    %143 = vector.broadcast %141 : vector<1x32xf32> to vector<512x32xf32>
    %144 = arith.mulf %107, %143 : vector<512x32xf32>
    %145 = vector.broadcast %142 : vector<1x32xf32> to vector<512x32xf32>
    %146 = arith.addf %144, %145 : vector<512x32xf32>
    %cst_45 = arith.constant 0.000000e+00 : f32
    %147 = vector.broadcast %cst_45 : f32 to vector<512x32xf32>
    %148 = arith.maximumf %146, %147 : vector<512x32xf32>
    %149 = vector.shape_cast %148 : vector<512x32xf32> to vector<2x16x16x32xf32>
    %c0_46 = arith.constant 0 : index
    %c0_47 = arith.constant 0 : index
    %c0_48 = arith.constant 0 : index
    %c0_49 = arith.constant 0 : index
    %150 = vector.load %arg11[%c0_46, %c0_47, %c0_48, %c0_49] : memref<2x16x16x32xf32, #tpu.memory_space<vmem>>, vector<2x16x16x32xf32>
    tpu.vector_store %arg11[%c0_46, %c0_47, %c0_48, %c0_49], %149 {strides = array<i32>} : memref<2x16x16x32xf32, #tpu.memory_space<vmem>>, vector<2x16x16x32xf32>,
    return
  }
  func.func @transform_0(%arg0: i32) -> (i32, i32, i32, i32) {
    %c0_i32 = arith.constant 0 : i32
    %c0_i32_0 = arith.constant 0 : i32
    %c0_i32_1 = arith.constant 0 : i32
    %c0_i32_2 = arith.constant 0 : i32
    %c0_i32_3 = arith.constant 0 : i32
    return %c0_i32, %c0_i32_0, %c0_i32_1, %c0_i32_2 : i32, i32, i32, i32
  }
  func.func @transform_1(%arg0: i32) -> (i32, i32) {
    %c0_i32 = arith.constant 0 : i32
    %c0_i32_0 = arith.constant 0 : i32
    %c0_i32_1 = arith.constant 0 : i32
    return %c0_i32, %c0_i32_0 : i32, i32
  }
  func.func @transform_2(%arg0: i32) -> (i32, i32) {
    %c0_i32 = arith.constant 0 : i32
    %c0_i32_0 = arith.constant 0 : i32
    %c0_i32_1 = arith.constant 0 : i32
    return %c0_i32, %c0_i32_0 : i32, i32
  }
  func.func @transform_3(%arg0: i32) -> (i32, i32) {
    %c0_i32 = arith.constant 0 : i32
    %c0_i32_0 = arith.constant 0 : i32
    %c0_i32_1 = arith.constant 0 : i32
    return %c0_i32, %c0_i32_0 : i32, i32
  }
  func.func @transform_4(%arg0: i32) -> (i32, i32) {
    %c0_i32 = arith.constant 0 : i32
    %c0_i32_0 = arith.constant 0 : i32
    %c0_i32_1 = arith.constant 0 : i32
    return %c0_i32, %c0_i32_0 : i32, i32
  }
  func.func @transform_5(%arg0: i32) -> (i32, i32) {
    %c0_i32 = arith.constant 0 : i32
    %c0_i32_0 = arith.constant 0 : i32
    %c0_i32_1 = arith.constant 0 : i32
    return %c0_i32, %c0_i32_0 : i32, i32
  }
  func.func @transform_6(%arg0: i32) -> (i32, i32) {
    %c0_i32 = arith.constant 0 : i32
    %c0_i32_0 = arith.constant 0 : i32
    %c0_i32_1 = arith.constant 0 : i32
    return %c0_i32, %c0_i32_0 : i32, i32
  }
  func.func @transform_7(%arg0: i32) -> (i32, i32) {
    %c0_i32 = arith.constant 0 : i32
    %c0_i32_0 = arith.constant 0 : i32
    %c0_i32_1 = arith.constant 0 : i32
    return %c0_i32, %c0_i32_0 : i32, i32
  }
  func.func @transform_8(%arg0: i32) -> (i32, i32) {
    %c0_i32 = arith.constant 0 : i32
    %c0_i32_0 = arith.constant 0 : i32
    %c0_i32_1 = arith.constant 0 : i32
    return %c0_i32, %c0_i32_0 : i32, i32
  }
  func.func @transform_9(%arg0: i32) -> (i32, i32) {
    %c0_i32 = arith.constant 0 : i32
    %c0_i32_0 = arith.constant 0 : i32
    %c0_i32_1 = arith.constant 0 : i32
    return %c0_i32, %c0_i32_0 : i32, i32
  }
  func.func @transform_10(%arg0: i32) -> (i32, i32, i32, i32) {
    %c0_i32 = arith.constant 0 : i32
    %c0_i32_0 = arith.constant 0 : i32
    %c0_i32_1 = arith.constant 0 : i32
    %c0_i32_2 = arith.constant 0 : i32
    %c0_i32_3 = arith.constant 0 : i32
    return %c0_i32, %c0_i32_0, %c0_i32_1, %c0_i32_2 : i32, i32, i32, i32
  }
}

</mosaic_0001>

<bundles_post_ra>
// kernel: tpu_custom_call.1
= control target key start
LH: loop header
LB: loop body
LE: loop exit
PB: predicated region body
PF: predicated region fallthrough
CT: control target
= control target key end

     0   :  { %15 = vsyncpa [#allocation3], 0  ;;  %s12074_s0 = inlined_call_operand.hbm [shape: bf16[2,16,16,16], index: 0, kind: input, shape index: {}]   ;;  %s12075_s1 = inlined_call_operand.vmem [shape: bf16[16,4], index: 1, kind: input, shape index: {}]   ;;  %s12076_s2 = inlined_call_operand.vmem [shape: f32[1,4], index: 2, kind: input, shape index: {}]   ;;  %s12077_s3 = inlined_call_operand.vmem [shape: f32[1,4], index: 3, kind: input, shape index: {}]   ;;  %s12078_s4 = inlined_call_operand.vmem [shape: bf16[4,36], index: 4, kind: input, shape index: {}]   ;;  %s12079_s5 = inlined_call_operand.vmem [shape: f32[1,4], index: 5, kind: input, shape index: {}]   ;;  %s12080_s6 = inlined_call_operand.vmem [shape: f32[1,4], index: 6, kind: input, shape index: {}]   ;;  %s12081_s7 = inlined_call_operand.vmem [shape: bf16[16,32], index: 7, kind: input, shape index: {}]   ;;  %s12082_s8 = inlined_call_operand.vmem [shape: f32[1,8], index: 8, kind: input, shape index: {}]   ;;  %s12083_s9 = inlined_call_operand.vmem [shape: f32[1,8], index: 9, kind: input, shape index: {}]   ;;  %s12084_s10 = inlined_call_operand.hbm [shape: f32[2,16,16,32], index: 10, kind: output, shape index: {}]  }
   0x1   :  { %16 = vsyncpa [#allocation4], 0  ;;  %s6031_s13 = smov [#allocation2]   ;;  %s5983_s17 = scalar_lea.hbm %s12074_s0, 4096 }
   0x2   :  { %s22_s14 = sshll.u32 %s6031_s13, 4  ;;  %p5984_p0 = scmp.ne.s32.totalorder %s12074_s0, %s5983_s17  ;;  %s23_s14 = int_to_ptr.vmem [resolvable:$true] %s22_s14 }
   0x3   :  { %p5987_p1 = scmp.lt.u32.totalorder %s5983_s17, %s12074_s0 }
   0x5   :  { %p5989_p2 = pnand %p5987_p1, %p5984_p0 }
   0x7   :  { %5992 = shalt.err (!%p5989_p2)
}
   0x8   :  { %s5993_s22 = scalar_lea.vmem %s23_s14, 4096  ;;  %p5998_p4 = scmp.lt.s32.totalorder %s23_s14, %s23_s14 }
   0x9   :  { %p5994_p3 = scmp.ne.s32.totalorder %s23_s14, %s5993_s22  ;;  %p5999_p5 = scmp.lt.s32.totalorder %s5993_s22, %s5993_s22 }
   0xb   :  { %p6000_p6 = por %p5999_p5, %p5998_p4 }
   0xd   :  { %p6001_p7 = pnand %p6000_p6, %p5994_p3 }
   0xf   :  { %6004 = shalt.err (!%p6001_p7)
}
  0x10   :  { %s6032_s23 = smov 64   ;;  %s6033_s24 = smov 4  }
  0x11   :  { %28 = dma.hbm_to_vmem [thread:$0]  %s12074_s0, 4096, %s23_s14, [#allocation3], %s6032_s23, %s6032_s23, %s6033_s24  }
  0x12   :  { %6027 = dma.done.wait [#allocation3], 4096  }
  0x13   :  { %6028 = vsyncadd [#allocation3], 4294963200  ;;  %v5943_v0 = vld [vmem:[%s12075_s1] sm:$0xff]   ;;  %vm283_vm0 = vcmask 130048   ;;  %v5945_v2 = vld [vmem:[#allocation2 + $0x8] sm:$0xff]   ;;  %vm1343_vm1 = vcmask 1041408  }
  0x14   :  { %v5944_v1 = vld [vmem:[#allocation2] sm:$0xff]   ;;  %5726 = vmatprep.subr.bf16.mxu0 %v5943_v0  ;;  %5924 = vmatprep.subr.bf16.mxu1 %v5943_v0  ;;  %v5946_v3 = vld [vmem:[#allocation2 + $0x10] sm:$0xff]   ;;  %v5947_v4 = vld [vmem:[#allocation2 + $0x18] sm:$0xff]   ;;  %vm669_vm2 = vcmask 31744   ;;  %vm1700_vm3 = vcmask 1046528   ;;  %s6037_s12 = smov 8  }
  0x15   :  { %5727 = vmatpush3.bf16.msra.mxu0 %v5943_v0  ;;  %5728 = vmatprep.mubr.msk.bf16.mxu0 %vm283_vm0, %v5944_v1  ;;  %v5948_v5 = vld [vmem:[#allocation2 + $0x20] sm:$0xff]   ;;  %v5949_v6 = vld [vmem:[#allocation2 + $0x28] sm:$0xff]   ;;  %v5950_v7 = vld [vmem:[#allocation2 + $0x30] sm:$0xff]   ;;  %s6038_s13 = smov 108   ;;  %vm3665_vm4 = vcmask 64512   ;;  %vm3730_vm5 = vcmask 97280  }
  0x16   :  { %5925 = vmatpush3.bf16.msra.mxu1 %v5943_v0  ;;  %v5960_v8 = vld [vmem:[#allocation2 + $0x80] sm:$0xff]   ;;  %v5961_v9 = vld [vmem:[#allocation2 + $0x88] sm:$0xff]   ;;  %v5962_v10 = vld [vmem:[#allocation2 + $0x90] sm:$0xff]   ;;  %s6039_s14 = smov 120   ;;  %s6040_s15 = smov 124   ;;  %vm4817_vm6 = vcmask 261120  }
  0x17   :  { %5760 = vmatprep.mubr.msk.bf16.mxu1 %vm283_vm0, %v5960_v8  ;;  %v5963_v11 = vld [vmem:[#allocation2 + $0x98] sm:$0xff]   ;;  %v5964_v12 = vld [vmem:[#allocation2 + $0xa0] sm:$0xff]   ;;  %v5965_v15 = vld [vmem:[#allocation2 + $0xa8] sm:$0xff]   ;;  %s6041_s16 = smov 116   ;;  %s6042_s22 = smov 12   ;;  %vm5197_vm7 = vcmask 195584  }
  0x18   :  { %5729 = vmatmul.mubr.msk.bf16.vlgmr.msra.gmra.mrb[0].mxu0 %vm283_vm0, %v5945_v2  ;;  %v5951_v13 = vld [vmem:[#allocation2 + $0x38] sm:$0xff]   ;;  %v5952_v14 = vld [vmem:[#allocation2 + $0x40] sm:$0xff]   ;;  %v5966_v16 = vld [vmem:[#allocation2 + $0xb0] sm:$0xff]   ;;  %s6044_s26 = smov 16  }
  0x19   :  { %5732 = vmatprep.mubr.msk.bf16.mxu0 %vm283_vm0, %v5946_v3  ;;  %5761 = vmatmul.mubr.msk.bf16.vlgmr.msra.gmra.mrb[0].mxu1 %vm283_vm0, %v5961_v9  ;;  %v5953_v17 = vld [vmem:[#allocation2 + $0x48] sm:$0xff]   ;;  %v5954_v18 = vld [vmem:[#allocation2 + $0x50] sm:$0xff]   ;;  %v5967_v19 = vld [vmem:[#allocation2 + $0xb8] sm:$0xff]  }
  0x1a   :  { %5764 = vmatprep.mubr.msk.bf16.mxu1 %vm283_vm0, %v5962_v10  ;;  %v5968_v20 = vld [vmem:[#allocation2 + $0xc0] sm:$0xff]   ;;  %v5955_v21 = vld [vmem:[#allocation2 + $0x58] sm:$0xff]   ;;  %v5969_v23 = vld [vmem:[#allocation2 + $0xc8] sm:$0xff]  }
  0x1b   :  { %v5956_v22 = vld [vmem:[#allocation2 + $0x60] sm:$0xff]   ;;  %v5970_v24 = vld [vmem:[#allocation2 + $0xd0] sm:$0xff]   ;;  %v5957_v25 = vld [vmem:[#allocation2 + $0x68] sm:$0xff]  }
  0x1c   :  { %v5958_v26 = vld [vmem:[#allocation2 + $0x70] sm:$0xff]   ;;  %v5971_v27 = vld [vmem:[#allocation2 + $0xd8] sm:$0xff]   ;;  %v5972_v28 = vld [vmem:[#allocation2 + $0xe0] sm:$0xff]  }
  0x1d   :  { %v5959_v29 = vld [vmem:[#allocation2 + $0x78] sm:$0xff]   ;;  %v5973_v30 = vld [vmem:[#allocation2 + $0xe8] sm:$0xff]   ;;  %v5974_v31 = vld [vmem:[#allocation2 + $0xf0] sm:$0xff]  }
  0x1e   :  { %v5975_v32 = vld [vmem:[#allocation2 + $0xf8] sm:$0xff]   ;;  %v1246_v33 = vld [vmem:[%s12078_s4] sm:$0x3] }
  0x1f   :  { %5926 = vmatprep.subr.msk.bf16.mxu1 %vm1343_vm1, %v1246_v33  ;;  %v1345_v34 = vsel %vm1343_vm1, %v1246_v33, 0 }
  0x20   :  { %5733 = vmatmul.mubr.msk.bf16.gmra.mrb[4].mxu0 %vm283_vm0, %v5947_v4  ;;  %5793 = vmatpush3.bf16.msra.mxu1 %v1345_v34 }
  0x21   :  { %5736 = vmatprep.mubr.msk.bf16.mxu0 %vm283_vm0, %v5948_v5  ;;  %5765 = vmatmul.mubr.msk.bf16.gmra.mrb[4].mxu1 %vm283_vm0, %v5963_v11 }
  0x22   :  { %5768 = vmatprep.mubr.msk.bf16.mxu1 %vm283_vm0, %v5964_v12 }
  0x28   :  { %5737 = vmatmul.mubr.msk.bf16.gmra.mrb[8].mxu0 %vm283_vm0, %v5949_v6 }
  0x29   :  { %5740 = vmatprep.mubr.msk.bf16.mxu0 %vm283_vm0, %v5950_v7  ;;  %5769 = vmatmul.mubr.msk.bf16.gmra.mrb[8].mxu1 %vm283_vm0, %v5965_v15 }
  0x2a   :  { %5772 = vmatprep.mubr.msk.bf16.mxu1 %vm283_vm0, %v5966_v16 }
  0x30   :  { %5741 = vmatmul.mubr.msk.bf16.gmra.mrb[12].mxu0 %vm283_vm0, %v5951_v13 }
  0x31   :  { %5744 = vmatprep.mubr.msk.bf16.mxu0 %vm283_vm0, %v5952_v14  ;;  %5773 = vmatmul.mubr.msk.bf16.gmra.mrb[12].mxu1 %vm283_vm0, %v5967_v19 }
  0x32   :  { %5776 = vmatprep.mubr.msk.bf16.mxu1 %vm283_vm0, %v5968_v20 }
  0x38   :  { %5745 = vmatmul.mubr.msk.bf16.gmra.mrb[16].mxu0 %vm283_vm0, %v5953_v17 }
  0x39   :  { %5748 = vmatprep.mubr.msk.bf16.mxu0 %vm283_vm0, %v5954_v18  ;;  %5777 = vmatmul.mubr.msk.bf16.gmra.mrb[16].mxu1 %vm283_vm0, %v5969_v23 }
  0x3a   :  { %5780 = vmatprep.mubr.msk.bf16.mxu1 %vm283_vm0, %v5970_v24 }
  0x40   :  { %5749 = vmatmul.mubr.msk.bf16.gmra.mrb[20].mxu0 %vm283_vm0, %v5955_v21 }
  0x41   :  { %5752 = vmatprep.mubr.msk.bf16.mxu0 %vm283_vm0, %v5956_v22  ;;  %5781 = vmatmul.mubr.msk.bf16.gmra.mrb[20].mxu1 %vm283_vm0, %v5971_v27 }
  0x42   :  { %5784 = vmatprep.mubr.msk.bf16.mxu1 %vm283_vm0, %v5972_v28 }
  0x48   :  { %5753 = vmatmul.mubr.msk.bf16.gmra.mrb[24].mxu0 %vm283_vm0, %v5957_v25 }
  0x49   :  { %5756 = vmatprep.mubr.msk.bf16.mxu0 %vm283_vm0, %v5958_v26  ;;  %5785 = vmatmul.mubr.msk.bf16.gmra.mrb[24].mxu1 %vm283_vm0, %v5973_v30 }
  0x4a   :  { %5788 = vmatprep.mubr.msk.bf16.mxu1 %vm283_vm0, %v5974_v31 }
  0x50   :  { %5757 = vmatmul.mubr.msk.bf16.gmra.mrb[28].mxu0 %vm283_vm0, %v5959_v29 }
  0x51   :  { %5789 = vmatmul.mubr.msk.bf16.gmra.mrb[28].mxu1 %vm283_vm0, %v5975_v32 }
  0xeb   :  { %v6153_v35 = vpop.f32.mrb[0].mxu0 }
  0xec   :  { %v6155_v36 = vpop.f32.mrb[1].mxu0  ;;  %v807_v40 = vmul.f32 %v6153_v35, %v6153_v35  ;;  %v673_v45 = vsel %vm669_vm2, %v6153_v35, 0.0  ;;  %v6205_v9 = vpop.f32.mrb[0].mxu1 }
  0xed   :  { %v805_v37 = vmul.f32 %v6155_v36, %v6155_v36  ;;  %v6159_v38 = vpop.f32.mrb[2].mxu0  ;;  %v670_v41 = vsel %vm669_vm2, %v6155_v36, 0.0  ;;  %12324 = vst [vmem:[#allocation8_spill] sm:$0xff] %v6205_v9  ;;  %v6207_v12 = vpop.f32.mrb[1].mxu1 }
  0xee   :  { %v6161_v39 = vpop.f32.mrb[3].mxu0  ;;  %v808_v47 = vmul.f32 %v6159_v38, %v6159_v38  ;;  %v872_v51 = vsel %vm669_vm2, %v807_v40, 0.0  ;;  %v675_v52 = vsel %vm669_vm2, %v6159_v38, 0.0  ;;  %12325 = vst [vmem:[#allocation9_spill] sm:$0xff] %v6207_v12  ;;  %v6214_v16 = vpop.f32.mrb[2].mxu1 }
  0xef   :  { %v671_v42 = vsel %vm669_vm2, %v6161_v39, 0.0  ;;  %v806_v43 = vmul.f32 %v6161_v39, %v6161_v39  ;;  %v869_v46 = vsel %vm669_vm2, %v805_v37, 0.0  ;;  %12326 = vst [vmem:[#allocation10_spill] sm:$0xff] %v6214_v16  ;;  %v6218_v20 = vpop.f32.mrb[3].mxu1 }
  0xf0   :  { %v672_v44 = vadd.f32 %v671_v42, %v670_v41  ;;  %v874_v57 = vsel %vm669_vm2, %v808_v47, 0.0  ;;  %12327 = vst [vmem:[#allocation11_spill] sm:$0xff] %v6218_v20 }
  0xf1   :  { %v870_v48 = vsel %vm669_vm2, %v806_v43, 0.0 }
  0xf2   :  { %v674_v49 = vadd.f32 %v673_v45, %v672_v44  ;;  %v871_v50 = vadd.f32 %v870_v48, %v869_v46 }
  0xf3   :  { %v6180_v53 = vpop.f32.mrb[4].mxu0 }
  0xf4   :  { %v873_v54 = vadd.f32 %v872_v51, %v871_v50  ;;  %v6182_v55 = vpop.f32.mrb[5].mxu0  ;;  %v676_v56 = vadd.f32 %v675_v52, %v674_v49  ;;  %v811_v0 = vmul.f32 %v6180_v53, %v6180_v53  ;;  %v681_v6 = vsel %vm669_vm2, %v6180_v53, 0.0  ;;  %v6241_v41 = vpop.f32.mrb[4].mxu1 }
  0xf5   :  { %v677_v58 = vsel %vm669_vm2, %v6182_v55, 0.0  ;;  %v809_v59 = vmul.f32 %v6182_v55, %v6182_v55  ;;  %v6189_v60 = vpop.f32.mrb[6].mxu0  ;;  %12328 = vst [vmem:[#allocation12_spill] sm:$0xff] %v6241_v41  ;;  %v6243_v44 = vpop.f32.mrb[5].mxu1 }
  0xf6   :  { %v678_v61 = vadd.f32 %v677_v58, %v676_v56  ;;  %v875_v62 = vadd.f32 %v874_v57, %v873_v54  ;;  %v6191_v63 = vpop.f32.mrb[7].mxu0  ;;  %v812_v7 = vmul.f32 %v6189_v60, %v6189_v60  ;;  %v880_v13 = vsel %vm669_vm2, %v811_v0, 0.0  ;;  %12329 = vst [vmem:[#allocation13_spill] sm:$0xff] %v6243_v44  ;;  %v6250_v48 = vpop.f32.mrb[6].mxu1 }
  0xf7   :  { %v876_v1 = vsel %vm669_vm2, %v809_v59, 0.0  ;;  %v679_v2 = vsel %vm669_vm2, %v6191_v63, 0.0  ;;  %v810_v3 = vmul.f32 %v6191_v63, %v6191_v63  ;;  %v683_v14 = vsel %vm669_vm2, %v6189_v60, 0.0  ;;  %v6254_v52 = vpop.f32.mrb[7].mxu1 }
  0xf8   :  { %v877_v4 = vadd.f32 %v876_v1, %v875_v62  ;;  %v680_v5 = vadd.f32 %v679_v2, %v678_v61  ;;  %v882_v21 = vsel %vm669_vm2, %v812_v7, 0.0 }
  0xf9   :  { %v878_v8 = vsel %vm669_vm2, %v810_v3, 0.0 }
  0xfa   :  { %v682_v10 = vadd.f32 %v681_v6, %v680_v5  ;;  %v879_v11 = vadd.f32 %v878_v8, %v877_v4 }
  0xfb   :  { %v6212_v15 = vpop.f32.mrb[8].mxu0 }
  0xfc   :  { %v881_v17 = vadd.f32 %v880_v13, %v879_v11  ;;  %v6216_v18 = vpop.f32.mrb[9].mxu0  ;;  %v684_v19 = vadd.f32 %v683_v14, %v682_v10  ;;  %v815_v28 = vmul.f32 %v6212_v15, %v6212_v15  ;;  %v689_v34 = vsel %vm669_vm2, %v6212_v15, 0.0  ;;  %v6277_v10 = vpop.f32.mrb[8].mxu1 }
  0xfd   :  { %v685_v22 = vsel %vm669_vm2, %v6216_v18, 0.0  ;;  %v813_v23 = vmul.f32 %v6216_v18, %v6216_v18  ;;  %v6225_v24 = vpop.f32.mrb[10].mxu0  ;;  %v6279_v14 = vpop.f32.mrb[9].mxu1 }
  0xfe   :  { %v686_v25 = vadd.f32 %v685_v22, %v684_v19  ;;  %v883_v26 = vadd.f32 %v882_v21, %v881_v17  ;;  %v6227_v27 = vpop.f32.mrb[11].mxu0  ;;  %v816_v37 = vmul.f32 %v6225_v24, %v6225_v24  ;;  %v888_v45 = vsel %vm669_vm2, %v815_v28, 0.0  ;;  %v6286_v22 = vpop.f32.mrb[10].mxu1 }
  0xff   :  { %v884_v29 = vsel %vm669_vm2, %v813_v23, 0.0  ;;  %v687_v30 = vsel %vm669_vm2, %v6227_v27, 0.0  ;;  %v814_v31 = vmul.f32 %v6227_v27, %v6227_v27  ;;  %v691_v46 = vsel %vm669_vm2, %v6225_v24, 0.0  ;;  %v6290_v28 = vpop.f32.mrb[11].mxu1 }
 0x100   :  { %v885_v32 = vadd.f32 %v884_v29, %v883_v26  ;;  %v688_v33 = vadd.f32 %v687_v30, %v686_v25  ;;  %v890_v54 = vsel %vm669_vm2, %v816_v37, 0.0 }
 0x101   :  { %v886_v40 = vsel %vm669_vm2, %v814_v31, 0.0 }
 0x102   :  { %v690_v42 = vadd.f32 %v689_v34, %v688_v33  ;;  %v887_v43 = vadd.f32 %v886_v40, %v885_v32 }
 0x103   :  { %v6248_v47 = vpop.f32.mrb[12].mxu0 }
 0x104   :  { %v889_v49 = vadd.f32 %v888_v45, %v887_v43  ;;  %v6252_v50 = vpop.f32.mrb[13].mxu0  ;;  %v692_v51 = vadd.f32 %v691_v46, %v690_v42  ;;  %v819_v0 = vmul.f32 %v6248_v47, %v6248_v47  ;;  %v697_v6 = vsel %vm669_vm2, %v6248_v47, 0.0 }
 0x105   :  { %v693_v56 = vsel %vm669_vm2, %v6252_v50, 0.0  ;;  %v817_v57 = vmul.f32 %v6252_v50, %v6252_v50  ;;  %v6261_v58 = vpop.f32.mrb[14].mxu0 }
 0x106   :  { %v694_v59 = vadd.f32 %v693_v56, %v692_v51  ;;  %v891_v61 = vadd.f32 %v890_v54, %v889_v49  ;;  %v6263_v62 = vpop.f32.mrb[15].mxu0  ;;  %v820_v7 = vmul.f32 %v6261_v58, %v6261_v58  ;;  %v896_v17 = vsel %vm669_vm2, %v819_v0, 0.0 }
 0x107   :  { %v892_v1 = vsel %vm669_vm2, %v817_v57, 0.0  ;;  %v695_v2 = vsel %vm669_vm2, %v6263_v62, 0.0  ;;  %v818_v3 = vmul.f32 %v6263_v62, %v6263_v62  ;;  %v699_v19 = vsel %vm669_vm2, %v6261_v58, 0.0  ;;  %v6313_v57 = vpop.f32.mrb[12].mxu1 }
 0x108   :  { %v893_v4 = vadd.f32 %v892_v1, %v891_v61  ;;  %v696_v5 = vadd.f32 %v695_v2, %v694_v59  ;;  %v898_v29 = vsel %vm669_vm2, %v820_v7, 0.0  ;;  %v6315_v0 = vpop.f32.mrb[13].mxu1 }
 0x109   :  { %v894_v8 = vsel %vm669_vm2, %v818_v3, 0.0 }
 0x10a   :  { %v698_v11 = vadd.f32 %v697_v6, %v696_v5  ;;  %v895_v13 = vadd.f32 %v894_v8, %v893_v4  ;;  %v6322_v4 = vpop.f32.mrb[14].mxu1 }
 0x10b   :  { %v6284_v21 = vpop.f32.mrb[16].mxu0  ;;  %v6326_v8 = vpop.f32.mrb[15].mxu1 }
 0x10c   :  { %v897_v23 = vadd.f32 %v896_v17, %v895_v13  ;;  %v6288_v25 = vpop.f32.mrb[17].mxu0  ;;  %v700_v26 = vadd.f32 %v699_v19, %v698_v11  ;;  %v823_v40 = vmul.f32 %v6284_v21, %v6284_v21  ;;  %v705_v51 = vsel %vm669_vm2, %v6284_v21, 0.0 }
 0x10d   :  { %v701_v30 = vsel %vm669_vm2, %v6288_v25, 0.0  ;;  %v821_v31 = vmul.f32 %v6288_v25, %v6288_v25  ;;  %v6297_v32 = vpop.f32.mrb[18].mxu0 }
 0x10e   :  { %v702_v33 = vadd.f32 %v701_v30, %v700_v26  ;;  %v899_v34 = vadd.f32 %v898_v29, %v897_v23  ;;  %v6299_v37 = vpop.f32.mrb[19].mxu0  ;;  %v824_v54 = vmul.f32 %v6297_v32, %v6297_v32  ;;  %v904_v1 = vsel %vm669_vm2, %v823_v40, 0.0 }
 0x10f   :  { %v900_v42 = vsel %vm669_vm2, %v821_v31, 0.0  ;;  %v703_v43 = vsel %vm669_vm2, %v6299_v37, 0.0  ;;  %v822_v45 = vmul.f32 %v6299_v37, %v6299_v37  ;;  %v707_v2 = vsel %vm669_vm2, %v6297_v32, 0.0 }
 0x110   :  { %v901_v46 = vadd.f32 %v900_v42, %v899_v34  ;;  %v704_v49 = vadd.f32 %v703_v43, %v702_v33  ;;  %v906_v11 = vsel %vm669_vm2, %v824_v54, 0.0 }
 0x111   :  { %v902_v56 = vsel %vm669_vm2, %v822_v45, 0.0 }
 0x112   :  { %v706_v59 = vadd.f32 %v705_v51, %v704_v49  ;;  %v903_v61 = vadd.f32 %v902_v56, %v901_v46  ;;  %v6349_v49 = vpop.f32.mrb[16].mxu1 }
 0x113   :  { %v6320_v3 = vpop.f32.mrb[20].mxu0  ;;  %v6351_v56 = vpop.f32.mrb[17].mxu1 }
 0x114   :  { %12330 = vst [vmem:[#allocation14_spill] sm:$0xff] %v6320_v3  ;;  %v905_v5 = vadd.f32 %v904_v1, %v903_v61  ;;  %v6324_v6 = vpop.f32.mrb[21].mxu0  ;;  %v708_v7 = vadd.f32 %v707_v2, %v706_v59  ;;  %v827_v30 = vmul.f32 %v6320_v3, %v6320_v3  ;;  %v713_v43 = vsel %vm669_vm2, %v6320_v3, 0.0  ;;  %v6358_v2 = vpop.f32.mrb[18].mxu1 }
 0x115   :  { %12331 = vst [vmem:[#allocation15_spill] sm:$0xff] %v6324_v6  ;;  %v709_v13 = vsel %vm669_vm2, %v6324_v6, 0.0  ;;  %v825_v17 = vmul.f32 %v6324_v6, %v6324_v6  ;;  %v6333_v19 = vpop.f32.mrb[22].mxu0 }
 0x116   :  { %12332 = vst [vmem:[#allocation16_spill] sm:$0xff] %v6333_v19  ;;  %v710_v23 = vadd.f32 %v709_v13, %v708_v7  ;;  %v907_v26 = vadd.f32 %v906_v11, %v905_v5  ;;  %v6335_v29 = vpop.f32.mrb[23].mxu0  ;;  %v828_v45 = vmul.f32 %v6333_v19, %v6333_v19  ;;  %v912_v59 = vsel %vm669_vm2, %v827_v30, 0.0  ;;  %v6362_v13 = vpop.f32.mrb[19].mxu1 }
 0x117   :  { %12333 = vst [vmem:[#allocation17_spill] sm:$0xff] %v6335_v29  ;;  %v908_v31 = vsel %vm669_vm2, %v825_v17, 0.0  ;;  %v711_v33 = vsel %vm669_vm2, %v6335_v29, 0.0  ;;  %v826_v34 = vmul.f32 %v6335_v29, %v6335_v29  ;;  %v715_v61 = vsel %vm669_vm2, %v6333_v19, 0.0 }
 0x118   :  { %v909_v40 = vadd.f32 %v908_v31, %v907_v26  ;;  %v712_v42 = vadd.f32 %v711_v33, %v710_v23  ;;  %v914_v17 = vsel %vm669_vm2, %v828_v45, 0.0 }
 0x119   :  { %v910_v46 = vsel %vm669_vm2, %v826_v34, 0.0 }
 0x11a   :  { %v714_v51 = vadd.f32 %v713_v43, %v712_v42  ;;  %v911_v54 = vadd.f32 %v910_v46, %v909_v40 }
 0x11b   :  { %v6356_v1 = vpop.f32.mrb[24].mxu0 }
 0x11c   :  { %12334 = vst [vmem:[#allocation18_spill] sm:$0xff] %v6356_v1  ;;  %v913_v5 = vadd.f32 %v912_v59, %v911_v54  ;;  %v6360_v7 = vpop.f32.mrb[25].mxu0  ;;  %v716_v11 = vadd.f32 %v715_v61, %v714_v51  ;;  %v831_v40 = vmul.f32 %v6356_v1, %v6356_v1  ;;  %v721_v54 = vsel %vm669_vm2, %v6356_v1, 0.0 }
 0x11d   :  { %12335 = vst [vmem:[#allocation19_spill] sm:$0xff] %v6360_v7  ;;  %v717_v23 = vsel %vm669_vm2, %v6360_v7, 0.0  ;;  %v829_v26 = vmul.f32 %v6360_v7, %v6360_v7  ;;  %v6369_v30 = vpop.f32.mrb[26].mxu0 }
 0x11e   :  { %12336 = vst [vmem:[#allocation20_spill] sm:$0xff] %v6369_v30  ;;  %v718_v31 = vadd.f32 %v717_v23, %v716_v11  ;;  %v915_v33 = vadd.f32 %v914_v17, %v913_v5  ;;  %v6371_v34 = vpop.f32.mrb[27].mxu0  ;;  %v832_v59 = vmul.f32 %v6369_v30, %v6369_v30  ;;  %v6385_v5 = vpop.f32.mrb[20].mxu1 }
 0x11f   :  { %12337 = vst [vmem:[#allocation21_spill] sm:$0xff] %v6371_v34  ;;  %v916_v42 = vsel %vm669_vm2, %v829_v26, 0.0  ;;  %v719_v43 = vsel %vm669_vm2, %v6371_v34, 0.0  ;;  %v830_v45 = vmul.f32 %v6371_v34, %v6371_v34  ;;  %v6387_v23 = vpop.f32.mrb[21].mxu1  ;;  %v920_v26 = vsel %vm669_vm2, %v831_v40, 0.0 }
 0x120   :  { %v917_v46 = vadd.f32 %v916_v42, %v915_v33  ;;  %v720_v51 = vadd.f32 %v719_v43, %v718_v31  ;;  %v723_v33 = vsel %vm669_vm2, %v6369_v30, 0.0  ;;  %v6394_v42 = vpop.f32.mrb[22].mxu1 }
 0x121   :  { %v918_v61 = vsel %vm669_vm2, %v830_v45, 0.0  ;;  %v6398_v45 = vpop.f32.mrb[23].mxu1 }
 0x122   :  { %v722_v11 = vadd.f32 %v721_v54, %v720_v51  ;;  %v919_v17 = vadd.f32 %v918_v61, %v917_v46  ;;  %v922_v51 = vsel %vm669_vm2, %v832_v59, 0.0 }
 0x123   :  { %v6392_v31 = vpop.f32.mrb[28].mxu0 }
 0x124   :  { %12338 = vst [vmem:[#allocation22_spill] sm:$0xff] %v6392_v31  ;;  %v921_v43 = vadd.f32 %v920_v26, %v919_v17  ;;  %v6396_v1 = vpop.f32.mrb[29].mxu0  ;;  %v724_v34 = vadd.f32 %v723_v33, %v722_v11  ;;  %v835_v17 = vmul.f32 %v6392_v31, %v6392_v31 }
 0x125   :  { %12339 = vst [vmem:[#allocation23_spill] sm:$0xff] %v6396_v1  ;;  %v725_v46 = vsel %vm669_vm2, %v6396_v1, 0.0  ;;  %v833_v40 = vmul.f32 %v6396_v1, %v6396_v1  ;;  %v6405_v54 = vpop.f32.mrb[30].mxu0  ;;  %v729_v1 = vsel %vm669_vm2, %v6392_v31, 0.0 }
 0x126   :  { %12340 = vst [vmem:[#allocation24_spill] sm:$0xff] %v6405_v54  ;;  %v726_v61 = vadd.f32 %v725_v46, %v724_v34  ;;  %v923_v30 = vadd.f32 %v922_v51, %v921_v43  ;;  %v6407_v7 = vpop.f32.mrb[31].mxu0  ;;  %v836_v34 = vmul.f32 %v6405_v54, %v6405_v54  ;;  %v837_v51 = vmul.f32 %v6207_v12, %v6207_v12  ;;  %v6423_v46 = vpop.f32.mrb[24].mxu1 }
 0x127   :  { %12341 = vst [vmem:[#allocation25_spill] sm:$0xff] %v6407_v7  ;;  %v924_v11 = vsel %vm669_vm2, %v833_v40, 0.0  ;;  %v727_v59 = vsel %vm669_vm2, %v6407_v7, 0.0  ;;  %v834_v26 = vmul.f32 %v6407_v7, %v6407_v7  ;;  %12342 = vst [vmem:[#allocation26_spill] sm:$0xff] %v6423_v46  ;;  %v6425_v29 = vpop.f32.mrb[25].mxu1 }
 0x128   :  { %v925_v33 = vadd.f32 %v924_v11, %v923_v30  ;;  %v728_v19 = vadd.f32 %v727_v59, %v726_v61  ;;  %v928_v30 = vsel %vm669_vm2, %v835_v17, 0.0  ;;  %v731_v61 = vsel %vm669_vm2, %v6405_v54, 0.0  ;;  %v6432_v59 = vpop.f32.mrb[26].mxu1 }
 0x129   :  { %v926_v43 = vsel %vm669_vm2, %v834_v26, 0.0  ;;  %v733_v11 = vsel %vm669_vm2, %v6207_v12, 0.0  ;;  %12343 = vst [vmem:[#allocation27_spill] sm:$0xff] %v6432_v59  ;;  %v6434_v7 = vpop.f32.mrb[27].mxu1  ;;  %v930_v6 = vsel %vm669_vm2, %v836_v34, 0.0  ;;  %v735_v12 = vsel %vm669_vm2, %v6218_v20, 0.0 }
 0x12a   :  { %v730_v40 = vadd.f32 %v729_v1, %v728_v19  ;;  %v927_v3 = vadd.f32 %v926_v43, %v925_v33  ;;  %12344 = vst [vmem:[#allocation28_spill] sm:$0xff] %v6434_v7  ;;  %v932_v19 = vsel %vm669_vm2, %v837_v51, 0.0  ;;  %v838_v1 = vmul.f32 %v6218_v20, %v6218_v20 }
 0x12b   :  { %v839_v43 = vmul.f32 %v6205_v9, %v6205_v9  ;;  %v840_v34 = vmul.f32 %v6214_v16, %v6214_v16 }
 0x12c   :  { %v929_v26 = vadd.f32 %v928_v30, %v927_v3  ;;  %v732_v31 = vadd.f32 %v731_v61, %v730_v40  ;;  %v737_v40 = vsel %vm669_vm2, %v6205_v9, 0.0  ;;  %v934_v51 = vsel %vm669_vm2, %v838_v1, 0.0 }
 0x12d   :  { %v938_v20 = vsel %vm669_vm2, %v840_v34, 0.0  ;;  %v844_v34 = vmul.f32 %v6250_v48, %v6250_v48 }
 0x12e   :  { %v734_v17 = vadd.f32 %v733_v11, %v732_v31  ;;  %v931_v33 = vadd.f32 %v930_v6, %v929_v26  ;;  %v841_v31 = vmul.f32 %v6243_v44, %v6243_v44  ;;  %v6451_v6 = vpop.f32.mrb[28].mxu1  ;;  %v936_v26 = vsel %vm669_vm2, %v839_v43, 0.0 }
 0x12f   :  { %12345 = vst [vmem:[#allocation29_spill] sm:$0xff] %v6451_v6  ;;  %v6453_v11 = vpop.f32.mrb[29].mxu1 }
 0x130   :  { %v933_v54 = vadd.f32 %v932_v19, %v931_v33  ;;  %v736_v3 = vadd.f32 %v735_v12, %v734_v17  ;;  %12346 = vst [vmem:[#allocation30_spill] sm:$0xff] %v6453_v11  ;;  %v739_v12 = vsel %vm669_vm2, %v6214_v16, 0.0  ;;  %v741_v19 = vsel %vm669_vm2, %v6243_v44, 0.0  ;;  %v6460_v17 = vpop.f32.mrb[30].mxu1 }
 0x131   :  { %12347 = vst [vmem:[#allocation31_spill] sm:$0xff] %v6460_v17  ;;  %v6462_v9 = vpop.f32.mrb[31].mxu1  ;;  %v743_v44 = vsel %vm669_vm2, %v6254_v52, 0.0 }
 0x132   :  { %v738_v30 = vadd.f32 %v737_v40, %v736_v3  ;;  %v935_v61 = vadd.f32 %v934_v51, %v933_v54  ;;  %v940_v54 = vsel %vm669_vm2, %v841_v31, 0.0  ;;  %v842_v3 = vmul.f32 %v6254_v52, %v6254_v52 }
 0x133   :  { %v843_v51 = vmul.f32 %v6241_v41, %v6241_v41 }
 0x134   :  { %v937_v1 = vadd.f32 %v936_v26, %v935_v61  ;;  %v740_v33 = vadd.f32 %v739_v12, %v738_v30  ;;  %v745_v30 = vsel %vm669_vm2, %v6241_v41, 0.0  ;;  %v942_v31 = vsel %vm669_vm2, %v842_v3, 0.0 }
 0x135   :  { %v845_v26 = vmul.f32 %v6279_v14, %v6279_v14  ;;  %v846_v3 = vmul.f32 %v6290_v28, %v6290_v28 }
 0x136   :  { %v742_v43 = vadd.f32 %v741_v19, %v740_v33  ;;  %v939_v40 = vadd.f32 %v938_v20, %v937_v1  ;;  %v944_v19 = vsel %vm669_vm2, %v843_v51, 0.0  ;;  %v747_v1 = vsel %vm669_vm2, %v6250_v48, 0.0 }
 0x137   :  { %v751_v51 = vsel %vm669_vm2, %v6290_v28, 0.0 }
 0x138   :  { %v941_v16 = vadd.f32 %v940_v54, %v939_v40  ;;  %v744_v61 = vadd.f32 %v743_v44, %v742_v43  ;;  %v749_v44 = vsel %vm669_vm2, %v6279_v14, 0.0  ;;  %v946_v43 = vsel %vm669_vm2, %v844_v34, 0.0 }
 0x139   :  { %v948_v40 = vsel %vm669_vm2, %v845_v26, 0.0  ;;  %v848_v34 = vmul.f32 %v6286_v22, %v6286_v22  ;;  %v950_v26 = vsel %vm669_vm2, %v846_v3, 0.0  ;;  %v850_v3 = vmul.f32 %v6326_v8, %v6326_v8 }
 0x13a   :  { %v746_v20 = vadd.f32 %v745_v30, %v744_v61  ;;  %v943_v12 = vadd.f32 %v942_v31, %v941_v16  ;;  %v847_v16 = vmul.f32 %v6277_v10, %v6277_v10 }
 0x13c   :  { %v945_v33 = vadd.f32 %v944_v19, %v943_v12  ;;  %v748_v54 = vadd.f32 %v747_v1, %v746_v20  ;;  %v753_v20 = vsel %vm669_vm2, %v6277_v10, 0.0  ;;  %v849_v12 = vmul.f32 %v6315_v0, %v6315_v0 }
 0x13e   :  { %v750_v41 = vadd.f32 %v749_v44, %v748_v54  ;;  %v947_v61 = vadd.f32 %v946_v43, %v945_v33  ;;  %v952_v44 = vsel %vm669_vm2, %v847_v16, 0.0  ;;  %v755_v33 = vsel %vm669_vm2, %v6286_v22, 0.0 }
 0x13f   :  { %v851_v16 = vmul.f32 %v6313_v57, %v6313_v57 }
 0x140   :  { %v949_v30 = vadd.f32 %v948_v40, %v947_v61  ;;  %v752_v31 = vadd.f32 %v751_v51, %v750_v41  ;;  %v757_v41 = vsel %vm669_vm2, %v6315_v0, 0.0  ;;  %v954_v40 = vsel %vm669_vm2, %v848_v34, 0.0 }
 0x141   :  { %v956_v61 = vsel %vm669_vm2, %v849_v12, 0.0  ;;  %v852_v34 = vmul.f32 %v6322_v4, %v6322_v4  ;;  %v958_v12 = vsel %vm669_vm2, %v850_v3, 0.0  ;;  %v854_v3 = vmul.f32 %v6362_v13, %v6362_v13 }
 0x142   :  { %v754_v19 = vadd.f32 %v753_v20, %v752_v31  ;;  %v951_v1 = vadd.f32 %v950_v26, %v949_v30  ;;  %v759_v30 = vsel %vm669_vm2, %v6326_v8, 0.0 }
 0x144   :  { %v953_v54 = vadd.f32 %v952_v44, %v951_v1  ;;  %v756_v43 = vadd.f32 %v755_v33, %v754_v19  ;;  %v761_v19 = vsel %vm669_vm2, %v6313_v57, 0.0  ;;  %v853_v1 = vmul.f32 %v6351_v56, %v6351_v56 }
 0x146   :  { %v758_v51 = vadd.f32 %v757_v41, %v756_v43  ;;  %v955_v31 = vadd.f32 %v954_v40, %v953_v54  ;;  %v960_v41 = vsel %vm669_vm2, %v851_v16, 0.0  ;;  %v763_v54 = vsel %vm669_vm2, %v6322_v4, 0.0 }
 0x147   :  { %v765_v43 = vsel %vm669_vm2, %v6351_v56, 0.0  ;;  %v855_v16 = vmul.f32 %v6349_v49, %v6349_v49 }
 0x148   :  { %v957_v20 = vadd.f32 %v956_v61, %v955_v31  ;;  %v760_v26 = vadd.f32 %v759_v30, %v758_v51  ;;  %v962_v51 = vsel %vm669_vm2, %v852_v34, 0.0  ;;  %v964_v31 = vsel %vm669_vm2, %v853_v1, 0.0 }
 0x149   :  { %v856_v34 = vmul.f32 %v6358_v2, %v6358_v2  ;;  %v966_v1 = vsel %vm669_vm2, %v854_v3, 0.0  ;;  %v858_v3 = vmul.f32 %v6398_v45, %v6398_v45 }
 0x14a   :  { %v762_v44 = vadd.f32 %v761_v19, %v760_v26  ;;  %v959_v33 = vadd.f32 %v958_v12, %v957_v20  ;;  %v767_v20 = vsel %vm669_vm2, %v6362_v13, 0.0 }
 0x14c   :  { %v961_v40 = vadd.f32 %v960_v41, %v959_v33  ;;  %v764_v61 = vadd.f32 %v763_v54, %v762_v44  ;;  %v769_v44 = vsel %vm669_vm2, %v6349_v49, 0.0  ;;  %v857_v33 = vmul.f32 %v6387_v23, %v6387_v23 }
 0x14e   :  { %v766_v30 = vadd.f32 %v765_v43, %v764_v61  ;;  %v963_v26 = vadd.f32 %v962_v51, %v961_v40  ;;  %v968_v43 = vsel %vm669_vm2, %v855_v16, 0.0  ;;  %v771_v40 = vsel %vm669_vm2, %v6358_v2, 0.0 }
 0x14f   :  { %v773_v61 = vsel %vm669_vm2, %v6387_v23, 0.0  ;;  %v859_v16 = vmul.f32 %v6385_v5, %v6385_v5 }
 0x150   :  { %v965_v19 = vadd.f32 %v964_v31, %v963_v26  ;;  %v768_v12 = vadd.f32 %v767_v20, %v766_v30  ;;  %v970_v30 = vsel %vm669_vm2, %v856_v34, 0.0  ;;  %v972_v26 = vsel %vm669_vm2, %v857_v33, 0.0 }
 0x151   :  { %v860_v34 = vmul.f32 %v6394_v42, %v6394_v42  ;;  %v974_v33 = vsel %vm669_vm2, %v858_v3, 0.0  ;;  %v862_v3 = vmul.f32 %v6434_v7, %v6434_v7 }
 0x152   :  { %v770_v41 = vadd.f32 %v769_v44, %v768_v12  ;;  %v967_v54 = vadd.f32 %v966_v1, %v965_v19  ;;  %v775_v19 = vsel %vm669_vm2, %v6398_v45, 0.0 }
 0x154   :  { %v969_v51 = vadd.f32 %v968_v43, %v967_v54  ;;  %v772_v31 = vadd.f32 %v771_v40, %v770_v41  ;;  %v777_v41 = vsel %vm669_vm2, %v6385_v5, 0.0  ;;  %v861_v54 = vmul.f32 %v6425_v29, %v6425_v29 }
 0x156   :  { %v774_v20 = vadd.f32 %v773_v61, %v772_v31  ;;  %v971_v12 = vadd.f32 %v970_v30, %v969_v51  ;;  %v976_v61 = vsel %vm669_vm2, %v859_v16, 0.0  ;;  %v779_v51 = vsel %vm669_vm2, %v6394_v42, 0.0 }
 0x157   :  { %v781_v31 = vsel %vm669_vm2, %v6425_v29, 0.0  ;;  %v863_v16 = vmul.f32 %v6423_v46, %v6423_v46 }
 0x158   :  { %v973_v44 = vadd.f32 %v972_v26, %v971_v12  ;;  %v776_v1 = vadd.f32 %v775_v19, %v774_v20  ;;  %v978_v20 = vsel %vm669_vm2, %v860_v34, 0.0  ;;  %v980_v12 = vsel %vm669_vm2, %v861_v54, 0.0 }
 0x159   :  { %v864_v34 = vmul.f32 %v6432_v59, %v6432_v59  ;;  %v982_v54 = vsel %vm669_vm2, %v862_v3, 0.0  ;;  %v866_v3 = vmul.f32 %v6462_v9, %v6462_v9 }
 0x15a   :  { %v778_v43 = vadd.f32 %v777_v41, %v776_v1  ;;  %v975_v40 = vadd.f32 %v974_v33, %v973_v44  ;;  %v783_v44 = vsel %vm669_vm2, %v6434_v7, 0.0 }
 0x15c   :  { %v977_v30 = vadd.f32 %v976_v61, %v975_v40  ;;  %v780_v26 = vadd.f32 %v779_v51, %v778_v43  ;;  %v785_v43 = vsel %vm669_vm2, %v6423_v46, 0.0  ;;  %v865_v40 = vmul.f32 %v6453_v11, %v6453_v11 }
 0x15e   :  { %v782_v19 = vadd.f32 %v781_v31, %v780_v26  ;;  %v979_v1 = vadd.f32 %v978_v20, %v977_v30  ;;  %v984_v31 = vsel %vm669_vm2, %v863_v16, 0.0  ;;  %v787_v30 = vsel %vm669_vm2, %v6432_v59, 0.0 }
 0x15f   :  { %v789_v26 = vsel %vm669_vm2, %v6453_v11, 0.0  ;;  %v867_v16 = vmul.f32 %v6451_v6, %v6451_v6 }
 0x160   :  { %v981_v41 = vadd.f32 %v980_v12, %v979_v1  ;;  %v784_v33 = vadd.f32 %v783_v44, %v782_v19  ;;  %v986_v19 = vsel %vm669_vm2, %v864_v34, 0.0  ;;  %v988_v1 = vsel %vm669_vm2, %v865_v40, 0.0 }
 0x161   :  { %v868_v34 = vmul.f32 %v6460_v17, %v6460_v17  ;;  %v990_v40 = vsel %vm669_vm2, %v866_v3, 0.0 }
 0x162   :  { %v786_v61 = vadd.f32 %v785_v43, %v784_v33  ;;  %v983_v51 = vadd.f32 %v982_v54, %v981_v41  ;;  %v791_v41 = vsel %vm669_vm2, %v6462_v9, 0.0 }
 0x164   :  { %v985_v20 = vadd.f32 %v984_v31, %v983_v51  ;;  %v788_v12 = vadd.f32 %v787_v30, %v786_v61  ;;  %v793_v61 = vsel %vm669_vm2, %v6451_v6, 0.0  ;;  %v992_v30 = vsel %vm669_vm2, %v867_v16, 0.0 }
 0x166   :  { %v790_v44 = vadd.f32 %v789_v26, %v788_v12  ;;  %v987_v33 = vadd.f32 %v986_v19, %v985_v20  ;;  %v795_v26 = vsel %vm669_vm2, %v6460_v17, 0.0  ;;  %v994_v19 = vsel %vm669_vm2, %v868_v34, 0.0 }
 0x167   :  { %v1009_v34 = vlaneseq }
 0x168   :  { %v989_v43 = vadd.f32 %v988_v1, %v987_v33  ;;  %v792_v54 = vadd.f32 %v791_v41, %v790_v44 }
 0x16a   :  { %v794_v51 = vadd.f32 %v793_v61, %v792_v54  ;;  %v991_v31 = vadd.f32 %v990_v40, %v989_v43 }
 0x16c   :  { %v796_v20 = vadd.f32 %v795_v26, %v794_v51  ;;  %v993_v12 = vadd.f32 %v992_v30, %v991_v31  ;;  %v1010_v30 = vshrl.u32 %v1009_v34, 7  ;;  %v1007_v26 = vld [vmem:[%s12076_s2] sm:$0x1]  ;;  %s6035_s2 = smov 24  }
 0x16e   :  { %v797_v1 = vrot.slane %v796_v20, 4  ;;  %v995_v44 = vadd.f32 %v994_v19, %v993_v12 }
 0x170   :  { %v798_v33 = vadd.f32 %v797_v1, %v796_v20  ;;  %v996_v41 = vrot.slane %v995_v44, 4  ;;  %v6604_v20 = vsub.s32 0, %v1010_v30  ;;  %v12356_v30 = vld [vmem:[#allocation18_spill] sm:$0xff] }
 0x172   :  { %v799_v6 = vrot.slane %v798_v33, 2  ;;  %v997_v11 = vadd.f32 %v996_v41, %v995_v44  ;;  %12348 = vst [vmem:[#allocation32_spill] sm:$0xff] %v6604_v20 }
 0x174   :  { %v800_v59 = vadd.f32 %v799_v6, %v798_v33  ;;  %v998_v46 = vrot.slane %v997_v11, 2 }
 0x176   :  { %v801_v3 = vrot.slane %v800_v59, 1  ;;  %v999_v54 = vadd.f32 %v998_v46, %v997_v11  ;;  %v1077_v46 = vld [vmem:[%s12077_s3] sm:$0x1]  ;;  %s6036_s3 = smov 112  }
 0x178   :  { %v802_v43 = vadd.f32 %v801_v3, %v800_v59  ;;  %v1000_v61 = vrot.slane %v999_v54, 1 }
 0x17a   :  { %v804_v16 = vmul.f32 0.001953125, %v802_v43  ;;  %v1001_v40 = vadd.f32 %v1000_v61, %v999_v54  ;;  %v12365_v54 = vld [vmem:[#allocation10_spill] sm:$0xff] }
 0x17c   :  { %v1002_v7 = vmul.f32 0.001953125, %v1001_v40  ;;  %v1003_v17 = vmul.f32 %v804_v16, %v804_v16 }
 0x17e   :  { %v1004_v51 = vsub.f32 %v1002_v7, %v1003_v17 }
 0x180   :  { %v1005_v31 = vadd.f32 1e-05, %v1004_v51 }
 0x182   :  { %5977 = vrsqrt.f32 %v1005_v31  ;;  %v12355_v31 = vld [vmem:[#allocation21_spill] sm:$0xff] }
 0x18c   :  { %v5978_v6 = vpop.eup %5977 }
 0x18d   :  { %v1008_v12 = vmul.f32 %v5978_v6, %v1007_v26  ;;  %v12357_v6 = vld [vmem:[#allocation20_spill] sm:$0xff] }
 0x18f   :  { %v6610_v59 = vrot.slane %v1008_v12, %v6604_v20  ;;  %v1078_v7 = vmul.f32 %v1008_v12, %v804_v16 }
 0x191   :  { %v1074_v11 = vmul.f32 %v6610_v59, %v6462_v9  ;;  %v1079_v17 = vsub.f32 %v1077_v46, %v1078_v7  ;;  %v6616_v19 = vmul.f32 %v6610_v59, %v6155_v36  ;;  %v6620_v1 = vmul.f32 %v6610_v59, %v6161_v39  ;;  %v12358_v46 = vld [vmem:[#allocation23_spill] sm:$0xff] }
 0x192   :  { %v6624_v44 = vmul.f32 %v6153_v35, %v6610_v59  ;;  %v6628_v33 = vmul.f32 %v6159_v38, %v6610_v59  ;;  %v6632_v9 = vmul.f32 %v6610_v59, %v6182_v55  ;;  %v6636_v36 = vmul.f32 %v6610_v59, %v6191_v63 }
 0x193   :  { %v6639_v41 = vrot.slane %v1079_v17, %v6604_v20  ;;  %v6643_v39 = vmul.f32 %v6180_v53, %v6610_v59  ;;  %v6647_v35 = vmul.f32 %v6189_v60, %v6610_v59  ;;  %v6651_v38 = vmul.f32 %v6610_v59, %v6216_v18  ;;  %v12366_v20 = vld [vmem:[#allocation13_spill] sm:$0xff] }
 0x194   :  { %v6655_v55 = vmul.f32 %v6610_v59, %v6227_v27  ;;  %v6659_v63 = vmul.f32 %v6212_v15, %v6610_v59  ;;  %v6663_v53 = vmul.f32 %v6225_v24, %v6610_v59  ;;  %v6667_v60 = vmul.f32 %v6610_v59, %v6252_v50 }
 0x195   :  { %v6670_v3 = vadd.f32 %v6639_v41, %v1074_v11  ;;  %v6674_v18 = vmul.f32 %v6610_v59, %v6263_v62  ;;  %v6678_v27 = vmul.f32 %v6248_v47, %v6610_v59  ;;  %v6682_v15 = vmul.f32 %v6261_v58, %v6610_v59  ;;  %v12350_v58 = vld [vmem:[#allocation15_spill] sm:$0xff]  ;;  %v12359_v11 = vld [vmem:[#allocation25_spill] sm:$0xff] }
 0x196   :  { %v6686_v24 = vmul.f32 %v6610_v59, %v6288_v25  ;;  %v6690_v50 = vmul.f32 %v6610_v59, %v6299_v37  ;;  %v6694_v62 = vmul.f32 %v6284_v21, %v6610_v59  ;;  %v6698_v47 = vmul.f32 %v6297_v32, %v6610_v59  ;;  %v12351_v25 = vld [vmem:[#allocation17_spill] sm:$0xff]  ;;  %v12352_v37 = vld [vmem:[#allocation14_spill] sm:$0xff]  ;;  %v12353_v21 = vld [vmem:[#allocation16_spill] sm:$0xff] }
 0x197   :  { %12349 = vst [vmem:[#allocation33_spill] sm:$0xff] %v6670_v3  ;;  %v6703_v43 = vmul.f32 %v6610_v59, %v12350_v58  ;;  %v6707_v61 = vmul.f32 %v6610_v59, %v12351_v25  ;;  %v6711_v16 = vmul.f32 %v12352_v37, %v6610_v59  ;;  %v6715_v40 = vmul.f32 %v12353_v21, %v6610_v59  ;;  %v12354_v32 = vld [vmem:[#allocation19_spill] sm:$0xff]  ;;  %v12360_v58 = vld [vmem:[#allocation22_spill] sm:$0xff]  ;;  %v12361_v37 = vld [vmem:[#allocation24_spill] sm:$0xff] }
 0x198   :  { %v6719_v51 = vmul.f32 %v6610_v59, %v12354_v32  ;;  %v6723_v34 = vmul.f32 %v6610_v59, %v12355_v31  ;;  %v6727_v26 = vmul.f32 %v12356_v30, %v6610_v59  ;;  %v6731_v12 = vmul.f32 %v12357_v6, %v6610_v59  ;;  %v12362_v32 = vld [vmem:[#allocation9_spill] sm:$0xff]  ;;  %v12363_v30 = vld [vmem:[#allocation11_spill] sm:$0xff]  ;;  %v12367_v3 = vld [vmem:[#allocation12_spill] sm:$0xff] }
 0x199   :  { %v6735_v7 = vmul.f32 %v6610_v59, %v12358_v46  ;;  %v6739_v17 = vmul.f32 %v6610_v59, %v12359_v11  ;;  %v6743_v25 = vmul.f32 %v12360_v58, %v6610_v59  ;;  %v6747_v21 = vmul.f32 %v12361_v37, %v6610_v59  ;;  %v12364_v46 = vld [vmem:[#allocation8_spill] sm:$0xff] }
 0x19a   :  { %v6751_v31 = vmul.f32 %v6610_v59, %v12362_v32  ;;  %v6755_v6 = vmul.f32 %v6610_v59, %v12363_v30  ;;  %v6759_v11 = vmul.f32 %v12364_v46, %v6610_v59  ;;  %v6763_v58 = vmul.f32 %v12365_v54, %v6610_v59 }
 0x19b   :  { %v6767_v37 = vmul.f32 %v6610_v59, %v12366_v20  ;;  %v6771_v32 = vmul.f32 %v6610_v59, %v6254_v52  ;;  %v6775_v30 = vmul.f32 %v12367_v3, %v6610_v59  ;;  %v6779_v46 = vmul.f32 %v6250_v48, %v6610_v59 }
 0x19c   :  { %v6783_v54 = vmul.f32 %v6610_v59, %v6279_v14  ;;  %v6787_v20 = vmul.f32 %v6610_v59, %v6290_v28  ;;  %v6791_v52 = vmul.f32 %v6277_v10, %v6610_v59  ;;  %v6795_v3 = vmul.f32 %v6286_v22, %v6610_v59 }
 0x19d   :  { %v6799_v48 = vmul.f32 %v6610_v59, %v6315_v0  ;;  %v6803_v14 = vmul.f32 %v6610_v59, %v6326_v8  ;;  %v6807_v28 = vmul.f32 %v6313_v57, %v6610_v59  ;;  %v6811_v10 = vmul.f32 %v6322_v4, %v6610_v59 }
 0x19e   :  { %v6815_v22 = vmul.f32 %v6610_v59, %v6351_v56  ;;  %v6819_v0 = vmul.f32 %v6610_v59, %v6362_v13  ;;  %v6823_v8 = vmul.f32 %v6349_v49, %v6610_v59  ;;  %v6827_v57 = vmul.f32 %v6358_v2, %v6610_v59 }
 0x19f   :  { %v6831_v4 = vmul.f32 %v6610_v59, %v6387_v23  ;;  %v6835_v56 = vmul.f32 %v6610_v59, %v6398_v45  ;;  %v6839_v13 = vmul.f32 %v6385_v5, %v6610_v59  ;;  %v6843_v49 = vmul.f32 %v6394_v42, %v6610_v59 }
 0x1a0   :  { %12368 = vst [vmem:[#allocation15_spill] sm:$0xff] %v6827_v57  ;;  %v6847_v2 = vmul.f32 %v6610_v59, %v6425_v29  ;;  %v12374_v57 = vld [vmem:[#allocation28_spill] sm:$0xff] }
 0x1a1   :  { %12369 = vst [vmem:[#allocation17_spill] sm:$0xff] %v6831_v4  ;;  %12370 = vst [vmem:[#allocation14_spill] sm:$0xff] %v6835_v56  ;;  %v6851_v23 = vmul.f32 %v6610_v59, %v12374_v57  ;;  %v12375_v4 = vld [vmem:[#allocation26_spill] sm:$0xff]  ;;  %v12376_v56 = vld [vmem:[#allocation27_spill] sm:$0xff] }
 0x1a2   :  { %12371 = vst [vmem:[#allocation16_spill] sm:$0xff] %v6839_v13  ;;  %12372 = vst [vmem:[#allocation19_spill] sm:$0xff] %v6843_v49  ;;  %v6855_v45 = vmul.f32 %v12375_v4, %v6610_v59  ;;  %v6859_v5 = vmul.f32 %v12376_v56, %v6610_v59  ;;  %v12377_v13 = vld [vmem:[#allocation30_spill] sm:$0xff]  ;;  %v12378_v49 = vld [vmem:[#allocation29_spill] sm:$0xff]  ;;  %v6875_v4 = vadd.f32 %v6639_v41, %v6616_v19 }
 0x1a3   :  { %12373 = vst [vmem:[#allocation21_spill] sm:$0xff] %v6847_v2  ;;  %v6863_v42 = vmul.f32 %v6610_v59, %v12377_v13  ;;  %v6867_v29 = vmul.f32 %v12378_v49, %v6610_v59  ;;  %v12379_v2 = vld [vmem:[#allocation31_spill] sm:$0xff]  ;;  %v6879_v56 = vadd.f32 %v6639_v41, %v6620_v1  ;;  %v6883_v13 = vadd.f32 %v6639_v41, %v6624_v44 }
 0x1a4   :  { %v6871_v57 = vmul.f32 %v12379_v2, %v6610_v59  ;;  %12380 = vst [vmem:[#allocation18_spill] sm:$0xff] %v6875_v4  ;;  %v6887_v49 = vadd.f32 %v6639_v41, %v6628_v33  ;;  %v6891_v59 = vadd.f32 %v6639_v41, %v6632_v9  ;;  %v6895_v19 = vadd.f32 %v6639_v41, %v6636_v36 }
 0x1a5   :  { %v6899_v1 = vadd.f32 %v6639_v41, %v6643_v39  ;;  %v6903_v44 = vadd.f32 %v6639_v41, %v6647_v35  ;;  %v6907_v33 = vadd.f32 %v6639_v41, %v6651_v38  ;;  %v6911_v9 = vadd.f32 %v6639_v41, %v6655_v55 }
 0x1a6   :  { %v6915_v36 = vadd.f32 %v6639_v41, %v6659_v63  ;;  %v6919_v39 = vadd.f32 %v6639_v41, %v6663_v53  ;;  %v6923_v35 = vadd.f32 %v6639_v41, %v6667_v60  ;;  %v6927_v38 = vadd.f32 %v6639_v41, %v6674_v18 }
 0x1a7   :  { %v6931_v55 = vadd.f32 %v6639_v41, %v6678_v27  ;;  %v6935_v63 = vadd.f32 %v6639_v41, %v6682_v15  ;;  %v6939_v53 = vadd.f32 %v6639_v41, %v6686_v24  ;;  %v6943_v60 = vadd.f32 %v6639_v41, %v6690_v50  ;;  %v12386_v2 = vld [vmem:[#allocation15_spill] sm:$0xff] }
 0x1a8   :  { %v6947_v18 = vadd.f32 %v6639_v41, %v6694_v62  ;;  %v6951_v27 = vadd.f32 %v6639_v41, %v6698_v47  ;;  %v6955_v15 = vadd.f32 %v6639_v41, %v6703_v43  ;;  %v6959_v24 = vadd.f32 %v6639_v41, %v6707_v61 }
 0x1a9   :  { %v6963_v50 = vadd.f32 %v6639_v41, %v6711_v16  ;;  %v6967_v62 = vadd.f32 %v6639_v41, %v6715_v40  ;;  %v6971_v47 = vadd.f32 %v6639_v41, %v6719_v51  ;;  %v6975_v43 = vadd.f32 %v6639_v41, %v6723_v34 }
 0x1aa   :  { %v6979_v61 = vadd.f32 %v6639_v41, %v6727_v26  ;;  %v6983_v16 = vadd.f32 %v6639_v41, %v6731_v12  ;;  %v6987_v40 = vadd.f32 %v6639_v41, %v6735_v7  ;;  %v6991_v51 = vadd.f32 %v6639_v41, %v6739_v17 }
 0x1ab   :  { %v6995_v34 = vadd.f32 %v6639_v41, %v6743_v25  ;;  %v6999_v26 = vadd.f32 %v6639_v41, %v6747_v21  ;;  %v7003_v12 = vadd.f32 %v6639_v41, %v6751_v31  ;;  %v7007_v7 = vadd.f32 %v6639_v41, %v6755_v6 }
 0x1ac   :  { %v7011_v17 = vadd.f32 %v6639_v41, %v6759_v11  ;;  %v7015_v25 = vadd.f32 %v6639_v41, %v6763_v58  ;;  %v7019_v21 = vadd.f32 %v6639_v41, %v6767_v37  ;;  %v7023_v31 = vadd.f32 %v6639_v41, %v6771_v32 }
 0x1ad   :  { %v7027_v6 = vadd.f32 %v6639_v41, %v6775_v30  ;;  %v7031_v11 = vadd.f32 %v6639_v41, %v6779_v46  ;;  %v7035_v58 = vadd.f32 %v6639_v41, %v6783_v54  ;;  %v7039_v37 = vadd.f32 %v6639_v41, %v6787_v20 }
 0x1ae   :  { %v7043_v32 = vadd.f32 %v6639_v41, %v6791_v52  ;;  %v7047_v30 = vadd.f32 %v6639_v41, %v6795_v3  ;;  %v7051_v46 = vadd.f32 %v6639_v41, %v6799_v48  ;;  %v7055_v54 = vadd.f32 %v6639_v41, %v6803_v14 }
 0x1af   :  { %v7059_v20 = vadd.f32 %v6639_v41, %v6807_v28  ;;  %v7063_v52 = vadd.f32 %v6639_v41, %v6811_v10  ;;  %v7067_v3 = vadd.f32 %v6639_v41, %v6815_v22  ;;  %v7071_v48 = vadd.f32 %v6639_v41, %v6819_v0 }
 0x1b0   :  { %v7075_v14 = vadd.f32 %v6639_v41, %v6823_v8  ;;  %v7079_v28 = vadd.f32 %v6639_v41, %v12386_v2 }
 0x1b1   :  { %12381 = vst [vmem:[#allocation20_spill] sm:$0xff] %v7059_v20  ;;  %12382 = vst [vmem:[#allocation23_spill] sm:$0xff] %v7063_v52  ;;  %v12387_v20 = vld [vmem:[#allocation17_spill] sm:$0xff]  ;;  %v12388_v52 = vld [vmem:[#allocation14_spill] sm:$0xff] }
 0x1b2   :  { %12383 = vst [vmem:[#allocation25_spill] sm:$0xff] %v7067_v3  ;;  %12384 = vst [vmem:[#allocation22_spill] sm:$0xff] %v7071_v48  ;;  %v7083_v10 = vadd.f32 %v6639_v41, %v12387_v20  ;;  %v7087_v22 = vadd.f32 %v6639_v41, %v12388_v52  ;;  %v12389_v3 = vld [vmem:[#allocation16_spill] sm:$0xff]  ;;  %v12390_v48 = vld [vmem:[#allocation19_spill] sm:$0xff]  ;;  %v7103_v20 = vadd.f32 %v6639_v41, %v6851_v23 }
 0x1b3   :  { %12385 = vst [vmem:[#allocation24_spill] sm:$0xff] %v7075_v14  ;;  %v7091_v0 = vadd.f32 %v6639_v41, %v12389_v3  ;;  %v7095_v8 = vadd.f32 %v6639_v41, %v12390_v48  ;;  %v12392_v14 = vld [vmem:[#allocation21_spill] sm:$0xff]  ;;  %v7107_v52 = vadd.f32 %v6639_v41, %v6855_v45  ;;  %v7111_v3 = vadd.f32 %v6639_v41, %v6859_v5 }
 0x1b4   :  { %v7099_v2 = vadd.f32 %v6639_v41, %v12392_v14  ;;  %12394 = vst [vmem:[#allocation8_spill] sm:$0xff] %v7103_v20  ;;  %v7115_v48 = vadd.f32 %v6639_v41, %v6863_v42  ;;  %v7119_v14 = vadd.f32 %v6639_v41, %v6867_v29  ;;  %v7123_v23 = vadd.f32 %v6639_v41, %v6871_v57 }
 0x1b5   :  { %12391 = vst [vmem:[#allocation9_spill] sm:$0xff] %v7095_v8  ;;  %12395 = vst [vmem:[#allocation10_spill] sm:$0xff] %v7107_v52  ;;  %v1151_v45 = vmax.f32 %v6879_v56, 0.0  ;;  %v1152_v52 = vmax.f32 %v6883_v13, 0.0  ;;  %v1153_v5 = vmax.f32 %v6887_v49, 0.0  ;;  %v1155_v42 = vmax.f32 %v6895_v19, 0.0 }
 0x1b6   :  { %12393 = vst [vmem:[#allocation11_spill] sm:$0xff] %v7099_v2  ;;  %12396 = vst [vmem:[#allocation13_spill] sm:$0xff] %v7111_v3  ;;  %v1154_v3 = vmax.f32 %v6891_v59, 0.0  ;;  %v1157_v29 = vmax.f32 %v6903_v44, 0.0  ;;  %v1159_v41 = vmax.f32 %v6911_v9, 0.0  ;;  %v1160_v57 = vmax.f32 %v6915_v36, 0.0 }
 0x1b7   :  { %12397 = vst [vmem:[#allocation12_spill] sm:$0xff] %v7115_v48  ;;  %12398 = vst [vmem:[#allocation28_spill] sm:$0xff] %v7119_v14  ;;  %v1156_v48 = vmax.f32 %v6899_v1, 0.0  ;;  %v1158_v14 = vmax.f32 %v6907_v33, 0.0  ;;  %v1161_v56 = vmax.f32 %v6919_v39, 0.0  ;;  %v1162_v13 = vmax.f32 %v6923_v35, 0.0 }
 0x1b8   :  { %12399 = vst [vmem:[#allocation26_spill] sm:$0xff] %v7123_v23  ;;  %v1163_v49 = vmax.f32 %v6927_v38, 0.0  ;;  %v1164_v59 = vmax.f32 %v6931_v55, 0.0  ;;  %v1165_v19 = vmax.f32 %v6935_v63, 0.0  ;;  %v1166_v1 = vmax.f32 %v6939_v53, 0.0  ;;  %v12400_v20 = vld [vmem:[#allocation20_spill] sm:$0xff] }
 0x1b9   :  { %v1167_v44 = vmax.f32 %v6943_v60, 0.0  ;;  %v1168_v33 = vmax.f32 %v6947_v18, 0.0  ;;  %v1169_v9 = vmax.f32 %v6951_v27, 0.0  ;;  %v1170_v36 = vmax.f32 %v6955_v15, 0.0  ;;  %v12401_v4 = vld [vmem:[#allocation23_spill] sm:$0xff]  ;;  %v12402_v23 = vld [vmem:[#allocation25_spill] sm:$0xff] }
 0x1ba   :  { %v1171_v39 = vmax.f32 %v6959_v24, 0.0  ;;  %v1172_v35 = vmax.f32 %v6963_v50, 0.0  ;;  %v1173_v38 = vmax.f32 %v6967_v62, 0.0  ;;  %v1174_v55 = vmax.f32 %v6971_v47, 0.0  ;;  %v12403_v2 = vld [vmem:[#allocation22_spill] sm:$0xff]  ;;  %v12404_v8 = vld [vmem:[#allocation24_spill] sm:$0xff] }
 0x1bb   :  { %v1175_v63 = vmax.f32 %v6975_v43, 0.0  ;;  %v1176_v53 = vmax.f32 %v6979_v61, 0.0  ;;  %v1177_v60 = vmax.f32 %v6983_v16, 0.0  ;;  %v1178_v18 = vmax.f32 %v6987_v40, 0.0 }
 0x1bc   :  { %v1179_v27 = vmax.f32 %v6991_v51, 0.0  ;;  %v1180_v15 = vmax.f32 %v6995_v34, 0.0  ;;  %v1181_v24 = vmax.f32 %v6999_v26, 0.0  ;;  %v1182_v50 = vmax.f32 %v7003_v12, 0.0 }
 0x1bd   :  { %v1183_v62 = vmax.f32 %v7007_v7, 0.0  ;;  %v1184_v47 = vmax.f32 %v7011_v17, 0.0  ;;  %v1185_v43 = vmax.f32 %v7015_v25, 0.0  ;;  %v1186_v61 = vmax.f32 %v7019_v21, 0.0 }
 0x1be   :  { %v1187_v16 = vmax.f32 %v7023_v31, 0.0  ;;  %v1188_v40 = vmax.f32 %v7027_v6, 0.0  ;;  %v1189_v51 = vmax.f32 %v7031_v11, 0.0  ;;  %v1190_v34 = vmax.f32 %v7035_v58, 0.0 }
 0x1bf   :  { %v1191_v26 = vmax.f32 %v7039_v37, 0.0  ;;  %v1192_v12 = vmax.f32 %v7043_v32, 0.0  ;;  %v1193_v7 = vmax.f32 %v7047_v30, 0.0  ;;  %v1194_v17 = vmax.f32 %v7051_v46, 0.0 }
 0x1c0   :  { %v1195_v25 = vmax.f32 %v7055_v54, 0.0  ;;  %v1196_v21 = vmax.f32 %v12400_v20, 0.0  ;;  %v1197_v31 = vmax.f32 %v12401_v4, 0.0  ;;  %v1198_v6 = vmax.f32 %v12402_v23, 0.0  ;;  %v12405_v54 = vld [vmem:[#allocation9_spill] sm:$0xff]  ;;  %v12406_v4 = vld [vmem:[#allocation11_spill] sm:$0xff] }
 0x1c1   :  { %v1199_v11 = vmax.f32 %v12403_v2, 0.0  ;;  %v1200_v58 = vmax.f32 %v12404_v8, 0.0  ;;  %v1201_v37 = vmax.f32 %v7079_v28, 0.0  ;;  %v1202_v32 = vmax.f32 %v7083_v10, 0.0  ;;  %v12407_v2 = vld [vmem:[#allocation8_spill] sm:$0xff]  ;;  %v12408_v28 = vld [vmem:[#allocation10_spill] sm:$0xff] }
 0x1c2   :  { %v1203_v30 = vmax.f32 %v7087_v22, 0.0  ;;  %v1204_v46 = vmax.f32 %v7091_v0, 0.0  ;;  %v1205_v20 = vmax.f32 %v12405_v54, 0.0  ;;  %v1206_v23 = vmax.f32 %v12406_v4, 0.0  ;;  %v12409_v22 = vld [vmem:[#allocation13_spill] sm:$0xff]  ;;  %v12410_v54 = vld [vmem:[#allocation12_spill] sm:$0xff] }
 0x1c3   :  { %v1207_v8 = vmax.f32 %v12407_v2, 0.0  ;;  %v1208_v10 = vmax.f32 %v12408_v28, 0.0  ;;  %v1209_v0 = vmax.f32 %v12409_v22, 0.0  ;;  %v1210_v4 = vmax.f32 %v12410_v54, 0.0  ;;  %v12411_v2 = vld [vmem:[#allocation28_spill] sm:$0xff]  ;;  %v12412_v22 = vld [vmem:[#allocation26_spill] sm:$0xff] }
 0x1c4   :  { %v1212_v28 = vmax.f32 %v12411_v2, 0.0  ;;  %v1213_v54 = vmax.f32 %v12412_v22, 0.0  ;;  %v12413_v2 = vld [vmem:[#allocation18_spill] sm:$0xff] }
 0x1c5   :  { %v12414_v22 = vmax.f32 %v12413_v2, 0.0 }
 0x1c7   :  { %v1214_v2 = vpack.c.bf16 %v1151_v45, %v12414_v22  ;;  %v1215_v22 = vpack.c.bf16 %v1153_v5, %v1152_v52  ;;  %v1216_v45 = vpack.c.bf16 %v1155_v42, %v1154_v3  ;;  %v1217_v5 = vpack.c.bf16 %v1157_v29, %v1156_v48 }
 0x1c8   :  { %v1218_v52 = vpack.c.bf16 %v1159_v41, %v1158_v14  ;;  %v1219_v3 = vpack.c.bf16 %v1161_v56, %v1160_v57  ;;  %v1220_v42 = vpack.c.bf16 %v1163_v49, %v1162_v13  ;;  %v1221_v29 = vpack.c.bf16 %v1165_v19, %v1164_v59 }
 0x1c9   :  { %5794 = vmatprep.mubr.msk.bf16.mxu1 %vm669_vm2, %v1214_v2  ;;  %v1222_v48 = vpack.c.bf16 %v1167_v44, %v1166_v1  ;;  %v1223_v14 = vpack.c.bf16 %v1169_v9, %v1168_v33  ;;  %v1224_v41 = vpack.c.bf16 %v1171_v39, %v1170_v36  ;;  %v1225_v56 = vpack.c.bf16 %v1173_v38, %v1172_v35 }
 0x1ca   :  { %5795 = vmatmul.mubr.msk.bf16.vlgmr.msra.gmra.mrb[32].mxu1 %vm669_vm2, %v1215_v22  ;;  %v1226_v57 = vpack.c.bf16 %v1175_v63, %v1174_v55  ;;  %v1227_v2 = vpack.c.bf16 %v1177_v60, %v1176_v53  ;;  %v1228_v13 = vpack.c.bf16 %v1179_v27, %v1178_v18  ;;  %v1229_v49 = vpack.c.bf16 %v1181_v24, %v1180_v15  ;;  %v12415_v60 = vld [vmem:[#allocation33_spill] sm:$0xff] }
 0x1cb   :  { %5798 = vmatprep.mubr.msk.bf16.mxu1 %vm669_vm2, %v1216_v45  ;;  %v1230_v19 = vpack.c.bf16 %v1183_v62, %v1182_v50  ;;  %v1231_v59 = vpack.c.bf16 %v1185_v43, %v1184_v47  ;;  %v1232_v1 = vpack.c.bf16 %v1187_v16, %v1186_v61  ;;  %v1233_v44 = vpack.c.bf16 %v1189_v51, %v1188_v40 }
 0x1cc   :  { %v1234_v9 = vpack.c.bf16 %v1191_v26, %v1190_v34  ;;  %v1235_v33 = vpack.c.bf16 %v1193_v7, %v1192_v12  ;;  %v1236_v22 = vpack.c.bf16 %v1195_v25, %v1194_v17  ;;  %v1237_v36 = vpack.c.bf16 %v1197_v31, %v1196_v21 }
 0x1cd   :  { %v1238_v39 = vpack.c.bf16 %v1199_v11, %v1198_v6  ;;  %v1239_v35 = vpack.c.bf16 %v1201_v37, %v1200_v58  ;;  %v1240_v38 = vpack.c.bf16 %v1203_v30, %v1202_v32  ;;  %v1241_v55 = vpack.c.bf16 %v1205_v20, %v1204_v46 }
 0x1ce   :  { %v1242_v63 = vpack.c.bf16 %v1207_v8, %v1206_v23  ;;  %v1243_v53 = vpack.c.bf16 %v1209_v0, %v1208_v10  ;;  %v12416_v45 = vmax.f32 %v12415_v60, 0.0  ;;  %v1245_v27 = vpack.c.bf16 %v1213_v54, %v1212_v28 }
 0x1cf   :  { %v6034_v15 = vmov 0.0  }
 0x1d0   :  { %v1244_v18 = vpack.c.bf16 %v12416_v45, %v1210_v4  ;;  %2210 = vrot.lane.b32.xlu0 %v6034_v15, %s6035_s2 }
 0x1d2   :  { %5799 = vmatmul.mubr.msk.bf16.gmra.mrb[36].mxu1 %vm669_vm2, %v1217_v5 }
 0x1d3   :  { %5802 = vmatprep.mubr.msk.bf16.mxu1 %vm669_vm2, %v1218_v52 }
 0x1da   :  { %5803 = vmatmul.mubr.msk.bf16.gmra.mrb[40].mxu1 %vm669_vm2, %v1219_v3 }
 0x1db   :  { %5806 = vmatprep.mubr.msk.bf16.mxu1 %vm669_vm2, %v1220_v42 }
 0x1e2   :  { %5807 = vmatmul.mubr.msk.bf16.gmra.mrb[44].mxu1 %vm669_vm2, %v1221_v29 }
 0x1e3   :  { %5810 = vmatprep.mubr.msk.bf16.mxu1 %vm669_vm2, %v1222_v48 }
 0x1ea   :  { %5811 = vmatmul.mubr.msk.bf16.gmra.mrb[48].mxu1 %vm669_vm2, %v1223_v14 }
 0x1eb   :  { %5814 = vmatprep.mubr.msk.bf16.mxu1 %vm669_vm2, %v1224_v41 }
 0x1f2   :  { %5815 = vmatmul.mubr.msk.bf16.gmra.mrb[52].mxu1 %vm669_vm2, %v1225_v56 }
 0x1f3   :  { %5818 = vmatprep.mubr.msk.bf16.mxu1 %vm669_vm2, %v1226_v57 }
 0x1fa   :  { %5819 = vmatmul.mubr.msk.bf16.gmra.mrb[56].mxu1 %vm669_vm2, %v1227_v2 }
 0x1fb   :  { %5822 = vmatprep.mubr.msk.bf16.mxu1 %vm669_vm2, %v1228_v13 }
 0x202   :  { %5823 = vmatmul.mubr.msk.bf16.gmra.mrb[60].mxu1 %vm669_vm2, %v1229_v49 }
 0x203   :  { %5826 = vmatprep.mubr.msk.bf16.mxu1 %vm669_vm2, %v1230_v19 }
 0x20a   :  { %5827 = vmatmul.mubr.msk.bf16.gmra.mrb[64].mxu1 %vm669_vm2, %v1231_v59 }
 0x20b   :  { %5830 = vmatprep.mubr.msk.bf16.mxu1 %vm669_vm2, %v1232_v1 }
 0x212   :  { %5831 = vmatmul.mubr.msk.bf16.gmra.mrb[68].mxu1 %vm669_vm2, %v1233_v44 }
 0x213   :  { %5834 = vmatprep.mubr.msk.bf16.mxu1 %vm669_vm2, %v1234_v9 }
 0x21a   :  { %5835 = vmatmul.mubr.msk.bf16.gmra.mrb[72].mxu1 %vm669_vm2, %v1235_v33 }
 0x21b   :  { %5838 = vmatprep.mubr.msk.bf16.mxu1 %vm669_vm2, %v1236_v22 }
 0x222   :  { %5839 = vmatmul.mubr.msk.bf16.gmra.mrb[76].mxu1 %vm669_vm2, %v1237_v36 }
 0x223   :  { %5842 = vmatprep.mubr.msk.bf16.mxu1 %vm669_vm2, %v1238_v39 }
 0x22a   :  { %5843 = vmatmul.mubr.msk.bf16.gmra.mrb[80].mxu1 %vm669_vm2, %v1239_v35 }
 0x22b   :  { %5846 = vmatprep.mubr.msk.bf16.mxu1 %vm669_vm2, %v1240_v38 }
 0x232   :  { %5847 = vmatmul.mubr.msk.bf16.gmra.mrb[84].mxu1 %vm669_vm2, %v1241_v55 }
 0x233   :  { %5850 = vmatprep.mubr.msk.bf16.mxu1 %vm669_vm2, %v1242_v63 }
 0x23a   :  { %5851 = vmatmul.mubr.msk.bf16.gmra.mrb[88].mxu1 %vm669_vm2, %v1243_v53 }
 0x23b   :  { %5854 = vmatprep.mubr.msk.bf16.mxu1 %vm669_vm2, %v1244_v18 }
 0x242   :  { %5855 = vmatmul.mubr.msk.bf16.gmra.mrb[92].mxu1 %vm669_vm2, %v1245_v27 }
 0x29d   :  { %v7225_v24 = vpop.f32.mrb[32].mxu1 }
 0x29e   :  { %12417 = vst [vmem:[#allocation27_spill] sm:$0xff] %v7225_v24  ;;  %2150 = vrot.lane.b32.xlu0 %v7225_v24, %s6035_s2  ;;  %v7229_v50 = vpop.f32.mrb[33].mxu1  ;;  %v1704_v43 = vrot.slane %v7225_v24, 1 }
 0x29f   :  { %12418 = vst [vmem:[#allocation30_spill] sm:$0xff] %v7229_v50  ;;  %v7231_v62 = vpop.f32.mrb[34].mxu1  ;;  %v1701_v16 = vrot.slane %v7229_v50, 1 }
 0x2a0   :  { %12419 = vst [vmem:[#allocation29_spill] sm:$0xff] %v7231_v62  ;;  %2152 = vrot.lane.b32.xlu1 %v7231_v62, %s6035_s2  ;;  %v7235_v47 = vpop.f32.mrb[35].mxu1  ;;  %v1705_v61 = vrot.slane %v7231_v62, 1 }
 0x2a1   :  { %12420 = vst [vmem:[#allocation31_spill] sm:$0xff] %v7235_v47  ;;  %v1702_v40 = vrot.slane %v7235_v47, 1 }
 0x2a2   :  { %2705 = vrot.lane.b32.xlu0 %v7225_v24, %s6036_s3  ;;  %v1706_v51 = vsel %vm1700_vm3, %v1704_v43, %v1705_v61  ;;  %v1830_v10 = vsel %vm1700_vm3, %v1705_v61, 0.0 }
 0x2a3   :  { %v1703_v34 = vsel %vm1700_vm3, %v1701_v16, %v1702_v40  ;;  %v1829_v17 = vsel %vm1700_vm3, %v1702_v40, 0.0 }
 0x2a4   :  { %2703 = vrot.lane.b32.xlu1 %v7235_v47, %s6036_s3 }
 0x2a5   :  { %v7247_v26 = vpop.f32.mrb[36].mxu1 }
 0x2a6   :  { %12421 = vst [vmem:[#allocation15_spill] sm:$0xff] %v7247_v26  ;;  %2701 = vrot.lane.b32.xlu0 %v7229_v50, %s6036_s3  ;;  %v7251_v12 = vpop.f32.mrb[37].mxu1  ;;  %v1710_v31 = vrot.slane %v7247_v26, 1 }
 0x2a7   :  { %12422 = vst [vmem:[#allocation17_spill] sm:$0xff] %v7251_v12  ;;  %v7253_v7 = vpop.f32.mrb[38].mxu1  ;;  %v1707_v6 = vrot.slane %v7251_v12, 1 }
 0x2a8   :  { %12423 = vst [vmem:[#allocation14_spill] sm:$0xff] %v7253_v7  ;;  %1895 = vrot.lane.b32.xlu1 %v1829_v17, %s6037_s12  ;;  %v7257_v25 = vpop.f32.mrb[39].mxu1  ;;  %v1711_v21 = vrot.slane %v7253_v7, 1 }
 0x2a9   :  { %12424 = vst [vmem:[#allocation16_spill] sm:$0xff] %v7257_v25  ;;  %v1708_v11 = vrot.slane %v7257_v25, 1 }
 0x2aa   :  { %2707 = vrot.lane.b32.xlu0 %v7231_v62, %s6036_s3  ;;  %v7266_v58 = vsel %vm1700_vm3, %v1710_v31, %v1711_v21  ;;  %v1832_v54 = vsel %vm1700_vm3, %v1711_v21, 0.0 }
 0x2ab   :  { %v1709_v37 = vsel %vm1700_vm3, %v1707_v6, %v1708_v11  ;;  %v1831_v2 = vsel %vm1700_vm3, %v1708_v11, 0.0 }
 0x2ac   :  { %2160 = vrot.lane.b32.xlu1 %v7253_v7, %s6035_s2 }
 0x2ad   :  { %v7271_v32 = vpop.f32.mrb[40].mxu1 }
 0x2ae   :  { %12425 = vst [vmem:[#allocation19_spill] sm:$0xff] %v7271_v32  ;;  %1897 = vrot.lane.b32.xlu0 %v1706_v51, %s6037_s12  ;;  %v7274_v30 = vpop.f32.mrb[41].mxu1  ;;  %v1716_v8 = vrot.slane %v7271_v32, 1 }
 0x2af   :  { %12426 = vst [vmem:[#allocation21_spill] sm:$0xff] %v7274_v30  ;;  %v7276_v46 = vpop.f32.mrb[42].mxu1  ;;  %v1713_v4 = vrot.slane %v7274_v30, 1 }
 0x2b0   :  { %12427 = vst [vmem:[#allocation20_spill] sm:$0xff] %v7276_v46  ;;  %2156 = vrot.lane.b32.xlu1 %v7257_v25, %s6035_s2  ;;  %v7280_v20 = vpop.f32.mrb[43].mxu1  ;;  %v1717_v23 = vrot.slane %v7276_v46, 1 }
 0x2b1   :  { %12428 = vst [vmem:[#allocation23_spill] sm:$0xff] %v7280_v20  ;;  %v1714_v0 = vrot.slane %v7280_v20, 1 }
 0x2b2   :  { %1899 = vrot.lane.b32.xlu0 %v1830_v10, %s6037_s12  ;;  %v7289_v28 = vsel %vm1700_vm3, %v1716_v8, %v1717_v23  ;;  %v1834_v63 = vsel %vm1700_vm3, %v1717_v23, 0.0 }
 0x2b3   :  { %v7293_v5 = vsel %vm1700_vm3, %v1713_v4, %v1714_v0  ;;  %v1833_v43 = vsel %vm1700_vm3, %v1714_v0, 0.0 }
 0x2b4   :  { %1907 = vrot.lane.b32.xlu1 %v1832_v54, %s6037_s12 }
 0x2b5   :  { %v7296_v52 = vpop.f32.mrb[44].mxu1 }
 0x2b6   :  { %12429 = vst [vmem:[#allocation25_spill] sm:$0xff] %v7296_v52  ;;  %1893 = vrot.lane.b32.xlu0 %v1703_v34, %s6037_s12  ;;  %v7299_v3 = vpop.f32.mrb[45].mxu1  ;;  %v1722_v14 = vrot.slane %v7296_v52, 1 }
 0x2b7   :  { %12430 = vst [vmem:[#allocation22_spill] sm:$0xff] %v7299_v3  ;;  %v7301_v42 = vpop.f32.mrb[46].mxu1  ;;  %v1719_v56 = vrot.slane %v7299_v3, 1 }
 0x2b8   :  { %12431 = vst [vmem:[#allocation24_spill] sm:$0xff] %v7301_v42  ;;  %1901 = vrot.lane.b32.xlu1 %v1709_v37, %s6037_s12  ;;  %v7304_v29 = vpop.f32.mrb[47].mxu1  ;;  %v1723_v48 = vrot.slane %v7301_v42, 1 }
 0x2b9   :  { %12432 = vst [vmem:[#allocation9_spill] sm:$0xff] %v7304_v29  ;;  %v1720_v41 = vrot.slane %v7304_v29, 1 }
 0x2ba   :  { %2158 = vrot.lane.b32.xlu0 %v7247_v26, %s6035_s2  ;;  %v7313_v57 = vsel %vm1700_vm3, %v1722_v14, %v1723_v48  ;;  %v1836_v10 = vsel %vm1700_vm3, %v1723_v48, 0.0 }
 0x2bb   :  { %v7319_v13 = vsel %vm1700_vm3, %v1719_v56, %v1720_v41  ;;  %v1835_v48 = vsel %vm1700_vm3, %v1720_v41, 0.0 }
 0x2bc   :  { %1903 = vrot.lane.b32.xlu1 %v1831_v2, %s6037_s12 }
 0x2bd   :  { %v7322_v49 = vpop.f32.mrb[48].mxu1 }
 0x2be   :  { %2713 = vrot.lane.b32.xlu0 %v7247_v26, %s6036_s3  ;;  %v7326_v19 = vpop.f32.mrb[49].mxu1  ;;  %v1728_v9 = vrot.slane %v7322_v49, 1 }
 0x2bf   :  { %12433 = vst [vmem:[#allocation11_spill] sm:$0xff] %v7326_v19  ;;  %v7328_v59 = vpop.f32.mrb[50].mxu1  ;;  %v1725_v22 = vrot.slane %v7326_v19, 1 }
 0x2c0   :  { %2168 = vrot.lane.b32.xlu1 %v7276_v46, %s6035_s2  ;;  %v7332_v1 = vpop.f32.mrb[51].mxu1  ;;  %v1729_v44 = vrot.slane %v7328_v59, 1 }
 0x2c1   :  { %12434 = vst [vmem:[#allocation8_spill] sm:$0xff] %v7332_v1  ;;  %v1726_v33 = vrot.slane %v7332_v1, 1 }
 0x2c2   :  { %2154 = vrot.lane.b32.xlu0 %v7251_v12, %s6035_s2  ;;  %v7343_v36 = vsel %vm1700_vm3, %v1728_v9, %v1729_v44 }
 0x2c3   :  { %v7348_v39 = vsel %vm1700_vm3, %v1725_v22, %v1726_v33 }
 0x2c4   :  { %2164 = vrot.lane.b32.xlu1 %v7280_v20, %s6035_s2 }
 0x2c5   :  { %v7352_v35 = vpop.f32.mrb[52].mxu1 }
 0x2c6   :  { %12435 = vst [vmem:[#allocation10_spill] sm:$0xff] %v7352_v35  ;;  %2709 = vrot.lane.b32.xlu0 %v7251_v12, %s6036_s3  ;;  %v7356_v38 = vpop.f32.mrb[53].mxu1  ;;  %v1734_v45 = vrot.slane %v7352_v35, 1 }
 0x2c7   :  { %12436 = vst [vmem:[#allocation13_spill] sm:$0xff] %v7356_v38  ;;  %v7358_v55 = vpop.f32.mrb[54].mxu1  ;;  %v1731_v27 = vrot.slane %v7356_v38, 1 }
 0x2c8   :  { %1915 = vrot.lane.b32.xlu1 %v1834_v63, %s6037_s12  ;;  %v7362_v53 = vpop.f32.mrb[55].mxu1  ;;  %v12120_v60 = vrot.slane %v7358_v55, 1 }
 0x2c9   :  { %12437 = vst [vmem:[#allocation12_spill] sm:$0xff] %v7362_v53  ;;  %v12119_v18 = vrot.slane %v7362_v53, 1 }
 0x2ca   :  { %2715 = vrot.lane.b32.xlu0 %v7253_v7, %s6036_s3  ;;  %v7373_v15 = vsel %vm1700_vm3, %v1734_v45, %v12120_v60 }
 0x2cb   :  { %v7379_v61 = vsel %vm1700_vm3, %v1731_v27, %v12119_v18 }
 0x2cc   :  { %1911 = vrot.lane.b32.xlu1 %v1833_v43, %s6037_s12 }
 0x2cd   :  { %v7382_v16 = vpop.f32.mrb[56].mxu1 }
 0x2ce   :  { %12438 = vst [vmem:[#allocation28_spill] sm:$0xff] %v7382_v16  ;;  %2711 = vrot.lane.b32.xlu0 %v7257_v25, %s6036_s3  ;;  %v7386_v40 = vpop.f32.mrb[57].mxu1  ;;  %v1740_v21 = vrot.slane %v7382_v16, 1 }
 0x2cf   :  { %12439 = vst [vmem:[#allocation26_spill] sm:$0xff] %v7386_v40  ;;  %v7388_v51 = vpop.f32.mrb[58].mxu1  ;;  %v1737_v6 = vrot.slane %v7386_v40, 1 }
 0x2d0   :  { %12440 = vst [vmem:[#allocation18_spill] sm:$0xff] %v7388_v51  ;;  %2176 = vrot.lane.b32.xlu1 %v7301_v42, %s6035_s2  ;;  %v7392_v34 = vpop.f32.mrb[59].mxu1  ;;  %v12118_v17 = vrot.slane %v7388_v51, 1 }
 0x2d1   :  { %12441 = vst [vmem:[#allocation33_spill] sm:$0xff] %v7392_v34  ;;  %v12117_v31 = vrot.slane %v7392_v34, 1 }
 0x2d2   :  { %1905 = vrot.lane.b32.xlu0 %v7266_v58, %s6037_s12  ;;  %v7403_v11 = vsel %vm1700_vm3, %v1740_v21, %v12118_v17 }
 0x2d3   :  { %v7408_v37 = vsel %vm1700_vm3, %v1737_v6, %v12117_v31 }
 0x2d4   :  { %2172 = vrot.lane.b32.xlu1 %v7304_v29, %s6035_s2 }
 0x2d5   :  { %v7412_v23 = vpop.f32.mrb[60].mxu1 }
 0x2d6   :  { %2166 = vrot.lane.b32.xlu0 %v7271_v32, %s6035_s2  ;;  %v7416_v8 = vpop.f32.mrb[61].mxu1  ;;  %v1746_v54 = vrot.slane %v7412_v23, 1 }
 0x2d7   :  { %12442 = vst [vmem:[#allocation34_spill] sm:$0xff] %v7416_v8  ;;  %v7418_v58 = vpop.f32.mrb[62].mxu1  ;;  %v1743_v56 = vrot.slane %v7416_v8, 1 }
 0x2d8   :  { %12443 = vst [vmem:[#allocation35_spill] sm:$0xff] %v7418_v58  ;;  %1923 = vrot.lane.b32.xlu1 %v1836_v10, %s6037_s12  ;;  %v7422_v0 = vpop.f32.mrb[63].mxu1  ;;  %v12116_v4 = vrot.slane %v7418_v58, 1 }
 0x2d9   :  { %12444 = vst [vmem:[#allocation36_spill] sm:$0xff] %v7422_v0  ;;  %v12113_v14 = vrot.slane %v7422_v0, 1 }
 0x2da   :  { %2721 = vrot.lane.b32.xlu0 %v7271_v32, %s6036_s3  ;;  %v7433_v2 = vsel %vm1700_vm3, %v1746_v54, %v12116_v4 }
 0x2db   :  { %12445 = vst [vmem:[#allocation37_spill] sm:$0xff] %v7433_v2  ;;  %v7441_v9 = vsel %vm1700_vm3, %v1743_v56, %v12113_v14  ;;  %v7635_v2 = vpop.permute.xlu0 %2210 }
 0x2dc   :  { %12446 = vst [vmem:[#allocation38_spill] sm:$0xff] %v7441_v9  ;;  %1919 = vrot.lane.b32.xlu1 %v1835_v48, %s6037_s12  ;;  %12471 = vst [vmem:[#allocation59_spill] sm:$0xff] %v7635_v2 }
 0x2dd   :  { %v7444_v22 = vpop.f32.mrb[64].mxu1 }
 0x2de   :  { %12447 = vst [vmem:[#allocation39_spill] sm:$0xff] %v7444_v22  ;;  %2162 = vrot.lane.b32.xlu0 %v7274_v30, %s6035_s2  ;;  %v7448_v63 = vpop.f32.mrb[65].mxu1  ;;  %v1752_v27 = vrot.slane %v7444_v22, 1 }
 0x2df   :  { %12448 = vst [vmem:[#allocation40_spill] sm:$0xff] %v7448_v63  ;;  %v7450_v45 = vpop.f32.mrb[66].mxu1  ;;  %v1749_v21 = vrot.slane %v7448_v63, 1 }
 0x2e0   :  { %12449 = vst [vmem:[#allocation41_spill] sm:$0xff] %v7450_v45  ;;  %2184 = vrot.lane.b32.xlu1 %v7328_v59, %s6035_s2  ;;  %v7454_v41 = vpop.f32.mrb[67].mxu1  ;;  %v12115_v43 = vrot.slane %v7450_v45, 1 }
 0x2e1   :  { %12450 = vst [vmem:[#allocation42_spill] sm:$0xff] %v7454_v41  ;;  %v12114_v6 = vrot.slane %v7454_v41, 1 }
 0x2e2   :  { %2717 = vrot.lane.b32.xlu0 %v7274_v30, %s6036_s3  ;;  %v7465_v10 = vsel %vm1700_vm3, %v1752_v27, %v12115_v43  ;;  %v1838_v27 = vsel %vm1700_vm3, %v1729_v44, 0.0  ;;  %v1837_v44 = vsel %vm1700_vm3, %v1726_v33, 0.0 }
 0x2e3   :  { %v7470_v54 = vsel %vm1700_vm3, %v1749_v21, %v12114_v6 }
 0x2e4   :  { %12451 = vst [vmem:[#allocation43_spill] sm:$0xff] %v7470_v54  ;;  %2180 = vrot.lane.b32.xlu1 %v7332_v1, %s6035_s2 }
 0x2e5   :  { %v7474_v56 = vpop.f32.mrb[68].mxu1 }
 0x2e6   :  { %12452 = vst [vmem:[#allocation44_spill] sm:$0xff] %v7474_v56  ;;  %2723 = vrot.lane.b32.xlu0 %v7276_v46, %s6036_s3  ;;  %v7478_v48 = vpop.f32.mrb[69].mxu1  ;;  %v1758_v6 = vrot.slane %v7474_v56, 1 }
 0x2e7   :  { %12453 = vst [vmem:[#allocation45_spill] sm:$0xff] %v7478_v48  ;;  %v7480_v14 = vpop.f32.mrb[70].mxu1  ;;  %v1755_v4 = vrot.slane %v7478_v48, 1 }
 0x2e8   :  { %12454 = vst [vmem:[#allocation46_spill] sm:$0xff] %v7480_v14  ;;  %1931 = vrot.lane.b32.xlu1 %v1838_v27, %s6037_s12  ;;  %v7486_v21 = vpop.f32.mrb[71].mxu1  ;;  %v12121_v43 = vrot.slane %v7480_v14, 1 }
 0x2e9   :  { %v12122_v31 = vrot.slane %v7486_v21, 1 }
 0x2ea   :  { %2719 = vrot.lane.b32.xlu0 %v7280_v20, %s6036_s3  ;;  %v7497_v17 = vsel %vm1700_vm3, %v1758_v6, %v12121_v43 }
 0x2eb   :  { %v7505_v27 = vsel %vm1700_vm3, %v1755_v4, %v12122_v31 }
 0x2ec   :  { %1927 = vrot.lane.b32.xlu1 %v1837_v44, %s6037_s12 }
 0x2ed   :  { %v7508_v18 = vpop.f32.mrb[72].mxu1 }
 0x2ee   :  { %1913 = vrot.lane.b32.xlu0 %v7289_v28, %s6037_s12  ;;  %v7512_v60 = vpop.f32.mrb[73].mxu1  ;;  %v1764_v43 = vrot.slane %v7508_v18, 1 }
 0x2ef   :  { %v7514_v6 = vpop.f32.mrb[74].mxu1  ;;  %v1761_v44 = vrot.slane %v7512_v60, 1 }
 0x2f0   :  { %2192 = vrot.lane.b32.xlu1 %v7358_v55, %s6035_s2  ;;  %v7518_v33 = vpop.f32.mrb[75].mxu1  ;;  %v12129_v4 = vrot.slane %v7514_v6, 1 }
 0x2f1   :  { %v12130_v31 = vrot.slane %v7518_v33, 1 }
 0x2f2   :  { %1909 = vrot.lane.b32.xlu0 %v7293_v5, %s6037_s12  ;;  %v7529_v28 = vsel %vm1700_vm3, %v1764_v43, %v12129_v4  ;;  %v12458_v43 = vrot.slane %v7358_v55, 1 }
 0x2f3   :  { %v7534_v50 = vsel %vm1700_vm3, %v1761_v44, %v12130_v31 }
 0x2f4   :  { %2188 = vrot.lane.b32.xlu1 %v7362_v53, %s6035_s2  ;;  %v1840_v4 = vsel %vm1700_vm3, %v12458_v43, 0.0 }
 0x2f5   :  { %v7538_v30 = vpop.f32.mrb[76].mxu1 }
 0x2f6   :  { %12455 = vst [vmem:[#allocation47_spill] sm:$0xff] %v7538_v30  ;;  %2174 = vrot.lane.b32.xlu0 %v7296_v52, %s6035_s2  ;;  %v7542_v20 = vpop.f32.mrb[77].mxu1  ;;  %v1770_v31 = vrot.slane %v7538_v30, 1 }
 0x2f7   :  { %12456 = vst [vmem:[#allocation48_spill] sm:$0xff] %v7542_v20  ;;  %v7544_v5 = vpop.f32.mrb[78].mxu1  ;;  %v1767_v46 = vrot.slane %v7542_v20, 1 }
 0x2f8   :  { %12457 = vst [vmem:[#allocation49_spill] sm:$0xff] %v7544_v5  ;;  %1939 = vrot.lane.b32.xlu1 %v1840_v4, %s6037_s12  ;;  %v7550_v44 = vpop.f32.mrb[79].mxu1  ;;  %v12145_v32 = vrot.slane %v7544_v5, 1  ;;  %v12460_v4 = vrot.slane %v7362_v53, 1 }
 0x2f9   :  { %12459 = vst [vmem:[#allocation50_spill] sm:$0xff] %v7550_v44  ;;  %v12146_v12 = vrot.slane %v7550_v44, 1 }
 0x2fa   :  { %2729 = vrot.lane.b32.xlu0 %v7296_v52, %s6036_s3  ;;  %v7561_v25 = vsel %vm1700_vm3, %v1770_v31, %v12145_v32  ;;  %v1839_v43 = vsel %vm1700_vm3, %v12460_v4, 0.0 }
 0x2fb   :  { %v7569_v26 = vsel %vm1700_vm3, %v1767_v46, %v12146_v12 }
 0x2fc   :  { %1935 = vrot.lane.b32.xlu1 %v1839_v43, %s6037_s12 }
 0x2fd   :  { %v7572_v7 = vpop.f32.mrb[80].mxu1 }
 0x2fe   :  { %12461 = vst [vmem:[#allocation51_spill] sm:$0xff] %v7572_v7  ;;  %2170 = vrot.lane.b32.xlu0 %v7299_v3, %s6035_s2  ;;  %v7576_v52 = vpop.f32.mrb[81].mxu1  ;;  %v1776_v32 = vrot.slane %v7572_v7, 1 }
 0x2ff   :  { %12462 = vst [vmem:[#allocation52_spill] sm:$0xff] %v7576_v52  ;;  %v7578_v31 = vpop.f32.mrb[82].mxu1  ;;  %v1773_v43 = vrot.slane %v7576_v52, 1 }
 0x300   :  { %2200 = vrot.lane.b32.xlu1 %v7388_v51, %s6035_s2  ;;  %v7582_v4 = vpop.f32.mrb[83].mxu1  ;;  %v12155_v46 = vrot.slane %v7578_v31, 1 }
 0x301   :  { %12463 = vst [vmem:[#allocation53_spill] sm:$0xff] %v7582_v4  ;;  %v12156_v12 = vrot.slane %v7582_v4, 1 }
 0x302   :  { %2725 = vrot.lane.b32.xlu0 %v7299_v3, %s6036_s3  ;;  %v7593_v24 = vsel %vm1700_vm3, %v1776_v32, %v12155_v46  ;;  %v12467_v32 = vrot.slane %v7388_v51, 1 }
 0x303   :  { %v7598_v62 = vsel %vm1700_vm3, %v1773_v43, %v12156_v12 }
 0x304   :  { %2196 = vrot.lane.b32.xlu1 %v7392_v34, %s6035_s2  ;;  %v1842_v46 = vsel %vm1700_vm3, %v12467_v32, 0.0 }
 0x305   :  { %v7602_v54 = vpop.f32.mrb[84].mxu1 }
 0x306   :  { %12464 = vst [vmem:[#allocation54_spill] sm:$0xff] %v7602_v54  ;;  %2731 = vrot.lane.b32.xlu0 %v7301_v42, %s6036_s3  ;;  %v7606_v47 = vpop.f32.mrb[85].mxu1  ;;  %v1782_v12 = vrot.slane %v7602_v54, 1 }
 0x307   :  { %12465 = vst [vmem:[#allocation55_spill] sm:$0xff] %v7606_v47  ;;  %v7608_v3 = vpop.f32.mrb[86].mxu1  ;;  %v1779_v63 = vrot.slane %v7606_v47, 1 }
 0x308   :  { %12466 = vst [vmem:[#allocation56_spill] sm:$0xff] %v7608_v3  ;;  %1947 = vrot.lane.b32.xlu1 %v1842_v46, %s6037_s12  ;;  %v7614_v43 = vpop.f32.mrb[87].mxu1  ;;  %v12167_v41 = vrot.slane %v7608_v3, 1  ;;  %v12469_v46 = vrot.slane %v7392_v34, 1 }
 0x309   :  { %v12170_v42 = vrot.slane %v7614_v43, 1 }
 0x30a   :  { %2727 = vrot.lane.b32.xlu0 %v7304_v29, %s6036_s3  ;;  %v7625_v22 = vsel %vm1700_vm3, %v1782_v12, %v12167_v41  ;;  %v1841_v32 = vsel %vm1700_vm3, %v12469_v46, 0.0 }
 0x30b   :  { %12468 = vst [vmem:[#allocation57_spill] sm:$0xff] %v7625_v22  ;;  %v7633_v9 = vsel %vm1700_vm3, %v1779_v63, %v12170_v42 }
 0x30c   :  { %12470 = vst [vmem:[#allocation58_spill] sm:$0xff] %v7633_v9  ;;  %1943 = vrot.lane.b32.xlu1 %v1841_v32, %s6037_s12 }
 0x30d   :  { %v7638_v47 = vpop.f32.mrb[88].mxu1 }
 0x30e   :  { %12472 = vst [vmem:[#allocation60_spill] sm:$0xff] %v7638_v47  ;;  %1921 = vrot.lane.b32.xlu0 %v7313_v57, %s6037_s12  ;;  %v7642_v12 = vpop.f32.mrb[89].mxu1  ;;  %v1788_v46 = vrot.slane %v7638_v47, 1 }
 0x30f   :  { %12473 = vst [vmem:[#allocation61_spill] sm:$0xff] %v7642_v12  ;;  %v7644_v41 = vpop.f32.mrb[90].mxu1  ;;  %v1785_v42 = vrot.slane %v7642_v12, 1 }
 0x310   :  { %12474 = vst [vmem:[#allocation62_spill] sm:$0xff] %v7644_v41  ;;  %v7646_v29 = vpop.permute.xlu0 %2150  ;;  %2208 = vrot.lane.b32.xlu1 %v7418_v58, %s6035_s2  ;;  %v7650_v63 = vpop.f32.mrb[91].mxu1  ;;  %v12175_v32 = vrot.slane %v7644_v41, 1 }
 0x311   :  { %12475 = vst [vmem:[#allocation63_spill] sm:$0xff] %v7646_v29  ;;  %12476 = vst [vmem:[#allocation64_spill] sm:$0xff] %v7650_v63  ;;  %v12176_v9 = vrot.slane %v7650_v63, 1 }
 0x312   :  { %v7656_v57 = vpop.permute.xlu1 %2152  ;;  %1917 = vrot.lane.b32.xlu0 %v7319_v13, %s6037_s12  ;;  %v7663_v29 = vsel %vm1700_vm3, %v1788_v46, %v12175_v32  ;;  %v12485_v32 = vrot.slane %v7418_v58, 1 }
 0x313   :  { %12477 = vst [vmem:[#allocation65_spill] sm:$0xff] %v7656_v57  ;;  %12478 = vst [vmem:[#allocation66_spill] sm:$0xff] %v7663_v29  ;;  %v7668_v47 = vsel %vm1700_vm3, %v1785_v42, %v12176_v9 }
 0x314   :  { %12479 = vst [vmem:[#allocation67_spill] sm:$0xff] %v7668_v47  ;;  %v7670_v22 = vpop.permute.xlu0 %2705  ;;  %2204 = vrot.lane.b32.xlu1 %v7422_v0, %s6035_s2  ;;  %v1844_v42 = vsel %vm1700_vm3, %v12485_v32, 0.0 }
 0x315   :  { %12480 = vst [vmem:[#allocation68_spill] sm:$0xff] %v7670_v22  ;;  %v7674_v12 = vpop.f32.mrb[92].mxu1 }
 0x316   :  { %12481 = vst [vmem:[#allocation69_spill] sm:$0xff] %v7674_v12  ;;  %v7676_v57 = vpop.permute.xlu1 %2703  ;;  %2182 = vrot.lane.b32.xlu0 %v7322_v49, %s6035_s2  ;;  %v7680_v13 = vpop.f32.mrb[93].mxu1  ;;  %v1794_v47 = vrot.slane %v7674_v12, 1 }
 0x317   :  { %12482 = vst [vmem:[#allocation70_spill] sm:$0xff] %v7676_v57  ;;  %12483 = vst [vmem:[#allocation71_spill] sm:$0xff] %v7680_v13  ;;  %v7682_v46 = vpop.f32.mrb[94].mxu1  ;;  %v1791_v63 = vrot.slane %v7680_v13, 1 }
 0x318   :  { %12484 = vst [vmem:[#allocation72_spill] sm:$0xff] %v7682_v46  ;;  %v7687_v9 = vpop.permute.xlu0 %2701  ;;  %1955 = vrot.lane.b32.xlu1 %v1844_v42, %s6037_s12  ;;  %v7690_v22 = vpop.f32.mrb[95].mxu1  ;;  %v12186_v57 = vrot.slane %v7682_v46, 1  ;;  %v12489_v42 = vrot.slane %v7422_v0, 1 }
 0x319   :  { %12486 = vst [vmem:[#allocation73_spill] sm:$0xff] %v7687_v9  ;;  %12487 = vst [vmem:[#allocation74_spill] sm:$0xff] %v7690_v22  ;;  %v12185_v29 = vrot.slane %v7690_v22, 1 }
 0x31a   :  { %v7696_v41 = vpop.permute.xlu1 %1895  ;;  %2737 = vrot.lane.b32.xlu0 %v7322_v49, %s6036_s3  ;;  %v7703_v32 = vsel %vm1700_vm3, %v1794_v47, %v12186_v57  ;;  %v1843_v9 = vsel %vm1700_vm3, %v12489_v42, 0.0 }
 0x31b   :  { %12488 = vst [vmem:[#allocation75_spill] sm:$0xff] %v7696_v41  ;;  %v7711_v12 = vsel %vm1700_vm3, %v1791_v63, %v12185_v29 }
 0x31c   :  { %v7713_v13 = vpop.permute.xlu0 %2707  ;;  %1951 = vrot.lane.b32.xlu1 %v1843_v9, %s6037_s12 }
 0x31d   :  { %12490 = vst [vmem:[#allocation76_spill] sm:$0xff] %v7713_v13 }
 0x31e   :  { %v7716_v41 = vpop.permute.xlu1 %2160  ;;  %2178 = vrot.lane.b32.xlu0 %v7326_v19, %s6035_s2 }
 0x31f   :  { %12491 = vst [vmem:[#allocation77_spill] sm:$0xff] %v7716_v41 }
 0x320   :  { %v7720_v47 = vpop.permute.xlu0 %1897  ;;  %2214 = vrot.lane.b32.xlu1 %v7450_v45, %s6035_s2 }
 0x322   :  { %v7724_v42 = vpop.permute.xlu1 %2156  ;;  %2733 = vrot.lane.b32.xlu0 %v7326_v19, %s6036_s3 }
 0x323   :  { %12492 = vst [vmem:[#allocation78_spill] sm:$0xff] %v7724_v42 }
 0x324   :  { %v7728_v63 = vpop.permute.xlu0 %1899  ;;  %1961 = vrot.lane.b32.xlu1 %v7465_v10, %s6037_s12 }
 0x326   :  { %v7732_v9 = vpop.permute.xlu1 %1907  ;;  %2739 = vrot.lane.b32.xlu0 %v7328_v59, %s6036_s3 }
 0x328   :  { %v7736_v29 = vpop.permute.xlu0 %1893  ;;  %2220 = vrot.lane.b32.xlu1 %v7474_v56, %s6035_s2 }
 0x32a   :  { %v7740_v57 = vpop.permute.xlu1 %1901  ;;  %2735 = vrot.lane.b32.xlu0 %v7332_v1, %s6036_s3 }
 0x32c   :  { %v7744_v13 = vpop.permute.xlu0 %2158  ;;  %2216 = vrot.lane.b32.xlu1 %v7478_v48, %s6035_s2 }
 0x32e   :  { %v7748_v10 = vpop.permute.xlu1 %1903  ;;  %1929 = vrot.lane.b32.xlu0 %v7343_v36, %s6037_s12 }
 0x330   :  { %v7752_v19 = vpop.permute.xlu0 %2713  ;;  %2222 = vrot.lane.b32.xlu1 %v7480_v14, %s6035_s2 }
 0x331   :  { %12493 = vst [vmem:[#allocation79_spill] sm:$0xff] %v7752_v19 }
 0x332   :  { %v7756_v42 = vpop.permute.xlu1 %2168  ;;  %1925 = vrot.lane.b32.xlu0 %v7348_v39, %s6037_s12 }
 0x333   :  { %12494 = vst [vmem:[#allocation80_spill] sm:$0xff] %v7756_v42 }
 0x334   :  { %v7760_v1 = vpop.permute.xlu0 %2154  ;;  %2218 = vrot.lane.b32.xlu1 %v7486_v21, %s6035_s2 }
 0x336   :  { %v7764_v41 = vpop.permute.xlu1 %2164  ;;  %2190 = vrot.lane.b32.xlu0 %v7352_v35, %s6035_s2 }
 0x337   :  { %12495 = vst [vmem:[#allocation81_spill] sm:$0xff] %v7764_v41 }
 0x338   :  { %v7768_v36 = vpop.permute.xlu0 %2709  ;;  %1969 = vrot.lane.b32.xlu1 %v7497_v17, %s6037_s12 }
 0x339   :  { %12496 = vst [vmem:[#allocation82_spill] sm:$0xff] %v7768_v36 }
 0x33a   :  { %v7772_v19 = vpop.permute.xlu1 %1915  ;;  %2745 = vrot.lane.b32.xlu0 %v7352_v35, %s6036_s3 }
 0x33c   :  { %v7776_v39 = vpop.permute.xlu0 %2715  ;;  %1965 = vrot.lane.b32.xlu1 %v7505_v27, %s6037_s12 }
 0x33d   :  { %12497 = vst [vmem:[#allocation83_spill] sm:$0xff] %v7776_v39 }
 0x33e   :  { %v7780_v42 = vpop.permute.xlu1 %1911  ;;  %2186 = vrot.lane.b32.xlu0 %v7356_v38, %s6035_s2 }
 0x340   :  { %v7784_v41 = vpop.permute.xlu0 %2711  ;;  %2228 = vrot.lane.b32.xlu1 %v7508_v18, %s6035_s2 }
 0x341   :  { %12498 = vst [vmem:[#allocation84_spill] sm:$0xff] %v7784_v41 }
 0x342   :  { %v7788_v17 = vpop.permute.xlu1 %2176  ;;  %2741 = vrot.lane.b32.xlu0 %v7356_v38, %s6036_s3 }
 0x343   :  { %12499 = vst [vmem:[#allocation85_spill] sm:$0xff] %v7788_v17 }
 0x344   :  { %v7792_v36 = vpop.permute.xlu0 %1905  ;;  %2224 = vrot.lane.b32.xlu1 %v7512_v60, %s6035_s2 }
 0x346   :  { %v7796_v27 = vpop.permute.xlu1 %2172  ;;  %2747 = vrot.lane.b32.xlu0 %v7358_v55, %s6036_s3 }
 0x347   :  { %12500 = vst [vmem:[#allocation86_spill] sm:$0xff] %v7796_v27 }
 0x348   :  { %v7800_v39 = vpop.permute.xlu0 %2166  ;;  %2230 = vrot.lane.b32.xlu1 %v7514_v6, %s6035_s2 }
 0x34a   :  { %v7804_v41 = vpop.permute.xlu1 %1923  ;;  %2743 = vrot.lane.b32.xlu0 %v7362_v53, %s6036_s3 }
 0x34c   :  { %v7808_v17 = vpop.permute.xlu0 %2721  ;;  %2226 = vrot.lane.b32.xlu1 %v7518_v33, %s6035_s2 }
 0x34d   :  { %12501 = vst [vmem:[#allocation87_spill] sm:$0xff] %v7808_v17 }
 0x34e   :  { %v7812_v38 = vpop.permute.xlu1 %1919  ;;  %1937 = vrot.lane.b32.xlu0 %v7373_v15, %s6037_s12 }
 0x350   :  { %v7816_v27 = vpop.permute.xlu0 %2162  ;;  %1977 = vrot.lane.b32.xlu1 %v7529_v28, %s6037_s12 }
 0x352   :  { %v7820_v35 = vpop.permute.xlu1 %2184  ;;  %1933 = vrot.lane.b32.xlu0 %v7379_v61, %s6037_s12 }
 0x353   :  { %12502 = vst [vmem:[#allocation88_spill] sm:$0xff] %v7820_v35 }
 0x354   :  { %v7824_v53 = vpop.permute.xlu0 %2717  ;;  %1973 = vrot.lane.b32.xlu1 %v7534_v50, %s6037_s12 }
 0x355   :  { %12503 = vst [vmem:[#allocation89_spill] sm:$0xff] %v7824_v53 }
 0x356   :  { %v7828_v17 = vpop.permute.xlu1 %2180  ;;  %2198 = vrot.lane.b32.xlu0 %v7382_v16, %s6035_s2 }
 0x357   :  { %12504 = vst [vmem:[#allocation90_spill] sm:$0xff] %v7828_v17 }
 0x358   :  { %v7832_v15 = vpop.permute.xlu0 %2723  ;;  %2236 = vrot.lane.b32.xlu1 %v7538_v30, %s6035_s2 }
 0x359   :  { %12505 = vst [vmem:[#allocation91_spill] sm:$0xff] %v7832_v15 }
 0x35a   :  { %v7836_v28 = vpop.permute.xlu1 %1931  ;;  %2753 = vrot.lane.b32.xlu0 %v7382_v16, %s6036_s3 }
 0x35c   :  { %v7840_v61 = vpop.permute.xlu0 %2719  ;;  %2232 = vrot.lane.b32.xlu1 %v7542_v20, %s6035_s2 }
 0x35d   :  { %12506 = vst [vmem:[#allocation92_spill] sm:$0xff] %v7840_v61 }
 0x35e   :  { %v7844_v50 = vpop.permute.xlu1 %1927  ;;  %2194 = vrot.lane.b32.xlu0 %v7386_v40, %s6035_s2 }
 0x360   :  { %v7848_v53 = vpop.permute.xlu0 %1913  ;;  %2238 = vrot.lane.b32.xlu1 %v7544_v5, %s6035_s2 }
 0x362   :  { %v7852_v15 = vpop.permute.xlu1 %2192  ;;  %2749 = vrot.lane.b32.xlu0 %v7386_v40, %s6036_s3 }
 0x363   :  { %12507 = vst [vmem:[#allocation93_spill] sm:$0xff] %v7852_v15 }
 0x364   :  { %v7856_v17 = vpop.permute.xlu0 %1909  ;;  %2234 = vrot.lane.b32.xlu1 %v7550_v44, %s6035_s2 }
 0x366   :  { %v7860_v61 = vpop.permute.xlu1 %2188  ;;  %2755 = vrot.lane.b32.xlu0 %v7388_v51, %s6036_s3  ;;  %v12557_v51 = vld [vmem:[#allocation67_spill] sm:$0xff] }
 0x367   :  { %12508 = vst [vmem:[#allocation94_spill] sm:$0xff] %v7860_v61 }
 0x368   :  { %v7864_v35 = vpop.permute.xlu0 %2174  ;;  %1985 = vrot.lane.b32.xlu1 %v7561_v25, %s6037_s12 }
 0x369   :  { %12509 = vst [vmem:[#allocation95_spill] sm:$0xff] %v7864_v35 }
 0x36a   :  { %v7868_v16 = vpop.permute.xlu1 %1939  ;;  %2751 = vrot.lane.b32.xlu0 %v7392_v34, %s6036_s3 }
 0x36c   :  { %v7872_v15 = vpop.permute.xlu0 %2729  ;;  %1981 = vrot.lane.b32.xlu1 %v7569_v26, %s6037_s12 }
 0x36d   :  { %12510 = vst [vmem:[#allocation96_spill] sm:$0xff] %v7872_v15 }
 0x36e   :  { %v7876_v40 = vpop.permute.xlu1 %1935  ;;  %1945 = vrot.lane.b32.xlu0 %v7403_v11, %s6037_s12 }
 0x36f   :  { %12511 = vst [vmem:[#allocation97_spill] sm:$0xff] %v7876_v40 }
 0x370   :  { %v7880_v61 = vpop.permute.xlu0 %2170  ;;  %2244 = vrot.lane.b32.xlu1 %v7572_v7, %s6035_s2 }
 0x371   :  { %12512 = vst [vmem:[#allocation98_spill] sm:$0xff] %v7880_v61 }
 0x372   :  { %v7884_v25 = vpop.permute.xlu1 %2200  ;;  %1941 = vrot.lane.b32.xlu0 %v7408_v37, %s6037_s12 }
 0x373   :  { %12513 = vst [vmem:[#allocation99_spill] sm:$0xff] %v7884_v25 }
 0x374   :  { %v7888_v34 = vpop.permute.xlu0 %2725  ;;  %2240 = vrot.lane.b32.xlu1 %v7576_v52, %s6035_s2 }
 0x375   :  { %12514 = vst [vmem:[#allocation100_spill] sm:$0xff] %v7888_v34 }
 0x376   :  { %v7892_v26 = vpop.permute.xlu1 %2196  ;;  %2206 = vrot.lane.b32.xlu0 %v7412_v23, %s6035_s2 }
 0x377   :  { %12515 = vst [vmem:[#allocation101_spill] sm:$0xff] %v7892_v26 }
 0x378   :  { %v7896_v11 = vpop.permute.xlu0 %2731  ;;  %2246 = vrot.lane.b32.xlu1 %v7578_v31, %s6035_s2 }
 0x379   :  { %12516 = vst [vmem:[#allocation102_spill] sm:$0xff] %v7896_v11 }
 0x37a   :  { %v7900_v15 = vpop.permute.xlu1 %1947  ;;  %2761 = vrot.lane.b32.xlu0 %v7412_v23, %s6036_s3 }
 0x37b   :  { %12517 = vst [vmem:[#allocation103_spill] sm:$0xff] %v7900_v15  ;;  %v12558_v15 = vld [vmem:[#allocation31_spill] sm:$0xff] }
 0x37c   :  { %v7904_v37 = vpop.permute.xlu0 %2727  ;;  %2242 = vrot.lane.b32.xlu1 %v7582_v4, %s6035_s2 }
 0x37d   :  { %12518 = vst [vmem:[#allocation104_spill] sm:$0xff] %v7904_v37  ;;  %v2363_v37 = vadd.f32 %v7412_v23, %v7635_v2 }
 0x37e   :  { %v7908_v34 = vpop.permute.xlu1 %1943  ;;  %2202 = vrot.lane.b32.xlu0 %v7416_v8, %s6035_s2 }
 0x37f   :  { %12519 = vst [vmem:[#allocation105_spill] sm:$0xff] %v7908_v34 }
 0x380   :  { %v7912_v26 = vpop.permute.xlu0 %1921  ;;  %1993 = vrot.lane.b32.xlu1 %v7593_v24, %s6037_s12 }
 0x382   :  { %2757 = vrot.lane.b32.xlu0 %v7416_v8, %s6036_s3  ;;  %v7918_v11 = vpop.permute.xlu1 %2208 }
 0x383   :  { %12520 = vst [vmem:[#allocation106_spill] sm:$0xff] %v7918_v11 }
 0x384   :  { %v7920_v25 = vpop.permute.xlu0 %1917  ;;  %1989 = vrot.lane.b32.xlu1 %v7598_v62, %s6037_s12  ;;  %v12525_v62 = vld [vmem:[#allocation55_spill] sm:$0xff] }
 0x386   :  { %3213 = vrot.lane.b32.xlu0 %v2363_v37, %s6038_s13  ;;  %v7927_v34 = vpop.permute.xlu1 %2204 }
 0x387   :  { %12521 = vst [vmem:[#allocation107_spill] sm:$0xff] %v7927_v34 }
 0x388   :  { %v7929_v61 = vpop.permute.xlu0 %2182  ;;  %2252 = vrot.lane.b32.xlu1 %v7602_v54, %s6035_s2  ;;  %v2364_v54 = vadd.f32 %v7418_v58, %v7635_v2  ;;  %v12534_v2 = vld [vmem:[#allocation38_spill] sm:$0xff] }
 0x389   :  { %12522 = vst [vmem:[#allocation108_spill] sm:$0xff] %v7929_v61  ;;  %v12538_v61 = vld [vmem:[#allocation39_spill] sm:$0xff] }
 0x38a   :  { %2763 = vrot.lane.b32.xlu0 %v7418_v58, %s6036_s3  ;;  %v7935_v24 = vpop.permute.xlu1 %1955  ;;  %v12546_v58 = vld [vmem:[#allocation62_spill] sm:$0xff] }
 0x38b   :  { %12523 = vst [vmem:[#allocation109_spill] sm:$0xff] %v7935_v24  ;;  %v12554_v24 = vrot.slane %v7450_v45, 1 }
 0x38c   :  { %v7937_v11 = vpop.permute.xlu0 %2737  ;;  %2248 = vrot.lane.b32.xlu1 %v12525_v62, %s6035_s2  ;;  %v12530_v62 = vld [vmem:[#allocation37_spill] sm:$0xff] }
 0x38d   :  { %12524 = vst [vmem:[#allocation110_spill] sm:$0xff] %v7937_v11  ;;  %v1846_v35 = vsel %vm1700_vm3, %v12554_v24, 0.0 }
 0x38e   :  { %2759 = vrot.lane.b32.xlu0 %v7422_v0, %s6036_s3  ;;  %v7943_v37 = vpop.permute.xlu1 %1951 }
 0x38f   :  { %12526 = vst [vmem:[#allocation111_spill] sm:$0xff] %v7943_v37 }
 0x390   :  { %v7945_v34 = vpop.permute.xlu0 %2178  ;;  %2254 = vrot.lane.b32.xlu1 %v7608_v3, %s6035_s2 }
 0x391   :  { %12527 = vst [vmem:[#allocation112_spill] sm:$0xff] %v7945_v34  ;;  %v12533_v34 = vld [vmem:[#allocation57_spill] sm:$0xff] }
 0x392   :  { %3215 = vrot.lane.b32.xlu0 %v2364_v54, %s6038_s13  ;;  %v7952_v8 = vpop.permute.xlu1 %2214 }
 0x393   :  { %12528 = vst [vmem:[#allocation113_spill] sm:$0xff] %v7952_v8 }
 0x394   :  { %v7954_v11 = vpop.permute.xlu0 %2733  ;;  %2250 = vrot.lane.b32.xlu1 %v7614_v43, %s6035_s2 }
 0x395   :  { %12529 = vst [vmem:[#allocation114_spill] sm:$0xff] %v7954_v11  ;;  %v12537_v11 = vld [vmem:[#allocation58_spill] sm:$0xff] }
 0x396   :  { %1953 = vrot.lane.b32.xlu0 %v12530_v62, %s6037_s12  ;;  %v7960_v37 = vpop.permute.xlu1 %1961 }
 0x397   :  { %12531 = vst [vmem:[#allocation37_spill] sm:$0xff] %v7960_v37 }
 0x398   :  { %v7962_v0 = vpop.permute.xlu0 %2739  ;;  %2001 = vrot.lane.b32.xlu1 %v12533_v34, %s6037_s12 }
 0x399   :  { %12532 = vst [vmem:[#allocation115_spill] sm:$0xff] %v7962_v0  ;;  %v12540_v0 = vld [vmem:[#allocation60_spill] sm:$0xff] }
 0x39a   :  { %1949 = vrot.lane.b32.xlu0 %v12534_v2, %s6037_s12  ;;  %v7968_v54 = vpop.permute.xlu1 %2220 }
 0x39b   :  { %12535 = vst [vmem:[#allocation57_spill] sm:$0xff] %v7968_v54 }
 0x39c   :  { %v7970_v8 = vpop.permute.xlu0 %2735  ;;  %1997 = vrot.lane.b32.xlu1 %v12537_v11, %s6037_s12  ;;  %v12543_v11 = vld [vmem:[#allocation40_spill] sm:$0xff] }
 0x39d   :  { %12536 = vst [vmem:[#allocation38_spill] sm:$0xff] %v7970_v8  ;;  %v12542_v8 = vld [vmem:[#allocation61_spill] sm:$0xff] }
 0x39e   :  { %2212 = vrot.lane.b32.xlu0 %v12538_v61, %s6035_s2  ;;  %v7976_v62 = vpop.permute.xlu1 %2216 }
 0x39f   :  { %12539 = vst [vmem:[#allocation58_spill] sm:$0xff] %v7976_v62 }
 0x3a0   :  { %v7978_v37 = vpop.permute.xlu0 %1929  ;;  %2260 = vrot.lane.b32.xlu1 %v12540_v0, %s6035_s2 }
 0x3a2   :  { %2769 = vrot.lane.b32.xlu0 %v12538_v61, %s6036_s3  ;;  %v7984_v34 = vpop.permute.xlu1 %2222  ;;  %v12549_v61 = vld [vmem:[#allocation64_spill] sm:$0xff] }
 0x3a3   :  { %12541 = vst [vmem:[#allocation116_spill] sm:$0xff] %v7984_v34 }
 0x3a4   :  { %v7986_v2 = vpop.permute.xlu0 %1925  ;;  %2256 = vrot.lane.b32.xlu1 %v12542_v8, %s6035_s2  ;;  %v12550_v8 = vld [vmem:[#allocation42_spill] sm:$0xff] }
 0x3a6   :  { %2765 = vrot.lane.b32.xlu0 %v12543_v11, %s6036_s3  ;;  %v7992_v54 = vpop.permute.xlu1 %2218 }
 0x3a7   :  { %12544 = vst [vmem:[#allocation117_spill] sm:$0xff] %v7992_v54 }
 0x3a8   :  { %v7994_v62 = vpop.permute.xlu0 %2190  ;;  %2262 = vrot.lane.b32.xlu1 %v12546_v58, %s6035_s2 }
 0x3a9   :  { %12545 = vst [vmem:[#allocation118_spill] sm:$0xff] %v7994_v62  ;;  %v12553_v62 = vld [vmem:[#allocation66_spill] sm:$0xff] }
 0x3aa   :  { %2771 = vrot.lane.b32.xlu0 %v7450_v45, %s6036_s3  ;;  %v8000_v0 = vpop.permute.xlu1 %1969 }
 0x3ab   :  { %12547 = vst [vmem:[#allocation62_spill] sm:$0xff] %v8000_v0 }
 0x3ac   :  { %v8002_v34 = vpop.permute.xlu0 %2745  ;;  %2258 = vrot.lane.b32.xlu1 %v12549_v61, %s6035_s2 }
 0x3ad   :  { %12548 = vst [vmem:[#allocation119_spill] sm:$0xff] %v8002_v34 }
 0x3ae   :  { %2767 = vrot.lane.b32.xlu0 %v12550_v8, %s6036_s3  ;;  %v8008_v11 = vpop.permute.xlu1 %1965 }
 0x3af   :  { %12551 = vst [vmem:[#allocation64_spill] sm:$0xff] %v8008_v11  ;;  %v12559_v11 = vld [vmem:[#allocation65_spill] sm:$0xff] }
 0x3b0   :  { %v8010_v54 = vpop.permute.xlu0 %2186  ;;  %2009 = vrot.lane.b32.xlu1 %v12553_v62, %s6037_s12  ;;  %v2334_v40 = vadd.f32 %v12559_v11, %v12558_v15  ;;  %v12566_v11 = vld [vmem:[#allocation69_spill] sm:$0xff] }
 0x3b1   :  { %12552 = vst [vmem:[#allocation42_spill] sm:$0xff] %v8010_v54  ;;  %v12560_v54 = vld [vmem:[#allocation43_spill] sm:$0xff] }
 0x3b2   :  { %1963 = vrot.lane.b32.xlu0 %v1846_v35, %s6037_s12  ;;  %v8018_v34 = vpop.permute.xlu1 %2228  ;;  %v12563_v35 = vrot.slane %v12550_v8, 1 }
 0x3b3   :  { %12555 = vst [vmem:[#allocation66_spill] sm:$0xff] %v8018_v34 }
 0x3b4   :  { %v8020_v0 = vpop.permute.xlu0 %2741  ;;  %2005 = vrot.lane.b32.xlu1 %v12557_v51, %s6037_s12  ;;  %v1845_v24 = vsel %vm1700_vm3, %v12563_v35, 0.0  ;;  %v12569_v35 = vld [vmem:[#allocation29_spill] sm:$0xff] }
 0x3b5   :  { %12556 = vst [vmem:[#allocation120_spill] sm:$0xff] %v8020_v0 }
 0x3b6   :  { %1957 = vrot.lane.b32.xlu0 %v12560_v54, %s6037_s12  ;;  %v8028_v62 = vpop.permute.xlu1 %2224 }
 0x3b7   :  { %12561 = vst [vmem:[#allocation67_spill] sm:$0xff] %v8028_v62 }
 0x3b8   :  { %v8030_v45 = vpop.permute.xlu0 %2747  ;;  %3155 = vrot.lane.b32.xlu1 %v2334_v40, %s6038_s13  ;;  %v12568_v40 = vld [vmem:[#allocation71_spill] sm:$0xff] }
 0x3b9   :  { %12562 = vst [vmem:[#allocation31_spill] sm:$0xff] %v8030_v45 }
 0x3ba   :  { %1959 = vrot.lane.b32.xlu0 %v1845_v24, %s6037_s12  ;;  %v8037_v0 = vpop.permute.xlu1 %2230  ;;  %v8053_v24 = vadd.f32 %v12569_v35, %v7728_v63 }
 0x3bb   :  { %12564 = vst [vmem:[#allocation65_spill] sm:$0xff] %v8037_v0 }
 0x3bc   :  { %v8039_v51 = vpop.permute.xlu0 %2743  ;;  %2268 = vrot.lane.b32.xlu1 %v12566_v11, %s6035_s2  ;;  %12570 = vst [vmem:[#allocation29_spill] sm:$0xff] %v8053_v24 }
 0x3bd   :  { %12565 = vst [vmem:[#allocation43_spill] sm:$0xff] %v8039_v51 }
 0x3be   :  { %2777 = vrot.lane.b32.xlu0 %v7474_v56, %s6036_s3  ;;  %v8045_v54 = vpop.permute.xlu1 %2226 }
 0x3bf   :  { %12567 = vst [vmem:[#allocation121_spill] sm:$0xff] %v8045_v54  ;;  %v12572_v54 = vld [vmem:[#allocation27_spill] sm:$0xff] }
 0x3c0   :  { %v8047_v45 = vpop.permute.xlu0 %1937  ;;  %2264 = vrot.lane.b32.xlu1 %v12568_v40, %s6035_s2  ;;  %v8065_v0 = vadd.f32 %v12572_v54, %v7720_v47  ;;  %v12577_v47 = vrot.slane %v7480_v14, 1 }
 0x3c2   :  { %2773 = vrot.lane.b32.xlu0 %v7478_v48, %s6036_s3  ;;  %v8057_v51 = vpop.permute.xlu1 %1977  ;;  %12573 = vst [vmem:[#allocation27_spill] sm:$0xff] %v8065_v0  ;;  %v1848_v34 = vsel %vm1700_vm3, %v12577_v47, 0.0  ;;  %v12580_v48 = vld [vmem:[#allocation75_spill] sm:$0xff] }
 0x3c3   :  { %12571 = vst [vmem:[#allocation122_spill] sm:$0xff] %v8057_v51 }
 0x3c4   :  { %v8059_v11 = vpop.permute.xlu0 %1933  ;;  %2459 = vrot.lane.b32.xlu1 %v8053_v24, %s6035_s2 }
 0x3c6   :  { %2779 = vrot.lane.b32.xlu0 %v7480_v14, %s6036_s3  ;;  %v8069_v40 = vpop.permute.xlu1 %1973 }
 0x3c7   :  { %12574 = vst [vmem:[#allocation123_spill] sm:$0xff] %v8069_v40 }
 0x3c8   :  { %v8071_v63 = vpop.permute.xlu0 %2198  ;;  %2901 = vrot.lane.b32.xlu1 %v8065_v0, %s6036_s3 }
 0x3ca   :  { %2775 = vrot.lane.b32.xlu0 %v7486_v21, %s6036_s3  ;;  %v8077_v51 = vpop.permute.xlu1 %2236 }
 0x3cb   :  { %12575 = vst [vmem:[#allocation124_spill] sm:$0xff] %v8077_v51  ;;  %v12579_v51 = vrot.slane %v7486_v21, 1 }
 0x3cc   :  { %v8079_v62 = vpop.permute.xlu0 %2753  ;;  %2903 = vrot.lane.b32.xlu1 %v8053_v24, %s6036_s3  ;;  %v8098_v24 = vadd.f32 %v12580_v48, %v12558_v15 }
 0x3cd   :  { %12576 = vst [vmem:[#allocation125_spill] sm:$0xff] %v8079_v62  ;;  %v1847_v62 = vsel %vm1700_vm3, %v12579_v51, 0.0  ;;  %v12589_v51 = vrot.slane %v7682_v46, 1 }
 0x3ce   :  { %1971 = vrot.lane.b32.xlu0 %v1848_v34, %s6037_s12  ;;  %v8087_v40 = vpop.permute.xlu1 %2232  ;;  %12581 = vst [vmem:[#allocation75_spill] sm:$0xff] %v8098_v24 }
 0x3cf   :  { %12578 = vst [vmem:[#allocation126_spill] sm:$0xff] %v8087_v40 }
 0x3d0   :  { %v8089_v56 = vpop.permute.xlu0 %2194  ;;  %2270 = vrot.lane.b32.xlu1 %v7682_v46, %s6035_s2 }
 0x3d2   :  { %1967 = vrot.lane.b32.xlu0 %v1847_v62, %s6037_s12  ;;  %v8101_v47 = vpop.permute.xlu1 %2238 }
 0x3d3   :  { %12582 = vst [vmem:[#allocation127_spill] sm:$0xff] %v8101_v47 }
 0x3d4   :  { %v8103_v34 = vpop.permute.xlu0 %2749  ;;  %2899 = vrot.lane.b32.xlu1 %v8098_v24, %s6036_s3 }
 0x3d5   :  { %12583 = vst [vmem:[#allocation128_spill] sm:$0xff] %v8103_v34 }
 0x3d6   :  { %2785 = vrot.lane.b32.xlu0 %v7508_v18, %s6036_s3  ;;  %v8109_v40 = vpop.permute.xlu1 %2234 }
 0x3d7   :  { %12584 = vst [vmem:[#allocation129_spill] sm:$0xff] %v8109_v40 }
 0x3d8   :  { %v8111_v14 = vpop.permute.xlu0 %2755  ;;  %2266 = vrot.lane.b32.xlu1 %v7690_v22, %s6035_s2 }
 0x3d9   :  { %12585 = vst [vmem:[#allocation130_spill] sm:$0xff] %v8111_v14  ;;  %v1860_v14 = vsel %vm1700_vm3, %v12589_v51, 0.0  ;;  %v2335_v51 = vadd.f32 %v12572_v54, %v7760_v1  ;;  %v12598_v54 = vld [vmem:[#allocation15_spill] sm:$0xff] }
 0x3da   :  { %2781 = vrot.lane.b32.xlu0 %v7512_v60, %s6036_s3  ;;  %v8117_v48 = vpop.permute.xlu1 %1985 }
 0x3db   :  { %12586 = vst [vmem:[#allocation131_spill] sm:$0xff] %v8117_v48 }
 0x3dc   :  { %v8119_v15 = vpop.permute.xlu0 %2751  ;;  %2017 = vrot.lane.b32.xlu1 %v7703_v32, %s6037_s12  ;;  %v12591_v32 = vrot.slane %v7514_v6, 1 }
 0x3dd   :  { %12587 = vst [vmem:[#allocation132_spill] sm:$0xff] %v8119_v15 }
 0x3de   :  { %2787 = vrot.lane.b32.xlu0 %v7514_v6, %s6036_s3  ;;  %v8125_v62 = vpop.permute.xlu1 %1981 }
 0x3df   :  { %12588 = vst [vmem:[#allocation133_spill] sm:$0xff] %v8125_v62  ;;  %v1850_v62 = vsel %vm1700_vm3, %v12591_v32, 0.0 }
 0x3e0   :  { %v8130_v34 = vpop.permute.xlu0 %1945  ;;  %2019 = vrot.lane.b32.xlu1 %v1860_v14, %s6037_s12 }
 0x3e2   :  { %2783 = vrot.lane.b32.xlu0 %v7518_v33, %s6036_s3  ;;  %v8135_v15 = vpop.permute.xlu1 %2244 }
 0x3e3   :  { %12590 = vst [vmem:[#allocation134_spill] sm:$0xff] %v8135_v15  ;;  %v12593_v15 = vrot.slane %v7518_v33, 1 }
 0x3e4   :  { %v8137_v24 = vpop.permute.xlu0 %1941  ;;  %2013 = vrot.lane.b32.xlu1 %v7711_v12, %s6037_s12  ;;  %v12594_v12 = vld [vmem:[#allocation14_spill] sm:$0xff] }
 0x3e5   :  { %v1849_v40 = vsel %vm1700_vm3, %v12593_v15, 0.0  ;;  %v8157_v46 = vadd.f32 %v12594_v12, %v7732_v9 }
 0x3e6   :  { %1979 = vrot.lane.b32.xlu0 %v1850_v62, %s6037_s12  ;;  %v8147_v14 = vpop.permute.xlu1 %2240  ;;  %v8168_v62 = vadd.f32 %v12598_v54, %v7792_v36  ;;  %v12602_v36 = vld [vmem:[#allocation16_spill] sm:$0xff] }
 0x3e7   :  { %12592 = vst [vmem:[#allocation135_spill] sm:$0xff] %v8147_v14  ;;  %12595 = vst [vmem:[#allocation14_spill] sm:$0xff] %v8157_v46 }
 0x3e8   :  { %v8149_v48 = vpop.permute.xlu0 %2206  ;;  %3157 = vrot.lane.b32.xlu1 %v2335_v51, %s6038_s13 }
 0x3ea   :  { %1975 = vrot.lane.b32.xlu0 %v1849_v40, %s6037_s12  ;;  %v8160_v32 = vpop.permute.xlu1 %2246 }
 0x3eb   :  { %12596 = vst [vmem:[#allocation136_spill] sm:$0xff] %v8160_v32 }
 0x3ec   :  { %v8162_v1 = vpop.permute.xlu0 %2761  ;;  %2467 = vrot.lane.b32.xlu1 %v8157_v46, %s6035_s2 }
 0x3ed   :  { %12597 = vst [vmem:[#allocation137_spill] sm:$0xff] %v8162_v1  ;;  %v8188_v1 = vadd.f32 %v7748_v10, %v12602_v36 }
 0x3ee   :  { %2793 = vrot.lane.b32.xlu0 %v7538_v30, %s6036_s3  ;;  %v8172_v15 = vpop.permute.xlu1 %2242  ;;  %v12613_v30 = vld [vmem:[#allocation20_spill] sm:$0xff] }
 0x3ef   :  { %12599 = vst [vmem:[#allocation15_spill] sm:$0xff] %v8172_v15  ;;  %12603 = vst [vmem:[#allocation16_spill] sm:$0xff] %v8188_v1  ;;  %v8225_v47 = vadd.f32 %v12613_v30, %v7772_v19 }
 0x3f0   :  { %v8174_v9 = vpop.permute.xlu0 %2202  ;;  %2909 = vrot.lane.b32.xlu1 %v8168_v62, %s6036_s3 }
 0x3f1   :  { %12614 = vst [vmem:[#allocation20_spill] sm:$0xff] %v8225_v47 }
 0x3f2   :  { %2789 = vrot.lane.b32.xlu0 %v7542_v20, %s6036_s3  ;;  %v8180_v40 = vpop.permute.xlu1 %1993 }
 0x3f3   :  { %12600 = vst [vmem:[#allocation138_spill] sm:$0xff] %v8180_v40  ;;  %v12606_v40 = vld [vmem:[#allocation17_spill] sm:$0xff] }
 0x3f4   :  { %v8182_v51 = vpop.permute.xlu0 %2757  ;;  %2911 = vrot.lane.b32.xlu1 %v8157_v46, %s6036_s3 }
 0x3f5   :  { %12601 = vst [vmem:[#allocation139_spill] sm:$0xff] %v8182_v51  ;;  %v8200_v51 = vadd.f32 %v7740_v57, %v12606_v40 }
 0x3f6   :  { %2795 = vrot.lane.b32.xlu0 %v7544_v5, %s6036_s3  ;;  %v8192_v15 = vpop.permute.xlu1 %1989 }
 0x3f7   :  { %12604 = vst [vmem:[#allocation140_spill] sm:$0xff] %v8192_v15  ;;  %v12609_v15 = vrot.slane %v7544_v5, 1 }
 0x3f8   :  { %v8194_v32 = vpop.permute.xlu0 %3213  ;;  %2463 = vrot.lane.b32.xlu1 %v8188_v1, %s6035_s2 }
 0x3f9   :  { %12605 = vst [vmem:[#allocation141_spill] sm:$0xff] %v8194_v32  ;;  %v1852_v32 = vsel %vm1700_vm3, %v12609_v15, 0.0 }
 0x3fa   :  { %2791 = vrot.lane.b32.xlu0 %v7550_v44, %s6036_s3  ;;  %v8204_v14 = vpop.permute.xlu1 %2252 }
 0x3fb   :  { %12607 = vst [vmem:[#allocation17_spill] sm:$0xff] %v8204_v14  ;;  %v12612_v14 = vrot.slane %v7550_v44, 1 }
 0x3fc   :  { %v8206_v10 = vpop.permute.xlu0 %2763  ;;  %2905 = vrot.lane.b32.xlu1 %v8200_v51, %s6036_s3 }
 0x3fd   :  { %12608 = vst [vmem:[#allocation142_spill] sm:$0xff] %v8206_v10  ;;  %v1851_v10 = vsel %vm1700_vm3, %v12612_v14, 0.0 }
 0x3fe   :  { %1987 = vrot.lane.b32.xlu0 %v1852_v32, %s6037_s12  ;;  %v8214_v46 = vpop.permute.xlu1 %2248 }
 0x3ff   :  { %12610 = vst [vmem:[#allocation143_spill] sm:$0xff] %v8214_v46 }
 0x400   :  { %v8216_v57 = vpop.permute.xlu0 %2759  ;;  %2907 = vrot.lane.b32.xlu1 %v8188_v1, %s6036_s3 }
 0x401   :  { %12611 = vst [vmem:[#allocation144_spill] sm:$0xff] %v8216_v57  ;;  %v12617_v57 = vld [vmem:[#allocation19_spill] sm:$0xff] }
 0x402   :  { %1983 = vrot.lane.b32.xlu0 %v1851_v10, %s6037_s12  ;;  %v8228_v15 = vpop.permute.xlu1 %2254  ;;  %v8236_v46 = vadd.f32 %v12617_v57, %v7848_v53  ;;  %v12621_v53 = vld [vmem:[#allocation23_spill] sm:$0xff] }
 0x403   :  { %12615 = vst [vmem:[#allocation145_spill] sm:$0xff] %v8228_v15 }
 0x404   :  { %v8230_v32 = vpop.permute.xlu0 %3215  ;;  %2475 = vrot.lane.b32.xlu1 %v8225_v47, %s6035_s2  ;;  %12618 = vst [vmem:[#allocation19_spill] sm:$0xff] %v8236_v46 }
 0x405   :  { %12616 = vst [vmem:[#allocation146_spill] sm:$0xff] %v8230_v32 }
 0x406   :  { %2801 = vrot.lane.b32.xlu0 %v7572_v7, %s6036_s3  ;;  %v8240_v14 = vpop.permute.xlu1 %2250 }
 0x407   :  { %12619 = vst [vmem:[#allocation147_spill] sm:$0xff] %v8240_v14  ;;  %v8257_v14 = vadd.f32 %v7780_v42, %v12621_v53 }
 0x408   :  { %v1954_v19 = vpop.permute.xlu0 %1953  ;;  %2917 = vrot.lane.b32.xlu1 %v8236_v46, %s6036_s3 }
 0x409   :  { %v8245_v10 = vadd.f32 %v7412_v23, %v1954_v19  ;;  %12622 = vst [vmem:[#allocation23_spill] sm:$0xff] %v8257_v14  ;;  %v12624_v19 = vrot.slane %v7578_v31, 1 }
 0x40a   :  { %2797 = vrot.lane.b32.xlu0 %v7576_v52, %s6036_s3  ;;  %v8249_v32 = vpop.permute.xlu1 %2001  ;;  %v12625_v52 = vld [vmem:[#allocation21_spill] sm:$0xff] }
 0x40b   :  { %12620 = vst [vmem:[#allocation148_spill] sm:$0xff] %v8249_v32  ;;  %v1854_v32 = vsel %vm1700_vm3, %v12624_v19, 0.0 }
 0x40c   :  { %v8251_v15 = vpop.permute.xlu0 %1949  ;;  %2919 = vrot.lane.b32.xlu1 %v8225_v47, %s6036_s3  ;;  %v8272_v47 = vadd.f32 %v7856_v17, %v12625_v52  ;;  %v12631_v17 = vrot.slane %v7608_v3, 1 }
 0x40e   :  { %2799 = vrot.lane.b32.xlu0 %v7582_v4, %s6036_s3  ;;  %v8261_v7 = vpop.permute.xlu1 %1997 }
 0x40f   :  { %12623 = vst [vmem:[#allocation149_spill] sm:$0xff] %v8261_v7  ;;  %v12628_v7 = vrot.slane %v7582_v4, 1  ;;  %v12637_v4 = vld [vmem:[#allocation25_spill] sm:$0xff] }
 0x410   :  { %v8263_v23 = vpop.permute.xlu0 %2212  ;;  %2471 = vrot.lane.b32.xlu1 %v8257_v14, %s6035_s2 }
 0x411   :  { %v1853_v1 = vsel %vm1700_vm3, %v12628_v7, 0.0 }
 0x412   :  { %1995 = vrot.lane.b32.xlu0 %v1854_v32, %s6037_s12  ;;  %v8275_v42 = vpop.permute.xlu1 %2260  ;;  %v1856_v32 = vsel %vm1700_vm3, %v12631_v17, 0.0  ;;  %v8310_v17 = vadd.f32 %v12637_v4, %v7912_v26  ;;  %v12644_v26 = vld [vmem:[#allocation63_spill] sm:$0xff] }
 0x413   :  { %12626 = vst [vmem:[#allocation21_spill] sm:$0xff] %v8275_v42 }
 0x414   :  { %v8277_v5 = vpop.permute.xlu0 %2769  ;;  %2913 = vrot.lane.b32.xlu1 %v8272_v47, %s6036_s3  ;;  %12638 = vst [vmem:[#allocation25_spill] sm:$0xff] %v8310_v17 }
 0x415   :  { %12627 = vst [vmem:[#allocation150_spill] sm:$0xff] %v8277_v5  ;;  %v12632_v5 = vld [vmem:[#allocation24_spill] sm:$0xff] }
 0x416   :  { %1991 = vrot.lane.b32.xlu0 %v1853_v1, %s6037_s12  ;;  %v8285_v19 = vpop.permute.xlu1 %2256  ;;  %v8296_v42 = vadd.f32 %v12632_v5, %v7804_v41 }
 0x417   :  { %12629 = vst [vmem:[#allocation151_spill] sm:$0xff] %v8285_v19 }
 0x418   :  { %v8287_v44 = vpop.permute.xlu0 %2765  ;;  %2915 = vrot.lane.b32.xlu1 %v8257_v14, %s6036_s3  ;;  %12633 = vst [vmem:[#allocation24_spill] sm:$0xff] %v8296_v42  ;;  %v12643_v14 = vld [vmem:[#allocation30_spill] sm:$0xff] }
 0x419   :  { %12630 = vst [vmem:[#allocation152_spill] sm:$0xff] %v8287_v44  ;;  %v12636_v44 = vrot.slane %v7614_v43, 1  ;;  %v2333_v20 = vadd.f32 %v12644_v26, %v12643_v14 }
 0x41a   :  { %2003 = vrot.lane.b32.xlu0 %v1856_v32, %s6037_s12  ;;  %v8299_v7 = vpop.permute.xlu1 %2262 }
 0x41b   :  { %12634 = vst [vmem:[#allocation153_spill] sm:$0xff] %v8299_v7  ;;  %v1855_v19 = vsel %vm1700_vm3, %v12636_v44, 0.0 }
 0x41c   :  { %v8301_v1 = vpop.permute.xlu0 %2771  ;;  %2483 = vrot.lane.b32.xlu1 %v8296_v42, %s6035_s2 }
 0x41d   :  { %12635 = vst [vmem:[#allocation154_spill] sm:$0xff] %v8301_v1  ;;  %v12641_v1 = vrot.slane %v12546_v58, 1 }
 0x41e   :  { %1999 = vrot.lane.b32.xlu0 %v1855_v19, %s6037_s12  ;;  %v8313_v41 = vpop.permute.xlu1 %2258  ;;  %v12645_v19 = vld [vmem:[#allocation9_spill] sm:$0xff] }
 0x41f   :  { %12639 = vst [vmem:[#allocation155_spill] sm:$0xff] %v8313_v41  ;;  %v1858_v7 = vsel %vm1700_vm3, %v12641_v1, 0.0 }
 0x420   :  { %v8315_v32 = vpop.permute.xlu0 %2767  ;;  %2925 = vrot.lane.b32.xlu1 %v8310_v17, %s6036_s3 }
 0x421   :  { %12640 = vst [vmem:[#allocation156_spill] sm:$0xff] %v8315_v32  ;;  %v8333_v32 = vadd.f32 %v7812_v38, %v12645_v19 }
 0x422   :  { %2011 = vrot.lane.b32.xlu0 %v1858_v7, %s6037_s12  ;;  %v8323_v44 = vpop.permute.xlu1 %2009  ;;  %v12648_v7 = vrot.slane %v12549_v61, 1 }
 0x423   :  { %12642 = vst [vmem:[#allocation157_spill] sm:$0xff] %v8323_v44  ;;  %12646 = vst [vmem:[#allocation30_spill] sm:$0xff] %v8333_v32  ;;  %v12649_v44 = vld [vmem:[#allocation22_spill] sm:$0xff] }
 0x424   :  { %v8327_v3 = vpop.permute.xlu0 %1963  ;;  %2927 = vrot.lane.b32.xlu1 %v8296_v42, %s6036_s3  ;;  %v1857_v26 = vsel %vm1700_vm3, %v12648_v7, 0.0  ;;  %v8347_v42 = vadd.f32 %v7920_v25, %v12649_v44  ;;  %v8362_v7 = vadd.f32 %v7736_v29, %v12643_v14  ;;  %v8384_v29 = vadd.f32 %v7322_v49, %v7978_v37  ;;  %v12662_v37 = vld [vmem:[#allocation77_spill] sm:$0xff] }
 0x426   :  { %3153 = vrot.lane.b32.xlu0 %v2333_v20, %s6038_s13  ;;  %v8336_v41 = vpop.permute.xlu1 %2005  ;;  %12650 = vst [vmem:[#allocation9_spill] sm:$0xff] %v8347_v42  ;;  %12657 = vst [vmem:[#allocation163_spill] sm:$0xff] %v8384_v29 }
 0x427   :  { %12647 = vst [vmem:[#allocation63_spill] sm:$0xff] %v8336_v41 }
 0x428   :  { %v8338_v1 = vpop.permute.xlu0 %1957  ;;  %2479 = vrot.lane.b32.xlu1 %v8333_v32, %s6035_s2 }
 0x42a   :  { %2007 = vrot.lane.b32.xlu0 %v1857_v26, %s6037_s12  ;;  %v8350_v38 = vpop.permute.xlu1 %3155  ;;  %v8370_v26 = vadd.f32 %v7328_v59, %v7836_v28 }
 0x42b   :  { %12651 = vst [vmem:[#allocation22_spill] sm:$0xff] %v8350_v38 }
 0x42c   :  { %v8352_v20 = vpop.permute.xlu0 %1959  ;;  %2921 = vrot.lane.b32.xlu1 %v8347_v42, %s6036_s3  ;;  %12654 = vst [vmem:[#allocation160_spill] sm:$0xff] %v8370_v26 }
 0x42e   :  { %2457 = vrot.lane.b32.xlu0 %v8065_v0, %s6035_s2  ;;  %v8358_v41 = vpop.permute.xlu1 %2268 }
 0x42f   :  { %12652 = vst [vmem:[#allocation158_spill] sm:$0xff] %v8358_v41  ;;  %v2337_v41 = vadd.f32 %v7744_v13, %v12606_v40  ;;  %v12660_v13 = vrot.slane %v7690_v22, 1 }
 0x430   :  { %v8364_v25 = vpop.permute.xlu0 %2777  ;;  %2923 = vrot.lane.b32.xlu1 %v8333_v32, %s6036_s3 }
 0x431   :  { %12653 = vst [vmem:[#allocation159_spill] sm:$0xff] %v8364_v25  ;;  %v1859_v40 = vsel %vm1700_vm3, %v12660_v13, 0.0  ;;  %v12667_v13 = vld [vmem:[#allocation78_spill] sm:$0xff] }
 0x432   :  { %2897 = vrot.lane.b32.xlu0 %v8362_v7, %s6036_s3  ;;  %v8374_v38 = vpop.permute.xlu1 %2264 }
 0x433   :  { %12655 = vst [vmem:[#allocation161_spill] sm:$0xff] %v8374_v38 }
 0x434   :  { %v8378_v0 = vpop.permute.xlu0 %2773  ;;  %2491 = vrot.lane.b32.xlu1 %v8370_v26, %s6035_s2 }
 0x435   :  { %12656 = vst [vmem:[#allocation162_spill] sm:$0xff] %v8378_v0  ;;  %v2338_v0 = vadd.f32 %v12662_v37, %v12602_v36  ;;  %v12668_v36 = vld [vmem:[#allocation11_spill] sm:$0xff] }
 0x436   :  { %3161 = vrot.lane.b32.xlu0 %v2337_v41, %s6038_s13  ;;  %v8387_v28 = vpop.permute.xlu1 %2459  ;;  %v12664_v41 = vld [vmem:[#allocation8_spill] sm:$0xff]  ;;  %v8420_v37 = vadd.f32 %v7986_v2, %v12668_v36  ;;  %v8439_v2 = vadd.f32 %v7358_v55, %v7868_v16  ;;  %v2339_v16 = vadd.f32 %v12598_v54, %v7816_v27 }
 0x437   :  { %12658 = vst [vmem:[#allocation164_spill] sm:$0xff] %v8387_v28 }
 0x438   :  { %v8389_v14 = vpop.permute.xlu0 %2779  ;;  %2933 = vrot.lane.b32.xlu1 %v8384_v29, %s6036_s3  ;;  %12669 = vst [vmem:[#allocation78_spill] sm:$0xff] %v8420_v37  ;;  %12673 = vst [vmem:[#allocation170_spill] sm:$0xff] %v8439_v2 }
 0x439   :  { %12659 = vst [vmem:[#allocation165_spill] sm:$0xff] %v8389_v14  ;;  %v8407_v14 = vadd.f32 %v7844_v50, %v12664_v41 }
 0x43a   :  { %v8396_v25 = vpop.permute.xlu1 %2901  ;;  %2015 = vrot.lane.b32.xlu0 %v1859_v40, %s6037_s12 }
 0x43b   :  { %12661 = vst [vmem:[#allocation166_spill] sm:$0xff] %v8396_v25  ;;  %12665 = vst [vmem:[#allocation8_spill] sm:$0xff] %v8407_v14  ;;  %v2336_v25 = vadd.f32 %v12569_v35, %v12667_v13  ;;  %v2341_v13 = vadd.f32 %v7800_v39, %v12625_v52  ;;  %v12680_v39 = vld [vmem:[#allocation80_spill] sm:$0xff] }
 0x43c   :  { %v8401_v38 = vpop.permute.xlu0 %2775  ;;  %2935 = vrot.lane.b32.xlu1 %v8370_v26, %s6036_s3 }
 0x43d   :  { %12663 = vst [vmem:[#allocation77_spill] sm:$0xff] %v8401_v38 }
 0x43e   :  { %v8409_v28 = vpop.permute.xlu1 %2903  ;;  %3163 = vrot.lane.b32.xlu0 %v2338_v0, %s6038_s13 }
 0x43f   :  { %12666 = vst [vmem:[#allocation167_spill] sm:$0xff] %v8409_v28 }
 0x440   :  { %v8414_v40 = vpop.permute.xlu0 %1971  ;;  %2487 = vrot.lane.b32.xlu1 %v8407_v14, %s6035_s2 }
 0x442   :  { %v8422_v38 = vpop.permute.xlu1 %2270  ;;  %3159 = vrot.lane.b32.xlu0 %v2336_v25, %s6038_s13 }
 0x443   :  { %12670 = vst [vmem:[#allocation11_spill] sm:$0xff] %v8422_v38 }
 0x444   :  { %v8425_v50 = vpop.permute.xlu0 %1967  ;;  %2929 = vrot.lane.b32.xlu1 %v8420_v37, %s6036_s3 }
 0x446   :  { %v8429_v0 = vpop.permute.xlu1 %2899  ;;  %2465 = vrot.lane.b32.xlu0 %v8168_v62, %s6035_s2 }
 0x447   :  { %12671 = vst [vmem:[#allocation168_spill] sm:$0xff] %v8429_v0 }
 0x448   :  { %v8433_v35 = vpop.permute.xlu0 %2785  ;;  %2931 = vrot.lane.b32.xlu1 %v8407_v14, %s6036_s3  ;;  %v12698_v14 = vld [vmem:[#allocation98_spill] sm:$0xff] }
 0x449   :  { %12672 = vst [vmem:[#allocation169_spill] sm:$0xff] %v8433_v35  ;;  %v12676_v35 = vld [vmem:[#allocation10_spill] sm:$0xff] }
 0x44a   :  { %v8441_v25 = vpop.permute.xlu1 %2266  ;;  %2461 = vrot.lane.b32.xlu0 %v8200_v51, %s6035_s2  ;;  %v8453_v0 = vadd.f32 %v12676_v35, %v8047_v45  ;;  %v2342_v45 = vadd.f32 %v12680_v39, %v12621_v53  ;;  %v12687_v53 = vld [vmem:[#allocation13_spill] sm:$0xff] }
 0x44b   :  { %12674 = vst [vmem:[#allocation171_spill] sm:$0xff] %v8441_v25  ;;  %v8488_v39 = vadd.f32 %v8059_v11, %v12687_v53  ;;  %v12690_v11 = vld [vmem:[#allocation103_spill] sm:$0xff] }
 0x44c   :  { %v8447_v28 = vpop.permute.xlu0 %2781  ;;  %2499 = vrot.lane.b32.xlu1 %v8439_v2, %s6035_s2 }
 0x44d   :  { %12675 = vst [vmem:[#allocation172_spill] sm:$0xff] %v8447_v28 }
 0x44e   :  { %v8455_v38 = vpop.permute.xlu1 %2017  ;;  %3169 = vrot.lane.b32.xlu0 %v2341_v13, %s6038_s13  ;;  %v12682_v13 = vld [vmem:[#allocation12_spill] sm:$0xff] }
 0x44f   :  { %12677 = vst [vmem:[#allocation10_spill] sm:$0xff] %v8455_v38  ;;  %v12683_v38 = vld [vmem:[#allocation97_spill] sm:$0xff] }
 0x450   :  { %v8460_v25 = vpop.permute.xlu0 %2787  ;;  %2941 = vrot.lane.b32.xlu1 %v8453_v0, %s6036_s3  ;;  %v8475_v27 = vadd.f32 %v12683_v38, %v12682_v13 }
 0x451   :  { %12678 = vst [vmem:[#allocation173_spill] sm:$0xff] %v8460_v25  ;;  %v12686_v25 = vld [vmem:[#allocation81_spill] sm:$0xff] }
 0x452   :  { %v8464_v52 = vpop.permute.xlu1 %2019  ;;  %3165 = vrot.lane.b32.xlu0 %v2339_v16, %s6038_s13  ;;  %12684 = vst [vmem:[#allocation12_spill] sm:$0xff] %v8475_v27 }
 0x453   :  { %12679 = vst [vmem:[#allocation174_spill] sm:$0xff] %v8464_v52  ;;  %v2340_v52 = vadd.f32 %v12594_v12, %v12686_v25 }
 0x454   :  { %v8469_v28 = vpop.permute.xlu0 %2783  ;;  %2943 = vrot.lane.b32.xlu1 %v8439_v2, %s6036_s3 }
 0x455   :  { %12681 = vst [vmem:[#allocation80_spill] sm:$0xff] %v8469_v28 }
 0x456   :  { %3171 = vrot.lane.b32.xlu0 %v2342_v45, %s6038_s13  ;;  %v8478_v54 = vpop.permute.xlu1 %2013  ;;  %v12691_v45 = vld [vmem:[#allocation18_spill] sm:$0xff] }
 0x457   :  { %12685 = vst [vmem:[#allocation97_spill] sm:$0xff] %v8478_v54  ;;  %v12694_v54 = vld [vmem:[#allocation95_spill] sm:$0xff] }
 0x458   :  { %v8482_v16 = vpop.permute.xlu0 %1979  ;;  %2495 = vrot.lane.b32.xlu1 %v8475_v27, %s6035_s2  ;;  %v2345_v2 = vadd.f32 %v12694_v54, %v12649_v44  ;;  %v12700_v54 = vld [vmem:[#allocation85_spill] sm:$0xff] }
 0x45a   :  { %3167 = vrot.lane.b32.xlu0 %v2340_v52, %s6038_s13  ;;  %v8491_v38 = vpop.permute.xlu1 %3157  ;;  %v8507_v52 = vadd.f32 %v12691_v45, %v12690_v11 }
 0x45b   :  { %12688 = vst [vmem:[#allocation81_spill] sm:$0xff] %v8491_v38 }
 0x45c   :  { %v8493_v28 = vpop.permute.xlu0 %1975  ;;  %2937 = vrot.lane.b32.xlu1 %v8488_v39, %s6036_s3  ;;  %12692 = vst [vmem:[#allocation103_spill] sm:$0xff] %v8507_v52 }
 0x45e   :  { %2473 = vrot.lane.b32.xlu0 %v8236_v46, %s6035_s2  ;;  %v8499_v12 = vpop.permute.xlu1 %2467  ;;  %v2343_v46 = vadd.f32 %v12617_v57, %v12698_v14 }
 0x460   :  { %v8501_v25 = vpop.permute.xlu0 %2793  ;;  %2939 = vrot.lane.b32.xlu1 %v8475_v27, %s6036_s3 }
 0x461   :  { %12689 = vst [vmem:[#allocation13_spill] sm:$0xff] %v8501_v25  ;;  %v12696_v25 = vld [vmem:[#allocation28_spill] sm:$0xff] }
 0x462   :  { %2469 = vrot.lane.b32.xlu0 %v8272_v47, %s6035_s2  ;;  %v8511_v38 = vpop.permute.xlu1 %2909  ;;  %v8521_v27 = vadd.f32 %v12696_v25, %v8130_v34  ;;  %v2346_v34 = vadd.f32 %v12700_v54, %v12645_v19  ;;  %v12707_v19 = vld [vmem:[#allocation26_spill] sm:$0xff] }
 0x463   :  { %12693 = vst [vmem:[#allocation18_spill] sm:$0xff] %v8511_v38  ;;  %v8556_v54 = vadd.f32 %v8137_v24, %v12707_v19  ;;  %v12710_v24 = vld [vmem:[#allocation109_spill] sm:$0xff] }
 0x464   :  { %v8515_v26 = vpop.permute.xlu0 %2789  ;;  %2507 = vrot.lane.b32.xlu1 %v8507_v52, %s6035_s2 }
 0x465   :  { %12695 = vst [vmem:[#allocation95_spill] sm:$0xff] %v8515_v26 }
 0x466   :  { %3177 = vrot.lane.b32.xlu0 %v2345_v2, %s6038_s13  ;;  %v8524_v11 = vpop.permute.xlu1 %2911  ;;  %v12702_v2 = vld [vmem:[#allocation33_spill] sm:$0xff] }
 0x467   :  { %12697 = vst [vmem:[#allocation28_spill] sm:$0xff] %v8524_v11  ;;  %v12703_v11 = vld [vmem:[#allocation105_spill] sm:$0xff] }
 0x468   :  { %v8528_v38 = vpop.permute.xlu0 %2795  ;;  %2949 = vrot.lane.b32.xlu1 %v8521_v27, %s6036_s3  ;;  %v8543_v57 = vadd.f32 %v12703_v11, %v12702_v2 }
 0x469   :  { %12699 = vst [vmem:[#allocation98_spill] sm:$0xff] %v8528_v38  ;;  %v12706_v38 = vld [vmem:[#allocation86_spill] sm:$0xff] }
 0x46a   :  { %3173 = vrot.lane.b32.xlu0 %v2343_v46, %s6038_s13  ;;  %v8533_v44 = vpop.permute.xlu1 %2463  ;;  %12704 = vst [vmem:[#allocation33_spill] sm:$0xff] %v8543_v57  ;;  %v2344_v46 = vadd.f32 %v12613_v30, %v12706_v38 }
 0x46c   :  { %v8537_v26 = vpop.permute.xlu0 %2791  ;;  %2951 = vrot.lane.b32.xlu1 %v8507_v52, %s6036_s3 }
 0x46d   :  { %12701 = vst [vmem:[#allocation85_spill] sm:$0xff] %v8537_v26 }
 0x46e   :  { %3179 = vrot.lane.b32.xlu0 %v2346_v34, %s6038_s13  ;;  %v8546_v14 = vpop.permute.xlu1 %2905  ;;  %v12711_v34 = vld [vmem:[#allocation35_spill] sm:$0xff] }
 0x46f   :  { %12705 = vst [vmem:[#allocation105_spill] sm:$0xff] %v8546_v14  ;;  %v12713_v14 = vld [vmem:[#allocation108_spill] sm:$0xff] }
 0x470   :  { %v8550_v32 = vpop.permute.xlu0 %1987  ;;  %2503 = vrot.lane.b32.xlu1 %v8543_v57, %s6035_s2  ;;  %v2349_v52 = vadd.f32 %v12713_v14, %v12668_v36  ;;  %v12718_v14 = vld [vmem:[#allocation88_spill] sm:$0xff] }
 0x472   :  { %3175 = vrot.lane.b32.xlu0 %v2344_v46, %s6038_s13  ;;  %v8559_v11 = vpop.permute.xlu1 %2907  ;;  %v8575_v46 = vadd.f32 %v12711_v34, %v12710_v24 }
 0x473   :  { %12708 = vst [vmem:[#allocation86_spill] sm:$0xff] %v8559_v11 }
 0x474   :  { %v8561_v26 = vpop.permute.xlu0 %1983  ;;  %2945 = vrot.lane.b32.xlu1 %v8556_v54, %s6036_s3 }
 0x476   :  { %2481 = vrot.lane.b32.xlu0 %v8310_v17, %s6035_s2  ;;  %v8567_v30 = vpop.permute.xlu1 %2475 }
 0x478   :  { %v8569_v38 = vpop.permute.xlu0 %2801  ;;  %2947 = vrot.lane.b32.xlu1 %v8543_v57, %s6036_s3  ;;  %v12716_v57 = vld [vmem:[#allocation112_spill] sm:$0xff] }
 0x479   :  { %12709 = vst [vmem:[#allocation26_spill] sm:$0xff] %v8569_v38  ;;  %v2347_v24 = vadd.f32 %v12637_v4, %v12716_v57 }
 0x47a   :  { %2477 = vrot.lane.b32.xlu0 %v8347_v42, %s6035_s2  ;;  %v8579_v11 = vpop.permute.xlu1 %2917 }
 0x47b   :  { %12712 = vst [vmem:[#allocation109_spill] sm:$0xff] %v8579_v11 }
 0x47c   :  { %v8583_v17 = vpop.permute.xlu0 %2797  ;;  %2515 = vrot.lane.b32.xlu1 %v8575_v46, %s6035_s2 }
 0x47d   :  { %12714 = vst [vmem:[#allocation35_spill] sm:$0xff] %v8583_v17  ;;  %v2350_v17 = vadd.f32 %v12718_v14, %v12664_v41  ;;  %v12726_v41 = vld [vmem:[#allocation34_spill] sm:$0xff] }
 0x47e   :  { %3185 = vrot.lane.b32.xlu0 %v2349_v52, %s6038_s13  ;;  %v8588_v38 = vpop.permute.xlu1 %2919  ;;  %v12720_v52 = vld [vmem:[#allocation36_spill] sm:$0xff]  ;;  %v8620_v14 = vadd.f32 %v8251_v15, %v12726_v41 }
 0x47f   :  { %12715 = vst [vmem:[#allocation108_spill] sm:$0xff] %v8588_v38  ;;  %v12721_v38 = vld [vmem:[#allocation111_spill] sm:$0xff]  ;;  %v12730_v15 = vld [vmem:[#allocation40_spill] sm:$0xff] }
 0x480   :  { %v8592_v34 = vpop.permute.xlu0 %2799  ;;  %2957 = vrot.lane.b32.xlu1 %v8245_v10, %s6036_s3  ;;  %v8607_v4 = vadd.f32 %v12721_v38, %v12720_v52 }
 0x481   :  { %12717 = vst [vmem:[#allocation112_spill] sm:$0xff] %v8592_v34  ;;  %v12724_v34 = vld [vmem:[#allocation90_spill] sm:$0xff] }
 0x482   :  { %3181 = vrot.lane.b32.xlu0 %v2347_v24, %s6038_s13  ;;  %v8597_v36 = vpop.permute.xlu1 %2471  ;;  %12722 = vst [vmem:[#allocation36_spill] sm:$0xff] %v8607_v4  ;;  %v2348_v24 = vadd.f32 %v12632_v5, %v12724_v34  ;;  %v2365_v34 = vadd.f32 %v8263_v23, %v12730_v15  ;;  %v12736_v23 = vld [vmem:[#allocation42_spill] sm:$0xff] }
 0x484   :  { %v8601_v11 = vpop.permute.xlu0 %1995  ;;  %2959 = vrot.lane.b32.xlu1 %v8575_v46, %s6036_s3 }
 0x485   :  { %12719 = vst [vmem:[#allocation88_spill] sm:$0xff] %v8601_v11 }
 0x486   :  { %3187 = vrot.lane.b32.xlu0 %v2350_v17, %s6038_s13  ;;  %v8610_v57 = vpop.permute.xlu1 %2913 }
 0x487   :  { %12723 = vst [vmem:[#allocation111_spill] sm:$0xff] %v8610_v57 }
 0x488   :  { %v8614_v42 = vpop.permute.xlu0 %1991  ;;  %2511 = vrot.lane.b32.xlu1 %v8607_v4, %s6035_s2 }
 0x489   :  { %12725 = vst [vmem:[#allocation90_spill] sm:$0xff] %v8614_v42  ;;  %v2351_v42 = vadd.f32 %v7322_v49, %v12736_v23  ;;  %v12741_v49 = vld [vmem:[#allocation41_spill] sm:$0xff] }
 0x48a   :  { %3183 = vrot.lane.b32.xlu0 %v2348_v24, %s6038_s13  ;;  %v8623_v38 = vpop.permute.xlu1 %2915  ;;  %v8673_v23 = vadd.f32 %v12741_v49, %v8327_v3 }
 0x48b   :  { %12727 = vst [vmem:[#allocation34_spill] sm:$0xff] %v8623_v38  ;;  %v12732_v38 = vld [vmem:[#allocation118_spill] sm:$0xff] }
 0x48c   :  { %v8625_v11 = vpop.permute.xlu0 %2003  ;;  %2953 = vrot.lane.b32.xlu1 %v8620_v14, %s6036_s3  ;;  %v2353_v57 = vadd.f32 %v12732_v38, %v12687_v53  ;;  %v12739_v53 = vld [vmem:[#allocation39_spill] sm:$0xff] }
 0x48d   :  { %12728 = vst [vmem:[#allocation175_spill] sm:$0xff] %v8625_v11 }
 0x48e   :  { %2489 = vrot.lane.b32.xlu0 %v8384_v29, %s6035_s2  ;;  %v8631_v5 = vpop.permute.xlu1 %2483 }
 0x490   :  { %v8633_v17 = vpop.permute.xlu0 %1999  ;;  %2955 = vrot.lane.b32.xlu1 %v8607_v4, %s6036_s3 }
 0x491   :  { %12729 = vst [vmem:[#allocation176_spill] sm:$0xff] %v8633_v17  ;;  %v12734_v17 = vld [vmem:[#allocation113_spill] sm:$0xff] }
 0x492   :  { %2485 = vrot.lane.b32.xlu0 %v8420_v37, %s6035_s2  ;;  %v8641_v24 = vpop.permute.xlu1 %2925  ;;  %v2366_v29 = vadd.f32 %v12734_v17, %v12550_v8  ;;  %v12740_v17 = vld [vmem:[#allocation93_spill] sm:$0xff] }
 0x493   :  { %12731 = vst [vmem:[#allocation40_spill] sm:$0xff] %v8641_v24  ;;  %v12738_v24 = vld [vmem:[#allocation37_spill] sm:$0xff] }
 0x494   :  { %v8645_v11 = vpop.permute.xlu0 %2011  ;;  %3217 = vrot.lane.b32.xlu1 %v2365_v34, %s6038_s13  ;;  %v8660_v38 = vadd.f32 %v12739_v53, %v12738_v24  ;;  %v12743_v24 = vld [vmem:[#allocation94_spill] sm:$0xff] }
 0x495   :  { %12733 = vst [vmem:[#allocation118_spill] sm:$0xff] %v8645_v11 }
 0x496   :  { %3193 = vrot.lane.b32.xlu0 %v2353_v57, %s6038_s13  ;;  %v8651_v4 = vpop.permute.xlu1 %2927  ;;  %v2354_v57 = vadd.f32 %v12740_v17, %v12682_v13 }
 0x497   :  { %12735 = vst [vmem:[#allocation113_spill] sm:$0xff] %v8651_v4 }
 0x498   :  { %v8655_v37 = vpop.permute.xlu0 %3153  ;;  %3219 = vrot.lane.b32.xlu1 %v2366_v29, %s6038_s13 }
 0x499   :  { %12737 = vst [vmem:[#allocation42_spill] sm:$0xff] %v8655_v37 }
 0x49a   :  { %3189 = vrot.lane.b32.xlu0 %v2351_v42, %s6038_s13  ;;  %v8663_v34 = vpop.permute.xlu1 %2479  ;;  %v2352_v42 = vadd.f32 %v7328_v59, %v12743_v24 }
 0x49c   :  { %v8667_v11 = vpop.permute.xlu0 %2007  ;;  %2517 = vrot.lane.b32.xlu1 %v8660_v38, %s6035_s2 }
 0x49e   :  { %3195 = vrot.lane.b32.xlu0 %v2354_v57, %s6038_s13  ;;  %v8676_v29 = vpop.permute.xlu1 %2921  ;;  %v8701_v57 = vadd.f32 %v8338_v1, %v12730_v15  ;;  %v2355_v15 = vadd.f32 %v12676_v35, %v8089_v56  ;;  %v12755_v56 = vld [vmem:[#allocation58_spill] sm:$0xff] }
 0x49f   :  { %12742 = vst [vmem:[#allocation37_spill] sm:$0xff] %v8676_v29  ;;  %v8715_v29 = vadd.f32 %v8352_v20, %v12550_v8  ;;  %v12753_v8 = vld [vmem:[#allocation99_spill] sm:$0xff]  ;;  %v2367_v35 = vadd.f32 %v12739_v53, %v12755_v56  ;;  %v12760_v53 = vld [vmem:[#allocation117_spill] sm:$0xff]  ;;  %v12762_v56 = vld [vmem:[#allocation62_spill] sm:$0xff] }
 0x4a0   :  { %v8680_v4 = vpop.permute.xlu0 %2457  ;;  %2519 = vrot.lane.b32.xlu1 %v8673_v23, %s6035_s2  ;;  %v2358_v20 = vadd.f32 %v12753_v8, %v12702_v2  ;;  %v12758_v2 = vld [vmem:[#allocation116_spill] sm:$0xff] }
 0x4a1   :  { %v2370_v8 = vadd.f32 %v12758_v2, %v7486_v21 }
 0x4a2   :  { %3191 = vrot.lane.b32.xlu0 %v2352_v42, %s6038_s13  ;;  %v8685_v13 = vpop.permute.xlu1 %2923  ;;  %v2357_v42 = vadd.f32 %v8071_v63, %v12707_v19  ;;  %v12751_v63 = vld [vmem:[#allocation45_spill] sm:$0xff] }
 0x4a3   :  { %12744 = vst [vmem:[#allocation39_spill] sm:$0xff] %v8685_v13  ;;  %v12752_v19 = vld [vmem:[#allocation57_spill] sm:$0xff] }
 0x4a4   :  { %v8687_v17 = vpop.permute.xlu0 %2897  ;;  %2965 = vrot.lane.b32.xlu1 %v8660_v38, %s6036_s3 }
 0x4a5   :  { %12745 = vst [vmem:[#allocation93_spill] sm:$0xff] %v8687_v17 }
 0x4a6   :  { %2497 = vrot.lane.b32.xlu0 %v8453_v0, %s6035_s2  ;;  %v8693_v3 = vpop.permute.xlu1 %2491 }
 0x4a8   :  { %v8695_v59 = vpop.permute.xlu0 %3161  ;;  %2967 = vrot.lane.b32.xlu1 %v8673_v23, %s6036_s3 }
 0x4a9   :  { %12746 = vst [vmem:[#allocation41_spill] sm:$0xff] %v8695_v59  ;;  %v2369_v59 = vadd.f32 %v12752_v19, %v12751_v63 }
 0x4aa   :  { %2493 = vrot.lane.b32.xlu0 %v8488_v39, %s6035_s2  ;;  %v8705_v24 = vpop.permute.xlu1 %2933 }
 0x4ab   :  { %12747 = vst [vmem:[#allocation94_spill] sm:$0xff] %v8705_v24 }
 0x4ac   :  { %v8709_v13 = vpop.permute.xlu0 %2015  ;;  %2961 = vrot.lane.b32.xlu1 %v8701_v57, %s6036_s3 }
 0x4ad   :  { %12748 = vst [vmem:[#allocation177_spill] sm:$0xff] %v8709_v13  ;;  %v12816_v13 = vld [vmem:[#allocation124_spill] sm:$0xff] }
 0x4ae   :  { %3201 = vrot.lane.b32.xlu0 %v2357_v42, %s6038_s13  ;;  %v8718_v1 = vpop.permute.xlu1 %2935 }
 0x4af   :  { %12749 = vst [vmem:[#allocation178_spill] sm:$0xff] %v8718_v1 }
 0x4b0   :  { %v8722_v24 = vpop.permute.xlu0 %3163  ;;  %2963 = vrot.lane.b32.xlu1 %v8715_v29, %s6036_s3 }
 0x4b1   :  { %12750 = vst [vmem:[#allocation179_spill] sm:$0xff] %v8722_v24  ;;  %v12757_v24 = vld [vmem:[#allocation101_spill] sm:$0xff] }
 0x4b2   :  { %3197 = vrot.lane.b32.xlu0 %v2355_v15, %s6038_s13  ;;  %v8729_v37 = vpop.permute.xlu1 %2487  ;;  %v2356_v19 = vadd.f32 %v7358_v55, %v12757_v24 }
 0x4b4   :  { %v8733_v42 = vpop.permute.xlu0 %3159  ;;  %3225 = vrot.lane.b32.xlu1 %v2369_v59, %s6038_s13 }
 0x4b5   :  { %12754 = vst [vmem:[#allocation45_spill] sm:$0xff] %v8733_v42 }
 0x4b6   :  { %3203 = vrot.lane.b32.xlu0 %v2358_v20, %s6038_s13  ;;  %v8739_v1 = vpop.permute.xlu1 %2929  ;;  %v2368_v20 = vadd.f32 %v12741_v49, %v12760_v53  ;;  %v2361_v49 = vadd.f32 %v8149_v48, %v12726_v41  ;;  %v12767_v53 = vld [vmem:[#allocation46_spill] sm:$0xff] }
 0x4b7   :  { %12756 = vst [vmem:[#allocation57_spill] sm:$0xff] %v8739_v1  ;;  %v12771_v41 = vld [vmem:[#allocation106_spill] sm:$0xff] }
 0x4b8   :  { %v8743_v15 = vpop.permute.xlu0 %2465  ;;  %3221 = vrot.lane.b32.xlu1 %v2367_v35, %s6038_s13  ;;  %v12763_v35 = vld [vmem:[#allocation44_spill] sm:$0xff] }
 0x4ba   :  { %3199 = vrot.lane.b32.xlu0 %v2356_v19, %s6038_s13  ;;  %v8749_v59 = vpop.permute.xlu1 %2931  ;;  %v8765_v19 = vadd.f32 %v12763_v35, %v12762_v56 }
 0x4bb   :  { %12759 = vst [vmem:[#allocation99_spill] sm:$0xff] %v8749_v59  ;;  %v2359_v59 = vadd.f32 %v12696_v25, %v8174_v9  ;;  %v12774_v25 = vld [vmem:[#allocation107_spill] sm:$0xff] }
 0x4bc   :  { %v8751_v42 = vpop.permute.xlu0 %2461  ;;  %3227 = vrot.lane.b32.xlu1 %v2370_v8, %s6038_s13  ;;  %12764 = vst [vmem:[#allocation101_spill] sm:$0xff] %v8765_v19 }
 0x4be   :  { %2505 = vrot.lane.b32.xlu0 %v8521_v27, %s6035_s2  ;;  %v8758_v55 = vpop.permute.xlu1 %2499 }
 0x4c0   :  { %v8760_v24 = vpop.permute.xlu0 %3169  ;;  %3223 = vrot.lane.b32.xlu1 %v2368_v20, %s6038_s13  ;;  %v8779_v20 = vadd.f32 %v12767_v53, %v8414_v40  ;;  %v2362_v40 = vadd.f32 %v12771_v41, %v12720_v52 }
 0x4c1   :  { %12761 = vst [vmem:[#allocation58_spill] sm:$0xff] %v8760_v24 }
 0x4c2   :  { %2501 = vrot.lane.b32.xlu0 %v8556_v54, %s6035_s2  ;;  %v8769_v2 = vpop.permute.xlu1 %2941  ;;  %12768 = vst [vmem:[#allocation62_spill] sm:$0xff] %v8779_v20 }
 0x4c3   :  { %12765 = vst [vmem:[#allocation116_spill] sm:$0xff] %v8769_v2 }
 0x4c4   :  { %v8773_v8 = vpop.permute.xlu0 %3165  ;;  %2525 = vrot.lane.b32.xlu1 %v8765_v19, %s6035_s2 }
 0x4c5   :  { %12766 = vst [vmem:[#allocation117_spill] sm:$0xff] %v8773_v8 }
 0x4c6   :  { %3209 = vrot.lane.b32.xlu0 %v2361_v49, %s6038_s13  ;;  %v8782_v56 = vpop.permute.xlu1 %2943  ;;  %v2360_v49 = vadd.f32 %v12691_v45, %v12774_v25  ;;  %v8821_v45 = vadd.f32 %v8425_v50, %v7486_v21 }
 0x4c7   :  { %12769 = vst [vmem:[#allocation44_spill] sm:$0xff] %v8782_v56 }
 0x4c8   :  { %v8786_v2 = vpop.permute.xlu0 %3171  ;;  %2527 = vrot.lane.b32.xlu1 %v8779_v20, %s6035_s2 }
 0x4c9   :  { %12770 = vst [vmem:[#allocation46_spill] sm:$0xff] %v8786_v2 }
 0x4ca   :  { %3205 = vrot.lane.b32.xlu0 %v2359_v59, %s6038_s13  ;;  %v8791_v48 = vpop.permute.xlu1 %2495  ;;  %v12775_v59 = vld [vmem:[#allocation64_spill] sm:$0xff] }
 0x4cb   :  { %v8810_v52 = vadd.f32 %v12775_v59, %v12751_v63 }
 0x4cc   :  { %v8795_v1 = vpop.permute.xlu0 %3167  ;;  %2973 = vrot.lane.b32.xlu1 %v8765_v19, %s6036_s3 }
 0x4cd   :  { %12772 = vst [vmem:[#allocation106_spill] sm:$0xff] %v8795_v1 }
 0x4ce   :  { %3211 = vrot.lane.b32.xlu0 %v2362_v40, %s6038_s13  ;;  %v8800_v9 = vpop.permute.xlu1 %2937 }
 0x4cf   :  { %12773 = vst [vmem:[#allocation180_spill] sm:$0xff] %v8800_v9 }
 0x4d0   :  { %v8804_v56 = vpop.permute.xlu0 %2473  ;;  %2975 = vrot.lane.b32.xlu1 %v8779_v20, %s6036_s3 }
 0x4d2   :  { %3207 = vrot.lane.b32.xlu0 %v2360_v49, %s6038_s13  ;;  %v8813_v41 = vpop.permute.xlu1 %2939  ;;  %v12779_v49 = vld [vmem:[#allocation59_spill] sm:$0xff] }
 0x4d3   :  { %12776 = vst [vmem:[#allocation107_spill] sm:$0xff] %v8813_v41  ;;  %v2667_v59 = vadd.f32 %v12779_v49, %v8245_v10  ;;  %v2668_v41 = vadd.f32 %v12779_v49, %v8575_v46  ;;  %v12785_v46 = vld [vmem:[#allocation67_spill] sm:$0xff]  ;;  %v12808_v49 = vld [vmem:[#allocation60_spill] sm:$0xff] }
 0x4d4   :  { %v8815_v2 = vpop.permute.xlu0 %2469  ;;  %2521 = vrot.lane.b32.xlu1 %v8810_v52, %s6035_s2 }
 0x4d6   :  { %2513 = vrot.lane.b32.xlu0 %v8245_v10, %s6035_s2  ;;  %v8825_v40 = vpop.permute.xlu1 %2507 }
 0x4d8   :  { %v8827_v63 = vpop.permute.xlu0 %3177  ;;  %2523 = vrot.lane.b32.xlu1 %v8821_v45, %s6035_s2 }
 0x4d9   :  { %12777 = vst [vmem:[#allocation64_spill] sm:$0xff] %v8827_v63 }
 0x4da   :  { %2509 = vrot.lane.b32.xlu0 %v8620_v14, %s6035_s2  ;;  %v8833_v25 = vpop.permute.xlu1 %2949 }
 0x4db   :  { %12778 = vst [vmem:[#allocation181_spill] sm:$0xff] %v8833_v25  ;;  %v12783_v25 = vld [vmem:[#allocation66_spill] sm:$0xff] }
 0x4dc   :  { %v8837_v21 = vpop.permute.xlu0 %3173  ;;  %2969 = vrot.lane.b32.xlu1 %v8810_v52, %s6036_s3  ;;  %v2373_v10 = vadd.f32 %v12783_v25, %v7512_v60 }
 0x4dd   :  { %12780 = vst [vmem:[#allocation182_spill] sm:$0xff] %v8837_v21 }
 0x4de   :  { %3469 = vrot.lane.b32.xlu0 %v2667_v59, %s6038_s13  ;;  %v8842_v50 = vpop.permute.xlu1 %2951  ;;  %v2637_v59 = vadd.f32 %v8680_v4, %v8362_v7 }
 0x4df   :  { %12781 = vst [vmem:[#allocation183_spill] sm:$0xff] %v8842_v50  ;;  %v2371_v50 = vadd.f32 %v12763_v35, %v12785_v46  ;;  %v12789_v35 = vld [vmem:[#allocation121_spill] sm:$0xff] }
 0x4e0   :  { %v8846_v9 = vpop.permute.xlu0 %3179  ;;  %2971 = vrot.lane.b32.xlu1 %v8821_v45, %s6036_s3 }
 0x4e1   :  { %12782 = vst [vmem:[#allocation184_spill] sm:$0xff] %v8846_v9 }
 0x4e2   :  { %3471 = vrot.lane.b32.xlu0 %v2668_v41, %s6038_s13  ;;  %v8853_v63 = vpop.permute.xlu1 %2503  ;;  %v12787_v41 = vld [vmem:[#allocation65_spill] sm:$0xff] }
 0x4e3   :  { %v2374_v25 = vadd.f32 %v12787_v41, %v7518_v33  ;;  %v12792_v41 = vld [vmem:[#allocation122_spill] sm:$0xff] }
 0x4e4   :  { %v8857_v21 = vpop.permute.xlu0 %3175  ;;  %3233 = vrot.lane.b32.xlu1 %v2373_v10, %s6038_s13  ;;  %v2372_v10 = vadd.f32 %v12767_v53, %v12789_v35  ;;  %v8900_v53 = vadd.f32 %v7514_v6, %v8482_v16  ;;  %v12797_v35 = vld [vmem:[#allocation54_spill] sm:$0xff]  ;;  %v12802_v16 = vld [vmem:[#allocation61_spill] sm:$0xff] }
 0x4e5   :  { %12784 = vst [vmem:[#allocation66_spill] sm:$0xff] %v8857_v21 }
 0x4e6   :  { %3409 = vrot.lane.b32.xlu0 %v2637_v59, %s6038_s13  ;;  %v8863_v9 = vpop.permute.xlu1 %2945  ;;  %v12790_v59 = vld [vmem:[#allocation55_spill] sm:$0xff]  ;;  %12796 = vst [vmem:[#allocation186_spill] sm:$0xff] %v8900_v53 }
 0x4e7   :  { %12786 = vst [vmem:[#allocation67_spill] sm:$0xff] %v8863_v9  ;;  %v8888_v9 = vadd.f32 %v7508_v18, %v12792_v41 }
 0x4e8   :  { %v8865_v24 = vpop.permute.xlu0 %2481  ;;  %3229 = vrot.lane.b32.xlu1 %v2371_v50, %s6038_s13 }
 0x4e9   :  { %12793 = vst [vmem:[#allocation55_spill] sm:$0xff] %v8888_v9 }
 0x4ea   :  { %2803 = vrot.lane.b32.xlu0 %v7578_v31, %s6036_s3  ;;  %v8872_v7 = vpop.permute.xlu1 %2947 }
 0x4eb   :  { %12788 = vst [vmem:[#allocation65_spill] sm:$0xff] %v8872_v7 }
 0x4ec   :  { %v8874_v4 = vpop.permute.xlu0 %2477  ;;  %3235 = vrot.lane.b32.xlu1 %v2374_v25, %s6038_s13 }
 0x4ee   :  { %2805 = vrot.lane.b32.xlu0 %v12790_v59, %s6036_s3  ;;  %v8881_v46 = vpop.permute.xlu1 %2515 }
 0x4f0   :  { %v8883_v50 = vpop.permute.xlu0 %3185  ;;  %3231 = vrot.lane.b32.xlu1 %v2372_v10, %s6038_s13 }
 0x4f1   :  { %12791 = vst [vmem:[#allocation121_spill] sm:$0xff] %v8883_v50 }
 0x4f2   :  { %2807 = vrot.lane.b32.xlu0 %v7614_v43, %s6036_s3  ;;  %v8892_v25 = vpop.permute.xlu1 %2957 }
 0x4f3   :  { %12794 = vst [vmem:[#allocation122_spill] sm:$0xff] %v8892_v25  ;;  %v12800_v25 = vld [vmem:[#allocation56_spill] sm:$0xff] }
 0x4f4   :  { %v8894_v7 = vpop.permute.xlu0 %3181  ;;  %2533 = vrot.lane.b32.xlu1 %v8888_v9, %s6035_s2 }
 0x4f5   :  { %12795 = vst [vmem:[#allocation185_spill] sm:$0xff] %v8894_v7 }
 0x4f6   :  { %2809 = vrot.lane.b32.xlu0 %v12797_v35, %s6036_s3  ;;  %v8904_v10 = vpop.permute.xlu1 %2959 }
 0x4f7   :  { %12798 = vst [vmem:[#allocation54_spill] sm:$0xff] %v8904_v10 }
 0x4f8   :  { %v8906_v41 = vpop.permute.xlu0 %3187  ;;  %2535 = vrot.lane.b32.xlu1 %v8900_v53, %s6035_s2 }
 0x4f9   :  { %12799 = vst [vmem:[#allocation187_spill] sm:$0xff] %v8906_v41  ;;  %v12804_v41 = vld [vmem:[#allocation123_spill] sm:$0xff] }
 0x4fa   :  { %2811 = vrot.lane.b32.xlu0 %v12800_v25, %s6036_s3  ;;  %v8912_v50 = vpop.permute.xlu1 %2511  ;;  %v8928_v1 = vadd.f32 %v12804_v41, %v7512_v60 }
 0x4fc   :  { %v8914_v7 = vpop.permute.xlu0 %3183  ;;  %2981 = vrot.lane.b32.xlu1 %v8888_v9, %s6036_s3  ;;  %12805 = vst [vmem:[#allocation123_spill] sm:$0xff] %v8928_v1 }
 0x4fd   :  { %12801 = vst [vmem:[#allocation56_spill] sm:$0xff] %v8914_v7 }
 0x4fe   :  { %2813 = vrot.lane.b32.xlu0 %v12802_v16, %s6036_s3  ;;  %v8920_v21 = vpop.permute.xlu1 %2953 }
 0x4ff   :  { %12803 = vst [vmem:[#allocation61_spill] sm:$0xff] %v8920_v21  ;;  %v8940_v21 = vadd.f32 %v8493_v28, %v7518_v33  ;;  %v12813_v33 = vld [vmem:[#allocation71_spill] sm:$0xff] }
 0x500   :  { %v8922_v10 = vpop.permute.xlu0 %2489  ;;  %2983 = vrot.lane.b32.xlu1 %v8900_v53, %s6036_s3 }
 0x501   :  { %12807 = vst [vmem:[#allocation189_spill] sm:$0xff] %v8940_v21 }
 0x502   :  { %2815 = vrot.lane.b32.xlu0 %v12549_v61, %s6036_s3  ;;  %v8932_v7 = vpop.permute.xlu1 %2955 }
 0x503   :  { %12806 = vst [vmem:[#allocation188_spill] sm:$0xff] %v8932_v7 }
 0x504   :  { %v8934_v8 = vpop.permute.xlu0 %2485  ;;  %2529 = vrot.lane.b32.xlu1 %v8928_v1, %s6035_s2 }
 0x506   :  { %2817 = vrot.lane.b32.xlu0 %v12808_v49, %s6036_s3  ;;  %v8944_v17 = vpop.permute.xlu1 %3217 }
 0x507   :  { %12809 = vst [vmem:[#allocation60_spill] sm:$0xff] %v8944_v17 }
 0x508   :  { %v8946_v60 = vpop.permute.xlu0 %3193  ;;  %2531 = vrot.lane.b32.xlu1 %v8940_v21, %s6035_s2 }
 0x509   :  { %12810 = vst [vmem:[#allocation190_spill] sm:$0xff] %v8946_v60  ;;  %v12815_v60 = vld [vmem:[#allocation48_spill] sm:$0xff] }
 0x50a   :  { %2819 = vrot.lane.b32.xlu0 %v12546_v58, %s6036_s3  ;;  %v8952_v41 = vpop.permute.xlu1 %3219  ;;  %v2377_v53 = vadd.f32 %v12816_v13, %v12815_v60  ;;  %v12821_v13 = vld [vmem:[#allocation50_spill] sm:$0xff] }
 0x50b   :  { %12811 = vst [vmem:[#allocation191_spill] sm:$0xff] %v8952_v41 }
 0x50c   :  { %v8954_v7 = vpop.permute.xlu0 %3189  ;;  %2977 = vrot.lane.b32.xlu1 %v8928_v1, %s6036_s3  ;;  %v12823_v1 = vld [vmem:[#allocation72_spill] sm:$0xff] }
 0x50d   :  { %12812 = vst [vmem:[#allocation192_spill] sm:$0xff] %v8954_v7 }
 0x50e   :  { %2821 = vrot.lane.b32.xlu0 %v12813_v33, %s6036_s3  ;;  %v8960_v28 = vpop.permute.xlu1 %2517  ;;  %v12818_v33 = vld [vmem:[#allocation126_spill] sm:$0xff] }
 0x50f   :  { %v2375_v9 = vadd.f32 %v7508_v18, %v12818_v33  ;;  %v2641_v18 = vadd.f32 %v8743_v15, %v8200_v51  ;;  %v12825_v33 = vld [vmem:[#allocation129_spill] sm:$0xff]  ;;  %v12829_v51 = vld [vmem:[#allocation47_spill] sm:$0xff] }
 0x510   :  { %v8962_v17 = vpop.permute.xlu0 %3195  ;;  %2979 = vrot.lane.b32.xlu1 %v8940_v21, %s6036_s3 }
 0x511   :  { %12814 = vst [vmem:[#allocation193_spill] sm:$0xff] %v8962_v17  ;;  %v12819_v17 = vld [vmem:[#allocation69_spill] sm:$0xff] }
 0x512   :  { %2823 = vrot.lane.b32.xlu0 %v7690_v22, %s6036_s3  ;;  %v8970_v41 = vpop.permute.xlu1 %2519  ;;  %v12822_v22 = vld [vmem:[#allocation127_spill] sm:$0xff] }
 0x513   :  { %v2378_v21 = vadd.f32 %v12822_v22, %v12821_v13  ;;  %v12827_v22 = vld [vmem:[#allocation16_spill] sm:$0xff] }
 0x514   :  { %v8972_v7 = vpop.permute.xlu0 %3191  ;;  %3241 = vrot.lane.b32.xlu1 %v2377_v53, %s6038_s13 }
 0x515   :  { %12817 = vst [vmem:[#allocation48_spill] sm:$0xff] %v8972_v7 }
 0x516   :  { %2825 = vrot.lane.b32.xlu0 %v12819_v17, %s6036_s3  ;;  %v8979_v20 = vpop.permute.xlu1 %2965  ;;  %v2642_v17 = vadd.f32 %v8499_v12, %v12827_v22  ;;  %v12832_v12 = vld [vmem:[#allocation49_spill] sm:$0xff] }
 0x517   :  { %12820 = vst [vmem:[#allocation124_spill] sm:$0xff] %v8979_v20  ;;  %v2376_v20 = vadd.f32 %v7514_v6, %v12825_v33  ;;  %v12831_v6 = vld [vmem:[#allocation27_spill] sm:$0xff]  ;;  %v9020_v22 = vadd.f32 %v12832_v12, %v8550_v32  ;;  %v2645_v32 = vadd.f32 %v8804_v56, %v8272_v47 }
 0x518   :  { %v8981_v19 = vpop.permute.xlu0 %2497  ;;  %3237 = vrot.lane.b32.xlu1 %v2375_v9, %s6038_s13 }
 0x51a   :  { %2827 = vrot.lane.b32.xlu0 %v12823_v1, %s6036_s3  ;;  %v8988_v7 = vpop.permute.xlu1 %2967 }
 0x51b   :  { %12824 = vst [vmem:[#allocation126_spill] sm:$0xff] %v8988_v7  ;;  %v12828_v7 = vld [vmem:[#allocation131_spill] sm:$0xff] }
 0x51c   :  { %v8992_v53 = vpop.permute.xlu0 %2493  ;;  %3243 = vrot.lane.b32.xlu1 %v2378_v21, %s6038_s13  ;;  %v9007_v15 = vadd.f32 %v12829_v51, %v12828_v7  ;;  %v12834_v7 = vld [vmem:[#allocation29_spill] sm:$0xff] }
 0x51e   :  { %3417 = vrot.lane.b32.xlu0 %v2641_v18, %s6038_s13  ;;  %v8998_v9 = vpop.permute.xlu1 %2961  ;;  %v2639_v18 = vadd.f32 %v8751_v42, %v12831_v6 }
 0x51f   :  { %12826 = vst [vmem:[#allocation50_spill] sm:$0xff] %v8998_v9  ;;  %v12850_v9 = vld [vmem:[#allocation19_spill] sm:$0xff] }
 0x520   :  { %v9002_v1 = vpop.permute.xlu0 %3201  ;;  %3239 = vrot.lane.b32.xlu1 %v2376_v20, %s6038_s13 }
 0x522   :  { %3419 = vrot.lane.b32.xlu0 %v2642_v17, %s6038_s13  ;;  %v9010_v21 = vpop.permute.xlu1 %2963  ;;  %v2640_v17 = vadd.f32 %v8533_v44, %v12834_v7 }
 0x523   :  { %12830 = vst [vmem:[#allocation127_spill] sm:$0xff] %v9010_v21 }
 0x524   :  { %v9014_v33 = vpop.permute.xlu0 %3197  ;;  %2541 = vrot.lane.b32.xlu1 %v9007_v15, %s6035_s2 }
 0x526   :  { %3413 = vrot.lane.b32.xlu0 %v2639_v18, %s6038_s13  ;;  %v9023_v20 = vpop.permute.xlu1 %3225  ;;  %v12837_v18 = vld [vmem:[#allocation23_spill] sm:$0xff] }
 0x527   :  { %12833 = vst [vmem:[#allocation129_spill] sm:$0xff] %v9023_v20  ;;  %v2646_v7 = vadd.f32 %v8567_v30, %v12837_v18  ;;  %v9064_v30 = vadd.f32 %v8561_v26, %v12821_v13  ;;  %v12840_v18 = vld [vmem:[#allocation14_spill] sm:$0xff] }
 0x528   :  { %v9027_v21 = vpop.permute.xlu0 %3203  ;;  %2543 = vrot.lane.b32.xlu1 %v9020_v22, %s6035_s2 }
 0x52a   :  { %3415 = vrot.lane.b32.xlu0 %v2640_v17, %s6038_s13  ;;  %v9032_v42 = vpop.permute.xlu1 %3221  ;;  %v12838_v17 = vld [vmem:[#allocation133_spill] sm:$0xff] }
 0x52b   :  { %12835 = vst [vmem:[#allocation16_spill] sm:$0xff] %v9032_v42  ;;  %v9051_v47 = vadd.f32 %v12838_v17, %v12815_v60  ;;  %v12848_v42 = vld [vmem:[#allocation134_spill] sm:$0xff] }
 0x52c   :  { %v9036_v6 = vpop.permute.xlu0 %3199  ;;  %2989 = vrot.lane.b32.xlu1 %v9007_v15, %s6036_s3 }
 0x52e   :  { %3425 = vrot.lane.b32.xlu0 %v2645_v32, %s6038_s13  ;;  %v9041_v44 = vpop.permute.xlu1 %3227  ;;  %v2643_v32 = vadd.f32 %v8815_v2, %v8168_v62  ;;  %v12842_v2 = vld [vmem:[#allocation9_spill] sm:$0xff] }
 0x52f   :  { %12836 = vst [vmem:[#allocation131_spill] sm:$0xff] %v9041_v44  ;;  %v2649_v26 = vadd.f32 %v8865_v24, %v12842_v2 }
 0x530   :  { %v9045_v20 = vpop.permute.xlu0 %2505  ;;  %2991 = vrot.lane.b32.xlu1 %v9020_v22, %s6036_s3 }
 0x532   :  { %3427 = vrot.lane.b32.xlu0 %v2646_v7, %s6038_s13  ;;  %v9054_v56 = vpop.permute.xlu1 %3223  ;;  %v2644_v7 = vadd.f32 %v8597_v36, %v12840_v18 }
 0x533   :  { %12839 = vst [vmem:[#allocation47_spill] sm:$0xff] %v9054_v56 }
 0x534   :  { %v9058_v44 = vpop.permute.xlu0 %2501  ;;  %2537 = vrot.lane.b32.xlu1 %v9051_v47, %s6035_s2 }
 0x536   :  { %3421 = vrot.lane.b32.xlu0 %v2643_v32, %s6038_s13  ;;  %v9067_v60 = vpop.permute.xlu1 %2525  ;;  %v12845_v32 = vld [vmem:[#allocation30_spill] sm:$0xff] }
 0x537   :  { %v2650_v18 = vadd.f32 %v8631_v5, %v12845_v32  ;;  %v12852_v5 = vld [vmem:[#allocation135_spill] sm:$0xff] }
 0x538   :  { %v9071_v17 = vpop.permute.xlu0 %3209  ;;  %2539 = vrot.lane.b32.xlu1 %v9064_v30, %s6035_s2  ;;  %v2379_v32 = vadd.f32 %v12829_v51, %v12852_v5  ;;  %v12857_v5 = vld [vmem:[#allocation15_spill] sm:$0xff] }
 0x539   :  { %12841 = vst [vmem:[#allocation27_spill] sm:$0xff] %v9071_v17 }
 0x53a   :  { %3423 = vrot.lane.b32.xlu0 %v2644_v7, %s6038_s13  ;;  %v9076_v62 = vpop.permute.xlu1 %2527  ;;  %v12847_v7 = vld [vmem:[#allocation52_spill] sm:$0xff] }
 0x53b   :  { %v2381_v24 = vadd.f32 %v12848_v42, %v12847_v7 }
 0x53c   :  { %v9080_v13 = vpop.permute.xlu0 %3205  ;;  %2985 = vrot.lane.b32.xlu1 %v9051_v47, %s6036_s3 }
 0x53d   :  { %12843 = vst [vmem:[#allocation49_spill] sm:$0xff] %v9080_v13  ;;  %v12861_v13 = vld [vmem:[#allocation138_spill] sm:$0xff] }
 0x53e   :  { %3433 = vrot.lane.b32.xlu0 %v2649_v26, %s6038_s13  ;;  %v9085_v36 = vpop.permute.xlu1 %2973  ;;  %v2647_v26 = vadd.f32 %v8874_v4, %v12850_v9  ;;  %v12855_v4 = vld [vmem:[#allocation136_spill] sm:$0xff] }
 0x53f   :  { %12844 = vst [vmem:[#allocation29_spill] sm:$0xff] %v9085_v36 }
 0x540   :  { %v9089_v56 = vpop.permute.xlu0 %3211  ;;  %2987 = vrot.lane.b32.xlu1 %v9064_v30, %s6036_s3 }
 0x541   :  { %12846 = vst [vmem:[#allocation23_spill] sm:$0xff] %v9089_v56  ;;  %v12853_v56 = vld [vmem:[#allocation20_spill] sm:$0xff] }
 0x542   :  { %3435 = vrot.lane.b32.xlu0 %v2650_v18, %s6038_s13  ;;  %v9096_v2 = vpop.permute.xlu1 %2975  ;;  %v2648_v42 = vadd.f32 %v8663_v34, %v12853_v56  ;;  %v2380_v34 = vadd.f32 %v12832_v12, %v12857_v5  ;;  %v12864_v12 = vld [vmem:[#allocation25_spill] sm:$0xff] }
 0x543   :  { %12849 = vst [vmem:[#allocation133_spill] sm:$0xff] %v9096_v2  ;;  %v12854_v2 = vld [vmem:[#allocation53_spill] sm:$0xff] }
 0x544   :  { %v9100_v17 = vpop.permute.xlu0 %3207  ;;  %3249 = vrot.lane.b32.xlu1 %v2381_v24, %s6038_s13  ;;  %v2382_v9 = vadd.f32 %v12855_v4, %v12854_v2 }
 0x545   :  { %12851 = vst [vmem:[#allocation14_spill] sm:$0xff] %v9100_v17  ;;  %v12856_v17 = vld [vmem:[#allocation78_spill] sm:$0xff] }
 0x546   :  { %3429 = vrot.lane.b32.xlu0 %v2647_v26, %s6038_s13  ;;  %v9106_v36 = vpop.permute.xlu1 %2521  ;;  %v2653_v51 = vadd.f32 %v8922_v10, %v12856_v17  ;;  %v12862_v10 = vld [vmem:[#allocation51_spill] sm:$0xff] }
 0x547   :  { %v9135_v17 = vadd.f32 %v12862_v10, %v12861_v13 }
 0x548   :  { %v9110_v18 = vpop.permute.xlu0 %2513  ;;  %3245 = vrot.lane.b32.xlu1 %v2379_v32, %s6038_s13  ;;  %v12859_v32 = vld [vmem:[#allocation8_spill] sm:$0xff] }
 0x549   :  { %v2654_v4 = vadd.f32 %v8693_v3, %v12859_v32  ;;  %v12866_v3 = vld [vmem:[#allocation88_spill] sm:$0xff] }
 0x54a   :  { %3431 = vrot.lane.b32.xlu0 %v2648_v42, %s6038_s13  ;;  %v9116_v24 = vpop.permute.xlu1 %2523  ;;  %v9148_v32 = vadd.f32 %v7578_v31, %v12866_v3 }
 0x54c   :  { %v9120_v26 = vpop.permute.xlu0 %2509  ;;  %3251 = vrot.lane.b32.xlu1 %v2382_v9, %s6038_s13 }
 0x54e   :  { %3441 = vrot.lane.b32.xlu0 %v2653_v51, %s6038_s13  ;;  %v9126_v56 = vpop.permute.xlu1 %2969  ;;  %v2651_v51 = vadd.f32 %v8934_v8, %v12864_v12  ;;  %v2657_v12 = vadd.f32 %v8981_v19, %v8488_v39  ;;  %v12873_v39 = vld [vmem:[#allocation90_spill] sm:$0xff] }
 0x54f   :  { %12858 = vst [vmem:[#allocation9_spill] sm:$0xff] %v9126_v56  ;;  %v9183_v19 = vadd.f32 %v12873_v39, %v12854_v2 }
 0x550   :  { %v9130_v42 = vpop.permute.xlu0 %3469  ;;  %3247 = vrot.lane.b32.xlu1 %v2380_v34, %s6038_s13  ;;  %v12868_v34 = vld [vmem:[#allocation24_spill] sm:$0xff] }
 0x551   :  { %12860 = vst [vmem:[#allocation30_spill] sm:$0xff] %v9130_v42  ;;  %v12970_v42 = vld [vmem:[#allocation84_spill] sm:$0xff] }
 0x552   :  { %3443 = vrot.lane.b32.xlu0 %v2654_v4, %s6038_s13  ;;  %v9138_v9 = vpop.permute.xlu1 %2971  ;;  %v2652_v4 = vadd.f32 %v8729_v37, %v12868_v34 }
 0x553   :  { %12863 = vst [vmem:[#allocation52_spill] sm:$0xff] %v9138_v9 }
 0x554   :  { %v9142_v5 = vpop.permute.xlu0 %3471  ;;  %2549 = vrot.lane.b32.xlu1 %v9135_v17, %s6035_s2 }
 0x555   :  { %12865 = vst [vmem:[#allocation134_spill] sm:$0xff] %v9142_v5 }
 0x556   :  { %3437 = vrot.lane.b32.xlu0 %v2651_v51, %s6038_s13  ;;  %v9151_v13 = vpop.permute.xlu1 %3233  ;;  %v12870_v51 = vld [vmem:[#allocation140_spill] sm:$0xff] }
 0x557   :  { %12867 = vst [vmem:[#allocation19_spill] sm:$0xff] %v9151_v13  ;;  %v9170_v37 = vadd.f32 %v12870_v51, %v12847_v7  ;;  %v12872_v13 = vld [vmem:[#allocation12_spill] sm:$0xff]  ;;  %v12875_v51 = vld [vmem:[#allocation163_spill] sm:$0xff] }
 0x558   :  { %v9155_v9 = vpop.permute.xlu0 %3409  ;;  %2551 = vrot.lane.b32.xlu1 %v9148_v32, %s6035_s2 }
 0x55a   :  { %3439 = vrot.lane.b32.xlu0 %v2652_v4, %s6038_s13  ;;  %v9160_v8 = vpop.permute.xlu1 %3229  ;;  %v2658_v4 = vadd.f32 %v8758_v55, %v12872_v13  ;;  %v12876_v13 = vld [vmem:[#allocation160_spill] sm:$0xff] }
 0x55b   :  { %12869 = vst [vmem:[#allocation135_spill] sm:$0xff] %v9160_v8  ;;  %v2656_v2 = vadd.f32 %v8791_v48, %v12876_v13 }
 0x55c   :  { %v9164_v3 = vpop.permute.xlu0 %2803  ;;  %2997 = vrot.lane.b32.xlu1 %v9135_v17, %s6036_s3 }
 0x55e   :  { %3449 = vrot.lane.b32.xlu0 %v2657_v12, %s6038_s13  ;;  %v9173_v34 = vpop.permute.xlu1 %3235  ;;  %v2655_v12 = vadd.f32 %v8992_v53, %v12875_v51 }
 0x55f   :  { %12871 = vst [vmem:[#allocation20_spill] sm:$0xff] %v9173_v34 }
 0x560   :  { %v9177_v8 = vpop.permute.xlu0 %2805  ;;  %2545 = vrot.lane.b32.xlu1 %v9170_v37, %s6035_s2 }
 0x562   :  { %3451 = vrot.lane.b32.xlu0 %v2658_v4, %s6038_s13  ;;  %v9186_v7 = vpop.permute.xlu1 %3231  ;;  %v2661_v4 = vadd.f32 %v9045_v20, %v8556_v54  ;;  %v12882_v54 = vld [vmem:[#allocation175_spill] sm:$0xff] }
 0x563   :  { %12874 = vst [vmem:[#allocation53_spill] sm:$0xff] %v9186_v7  ;;  %v12880_v7 = vld [vmem:[#allocation33_spill] sm:$0xff]  ;;  %v9227_v20 = vadd.f32 %v12800_v25, %v12882_v54 }
 0x564   :  { %v9190_v34 = vpop.permute.xlu0 %2807  ;;  %2547 = vrot.lane.b32.xlu1 %v9183_v19, %s6035_s2 }
 0x566   :  { %3445 = vrot.lane.b32.xlu0 %v2655_v12, %s6038_s13  ;;  %v9195_v55 = vpop.permute.xlu1 %2533  ;;  %v12878_v12 = vld [vmem:[#allocation148_spill] sm:$0xff] }
 0x567   :  { %v9214_v48 = vadd.f32 %v12797_v35, %v12878_v12 }
 0x568   :  { %v9199_v39 = vpop.permute.xlu0 %2809  ;;  %2993 = vrot.lane.b32.xlu1 %v9170_v37, %s6036_s3 }
 0x56a   :  { %3447 = vrot.lane.b32.xlu0 %v2656_v2, %s6038_s13  ;;  %v9204_v53 = vpop.permute.xlu1 %2535  ;;  %v2662_v2 = vadd.f32 %v8825_v40, %v12880_v7  ;;  %v12885_v40 = vld [vmem:[#allocation149_spill] sm:$0xff] }
 0x56b   :  { %v9240_v7 = vadd.f32 %v12885_v40, %v12790_v59 }
 0x56c   :  { %v9208_v51 = vpop.permute.xlu0 %2811  ;;  %2995 = vrot.lane.b32.xlu1 %v9183_v19, %s6036_s3 }
 0x56d   :  { %12877 = vst [vmem:[#allocation136_spill] sm:$0xff] %v9208_v51 }
 0x56e   :  { %3457 = vrot.lane.b32.xlu0 %v2661_v4, %s6038_s13  ;;  %v9217_v13 = vpop.permute.xlu1 %2981  ;;  %v2659_v4 = vadd.f32 %v9058_v44, %v8453_v0  ;;  %v12888_v0 = vld [vmem:[#allocation176_spill] sm:$0xff] }
 0x56f   :  { %12879 = vst [vmem:[#allocation78_spill] sm:$0xff] %v9217_v13  ;;  %v9253_v44 = vadd.f32 %v12888_v0, %v7614_v43 }
 0x570   :  { %v9221_v56 = vpop.permute.xlu0 %2813  ;;  %2557 = vrot.lane.b32.xlu1 %v9214_v48, %s6035_s2 }
 0x571   :  { %12881 = vst [vmem:[#allocation15_spill] sm:$0xff] %v9221_v56  ;;  %v12886_v56 = vld [vmem:[#allocation170_spill] sm:$0xff] }
 0x572   :  { %3459 = vrot.lane.b32.xlu0 %v2662_v2, %s6038_s13  ;;  %v9230_v12 = vpop.permute.xlu1 %2983  ;;  %v2660_v2 = vadd.f32 %v8853_v63, %v12886_v56  ;;  %v12890_v63 = vld [vmem:[#allocation157_spill] sm:$0xff] }
 0x573   :  { %12883 = vst [vmem:[#allocation8_spill] sm:$0xff] %v9230_v12  ;;  %v9266_v56 = vadd.f32 %v12808_v49, %v12890_v63 }
 0x574   :  { %v9234_v51 = vpop.permute.xlu0 %2815  ;;  %2559 = vrot.lane.b32.xlu1 %v9227_v20, %s6035_s2 }
 0x575   :  { %12884 = vst [vmem:[#allocation138_spill] sm:$0xff] %v9234_v51  ;;  %12891 = vst [vmem:[#allocation88_spill] sm:$0xff] %v9266_v56 }
 0x576   :  { %3453 = vrot.lane.b32.xlu0 %v2659_v4, %s6038_s13  ;;  %v9243_v54 = vpop.permute.xlu1 %2529  ;;  %v2665_v4 = vadd.f32 %v9110_v18, %v8620_v14  ;;  %v12895_v14 = vld [vmem:[#allocation118_spill] sm:$0xff] }
 0x577   :  { %v9279_v18 = vadd.f32 %v12546_v58, %v12895_v14 }
 0x578   :  { %v9247_v12 = vpop.permute.xlu0 %2817  ;;  %2553 = vrot.lane.b32.xlu1 %v9240_v7, %s6035_s2 }
 0x579   :  { %12887 = vst [vmem:[#allocation51_spill] sm:$0xff] %v9247_v12  ;;  %v12893_v12 = vld [vmem:[#allocation36_spill] sm:$0xff]  ;;  %12896 = vst [vmem:[#allocation12_spill] sm:$0xff] %v9279_v18 }
 0x57a   :  { %3455 = vrot.lane.b32.xlu0 %v2660_v2, %s6038_s13  ;;  %v9256_v40 = vpop.permute.xlu1 %2531  ;;  %v2666_v2 = vadd.f32 %v8881_v46, %v12893_v12  ;;  %v12899_v46 = vld [vmem:[#allocation63_spill] sm:$0xff] }
 0x57b   :  { %v9292_v12 = vadd.f32 %v12899_v46, %v12802_v16 }
 0x57c   :  { %v9260_v51 = vpop.permute.xlu0 %2819  ;;  %2555 = vrot.lane.b32.xlu1 %v9253_v44, %s6035_s2 }
 0x57d   :  { %12889 = vst [vmem:[#allocation25_spill] sm:$0xff] %v9260_v51 }
 0x57e   :  { %3465 = vrot.lane.b32.xlu0 %v2665_v4, %s6038_s13  ;;  %v9269_v0 = vpop.permute.xlu1 %2977  ;;  %v2663_v4 = vadd.f32 %v9120_v26, %v8521_v27  ;;  %v9305_v27 = vadd.f32 %v8667_v11, %v12549_v61  ;;  %v2670_v11 = vadd.f32 %v8970_v41, %v8715_v29  ;;  %v2674_v41 = vadd.f32 %v9076_v62, %v8821_v45 }
 0x57f   :  { %12892 = vst [vmem:[#allocation24_spill] sm:$0xff] %v9269_v0  ;;  %v2672_v62 = vadd.f32 %v9116_v24, %v8673_v23  ;;  %v12915_v24 = vld [vmem:[#allocation189_spill] sm:$0xff] }
 0x580   :  { %v9273_v13 = vpop.permute.xlu0 %2821  ;;  %2565 = vrot.lane.b32.xlu1 %v9266_v56, %s6035_s2 }
 0x581   :  { %12894 = vst [vmem:[#allocation140_spill] sm:$0xff] %v9273_v13  ;;  %v12901_v13 = vld [vmem:[#allocation103_spill] sm:$0xff] }
 0x582   :  { %3467 = vrot.lane.b32.xlu0 %v2666_v2, %s6038_s13  ;;  %v9282_v63 = vpop.permute.xlu1 %2979  ;;  %v2664_v2 = vadd.f32 %v8912_v50, %v12901_v13  ;;  %v12905_v50 = vld [vmem:[#allocation75_spill] sm:$0xff]  ;;  %v12906_v13 = vld [vmem:[#allocation164_spill] sm:$0xff] }
 0x583   :  { %12897 = vst [vmem:[#allocation90_spill] sm:$0xff] %v9282_v63 }
 0x584   :  { %v9286_v51 = vpop.permute.xlu0 %2823  ;;  %2567 = vrot.lane.b32.xlu1 %v9279_v18, %s6035_s2 }
 0x585   :  { %12898 = vst [vmem:[#allocation163_spill] sm:$0xff] %v9286_v51 }
 0x586   :  { %3461 = vrot.lane.b32.xlu0 %v2663_v4, %s6038_s13  ;;  %v9295_v14 = vpop.permute.xlu1 %3241  ;;  %v2669_v4 = vadd.f32 %v8960_v28, %v8701_v57  ;;  %v12908_v57 = vld [vmem:[#allocation143_spill] sm:$0xff] }
 0x587   :  { %12900 = vst [vmem:[#allocation160_spill] sm:$0xff] %v9295_v14  ;;  %v2383_v28 = vadd.f32 %v12862_v10, %v12908_v57  ;;  %v12910_v10 = vld [vmem:[#allocation147_spill] sm:$0xff] }
 0x588   :  { %v9299_v63 = vpop.permute.xlu0 %2825  ;;  %2561 = vrot.lane.b32.xlu1 %v9292_v12, %s6035_s2 }
 0x589   :  { %12902 = vst [vmem:[#allocation148_spill] sm:$0xff] %v9299_v63  ;;  %v2638_v63 = vadd.f32 %v12906_v13, %v12905_v50  ;;  %v2673_v50 = vadd.f32 %v9067_v60, %v8810_v52  ;;  %v2384_v13 = vadd.f32 %v7578_v31, %v12910_v10  ;;  %v2671_v60 = vadd.f32 %v9106_v36, %v8660_v38  ;;  %v12912_v31 = vld [vmem:[#allocation17_spill] sm:$0xff]  ;;  %v12914_v36 = vld [vmem:[#allocation123_spill] sm:$0xff] }
 0x58a   :  { %3463 = vrot.lane.b32.xlu0 %v2664_v2, %s6038_s13  ;;  %v9308_v26 = vpop.permute.xlu1 %3237  ;;  %v2678_v10 = vadd.f32 %v9204_v53, %v12915_v24 }
 0x58b   :  { %12903 = vst [vmem:[#allocation33_spill] sm:$0xff] %v9308_v26 }
 0x58c   :  { %v9312_v46 = vpop.permute.xlu0 %2827  ;;  %2563 = vrot.lane.b32.xlu1 %v9305_v27, %s6035_s2 }
 0x58d   :  { %12904 = vst [vmem:[#allocation175_spill] sm:$0xff] %v9312_v46 }
 0x58e   :  { %3473 = vrot.lane.b32.xlu0 %v2669_v4, %s6038_s13  ;;  %v9319_v51 = vpop.permute.xlu1 %3243 }
 0x58f   :  { %12907 = vst [vmem:[#allocation149_spill] sm:$0xff] %v9319_v51 }
 0x590   :  { %v9323_v2 = vpop.permute.xlu0 %3417  ;;  %3411 = vrot.lane.b32.xlu1 %v2638_v63, %s6038_s13 }
 0x592   :  { %3475 = vrot.lane.b32.xlu0 %v2670_v11, %s6038_s13  ;;  %v9329_v46 = vpop.permute.xlu1 %3239 }
 0x593   :  { %12909 = vst [vmem:[#allocation170_spill] sm:$0xff] %v9329_v46 }
 0x594   :  { %v9333_v4 = vpop.permute.xlu0 %3419  ;;  %3253 = vrot.lane.b32.xlu1 %v2383_v28, %s6038_s13  ;;  %v2385_v28 = vadd.f32 %v12912_v31, %v12790_v59  ;;  %v12916_v59 = vld [vmem:[#allocation145_spill] sm:$0xff] }
 0x596   :  { %3481 = vrot.lane.b32.xlu0 %v2673_v50, %s6038_s13  ;;  %v2542_v29 = vpop.permute.xlu1 %2541  ;;  %v2677_v50 = vadd.f32 %v9195_v55, %v12914_v36  ;;  %v12919_v36 = vld [vmem:[#allocation62_spill] sm:$0xff] }
 0x598   :  { %v9339_v63 = vpop.permute.xlu0 %3413  ;;  %2999 = vrot.lane.b32.xlu1 %v9148_v32, %s6036_s3 }
 0x59a   :  { %3483 = vrot.lane.b32.xlu0 %v2674_v41, %s6038_s13  ;;  %v2544_v52 = vpop.permute.xlu1 %2543 }
 0x59c   :  { %v9348_v11 = vpop.permute.xlu0 %3415  ;;  %3255 = vrot.lane.b32.xlu1 %v2384_v13, %s6038_s13 }
 0x59e   :  { %3477 = vrot.lane.b32.xlu0 %v2671_v60, %s6038_s13  ;;  %v9352_v45 = vpop.permute.xlu1 %2989  ;;  %v2386_v60 = vadd.f32 %v12916_v59, %v7614_v43  ;;  %v12920_v43 = vld [vmem:[#allocation151_spill] sm:$0xff]  ;;  %v2681_v59 = vadd.f32 %v2542_v29, %v9051_v47 }
 0x59f   :  { %12911 = vst [vmem:[#allocation176_spill] sm:$0xff] %v9352_v45  ;;  %v12927_v29 = vld [vmem:[#allocation55_spill] sm:$0xff] }
 0x5a0   :  { %v9356_v57 = vpop.permute.xlu0 %3425  ;;  %3001 = vrot.lane.b32.xlu1 %v9240_v7, %s6036_s3 }
 0x5a2   :  { %3479 = vrot.lane.b32.xlu0 %v2672_v62, %s6038_s13  ;;  %v9363_v38 = vpop.permute.xlu1 %2991  ;;  %v12917_v62 = vld [vmem:[#allocation101_spill] sm:$0xff] }
 0x5a3   :  { %12913 = vst [vmem:[#allocation157_spill] sm:$0xff] %v9363_v38  ;;  %v2675_v31 = vadd.f32 %v9243_v54, %v12917_v62  ;;  %v2682_v62 = vadd.f32 %v2544_v52, %v9064_v30  ;;  %v12928_v30 = vld [vmem:[#allocation174_spill] sm:$0xff]  ;;  %v12929_v52 = vld [vmem:[#allocation72_spill] sm:$0xff] }
 0x5a4   :  { %v9367_v41 = vpop.permute.xlu0 %3427  ;;  %3257 = vrot.lane.b32.xlu1 %v2385_v28, %s6038_s13 }
 0x5a6   :  { %3489 = vrot.lane.b32.xlu0 %v2677_v50, %s6038_s13  ;;  %v2538_v23 = vpop.permute.xlu1 %2537  ;;  %v2676_v50 = vadd.f32 %v9256_v40, %v12919_v36  ;;  %v12924_v36 = vld [vmem:[#allocation69_spill] sm:$0xff] }
 0x5a8   :  { %v9373_v13 = vpop.permute.xlu0 %3421  ;;  %3003 = vrot.lane.b32.xlu1 %v9253_v44, %s6036_s3 }
 0x5aa   :  { %3491 = vrot.lane.b32.xlu0 %v2678_v10, %s6038_s13  ;;  %v2540_v55 = vpop.permute.xlu1 %2539  ;;  %v2387_v10 = vadd.f32 %v12797_v35, %v12920_v43  ;;  %v12923_v35 = vld [vmem:[#allocation10_spill] sm:$0xff]  ;;  %v2679_v43 = vadd.f32 %v2538_v23, %v12927_v29  ;;  %v12933_v23 = vld [vmem:[#allocation71_spill] sm:$0xff]  ;;  %v12934_v29 = vld [vmem:[#allocation97_spill] sm:$0xff] }
 0x5ac   :  { %v9382_v28 = vpop.permute.xlu0 %3423  ;;  %3259 = vrot.lane.b32.xlu1 %v2386_v60, %s6038_s13 }
 0x5ae   :  { %3485 = vrot.lane.b32.xlu0 %v2675_v31, %s6038_s13  ;;  %v9386_v53 = vpop.permute.xlu1 %2985 }
 0x5af   :  { %12918 = vst [vmem:[#allocation36_spill] sm:$0xff] %v9386_v53 }
 0x5b0   :  { %v9390_v24 = vpop.permute.xlu0 %3433  ;;  %3005 = vrot.lane.b32.xlu1 %v9214_v48, %s6036_s3 }
 0x5b2   :  { %3487 = vrot.lane.b32.xlu0 %v2676_v50, %s6038_s13  ;;  %v9397_v54 = vpop.permute.xlu1 %2987  ;;  %v9413_v50 = vadd.f32 %v12924_v36, %v12923_v35  ;;  %v12932_v35 = vld [vmem:[#allocation186_spill] sm:$0xff] }
 0x5b3   :  { %12921 = vst [vmem:[#allocation118_spill] sm:$0xff] %v9397_v54  ;;  %v2680_v38 = vadd.f32 %v2540_v55, %v12932_v35  ;;  %v12937_v55 = vld [vmem:[#allocation177_spill] sm:$0xff] }
 0x5b4   :  { %v9400_v60 = vpop.permute.xlu0 %3435  ;;  %3261 = vrot.lane.b32.xlu1 %v2387_v10, %s6038_s13  ;;  %12925 = vst [vmem:[#allocation103_spill] sm:$0xff] %v9413_v50 }
 0x5b6   :  { %3497 = vrot.lane.b32.xlu0 %v2681_v59, %s6038_s13  ;;  %v9404_v40 = vpop.permute.xlu1 %3249  ;;  %v9425_v59 = vadd.f32 %v12929_v52, %v12928_v30 }
 0x5b7   :  { %12922 = vst [vmem:[#allocation63_spill] sm:$0xff] %v9404_v40 }
 0x5b8   :  { %v9407_v31 = vpop.permute.xlu0 %3429  ;;  %3007 = vrot.lane.b32.xlu1 %v9227_v20, %s6036_s3  ;;  %12930 = vst [vmem:[#allocation164_spill] sm:$0xff] %v9425_v59 }
 0x5ba   :  { %3499 = vrot.lane.b32.xlu0 %v2682_v62, %s6038_s13  ;;  %v9416_v47 = vpop.permute.xlu1 %3245 }
 0x5bb   :  { %12926 = vst [vmem:[#allocation75_spill] sm:$0xff] %v9416_v47  ;;  %v9437_v47 = vadd.f32 %v12934_v29, %v12933_v23 }
 0x5bc   :  { %v9419_v10 = vpop.permute.xlu0 %3431  ;;  %2573 = vrot.lane.b32.xlu1 %v9413_v50, %s6035_s2 }
 0x5be   :  { %3493 = vrot.lane.b32.xlu0 %v2679_v43, %s6038_s13  ;;  %v9428_v40 = vpop.permute.xlu1 %3251  ;;  %v12936_v43 = vld [vmem:[#allocation74_spill] sm:$0xff] }
 0x5bf   :  { %12931 = vst [vmem:[#allocation143_spill] sm:$0xff] %v9428_v40  ;;  %v9448_v35 = vadd.f32 %v12937_v55, %v12936_v43 }
 0x5c0   :  { %v9431_v62 = vpop.permute.xlu0 %3441  ;;  %2575 = vrot.lane.b32.xlu1 %v9425_v59, %s6035_s2 }
 0x5c2   :  { %3495 = vrot.lane.b32.xlu0 %v2680_v38, %s6038_s13  ;;  %v9440_v45 = vpop.permute.xlu1 %3247  ;;  %v12938_v38 = vld [vmem:[#allocation155_spill] sm:$0xff] }
 0x5c3   :  { %12935 = vst [vmem:[#allocation147_spill] sm:$0xff] %v9440_v45  ;;  %v2388_v29 = vadd.f32 %v12800_v25, %v12938_v38 }
 0x5c4   :  { %v9442_v30 = vpop.permute.xlu0 %3443  ;;  %2569 = vrot.lane.b32.xlu1 %v9437_v47, %s6035_s2 }
 0x5c6   :  { %v2550_v40 = vpop.permute.xlu1 %2549 }
 0x5c7   :  { %v2685_v51 = vadd.f32 %v2550_v40, %v9170_v37 }
 0x5c8   :  { %v9451_v54 = vpop.permute.xlu0 %3437  ;;  %2571 = vrot.lane.b32.xlu1 %v9448_v35, %s6035_s2 }
 0x5c9   :  { %3505 = vrot.lane.b32.xlu0 %v2685_v51, %s6038_s13  ;;  %v12940_v51 = vld [vmem:[#allocation21_spill] sm:$0xff] }
 0x5ca   :  { %v2552_v45 = vpop.permute.xlu1 %2551  ;;  %v2389_v55 = vadd.f32 %v12940_v51, %v12802_v16  ;;  %v12941_v16 = vld [vmem:[#allocation153_spill] sm:$0xff] }
 0x5cb   :  { %v2686_v14 = vadd.f32 %v2552_v45, %v9183_v19  ;;  %v2390_v51 = vadd.f32 %v12941_v16, %v12549_v61 }
 0x5cc   :  { %v9459_v53 = vpop.permute.xlu0 %3439  ;;  %3263 = vrot.lane.b32.xlu1 %v2388_v29, %s6038_s13 }
 0x5cd   :  { %3507 = vrot.lane.b32.xlu0 %v2686_v14, %s6038_s13 }
 0x5ce   :  { %v9463_v37 = vpop.permute.xlu1 %2997 }
 0x5cf   :  { %12939 = vst [vmem:[#allocation17_spill] sm:$0xff] %v9463_v37 }
 0x5d0   :  { %v9465_v40 = vpop.permute.xlu0 %3449  ;;  %3009 = vrot.lane.b32.xlu1 %v9292_v12, %s6036_s3 }
 0x5d2   :  { %v2546_v25 = vpop.permute.xlu1 %2545 }
 0x5d3   :  { %v2683_v38 = vadd.f32 %v2546_v25, %v9007_v15 }
 0x5d4   :  { %v9472_v19 = vpop.permute.xlu0 %3451  ;;  %3265 = vrot.lane.b32.xlu1 %v2389_v55, %s6038_s13 }
 0x5d5   :  { %3501 = vrot.lane.b32.xlu0 %v2683_v38, %s6038_s13 }
 0x5d6   :  { %v2548_v14 = vpop.permute.xlu1 %2547 }
 0x5d7   :  { %v2684_v45 = vadd.f32 %v2548_v14, %v9020_v22  ;;  %v12944_v22 = vld [vmem:[#allocation161_spill] sm:$0xff] }
 0x5d8   :  { %v9477_v29 = vpop.permute.xlu0 %3445  ;;  %3011 = vrot.lane.b32.xlu1 %v9305_v27, %s6036_s3  ;;  %v2391_v14 = vadd.f32 %v12808_v49, %v12944_v22  ;;  %v12945_v49 = vld [vmem:[#allocation171_spill] sm:$0xff] }
 0x5d9   :  { %3503 = vrot.lane.b32.xlu0 %v2684_v45, %s6038_s13  ;;  %v2392_v22 = vadd.f32 %v12546_v58, %v12945_v49 }
 0x5da   :  { %v9484_v15 = vpop.permute.xlu1 %2993 }
 0x5db   :  { %12942 = vst [vmem:[#allocation123_spill] sm:$0xff] %v9484_v15 }
 0x5dc   :  { %v9486_v25 = vpop.permute.xlu0 %3447  ;;  %3267 = vrot.lane.b32.xlu1 %v2390_v51, %s6038_s13 }
 0x5de   :  { %v9489_v55 = vpop.permute.xlu1 %2995 }
 0x5df   :  { %12943 = vst [vmem:[#allocation189_spill] sm:$0xff] %v9489_v55 }
 0x5e0   :  { %v9491_v38 = vpop.permute.xlu0 %3457  ;;  %3013 = vrot.lane.b32.xlu1 %v9266_v56, %s6036_s3 }
 0x5e2   :  { %v2558_v45 = vpop.permute.xlu1 %2557 }
 0x5e3   :  { %v2689_v37 = vadd.f32 %v2558_v45, %v9240_v7 }
 0x5e4   :  { %v9498_v61 = vpop.permute.xlu0 %3459  ;;  %3269 = vrot.lane.b32.xlu1 %v2391_v14, %s6038_s13 }
 0x5e5   :  { %3513 = vrot.lane.b32.xlu0 %v2689_v37, %s6038_s13 }
 0x5e6   :  { %v2560_v16 = vpop.permute.xlu1 %2559 }
 0x5e7   :  { %v2690_v51 = vadd.f32 %v2560_v16, %v9253_v44  ;;  %v12946_v44 = vld [vmem:[#allocation158_spill] sm:$0xff] }
 0x5e8   :  { %v9503_v55 = vpop.permute.xlu0 %3453  ;;  %3015 = vrot.lane.b32.xlu1 %v9279_v18, %s6036_s3  ;;  %v2393_v37 = vadd.f32 %v12946_v44, %v12933_v23  ;;  %v12985_v18 = vld [vmem:[#allocation41_spill] sm:$0xff] }
 0x5e9   :  { %3515 = vrot.lane.b32.xlu0 %v2690_v51, %s6038_s13 }
 0x5ea   :  { %v2554_v7 = vpop.permute.xlu1 %2553 }
 0x5eb   :  { %v2687_v45 = vadd.f32 %v2554_v7, %v9135_v17 }
 0x5ec   :  { %3271 = vrot.lane.b32.xlu1 %v2392_v22, %s6038_s13  ;;  %v9512_v14 = vpop.permute.xlu0 %3455 }
 0x5ed   :  { %3509 = vrot.lane.b32.xlu0 %v2687_v45, %s6038_s13  ;;  %v12951_v45 = vld [vmem:[#allocation73_spill] sm:$0xff] }
 0x5ee   :  { %v2556_v16 = vpop.permute.xlu1 %2555 }
 0x5ef   :  { %v2688_v15 = vadd.f32 %v2556_v16, %v9148_v32  ;;  %v12952_v16 = vld [vmem:[#allocation168_spill] sm:$0xff] }
 0x5f0   :  { %3273 = vrot.lane.b32.xlu1 %v2393_v37, %s6038_s13  ;;  %v9520_v51 = vpop.permute.xlu0 %3465 }
 0x5f1   :  { %3511 = vrot.lane.b32.xlu0 %v2688_v15, %s6038_s13  ;;  %12947 = vst [vmem:[#allocation145_spill] sm:$0xff] %v9520_v51  ;;  %v12949_v15 = vld [vmem:[#allocation11_spill] sm:$0xff] }
 0x5f2   :  { %v2566_v58 = vpop.permute.xlu1 %2565  ;;  %v2394_v22 = vadd.f32 %v12949_v15, %v12936_v43  ;;  %v12956_v15 = vld [vmem:[#allocation68_spill] sm:$0xff] }
 0x5f3   :  { %v2693_v17 = vadd.f32 %v2566_v58, %v9292_v12  ;;  %v12950_v12 = vld [vmem:[#allocation93_spill] sm:$0xff]  ;;  %v12953_v58 = vld [vmem:[#allocation70_spill] sm:$0xff] }
 0x5f4   :  { %3017 = vrot.lane.b32.xlu1 %v9437_v47, %s6036_s3  ;;  %v9529_v32 = vpop.permute.xlu0 %3467  ;;  %v3601_v44 = vsel %vm669_vm2, %v12951_v45, %v12950_v12  ;;  %v12958_v12 = vld [vmem:[#allocation76_spill] sm:$0xff] }
 0x5f5   :  { %3521 = vrot.lane.b32.xlu0 %v2693_v17, %s6038_s13  ;;  %12948 = vst [vmem:[#allocation101_spill] sm:$0xff] %v9529_v32  ;;  %v12954_v17 = vld [vmem:[#allocation59_spill] sm:$0xff] }
 0x5f6   :  { %v2568_v49 = vpop.permute.xlu1 %2567  ;;  %v9547_v43 = vadd.f32 %v12929_v52, %v12954_v17 }
 0x5f7   :  { %v2694_v23 = vadd.f32 %v2568_v49, %v9305_v27  ;;  %v3602_v27 = vsel %vm669_vm2, %v12953_v58, %v12952_v16  ;;  %v2395_v49 = vadd.f32 %v12924_v36, %v12954_v17  ;;  %v12959_v16 = vld [vmem:[#allocation42_spill] sm:$0xff]  ;;  %v12960_v58 = vld [vmem:[#allocation81_spill] sm:$0xff] }
 0x5f8   :  { %3019 = vrot.lane.b32.xlu1 %v9448_v35, %s6036_s3  ;;  %v9563_v46 = vpop.permute.xlu0 %3461 }
 0x5f9   :  { %3523 = vrot.lane.b32.xlu0 %v2694_v23, %s6038_s13  ;;  %v12955_v23 = vld [vmem:[#allocation166_spill] sm:$0xff] }
 0x5fa   :  { %v2562_v7 = vpop.permute.xlu1 %2561 }
 0x5fb   :  { %v2691_v37 = vadd.f32 %v2562_v7, %v9214_v48  ;;  %v3603_v48 = vsel %vm669_vm2, %v12956_v15, %v12955_v23  ;;  %v12957_v7 = vld [vmem:[#allocation167_spill] sm:$0xff]  ;;  %v12962_v15 = vld [vmem:[#allocation22_spill] sm:$0xff] }
 0x5fc   :  { %3275 = vrot.lane.b32.xlu1 %v2394_v22, %s6038_s13  ;;  %v3604_v45 = vsel %vm669_vm2, %v12958_v12, %v12957_v7  ;;  %v3666_v22 = vsel %vm3665_vm4, %v3601_v44, %v12959_v16  ;;  %v3668_v36 = vsel %vm3665_vm4, %v3603_v48, %v12960_v58  ;;  %v3667_v26 = vsel %vm3665_vm4, %v3602_v27, %v12962_v15  ;;  %v12963_v7 = vld [vmem:[#allocation18_spill] sm:$0xff]  ;;  %v12964_v12 = vld [vmem:[#allocation79_spill] sm:$0xff]  ;;  %v12965_v44 = vld [vmem:[#allocation28_spill] sm:$0xff] }
 0x5fd   :  { %3517 = vrot.lane.b32.xlu0 %v2691_v37, %s6038_s13  ;;  %v9561_v52 = vsel %vm3730_vm5, %v3666_v22, %v9155_v9  ;;  %v3607_v0 = vsel %vm669_vm2, %v12964_v12, %v12963_v7  ;;  %v12966_v16 = vld [vmem:[#allocation83_spill] sm:$0xff]  ;;  %v12967_v48 = vld [vmem:[#allocation105_spill] sm:$0xff]  ;;  %v12968_v58 = vld [vmem:[#allocation82_spill] sm:$0xff] }
 0x5fe   :  { %v2564_v37 = vpop.permute.xlu1 %2563  ;;  %12961 = vst [vmem:[#allocation62_spill] sm:$0xff] %v9561_v52  ;;  %v3608_v5 = vsel %vm669_vm2, %v12966_v16, %v12965_v44  ;;  %v3605_v9 = vsel %vm669_vm2, %v12968_v58, %v12967_v48  ;;  %v12969_v22 = vld [vmem:[#allocation86_spill] sm:$0xff]  ;;  %v12972_v27 = vld [vmem:[#allocation87_spill] sm:$0xff]  ;;  %v12973_v15 = vld [vmem:[#allocation108_spill] sm:$0xff] }
 0x5ff   :  { %v2692_v23 = vadd.f32 %v2564_v37, %v9227_v20  ;;  %v3606_v17 = vsel %vm669_vm2, %v12970_v42, %v12969_v22  ;;  %v12971_v20 = vld [vmem:[#allocation109_spill] sm:$0xff]  ;;  %v12974_v7 = vld [vmem:[#allocation91_spill] sm:$0xff]  ;;  %v9597_v42 = vsel %vm3730_vm5, %v3668_v36, %v9339_v63  ;;  %v12978_v58 = vld [vmem:[#allocation34_spill] sm:$0xff] }
 0x600   :  { %3021 = vrot.lane.b32.xlu1 %v9413_v50, %s6036_s3  ;;  %v9585_v37 = vsel %vm669_vm2, %v12972_v27, %v12971_v20  ;;  %v9590_v12 = vsel %vm669_vm2, %v12974_v7, %v12973_v15  ;;  %v12975_v44 = vld [vmem:[#allocation111_spill] sm:$0xff]  ;;  %v12976_v16 = vld [vmem:[#allocation89_spill] sm:$0xff]  ;;  %12977 = vst [vmem:[#allocation151_spill] sm:$0xff] %v9597_v42  ;;  %v12979_v22 = vld [vmem:[#allocation92_spill] sm:$0xff] }
 0x601   :  { %v3609_v48 = vsel %vm669_vm2, %v12976_v16, %v12975_v44  ;;  %3519 = vrot.lane.b32.xlu0 %v2692_v23, %s6038_s13  ;;  %v3610_v20 = vsel %vm669_vm2, %v12979_v22, %v12978_v58  ;;  %v12980_v27 = vld [vmem:[#allocation40_spill] sm:$0xff]  ;;  %v12982_v15 = vld [vmem:[#allocation45_spill] sm:$0xff]  ;;  %v3928_v44 = vmul.f32 %v9561_v52, %v9561_v52  ;;  %v12984_v36 = vld [vmem:[#allocation102_spill] sm:$0xff]  ;;  %v3670_v58 = vsel %vm3665_vm4, %v3605_v9, %v12985_v18 }
 0x602   :  { %v12981_v50 = vld [vmem:[#allocation96_spill] sm:$0xff]  ;;  %v3669_v7 = vsel %vm3665_vm4, %v3604_v45, %v12982_v15  ;;  %v3412_v16 = vpop.permute.xlu1 %3411  ;;  %v12983_v63 = vld [vmem:[#allocation113_spill] sm:$0xff]  ;;  %v3795_v45 = vsel %vm283_vm0, %v9561_v52, 0.0 }
 0x603   :  { %v9606_v32 = vsel %vm669_vm2, %v12981_v50, %v12980_v27  ;;  %v9615_v23 = vsel %vm669_vm2, %v12984_v36, %v12983_v63  ;;  %v9621_v22 = vsel %vm3730_vm5, %v3669_v7, %v9348_v11  ;;  %v9624_v50 = vsel %vm3730_vm5, %v3667_v26, %v3412_v16  ;;  %v12988_v18 = vld [vmem:[#allocation37_spill] sm:$0xff]  ;;  %v12989_v11 = vld [vmem:[#allocation100_spill] sm:$0xff]  ;;  %v12990_v26 = vld [vmem:[#allocation179_spill] sm:$0xff]  ;;  %v9646_v36 = vpop.permute.xlu0 %3463 }
 0x604   :  { %12986 = vst [vmem:[#allocation10_spill] sm:$0xff] %v9621_v22  ;;  %12987 = vst [vmem:[#allocation69_spill] sm:$0xff] %v9624_v50  ;;  %v3930_v27 = vmul.f32 %v9597_v42, %v9597_v42  ;;  %v3796_v15 = vsel %vm283_vm0, %v9624_v50, 0.0  ;;  %v3929_v63 = vmul.f32 %v9624_v50, %v9624_v50  ;;  %3277 = vrot.lane.b32.xlu1 %v2395_v49, %s6038_s13  ;;  %v3992_v51 = vsel %vm283_vm0, %v3928_v44, 0.0 }
 0x605   :  { %v9638_v9 = vsel %vm669_vm2, %v12989_v11, %v12988_v18  ;;  %v3671_v7 = vsel %vm3665_vm4, %v3606_v17, %v12990_v26  ;;  %v9644_v16 = vsel %vm3730_vm5, %v3670_v58, %v9323_v2  ;;  %v3797_v52 = vadd.f32 %v3796_v15, %v3795_v45  ;;  %v12992_v17 = vld [vmem:[#allocation39_spill] sm:$0xff]  ;;  %v12993_v26 = vld [vmem:[#allocation104_spill] sm:$0xff]  ;;  %v12994_v15 = vld [vmem:[#allocation117_spill] sm:$0xff] }
 0x606   :  { %v3798_v49 = vsel %vm283_vm0, %v9597_v42, 0.0  ;;  %v3931_v50 = vmul.f32 %v9621_v22, %v9621_v22  ;;  %v3993_v18 = vsel %vm283_vm0, %v3929_v63, 0.0  ;;  %v9654_v11 = vpop.permute.xlu1 %3253  ;;  %v9659_v2 = vsel %vm669_vm2, %v12993_v26, %v12992_v17  ;;  %v12995_v17 = vld [vmem:[#allocation94_spill] sm:$0xff] }
 0x607   :  { %12991 = vst [vmem:[#allocation55_spill] sm:$0xff] %v9654_v11  ;;  %v9663_v58 = vsel %vm3730_vm5, %v3671_v7, %v9333_v4  ;;  %v3799_v44 = vadd.f32 %v3798_v49, %v3797_v52  ;;  %v3994_v45 = vadd.f32 %v3993_v18, %v3992_v51  ;;  %v3672_v42 = vsel %vm3665_vm4, %v3607_v0, %v12994_v15  ;;  %v12996_v26 = vld [vmem:[#allocation110_spill] sm:$0xff] }
 0x608   :  { %v3932_v56 = vmul.f32 %v9644_v16, %v9644_v16  ;;  %v3995_v63 = vsel %vm283_vm0, %v3930_v27, 0.0  ;;  %v3800_v11 = vsel %vm283_vm0, %v9621_v22, 0.0  ;;  %3023 = vrot.lane.b32.xlu1 %v9425_v59, %s6036_s3  ;;  %v9677_v4 = vsel %vm669_vm2, %v12996_v26, %v12995_v17  ;;  %v12997_v7 = vld [vmem:[#allocation106_spill] sm:$0xff]  ;;  %v12999_v26 = vld [vmem:[#allocation115_spill] sm:$0xff] }
 0x609   :  { %v9681_v51 = vsel %vm3730_vm5, %v3672_v42, %v9373_v13  ;;  %v3801_v0 = vadd.f32 %v3800_v11, %v3799_v44  ;;  %v3996_v52 = vadd.f32 %v3995_v63, %v3994_v45  ;;  %v3673_v27 = vsel %vm3665_vm4, %v3608_v5, %v12997_v7  ;;  %v12998_v17 = vld [vmem:[#allocation178_spill] sm:$0xff]  ;;  %v9699_v42 = vpop.permute.xlu0 %3473 }
 0x60a   :  { %v3802_v49 = vsel %vm283_vm0, %v9644_v16, 0.0  ;;  %v3933_v18 = vmul.f32 %v9663_v58, %v9663_v58  ;;  %v3997_v15 = vsel %vm283_vm0, %v3931_v50, 0.0  ;;  %v3000_v22 = vpop.permute.xlu1 %2999  ;;  %v9693_v59 = vsel %vm669_vm2, %v12999_v26, %v12998_v17  ;;  %v13000_v44 = vld [vmem:[#allocation58_spill] sm:$0xff] }
 0x60b   :  { %v9697_v13 = vsel %vm3730_vm5, %v3673_v27, %v9382_v28  ;;  %v3803_v5 = vadd.f32 %v3802_v49, %v3801_v0  ;;  %v3998_v11 = vadd.f32 %v3997_v15, %v3996_v52  ;;  %v3674_v45 = vsel %vm3665_vm4, %v3609_v48, %v13000_v44  ;;  %v13001_v28 = vld [vmem:[#allocation46_spill] sm:$0xff] }
 0x60c   :  { %v3999_v63 = vsel %vm283_vm0, %v3932_v56, 0.0  ;;  %v3804_v50 = vsel %vm283_vm0, %v9663_v58, 0.0  ;;  %v3934_v7 = vmul.f32 %v9681_v51, %v9681_v51  ;;  %3279 = vrot.lane.b32.xlu1 %v9547_v43, %s6038_s13  ;;  %v3675_v27 = vsel %vm3665_vm4, %v3610_v20, %v13001_v28 }
 0x60d   :  { %v9714_v0 = vsel %vm3730_vm5, %v3674_v45, %v9356_v57  ;;  %v3805_v52 = vadd.f32 %v3804_v50, %v3803_v5  ;;  %v4000_v48 = vadd.f32 %v3999_v63, %v3998_v11  ;;  %v4001_v56 = vsel %vm283_vm0, %v3933_v18, 0.0  ;;  %v13002_v18 = vld [vmem:[#allocation182_spill] sm:$0xff] }
 0x60e   :  { %v3806_v49 = vsel %vm283_vm0, %v9681_v51, 0.0  ;;  %v3935_v15 = vmul.f32 %v9697_v13, %v9697_v13  ;;  %v3652_v43 = vsel %vm669_vm2, %v9164_v3, %v3000_v22  ;;  %v3256_v17 = vpop.permute.xlu1 %3255  ;;  %v9725_v20 = vsel %vm3730_vm5, %v3675_v27, %v9367_v41  ;;  %v13003_v22 = vld [vmem:[#allocation57_spill] sm:$0xff]  ;;  %v13004_v41 = vld [vmem:[#allocation114_spill] sm:$0xff] }
 0x60f   :  { %v3807_v57 = vadd.f32 %v3806_v49, %v3805_v52  ;;  %v4002_v26 = vadd.f32 %v4001_v56, %v4000_v48  ;;  %v9728_v5 = vsel %vm3665_vm4, %v3652_v43, %v3256_v17  ;;  %v3676_v11 = vsel %vm3665_vm4, %v9585_v37, %v13002_v18  ;;  %v9745_v52 = vpop.permute.xlu0 %3475  ;;  %v13005_v37 = vld [vmem:[#allocation66_spill] sm:$0xff]  ;;  %v13006_v17 = vld [vmem:[#allocation99_spill] sm:$0xff] }
 0x610   :  { %v3936_v44 = vmul.f32 %v9714_v0, %v9714_v0  ;;  %v4003_v45 = vsel %vm283_vm0, %v3934_v7, 0.0  ;;  %v3808_v3 = vsel %vm283_vm0, %v9697_v13, 0.0  ;;  %v3617_v63 = vsel %vm669_vm2, %v13004_v41, %v13003_v22  ;;  %v13009_v41 = vld [vmem:[#allocation184_spill] sm:$0xff] }
 0x611   :  { %v9743_v50 = vsel %vm3730_vm5, %v3676_v11, %v9407_v31  ;;  %v3809_v28 = vadd.f32 %v3808_v3, %v3807_v57  ;;  %v4004_v27 = vadd.f32 %v4003_v45, %v4002_v26  ;;  %v3677_v48 = vsel %vm3665_vm4, %v9590_v12, %v13005_v37  ;;  %v13007_v31 = vld [vmem:[#allocation38_spill] sm:$0xff]  ;;  %v13008_v12 = vld [vmem:[#allocation64_spill] sm:$0xff] }
 0x612   :  { %v3810_v7 = vsel %vm283_vm0, %v9714_v0, 0.0  ;;  %v3937_v56 = vmul.f32 %v9725_v20, %v9725_v20  ;;  %v4005_v49 = vsel %vm283_vm0, %v3935_v15, 0.0  ;;  %v3002_v43 = vpop.permute.xlu1 %3001  ;;  %v3618_v57 = vsel %vm669_vm2, %v13007_v31, %v13006_v17 }
 0x613   :  { %v9760_v26 = vsel %vm3730_vm5, %v3677_v48, %v9419_v10  ;;  %v3811_v18 = vadd.f32 %v3810_v7, %v3809_v28  ;;  %v4006_v11 = vadd.f32 %v4005_v49, %v4004_v27  ;;  %v3678_v45 = vsel %vm3665_vm4, %v9638_v9, %v13008_v12  ;;  %v9788_v31 = vpop.permute.xlu0 %3481 }
 0x614   :  { %v4007_v3 = vsel %vm283_vm0, %v3936_v44, 0.0  ;;  %v3812_v15 = vsel %vm283_vm0, %v9725_v20, 0.0  ;;  %v3938_v22 = vmul.f32 %v9743_v50, %v9743_v50  ;;  %v3679_v37 = vsel %vm3665_vm4, %v9659_v2, %v13009_v41 }
 0x615   :  { %v9775_v10 = vsel %vm3730_vm5, %v3678_v45, %v9390_v24  ;;  %v3813_v28 = vadd.f32 %v3812_v15, %v3811_v18  ;;  %v4008_v27 = vadd.f32 %v4007_v3, %v4006_v11  ;;  %v4009_v9 = vsel %vm283_vm0, %v3937_v56, 0.0  ;;  %v13011_v18 = vld [vmem:[#allocation185_spill] sm:$0xff]  ;;  %v13013_v45 = vld [vmem:[#allocation119_spill] sm:$0xff] }
 0x616   :  { %v3814_v44 = vsel %vm283_vm0, %v9743_v50, 0.0  ;;  %v3939_v48 = vmul.f32 %v9760_v26, %v9760_v26  ;;  %v3653_v7 = vsel %vm669_vm2, %v9177_v8, %v3002_v43  ;;  %v3258_v49 = vpop.permute.xlu1 %3257  ;;  %v9786_v2 = vsel %vm3730_vm5, %v3679_v37, %v9400_v60  ;;  %v13012_v43 = vld [vmem:[#allocation116_spill] sm:$0xff] }
 0x617   :  { %13010 = vst [vmem:[#allocation174_spill] sm:$0xff] %v9786_v2  ;;  %v3815_v24 = vadd.f32 %v3814_v44, %v3813_v28  ;;  %v4010_v17 = vadd.f32 %v4009_v9, %v4008_v27  ;;  %v9791_v56 = vsel %vm3665_vm4, %v3653_v7, %v3258_v49  ;;  %v3680_v11 = vsel %vm3665_vm4, %v9606_v32, %v13011_v18  ;;  %v13015_v32 = vld [vmem:[#allocation56_spill] sm:$0xff]  ;;  %v13017_v49 = vld [vmem:[#allocation31_spill] sm:$0xff]  ;;  %v13019_v18 = vld [vmem:[#allocation121_spill] sm:$0xff] }
 0x618   :  { %v3940_v12 = vmul.f32 %v9775_v10, %v9775_v10  ;;  %v4011_v8 = vsel %vm283_vm0, %v3938_v22, 0.0  ;;  %v3816_v60 = vsel %vm283_vm0, %v9760_v26, 0.0  ;;  %v9804_v3 = vsel %vm669_vm2, %v13013_v45, %v13012_v43  ;;  %v13016_v7 = vld [vmem:[#allocation44_spill] sm:$0xff]  ;;  %v13020_v43 = vld [vmem:[#allocation187_spill] sm:$0xff] }
 0x619   :  { %v9808_v15 = vsel %vm3730_vm5, %v3680_v11, %v9451_v54  ;;  %v3817_v41 = vadd.f32 %v3816_v60, %v3815_v24  ;;  %v4012_v37 = vadd.f32 %v4011_v8, %v4010_v17  ;;  %v3681_v28 = vsel %vm3665_vm4, %v9615_v23, %v13015_v32  ;;  %v9840_v32 = vpop.permute.xlu0 %3483 }
 0x61a   :  { %13014 = vst [vmem:[#allocation72_spill] sm:$0xff] %v9808_v15  ;;  %v3818_v22 = vsel %vm283_vm0, %v9775_v10, 0.0  ;;  %v3941_v27 = vmul.f32 %v9786_v2, %v9786_v2  ;;  %v4013_v9 = vsel %vm283_vm0, %v3939_v48, 0.0  ;;  %v3004_v44 = vpop.permute.xlu1 %3003  ;;  %v9821_v54 = vsel %vm669_vm2, %v13017_v49, %v13016_v7 }
 0x61b   :  { %v9825_v24 = vsel %vm3730_vm5, %v3681_v28, %v9459_v53  ;;  %v3819_v17 = vadd.f32 %v3818_v22, %v3817_v41  ;;  %v4014_v23 = vadd.f32 %v4013_v9, %v4012_v37  ;;  %v3682_v11 = vsel %vm3665_vm4, %v3617_v63, %v13019_v18 }
 0x61c   :  { %13018 = vst [vmem:[#allocation186_spill] sm:$0xff] %v9825_v24  ;;  %v4015_v8 = vsel %vm283_vm0, %v3940_v12, 0.0  ;;  %v3820_v48 = vsel %vm283_vm0, %v9786_v2, 0.0  ;;  %v3942_v60 = vmul.f32 %v9808_v15, %v9808_v15  ;;  %v3683_v45 = vsel %vm3665_vm4, %v3618_v57, %v13020_v43 }
 0x61d   :  { %v9838_v53 = vsel %vm3730_vm5, %v3682_v11, %v9431_v62  ;;  %v3821_v41 = vadd.f32 %v3820_v48, %v3819_v17  ;;  %v4016_v37 = vadd.f32 %v4015_v8, %v4014_v23  ;;  %v4017_v63 = vsel %vm283_vm0, %v3941_v27, 0.0  ;;  %v13023_v27 = vld [vmem:[#allocation192_spill] sm:$0xff] }
 0x61e   :  { %13021 = vst [vmem:[#allocation71_spill] sm:$0xff] %v9838_v53  ;;  %v3822_v12 = vsel %vm283_vm0, %v9808_v15, 0.0  ;;  %v3943_v28 = vmul.f32 %v9825_v24, %v9825_v24  ;;  %v3654_v22 = vsel %vm669_vm2, %v9190_v34, %v3004_v44  ;;  %v3260_v57 = vpop.permute.xlu1 %3259  ;;  %v9851_v62 = vsel %vm3730_vm5, %v3683_v45, %v9442_v30  ;;  %v13024_v44 = vld [vmem:[#allocation180_spill] sm:$0xff] }
 0x61f   :  { %13022 = vst [vmem:[#allocation97_spill] sm:$0xff] %v9851_v62  ;;  %v3823_v9 = vadd.f32 %v3822_v12, %v3821_v41  ;;  %v4018_v7 = vadd.f32 %v4017_v63, %v4016_v37  ;;  %v9854_v49 = vsel %vm3665_vm4, %v3654_v22, %v3260_v57  ;;  %v3684_v17 = vsel %vm3665_vm4, %v9677_v4, %v13023_v27  ;;  %v13025_v30 = vld [vmem:[#allocation120_spill] sm:$0xff]  ;;  %v13028_v12 = vld [vmem:[#allocation107_spill] sm:$0xff]  ;;  %v13031_v27 = vld [vmem:[#allocation190_spill] sm:$0xff] }
 0x620   :  { %v3944_v23 = vmul.f32 %v9838_v53, %v9838_v53  ;;  %v4019_v18 = vsel %vm283_vm0, %v3942_v60, 0.0  ;;  %v3824_v34 = vsel %vm283_vm0, %v9825_v24, 0.0  ;;  %v3621_v11 = vsel %vm669_vm2, %v13025_v30, %v13024_v44  ;;  %v13027_v45 = vld [vmem:[#allocation48_spill] sm:$0xff]  ;;  %v13029_v22 = vld [vmem:[#allocation43_spill] sm:$0xff]  ;;  %v13032_v44 = vld [vmem:[#allocation193_spill] sm:$0xff] }
 0x621   :  { %v9869_v8 = vsel %vm3730_vm5, %v3684_v17, %v9477_v29  ;;  %v3825_v48 = vadd.f32 %v3824_v34, %v3823_v9  ;;  %v4020_v43 = vadd.f32 %v4019_v18, %v4018_v7  ;;  %v3685_v4 = vsel %vm3665_vm4, %v9693_v59, %v13027_v45  ;;  %v9886_v59 = vpop.permute.xlu0 %3477 }
 0x622   :  { %13026 = vst [vmem:[#allocation74_spill] sm:$0xff] %v9869_v8  ;;  %v3826_v60 = vsel %vm283_vm0, %v9838_v53, 0.0  ;;  %v3945_v41 = vmul.f32 %v9851_v62, %v9851_v62  ;;  %v4021_v37 = vsel %vm283_vm0, %v3943_v28, 0.0  ;;  %v3006_v63 = vpop.permute.xlu1 %3005  ;;  %v3622_v29 = vsel %vm669_vm2, %v13029_v22, %v13028_v12  ;;  %v13134_v53 = vld [vmem:[#allocation55_spill] sm:$0xff] }
 0x623   :  { %v9884_v57 = vsel %vm3730_vm5, %v3685_v4, %v9486_v25  ;;  %v3827_v9 = vadd.f32 %v3826_v60, %v3825_v48  ;;  %v4022_v7 = vadd.f32 %v4021_v37, %v4020_v43  ;;  %v3686_v17 = vsel %vm3665_vm4, %v3621_v11, %v13031_v27 }
 0x624   :  { %13030 = vst [vmem:[#allocation177_spill] sm:$0xff] %v9884_v57  ;;  %v4023_v18 = vsel %vm283_vm0, %v3944_v23, 0.0  ;;  %v3828_v28 = vsel %vm283_vm0, %v9851_v62, 0.0  ;;  %v3946_v34 = vmul.f32 %v9869_v8, %v9869_v8  ;;  %v3687_v30 = vsel %vm3665_vm4, %v3622_v29, %v13032_v44 }
 0x625   :  { %v9899_v25 = vsel %vm3730_vm5, %v3686_v17, %v9465_v40  ;;  %v4024_v48 = vadd.f32 %v4023_v18, %v4022_v7  ;;  %v3829_v43 = vadd.f32 %v3828_v28, %v3827_v9  ;;  %v4025_v45 = vsel %vm283_vm0, %v3945_v41, 0.0  ;;  %v9930_v28 = vpop.permute.xlu0 %3479 }
 0x626   :  { %13033 = vst [vmem:[#allocation155_spill] sm:$0xff] %v9899_v25  ;;  %v3830_v23 = vsel %vm283_vm0, %v9869_v8, 0.0  ;;  %v3947_v11 = vmul.f32 %v9884_v57, %v9884_v57  ;;  %v3655_v4 = vsel %vm669_vm2, %v9199_v39, %v3006_v63  ;;  %v3262_v60 = vpop.permute.xlu1 %3261  ;;  %v9910_v37 = vsel %vm3730_vm5, %v3687_v30, %v9472_v19  ;;  %v13035_v63 = vld [vmem:[#allocation181_spill] sm:$0xff] }
 0x627   :  { %13034 = vst [vmem:[#allocation21_spill] sm:$0xff] %v9910_v37  ;;  %v3831_v40 = vadd.f32 %v3830_v23, %v3829_v43  ;;  %v4026_v12 = vadd.f32 %v4025_v45, %v4024_v48  ;;  %v9913_v22 = vsel %vm3665_vm4, %v3655_v4, %v3262_v60  ;;  %v3688_v41 = vsel %vm3665_vm4, %v9804_v3, %v9014_v33  ;;  %v13036_v19 = vld [vmem:[#allocation125_spill] sm:$0xff]  ;;  %v13039_v48 = vld [vmem:[#allocation128_spill] sm:$0xff] }
 0x628   :  { %v3948_v29 = vmul.f32 %v9899_v25, %v9899_v25  ;;  %v4027_v9 = vsel %vm283_vm0, %v3946_v34, 0.0  ;;  %v3832_v39 = vsel %vm283_vm0, %v9884_v57, 0.0  ;;  %v3627_v7 = vsel %vm669_vm2, %v13036_v19, %v13035_v63 }
 0x629   :  { %v9928_v27 = vsel %vm3730_vm5, %v3688_v41, %v9503_v55  ;;  %v3833_v17 = vadd.f32 %v3832_v39, %v3831_v40  ;;  %v4028_v18 = vadd.f32 %v4027_v9, %v4026_v12  ;;  %v3689_v33 = vsel %vm3665_vm4, %v9821_v54, %v9036_v6  ;;  %v13038_v55 = vld [vmem:[#allocation67_spill] sm:$0xff]  ;;  %v13041_v40 = vld [vmem:[#allocation65_spill] sm:$0xff]  ;;  %v13042_v12 = vld [vmem:[#allocation132_spill] sm:$0xff] }
 0x62a   :  { %13037 = vst [vmem:[#allocation153_spill] sm:$0xff] %v9928_v27  ;;  %v3834_v3 = vsel %vm283_vm0, %v9899_v25, 0.0  ;;  %v3949_v34 = vmul.f32 %v9910_v37, %v9910_v37  ;;  %v4029_v44 = vsel %vm283_vm0, %v3947_v11, 0.0  ;;  %v9940_v30 = vpop.permute.xlu1 %3007  ;;  %v3625_v43 = vsel %vm669_vm2, %v13039_v48, %v13038_v55  ;;  %v13122_v25 = vld [vmem:[#allocation75_spill] sm:$0xff] }
 0x62b   :  { %v9947_v45 = vsel %vm3730_vm5, %v3689_v33, %v9512_v14  ;;  %v3835_v23 = vadd.f32 %v3834_v3, %v3833_v17  ;;  %v4030_v6 = vadd.f32 %v4029_v44, %v4028_v18  ;;  %v3690_v54 = vsel %vm3665_vm4, %v3625_v43, %v9002_v1  ;;  %v9974_v3 = vpop.permute.xlu0 %3489 }
 0x62c   :  { %13040 = vst [vmem:[#allocation161_spill] sm:$0xff] %v9947_v45  ;;  %v4031_v4 = vsel %vm283_vm0, %v3948_v29, 0.0  ;;  %v3836_v11 = vsel %vm283_vm0, %v9910_v37, 0.0  ;;  %v3950_v60 = vmul.f32 %v9928_v27, %v9928_v27  ;;  %v3626_v41 = vsel %vm669_vm2, %v13042_v12, %v13041_v40  ;;  %v13049_v12 = vld [vmem:[#allocation14_spill] sm:$0xff] }
 0x62d   :  { %v9961_v14 = vsel %vm3730_vm5, %v3690_v54, %v9491_v38  ;;  %v3837_v9 = vadd.f32 %v3836_v11, %v3835_v23  ;;  %v4032_v39 = vadd.f32 %v4031_v4, %v4030_v6  ;;  %v3691_v1 = vsel %vm3665_vm4, %v3626_v41, %v9027_v21  ;;  %v13045_v21 = vld [vmem:[#allocation49_spill] sm:$0xff]  ;;  %v13048_v54 = vld [vmem:[#allocation130_spill] sm:$0xff] }
 0x62e   :  { %13043 = vst [vmem:[#allocation171_spill] sm:$0xff] %v9961_v14  ;;  %v4033_v29 = vsel %vm283_vm0, %v3949_v34, 0.0  ;;  %v3838_v63 = vsel %vm283_vm0, %v9928_v27, 0.0  ;;  %v3951_v19 = vmul.f32 %v9947_v45, %v9947_v45  ;;  %v2574_v17 = vpop.permute.xlu1 %2573  ;;  %v9972_v18 = vsel %vm3730_vm5, %v3691_v1, %v9498_v61 }
 0x62f   :  { %13044 = vst [vmem:[#allocation158_spill] sm:$0xff] %v9972_v18  ;;  %v3839_v38 = vadd.f32 %v3838_v63, %v3837_v9  ;;  %v4034_v33 = vadd.f32 %v4033_v29, %v4032_v39  ;;  %v2697_v44 = vadd.f32 %v2574_v17, %v9437_v47  ;;  %v3692_v34 = vsel %vm3665_vm4, %v3627_v7, %v13045_v21  ;;  %v13047_v47 = vld [vmem:[#allocation183_spill] sm:$0xff] }
 0x630   :  { %v3952_v55 = vmul.f32 %v9961_v14, %v9961_v14  ;;  %v4035_v48 = vsel %vm283_vm0, %v3950_v60, 0.0  ;;  %v3840_v43 = vsel %vm283_vm0, %v9947_v45, 0.0  ;;  %v9986_v61 = vsel %vm3730_vm5, %v3692_v34, %v9563_v46  ;;  %v10012_v34 = vpop.permute.xlu0 %3491 }
 0x631   :  { %13046 = vst [vmem:[#allocation11_spill] sm:$0xff] %v9986_v61  ;;  %v3841_v23 = vadd.f32 %v3840_v43, %v3839_v38  ;;  %v4036_v6 = vadd.f32 %v4035_v48, %v4034_v33  ;;  %3529 = vrot.lane.b32.xlu0 %v2697_v44, %s6038_s13  ;;  %v3628_v7 = vsel %vm669_vm2, %v13048_v54, %v13047_v47  ;;  %v3842_v4 = vsel %vm283_vm0, %v9961_v14, 0.0  ;;  %v13052_v38 = vld [vmem:[#allocation139_spill] sm:$0xff]  ;;  %v13054_v54 = vld [vmem:[#allocation88_spill] sm:$0xff] }
 0x632   :  { %v3953_v11 = vmul.f32 %v9972_v18, %v9972_v18  ;;  %v4037_v60 = vsel %vm283_vm0, %v3951_v19, 0.0  ;;  %v2576_v40 = vpop.permute.xlu1 %2575  ;;  %v3693_v46 = vsel %vm3665_vm4, %v3628_v7, %v13049_v12  ;;  %v4039_v1 = vsel %vm283_vm0, %v3952_v55, 0.0  ;;  %v13051_v19 = vld [vmem:[#allocation61_spill] sm:$0xff] }
 0x633   :  { %v3843_v41 = vadd.f32 %v3842_v4, %v3841_v23  ;;  %v4038_v9 = vadd.f32 %v4037_v60, %v4036_v6  ;;  %v2698_v39 = vadd.f32 %v2576_v40, %v9448_v35  ;;  %v3844_v29 = vsel %vm283_vm0, %v9972_v18, 0.0  ;;  %v13053_v35 = vld [vmem:[#allocation27_spill] sm:$0xff]  ;;  %v13055_v4 = vld [vmem:[#allocation145_spill] sm:$0xff] }
 0x634   :  { %v3954_v63 = vmul.f32 %v9986_v61, %v9986_v61  ;;  %v10007_v17 = vsel %vm3730_vm5, %v3693_v46, %v9646_v36  ;;  %v3629_v33 = vsel %vm669_vm2, %v13052_v38, %v13051_v19  ;;  %v4041_v48 = vsel %vm283_vm0, %v3953_v11, 0.0  ;;  %v13057_v46 = vld [vmem:[#allocation188_spill] sm:$0xff] }
 0x635   :  { %13050 = vst [vmem:[#allocation93_spill] sm:$0xff] %v10007_v17  ;;  %v3845_v44 = vadd.f32 %v3844_v29, %v3843_v41  ;;  %v4040_v21 = vadd.f32 %v4039_v1, %v4038_v9  ;;  %3531 = vrot.lane.b32.xlu0 %v2698_v39, %s6038_s13  ;;  %v3694_v55 = vsel %vm3665_vm4, %v3629_v33, %v13053_v35  ;;  %v3846_v43 = vsel %vm283_vm0, %v9986_v61, 0.0  ;;  %v13058_v41 = vld [vmem:[#allocation144_spill] sm:$0xff]  ;;  %v13059_v29 = vld [vmem:[#allocation23_spill] sm:$0xff]  ;;  %v10039_v33 = vpop.permute.xlu0 %3485  ;;  %v13061_v35 = vld [vmem:[#allocation122_spill] sm:$0xff] }
 0x636   :  { %v2570_v36 = vpop.permute.xlu1 %2569  ;;  %v3955_v23 = vmul.f32 %v10007_v17, %v10007_v17  ;;  %v10025_v60 = vsel %vm3730_vm5, %v3694_v55, %v13055_v4  ;;  %v4043_v40 = vsel %vm283_vm0, %v3954_v63, 0.0  ;;  %v3848_v11 = vsel %vm283_vm0, %v10007_v17, 0.0  ;;  %v13062_v55 = vld [vmem:[#allocation137_spill] sm:$0xff] }
 0x637   :  { %v3847_v6 = vadd.f32 %v3846_v43, %v3845_v44  ;;  %v4042_v47 = vadd.f32 %v4041_v48, %v4040_v21  ;;  %v2695_v7 = vadd.f32 %v2570_v36, %v13054_v54  ;;  %13056 = vst [vmem:[#allocation73_spill] sm:$0xff] %v10025_v60  ;;  %v3630_v9 = vsel %vm669_vm2, %v13058_v41, %v13057_v46  ;;  %v13060_v44 = vld [vmem:[#allocation12_spill] sm:$0xff]  ;;  %v13063_v43 = vld [vmem:[#allocation101_spill] sm:$0xff] }
 0x638   :  { %v3695_v19 = vsel %vm3665_vm4, %v3630_v9, %v13059_v29  ;;  %v3956_v38 = vmul.f32 %v10025_v60, %v10025_v60  ;;  %v4045_v63 = vsel %vm283_vm0, %v3955_v23, 0.0  ;;  %v3631_v48 = vsel %vm669_vm2, %v13062_v55, %v13061_v35  ;;  %v13065_v23 = vld [vmem:[#allocation103_spill] sm:$0xff]  ;;  %v13068_v9 = vld [vmem:[#allocation54_spill] sm:$0xff]  ;;  %v13110_v61 = vld [vmem:[#allocation33_spill] sm:$0xff] }
 0x639   :  { %v4044_v12 = vadd.f32 %v4043_v40, %v4042_v47  ;;  %3525 = vrot.lane.b32.xlu0 %v2695_v7, %s6038_s13  ;;  %v3849_v39 = vadd.f32 %v3848_v11, %v3847_v6  ;;  %v10047_v36 = vsel %vm3730_vm5, %v3695_v19, %v13063_v43  ;;  %v3850_v47 = vsel %vm283_vm0, %v10025_v60, 0.0  ;;  %v13066_v7 = vld [vmem:[#allocation59_spill] sm:$0xff]  ;;  %v13067_v40 = vld [vmem:[#allocation141_spill] sm:$0xff]  ;;  %v13070_v29 = vld [vmem:[#allocation30_spill] sm:$0xff] }
 0x63a   :  { %v2572_v1 = vpop.permute.xlu1 %2571  ;;  %13064 = vst [vmem:[#allocation168_spill] sm:$0xff] %v10047_v36  ;;  %v2699_v4 = vadd.f32 %v13066_v7, %v13065_v23  ;;  %v3696_v11 = vsel %vm3665_vm4, %v3631_v48, %v13067_v40  ;;  %v4047_v46 = vsel %vm283_vm0, %v3956_v38, 0.0  ;;  %v3957_v41 = vmul.f32 %v10047_v36, %v10047_v36  ;;  %v13073_v48 = vld [vmem:[#allocation146_spill] sm:$0xff]  ;;  %v13075_v23 = vld [vmem:[#allocation152_spill] sm:$0xff] }
 0x63b   :  { %v2696_v21 = vadd.f32 %v2572_v1, %v13060_v44  ;;  %v4046_v6 = vadd.f32 %v4045_v63, %v4044_v12  ;;  %v3851_v54 = vadd.f32 %v3850_v47, %v3849_v39  ;;  %v13069_v1 = vld [vmem:[#allocation142_spill] sm:$0xff]  ;;  %v10064_v19 = vsel %vm3730_vm5, %v3696_v11, %v13070_v29  ;;  %v10068_v44 = vpop.permute.xlu0 %3487 }
 0x63c   :  { %v3632_v12 = vsel %vm669_vm2, %v13069_v1, %v13068_v9  ;;  %13071 = vst [vmem:[#allocation70_spill] sm:$0xff] %v10064_v19  ;;  %v3852_v63 = vsel %vm283_vm0, %v10047_v36, 0.0  ;;  %v3958_v55 = vmul.f32 %v10064_v19, %v10064_v19  ;;  %v4049_v47 = vsel %vm283_vm0, %v3957_v41, 0.0  ;;  %v13076_v11 = vld [vmem:[#allocation134_spill] sm:$0xff]  ;;  %v13078_v1 = vld [vmem:[#allocation60_spill] sm:$0xff] }
 0x63d   :  { %3527 = vrot.lane.b32.xlu0 %v2696_v21, %s6038_s13  ;;  %v4048_v39 = vadd.f32 %v4047_v46, %v4046_v6  ;;  %v3853_v38 = vadd.f32 %v3852_v63, %v3851_v54  ;;  %v13072_v21 = vld [vmem:[#allocation164_spill] sm:$0xff]  ;;  %v3697_v43 = vsel %vm3665_vm4, %v3632_v12, %v13073_v48  ;;  %v13074_v6 = vld [vmem:[#allocation50_spill] sm:$0xff]  ;;  %v13079_v63 = vld [vmem:[#allocation127_spill] sm:$0xff] }
 0x63e   :  { %v2700_v35 = vadd.f32 %v13066_v7, %v13072_v21  ;;  %v3633_v40 = vsel %vm669_vm2, %v13075_v23, %v13074_v6  ;;  %v10083_v46 = vsel %vm3730_vm5, %v3697_v43, %v13076_v11  ;;  %v3854_v7 = vsel %vm283_vm0, %v10064_v19, 0.0  ;;  %v13080_v21 = vld [vmem:[#allocation156_spill] sm:$0xff]  ;;  %v13082_v6 = vld [vmem:[#allocation191_spill] sm:$0xff] }
 0x63f   :  { %13077 = vst [vmem:[#allocation166_spill] sm:$0xff] %v10083_v46  ;;  %v4050_v54 = vadd.f32 %v4049_v47, %v4048_v39  ;;  %v4051_v9 = vsel %vm283_vm0, %v3958_v55, 0.0  ;;  %v3959_v41 = vmul.f32 %v10083_v46, %v10083_v46  ;;  %v3698_v12 = vsel %vm3665_vm4, %v3633_v40, %v13078_v1  ;;  %v10093_v29 = vpop.permute.xlu0 %3497  ;;  %v13086_v1 = vld [vmem:[#allocation16_spill] sm:$0xff] }
 0x640   :  { %v3634_v39 = vsel %vm669_vm2, %v13080_v21, %v13079_v63  ;;  %v10100_v48 = vsel %vm3730_vm5, %v3698_v12, %v9699_v42 }
 0x641   :  { %3533 = vrot.lane.b32.xlu0 %v2699_v4, %s6038_s13  ;;  %v3855_v4 = vadd.f32 %v3854_v7, %v3853_v38  ;;  %13081 = vst [vmem:[#allocation68_spill] sm:$0xff] %v10100_v48  ;;  %v3856_v38 = vsel %vm283_vm0, %v10083_v46, 0.0  ;;  %v4053_v43 = vsel %vm283_vm0, %v3959_v41, 0.0  ;;  %v3960_v47 = vmul.f32 %v10100_v48, %v10100_v48  ;;  %v13084_v7 = vld [vmem:[#allocation124_spill] sm:$0xff] }
 0x642   :  { %v3699_v23 = vsel %vm3665_vm4, %v3634_v39, %v13082_v6  ;;  %v3858_v42 = vsel %vm283_vm0, %v10100_v48, 0.0  ;;  %v13098_v48 = vld [vmem:[#allocation135_spill] sm:$0xff] }
 0x643   :  { %v3857_v55 = vadd.f32 %v3856_v38, %v3855_v4  ;;  %v10111_v40 = vsel %vm3730_vm5, %v3699_v23, %v9745_v52  ;;  %v13085_v4 = vld [vmem:[#allocation150_spill] sm:$0xff]  ;;  %v4055_v63 = vsel %vm283_vm0, %v3960_v47, 0.0  ;;  %v13089_v23 = vld [vmem:[#allocation47_spill] sm:$0xff] }
 0x644   :  { %13083 = vst [vmem:[#allocation167_spill] sm:$0xff] %v10111_v40  ;;  %v3961_v52 = vmul.f32 %v10111_v40, %v10111_v40  ;;  %v13087_v38 = vld [vmem:[#allocation126_spill] sm:$0xff] }
 0x645   :  { %3535 = vrot.lane.b32.xlu0 %v2700_v35, %s6038_s13  ;;  %v4052_v35 = vadd.f32 %v4051_v9, %v4050_v54  ;;  %v10115_v54 = vpop.permute.xlu0 %3499  ;;  %v3635_v9 = vsel %vm669_vm2, %v13085_v4, %v13084_v7  ;;  %v3859_v41 = vadd.f32 %v3858_v42, %v3857_v55  ;;  %v13091_v4 = vld [vmem:[#allocation162_spill] sm:$0xff] }
 0x646   :  { %v3700_v12 = vsel %vm3665_vm4, %v3635_v9, %v13086_v1  ;;  %v4057_v47 = vsel %vm283_vm0, %v3961_v52, 0.0 }
 0x647   :  { %v4054_v11 = vadd.f32 %v4053_v43, %v4052_v35  ;;  %v10127_v39 = vsel %vm3730_vm5, %v3700_v12, %v9886_v59  ;;  %v3860_v35 = vsel %vm283_vm0, %v10111_v40, 0.0  ;;  %v13088_v43 = vld [vmem:[#allocation154_spill] sm:$0xff]  ;;  %v13090_v59 = vld [vmem:[#allocation9_spill] sm:$0xff] }
 0x648   :  { %v3636_v55 = vsel %vm669_vm2, %v13088_v43, %v13087_v38  ;;  %v3861_v6 = vadd.f32 %v3860_v35, %v3859_v41  ;;  %v3637_v9 = vsel %vm669_vm2, %v13091_v4, %v13090_v59  ;;  %v10148_v41 = vpop.permute.xlu1 %3263  ;;  %v13092_v35 = vld [vmem:[#allocation129_spill] sm:$0xff] }
 0x649   :  { %v4056_v21 = vadd.f32 %v4055_v63, %v4054_v11  ;;  %v3701_v42 = vsel %vm3665_vm4, %v3636_v55, %v13089_v23  ;;  %v3962_v11 = vmul.f32 %v10127_v39, %v10127_v39  ;;  %v10139_v7 = vpop.permute.xlu0 %3493  ;;  %v3862_v63 = vsel %vm283_vm0, %v10127_v39, 0.0  ;;  %v13093_v23 = vld [vmem:[#allocation52_spill] sm:$0xff] }
 0x64a   :  { %v10146_v12 = vsel %vm3730_vm5, %v3701_v42, %v9930_v28  ;;  %v3863_v52 = vadd.f32 %v3862_v63, %v3861_v6  ;;  %v3702_v38 = vsel %vm3665_vm4, %v3637_v9, %v13092_v35  ;;  %v13095_v63 = vld [vmem:[#allocation131_spill] sm:$0xff] }
 0x64b   :  { %v4058_v1 = vadd.f32 %v4057_v47, %v4056_v21  ;;  %v4059_v43 = vsel %vm283_vm0, %v3962_v11, 0.0  ;;  %v3963_v55 = vmul.f32 %v10146_v12, %v10146_v12  ;;  %v13094_v21 = vld [vmem:[#allocation77_spill] sm:$0xff]  ;;  %v10162_v28 = vsel %vm3730_vm5, %v3702_v38, %v9788_v31 }
 0x64c   :  { %v3638_v47 = vsel %vm669_vm2, %v13094_v21, %v13093_v23  ;;  %v3864_v6 = vsel %vm283_vm0, %v10146_v12, 0.0  ;;  %v10168_v9 = vpop.permute.xlu1 %3009  ;;  %v3964_v11 = vmul.f32 %v10162_v28, %v10162_v28  ;;  %v3866_v38 = vsel %vm283_vm0, %v10162_v28, 0.0  ;;  %v13097_v21 = vld [vmem:[#allocation159_spill] sm:$0xff] }
 0x64d   :  { %v4060_v42 = vadd.f32 %v4059_v43, %v4058_v1  ;;  %v10166_v59 = vpop.permute.xlu0 %3495  ;;  %v3865_v4 = vadd.f32 %v3864_v6, %v3863_v52  ;;  %v3703_v35 = vsel %vm3665_vm4, %v3638_v47, %v13095_v63  ;;  %v4061_v23 = vsel %vm283_vm0, %v3963_v55, 0.0  ;;  %v13096_v52 = vld [vmem:[#allocation29_spill] sm:$0xff] }
 0x64e   :  { %v10177_v31 = vsel %vm3730_vm5, %v3703_v35, %v9840_v32  ;;  %v3639_v6 = vsel %vm669_vm2, %v13097_v21, %v13096_v52  ;;  %v4063_v55 = vsel %vm283_vm0, %v3964_v11, 0.0  ;;  %v13099_v52 = vld [vmem:[#allocation133_spill] sm:$0xff] }
 0x64f   :  { %v4062_v1 = vadd.f32 %v4061_v23, %v4060_v42  ;;  %v3867_v40 = vadd.f32 %v3866_v38, %v3865_v4  ;;  %v3704_v47 = vsel %vm3665_vm4, %v3639_v6, %v13098_v48  ;;  %v3965_v32 = vmul.f32 %v10177_v31, %v10177_v31  ;;  %v13100_v4 = vld [vmem:[#allocation165_spill] sm:$0xff] }
 0x650   :  { %v10193_v42 = vsel %vm3730_vm5, %v3704_v47, %v10039_v33  ;;  %v10195_v35 = vpop.permute.xlu1 %3265  ;;  %v3868_v23 = vsel %vm283_vm0, %v10177_v31, 0.0  ;;  %v3640_v38 = vsel %vm669_vm2, %v13100_v4, %v13099_v52  ;;  %v13101_v21 = vld [vmem:[#allocation53_spill] sm:$0xff]  ;;  %v13102_v47 = vld [vmem:[#allocation24_spill] sm:$0xff] }
 0x651   :  { %v10181_v43 = vpop.permute.xlu0 %3505  ;;  %v4064_v63 = vadd.f32 %v4063_v55, %v4062_v1  ;;  %v3869_v48 = vadd.f32 %v3868_v23, %v3867_v40  ;;  %v3705_v11 = vsel %vm3665_vm4, %v3640_v38, %v13101_v21  ;;  %v4065_v6 = vsel %vm283_vm0, %v3965_v32, 0.0  ;;  %v13103_v55 = vld [vmem:[#allocation172_spill] sm:$0xff]  ;;  %v13104_v32 = vld [vmem:[#allocation19_spill] sm:$0xff] }
 0x652   :  { %v3966_v1 = vmul.f32 %v10193_v42, %v10193_v42  ;;  %v3641_v46 = vsel %vm669_vm2, %v13103_v55, %v13102_v47  ;;  %v10214_v36 = vsel %vm3730_vm5, %v3705_v11, %v10068_v44  ;;  %v3870_v40 = vsel %vm283_vm0, %v10193_v42, 0.0 }
 0x653   :  { %v4066_v19 = vadd.f32 %v4065_v6, %v4064_v63  ;;  %v3871_v23 = vadd.f32 %v3870_v40, %v3869_v48  ;;  %v3706_v4 = vsel %vm3665_vm4, %v3641_v46, %v13104_v32  ;;  %v3967_v21 = vmul.f32 %v10214_v36, %v10214_v36  ;;  %v13105_v63 = vld [vmem:[#allocation90_spill] sm:$0xff]  ;;  %v13106_v6 = vld [vmem:[#allocation80_spill] sm:$0xff] }
 0x654   :  { %v10218_v52 = vpop.permute.xlu1 %3011  ;;  %v4067_v38 = vsel %vm283_vm0, %v3966_v1, 0.0  ;;  %v3642_v44 = vsel %vm669_vm2, %v13106_v6, %v13105_v63  ;;  %v10230_v11 = vsel %vm3730_vm5, %v3706_v4, %v9974_v3  ;;  %v3872_v55 = vsel %vm283_vm0, %v10214_v36, 0.0  ;;  %v13107_v1 = vld [vmem:[#allocation20_spill] sm:$0xff] }
 0x655   :  { %v10207_v33 = vpop.permute.xlu0 %3507  ;;  %v4068_v48 = vadd.f32 %v4067_v38, %v4066_v19  ;;  %v3873_v40 = vadd.f32 %v3872_v55, %v3871_v23  ;;  %v3968_v46 = vmul.f32 %v10230_v11, %v10230_v11  ;;  %v3707_v32 = vsel %vm3665_vm4, %v3642_v44, %v13107_v1  ;;  %v13108_v23 = vld [vmem:[#allocation78_spill] sm:$0xff]  ;;  %v13109_v38 = vld [vmem:[#allocation169_spill] sm:$0xff] }
 0x656   :  { %v4069_v60 = vsel %vm283_vm0, %v3967_v21, 0.0  ;;  %v10241_v63 = vsel %vm3730_vm5, %v3707_v32, %v10012_v34  ;;  %v3874_v19 = vsel %vm283_vm0, %v10230_v11, 0.0  ;;  %v3643_v55 = vsel %vm669_vm2, %v13109_v38, %v13108_v23  ;;  %v13111_v23 = vld [vmem:[#allocation8_spill] sm:$0xff] }
 0x657   :  { %v4070_v6 = vadd.f32 %v4069_v60, %v4068_v48  ;;  %v3875_v17 = vadd.f32 %v3874_v19, %v3873_v40  ;;  %v3708_v44 = vsel %vm3665_vm4, %v3643_v55, %v13110_v61  ;;  %v4071_v21 = vsel %vm283_vm0, %v3968_v46, 0.0  ;;  %v13112_v40 = vld [vmem:[#allocation173_spill] sm:$0xff]  ;;  %v13113_v46 = vld [vmem:[#allocation170_spill] sm:$0xff] }
 0x658   :  { %v10243_v3 = vpop.permute.xlu1 %3267  ;;  %v3969_v34 = vmul.f32 %v10241_v63, %v10241_v63  ;;  %v10257_v48 = vsel %vm3730_vm5, %v3708_v44, %v10139_v7  ;;  %v3876_v1 = vsel %vm283_vm0, %v10241_v63, 0.0  ;;  %v3644_v19 = vsel %vm669_vm2, %v13112_v40, %v13111_v23  ;;  %v13114_v44 = vld [vmem:[#allocation36_spill] sm:$0xff] }
 0x659   :  { %v3502_v47 = vpop.permute.xlu0 %3501  ;;  %v4072_v60 = vadd.f32 %v4071_v21, %v4070_v6  ;;  %v3877_v61 = vadd.f32 %v3876_v1, %v3875_v17  ;;  %v3709_v55 = vsel %vm3665_vm4, %v3644_v19, %v13113_v46  ;;  %v3970_v7 = vmul.f32 %v10257_v48, %v10257_v48  ;;  %v13115_v21 = vld [vmem:[#allocation95_spill] sm:$0xff]  ;;  %v13116_v23 = vld [vmem:[#allocation160_spill] sm:$0xff] }
 0x65a   :  { %v4073_v6 = vsel %vm283_vm0, %v3969_v34, 0.0  ;;  %v3645_v18 = vsel %vm669_vm2, %v13115_v21, %v13114_v44  ;;  %v10278_v45 = vsel %vm3730_vm5, %v3709_v55, %v10166_v59  ;;  %v3878_v17 = vsel %vm283_vm0, %v10257_v48, 0.0  ;;  %v13117_v44 = vld [vmem:[#allocation118_spill] sm:$0xff] }
 0x65b   :  { %v4074_v14 = vadd.f32 %v4073_v6, %v4072_v60  ;;  %v3879_v1 = vadd.f32 %v3878_v17, %v3877_v61  ;;  %v3710_v40 = vsel %vm3665_vm4, %v3645_v18, %v13116_v23  ;;  %v4075_v34 = vsel %vm283_vm0, %v3970_v7, 0.0  ;;  %v13118_v60 = vld [vmem:[#allocation85_spill] sm:$0xff] }
 0x65c   :  { %v10266_v38 = vpop.permute.xlu1 %3013  ;;  %v3971_v19 = vmul.f32 %v10278_v45, %v10278_v45  ;;  %v3646_v6 = vsel %vm669_vm2, %v13118_v60, %v13117_v44  ;;  %v10294_v59 = vsel %vm3730_vm5, %v3710_v40, %v10093_v29  ;;  %v3880_v18 = vsel %vm283_vm0, %v10278_v45, 0.0  ;;  %v13119_v17 = vld [vmem:[#allocation149_spill] sm:$0xff] }
 0x65d   :  { %v3504_v4 = vpop.permute.xlu0 %3503  ;;  %v4076_v55 = vadd.f32 %v4075_v34, %v4074_v14  ;;  %v3881_v7 = vadd.f32 %v3880_v18, %v3879_v1  ;;  %v3972_v21 = vmul.f32 %v10294_v59, %v10294_v59  ;;  %v3711_v23 = vsel %vm3665_vm4, %v3646_v6, %v13119_v17  ;;  %v13120_v34 = vld [vmem:[#allocation176_spill] sm:$0xff]  ;;  %v13121_v60 = vld [vmem:[#allocation13_spill] sm:$0xff] }
 0x65e   :  { %v4077_v27 = vsel %vm283_vm0, %v3971_v19, 0.0  ;;  %v10307_v44 = vsel %vm3730_vm5, %v3711_v23, %v10115_v54  ;;  %v3882_v14 = vsel %vm283_vm0, %v10294_v59, 0.0  ;;  %v3647_v1 = vsel %vm669_vm2, %v13121_v60, %v13120_v34  ;;  %v13123_v23 = vld [vmem:[#allocation157_spill] sm:$0xff]  ;;  %v13124_v34 = vld [vmem:[#allocation98_spill] sm:$0xff]  ;;  %v13125_v60 = vld [vmem:[#allocation147_spill] sm:$0xff] }
 0x65f   :  { %v4078_v29 = vadd.f32 %v4077_v27, %v4076_v55  ;;  %v3883_v18 = vadd.f32 %v3882_v14, %v3881_v7  ;;  %v3712_v6 = vsel %vm3665_vm4, %v3647_v1, %v13122_v25  ;;  %v4079_v19 = vsel %vm283_vm0, %v3972_v21, 0.0 }
 0x660   :  { %v10296_v61 = vpop.permute.xlu1 %3269  ;;  %v3973_v54 = vmul.f32 %v10307_v44, %v10307_v44  ;;  %v10322_v55 = vsel %vm3730_vm5, %v3712_v6, %v3502_v47  ;;  %v3884_v17 = vsel %vm283_vm0, %v10307_v44, 0.0  ;;  %v3648_v7 = vsel %vm669_vm2, %v13124_v34, %v13123_v23  ;;  %v13127_v47 = vld [vmem:[#allocation35_spill] sm:$0xff] }
 0x661   :  { %v10261_v32 = vpop.permute.xlu0 %3513  ;;  %v4080_v27 = vadd.f32 %v4079_v19, %v4078_v29  ;;  %v3885_v14 = vadd.f32 %v3884_v17, %v3883_v18  ;;  %v3713_v25 = vsel %vm3665_vm4, %v3648_v7, %v13125_v60  ;;  %v3974_v1 = vmul.f32 %v10322_v55, %v10322_v55  ;;  %v13126_v19 = vld [vmem:[#allocation123_spill] sm:$0xff]  ;;  %v13129_v60 = vld [vmem:[#allocation189_spill] sm:$0xff] }
 0x662   :  { %v4081_v21 = vsel %vm283_vm0, %v3973_v54, 0.0  ;;  %v3649_v6 = vsel %vm669_vm2, %v13127_v47, %v13126_v19  ;;  %v10338_v8 = vsel %vm3730_vm5, %v3713_v25, %v3504_v4  ;;  %v3886_v18 = vsel %vm283_vm0, %v10322_v55, 0.0  ;;  %v13128_v23 = vld [vmem:[#allocation63_spill] sm:$0xff]  ;;  %v13130_v19 = vld [vmem:[#allocation112_spill] sm:$0xff] }
 0x663   :  { %v4082_v57 = vadd.f32 %v4081_v21, %v4080_v27  ;;  %v3887_v17 = vadd.f32 %v3886_v18, %v3885_v14  ;;  %v3714_v54 = vsel %vm3665_vm4, %v3649_v6, %v13128_v23  ;;  %v4083_v34 = vsel %vm283_vm0, %v3974_v1, 0.0  ;;  %v13131_v18 = vld [vmem:[#allocation143_spill] sm:$0xff] }
 0x664   :  { %v10314_v37 = vpop.permute.xlu1 %3015  ;;  %v3975_v7 = vmul.f32 %v10338_v8, %v10338_v8  ;;  %v3650_v27 = vsel %vm669_vm2, %v13130_v19, %v13129_v60  ;;  %v10354_v4 = vsel %vm3730_vm5, %v3714_v54, %v10181_v43  ;;  %v3888_v14 = vsel %vm283_vm0, %v10338_v8, 0.0 }
 0x665   :  { %v10287_v46 = vpop.permute.xlu0 %3515  ;;  %v4084_v25 = vadd.f32 %v4083_v34, %v4082_v57  ;;  %v3889_v47 = vadd.f32 %v3888_v14, %v3887_v17  ;;  %v3976_v1 = vmul.f32 %v10354_v4, %v10354_v4  ;;  %v3715_v23 = vsel %vm3665_vm4, %v3650_v27, %v13131_v18  ;;  %v13132_v34 = vld [vmem:[#allocation17_spill] sm:$0xff]  ;;  %v13133_v17 = vld [vmem:[#allocation26_spill] sm:$0xff] }
 0x666   :  { %v4085_v60 = vsel %vm283_vm0, %v3975_v7, 0.0  ;;  %v10367_v43 = vsel %vm3730_vm5, %v3715_v23, %v10207_v33  ;;  %v3890_v54 = vsel %vm283_vm0, %v10354_v4, 0.0  ;;  %v3651_v19 = vsel %vm669_vm2, %v13133_v17, %v13132_v34 }
 0x667   :  { %v4086_v57 = vadd.f32 %v4085_v60, %v4084_v25  ;;  %v3891_v14 = vadd.f32 %v3890_v54, %v3889_v47  ;;  %v3716_v24 = vsel %vm3665_vm4, %v3651_v19, %v13134_v53  ;;  %v4087_v27 = vsel %vm283_vm0, %v3976_v1, 0.0 }
 0x668   :  { %v10340_v62 = vpop.permute.xlu1 %3271  ;;  %v3977_v7 = vmul.f32 %v10367_v43, %v10367_v43  ;;  %v3892_v60 = vsel %vm283_vm0, %v10367_v43, 0.0 }
 0x669   :  { %v3510_v40 = vpop.permute.xlu0 %3509  ;;  %v4088_v33 = vadd.f32 %v4087_v27, %v4086_v57  ;;  %v3893_v15 = vadd.f32 %v3892_v60, %v3891_v14  ;;  %v10401_v14 = vsel %vm3730_vm5, %v9791_v56, %v10261_v32  ;;  %v13135_v60 = vld [vmem:[#allocation136_spill] sm:$0xff]  ;;  %v10414_v56 = vsel %vm3730_vm5, %v9854_v49, %v10287_v46 }
 0x66a   :  { %v10380_v25 = vsel %vm3730_vm5, %v3716_v24, %v3510_v40  ;;  %v4089_v47 = vsel %vm283_vm0, %v3977_v7, 0.0  ;;  %v3981_v49 = vmul.f32 %v10414_v56, %v10414_v56 }
 0x66b   :  { %v3978_v53 = vmul.f32 %v10380_v25, %v10380_v25  ;;  %v4090_v54 = vadd.f32 %v4089_v47, %v4088_v33  ;;  %v3894_v57 = vsel %vm283_vm0, %v10380_v25, 0.0  ;;  %v3656_v47 = vsel %vm669_vm2, %v13135_v60, %v9940_v30 }
 0x66c   :  { %v10358_v6 = vpop.permute.xlu1 %3273  ;;  %v3895_v40 = vadd.f32 %v3894_v57, %v3893_v15  ;;  %v3980_v15 = vmul.f32 %v10401_v14, %v10401_v14  ;;  %v3721_v57 = vsel %vm3665_vm4, %v3656_v47, %v10148_v41  ;;  %v4097_v60 = vsel %vm283_vm0, %v3981_v49, 0.0 }
 0x66d   :  { %v3512_v29 = vpop.permute.xlu0 %3511  ;;  %v4091_v17 = vsel %vm283_vm0, %v3978_v53, 0.0 }
 0x66e   :  { %v10389_v1 = vsel %vm3730_vm5, %v9728_v5, %v3512_v29  ;;  %v4092_v27 = vadd.f32 %v4091_v17, %v4090_v54 }
 0x66f   :  { %v3979_v19 = vmul.f32 %v10389_v1, %v10389_v1  ;;  %v3896_v5 = vsel %vm283_vm0, %v10389_v1, 0.0 }
 0x670   :  { %v3018_v23 = vpop.permute.xlu1 %3017  ;;  %v3897_v29 = vadd.f32 %v3896_v5, %v3895_v40  ;;  %v3898_v40 = vsel %vm283_vm0, %v10401_v14, 0.0  ;;  %v13136_v5 = vld [vmem:[#allocation15_spill] sm:$0xff] }
 0x671   :  { %v3522_v21 = vpop.permute.xlu0 %3521  ;;  %v4093_v7 = vsel %vm283_vm0, %v3979_v19, 0.0  ;;  %v4095_v19 = vsel %vm283_vm0, %v3980_v15, 0.0 }
 0x672   :  { %v4094_v32 = vadd.f32 %v4093_v7, %v4092_v27  ;;  %v3899_v17 = vadd.f32 %v3898_v40, %v3897_v29  ;;  %v3657_v29 = vsel %vm669_vm2, %v13136_v5, %v10168_v9 }
 0x674   :  { %v10393_v34 = vpop.permute.xlu1 %3019 }
 0x675   :  { %v3524_v18 = vpop.permute.xlu0 %3523 }
 0x678   :  { %v3276_v53 = vpop.permute.xlu1 %3275 }
 0x679   :  { %v3518_v24 = vpop.permute.xlu0 %3517 }
 0x67a   :  { %v10418_v54 = vsel %vm3730_vm5, %v9913_v22, %v3518_v24  ;;  %v4096_v22 = vadd.f32 %v4095_v19, %v4094_v32  ;;  %v3900_v24 = vsel %vm283_vm0, %v10414_v56, 0.0 }
 0x67b   :  { %v3982_v46 = vmul.f32 %v10418_v54, %v10418_v54  ;;  %v3902_v41 = vsel %vm283_vm0, %v10418_v54, 0.0  ;;  %v3901_v15 = vadd.f32 %v3900_v24, %v3899_v17  ;;  %v13137_v17 = vld [vmem:[#allocation138_spill] sm:$0xff] }
 0x67c   :  { %v3022_v7 = vpop.permute.xlu1 %3021  ;;  %v4098_v2 = vadd.f32 %v4097_v60, %v4096_v22  ;;  %v3658_v24 = vsel %vm669_vm2, %v13137_v17, %v10218_v52  ;;  %v13139_v52 = vld [vmem:[#allocation140_spill] sm:$0xff] }
 0x67d   :  { %v3520_v33 = vpop.permute.xlu0 %3519  ;;  %v4099_v47 = vsel %vm283_vm0, %v3982_v46, 0.0  ;;  %v3903_v19 = vadd.f32 %v3902_v41, %v3901_v15  ;;  %v3723_v49 = vsel %vm3665_vm4, %v3658_v24, %v10243_v3  ;;  %v13138_v15 = vld [vmem:[#allocation51_spill] sm:$0xff]  ;;  %v13140_v24 = vld [vmem:[#allocation25_spill] sm:$0xff] }
 0x67e   :  { %v10425_v30 = vsel %vm3730_vm5, %v3721_v57, %v3520_v33  ;;  %v3722_v33 = vsel %vm3665_vm4, %v3657_v29, %v10195_v35  ;;  %v4100_v35 = vadd.f32 %v4099_v47, %v4098_v2  ;;  %v3659_v2 = vsel %vm669_vm2, %v13138_v15, %v10266_v38 }
 0x67f   :  { %v3983_v27 = vmul.f32 %v10425_v30, %v10425_v30  ;;  %v3904_v32 = vsel %vm283_vm0, %v10425_v30, 0.0  ;;  %v10448_v40 = vsel %vm3730_vm5, %v3722_v33, %v3522_v21  ;;  %v10459_v21 = vsel %vm3730_vm5, %v3723_v49, %v3524_v18 }
 0x680   :  { %v3905_v5 = vadd.f32 %v3904_v32, %v3903_v19  ;;  %v3984_v46 = vmul.f32 %v10448_v40, %v10448_v40  ;;  %v3278_v22 = vpop.permute.xlu1 %3277  ;;  %v3661_v33 = vsel %vm669_vm2, %v13139_v52, %v3018_v23  ;;  %v3724_v60 = vsel %vm3665_vm4, %v3659_v2, %v10296_v61 }
 0x681   :  { %v4101_v9 = vsel %vm283_vm0, %v3983_v27, 0.0  ;;  %v3906_v27 = vsel %vm283_vm0, %v10448_v40, 0.0  ;;  %v3985_v18 = vmul.f32 %v10459_v21, %v10459_v21  ;;  %v3908_v38 = vsel %vm283_vm0, %v10459_v21, 0.0 }
 0x682   :  { %v4102_v41 = vadd.f32 %v4101_v9, %v4100_v35  ;;  %v3907_v3 = vadd.f32 %v3906_v27, %v3905_v5  ;;  %v4103_v47 = vsel %vm283_vm0, %v3984_v46, 0.0  ;;  %v3726_v23 = vsel %vm3665_vm4, %v3661_v33, %v10358_v6  ;;  %v13141_v5 = vld [vmem:[#allocation163_spill] sm:$0xff] }
 0x683   :  { %v3660_v35 = vsel %vm669_vm2, %v13140_v24, %v10314_v37  ;;  %v3662_v49 = vsel %vm669_vm2, %v13141_v5, %v10393_v34  ;;  %v4105_v15 = vsel %vm283_vm0, %v3985_v18, 0.0 }
 0x684   :  { %v4104_v19 = vadd.f32 %v4103_v47, %v4102_v41  ;;  %v3024_v46 = vpop.permute.xlu1 %3023  ;;  %v3909_v27 = vadd.f32 %v3908_v38, %v3907_v3  ;;  %v3725_v6 = vsel %vm3665_vm4, %v3660_v35, %v10340_v62  ;;  %v3727_v2 = vsel %vm3665_vm4, %v3662_v49, %v3276_v53  ;;  %v13142_v3 = vld [vmem:[#allocation148_spill] sm:$0xff] }
 0x685   :  { %v3663_v18 = vsel %vm669_vm2, %v13142_v3, %v3022_v7 }
 0x686   :  { %v4106_v34 = vadd.f32 %v4105_v15, %v4104_v19  ;;  %v3728_v38 = vsel %vm3665_vm4, %v3663_v18, %v3278_v22 }
 0x688   :  { %v3280_v24 = vpop.permute.xlu1 %3279 }
 0x6a3   :  { %v3530_v57 = vpop.permute.xlu0 %3529 }
 0x6a4   :  { %v10491_v41 = vsel %vm3730_vm5, %v3726_v23, %v3530_v57 }
 0x6a5   :  { %v3988_v57 = vmul.f32 %v10491_v41, %v10491_v41  ;;  %v3914_v19 = vsel %vm283_vm0, %v10491_v41, 0.0 }
 0x6a7   :  { %v3532_v29 = vpop.permute.xlu0 %3531  ;;  %v4111_v7 = vsel %vm283_vm0, %v3988_v57, 0.0 }
 0x6a8   :  { %v10499_v37 = vsel %vm3730_vm5, %v3727_v2, %v3532_v29 }
 0x6a9   :  { %v3989_v23 = vmul.f32 %v10499_v37, %v10499_v37  ;;  %v3916_v22 = vsel %vm283_vm0, %v10499_v37, 0.0 }
 0x6ab   :  { %v3526_v32 = vpop.permute.xlu0 %3525 }
 0x6ac   :  { %v10474_v9 = vsel %vm3730_vm5, %v3724_v60, %v3526_v32 }
 0x6ad   :  { %v3910_v17 = vsel %vm283_vm0, %v10474_v9, 0.0  ;;  %v3986_v61 = vmul.f32 %v10474_v9, %v10474_v9 }
 0x6ae   :  { %v3911_v60 = vadd.f32 %v3910_v17, %v3909_v27 }
 0x6af   :  { %v4107_v52 = vsel %vm283_vm0, %v3986_v61, 0.0  ;;  %v3528_v33 = vpop.permute.xlu0 %3527 }
 0x6b0   :  { %v10502_v47 = vsel %vm3730_vm5, %v3725_v6, %v3528_v33  ;;  %v4108_v32 = vadd.f32 %v4107_v52, %v4106_v34  ;;  %v13143_v6 = vld [vmem:[#allocation175_spill] sm:$0xff] }
 0x6b1   :  { %v3912_v62 = vsel %vm283_vm0, %v10502_v47, 0.0  ;;  %v3987_v53 = vmul.f32 %v10502_v47, %v10502_v47  ;;  %v3664_v15 = vsel %vm669_vm2, %v13143_v6, %v3024_v46 }
 0x6b2   :  { %v3913_v29 = vadd.f32 %v3912_v62, %v3911_v60  ;;  %v3729_v33 = vsel %vm3665_vm4, %v3664_v15, %v3280_v24  ;;  %v4113_v60 = vsel %vm283_vm0, %v3989_v23, 0.0 }
 0x6b3   :  { %v4109_v17 = vsel %vm283_vm0, %v3987_v53, 0.0  ;;  %v3534_v61 = vpop.permute.xlu0 %3533 }
 0x6b4   :  { %v3915_v35 = vadd.f32 %v3914_v19, %v3913_v29  ;;  %v4110_v5 = vadd.f32 %v4109_v17, %v4108_v32  ;;  %v10519_v49 = vsel %vm3730_vm5, %v3728_v38, %v3534_v61 }
 0x6b5   :  { %v3990_v27 = vmul.f32 %v10519_v49, %v10519_v49  ;;  %v3918_v34 = vsel %vm283_vm0, %v10519_v49, 0.0 }
 0x6b6   :  { %v4112_v2 = vadd.f32 %v4111_v7, %v4110_v5  ;;  %v3917_v52 = vadd.f32 %v3916_v22, %v3915_v35 }
 0x6b7   :  { %v3536_v62 = vpop.permute.xlu0 %3535  ;;  %v4115_v18 = vsel %vm283_vm0, %v3990_v27, 0.0 }
 0x6b8   :  { %v3919_v57 = vadd.f32 %v3918_v34, %v3917_v52  ;;  %v4114_v53 = vadd.f32 %v4113_v60, %v4112_v2  ;;  %v10533_v3 = vsel %vm3730_vm5, %v3729_v33, %v3536_v62  ;;  %v5976_v33 = vld [vmem:[%s12081_s7] sm:$0xff]  }
 0x6b9   :  { %v3920_v46 = vsel %vm283_vm0, %v10533_v3, 0.0  ;;  %v3991_v32 = vmul.f32 %v10533_v3, %v10533_v3  ;;  %5858 = vmatprep.subr.bf16.mxu0 %v5976_v33 }
 0x6ba   :  { %v4116_v29 = vadd.f32 %v4115_v18, %v4114_v53  ;;  %v3921_v38 = vadd.f32 %v3920_v46, %v3919_v57  ;;  %5859 = vmatpush3.bf16.msra.mxu0 %v5976_v33 }
 0x6bb   :  { %v4117_v19 = vsel %vm283_vm0, %v3991_v32, 0.0 }
 0x6bc   :  { %v3922_v23 = vrot.slane %v3921_v38, 4  ;;  %v4118_v17 = vadd.f32 %v4117_v19, %v4116_v29 }
 0x6be   :  { %v3923_v61 = vadd.f32 %v3922_v23, %v3921_v38  ;;  %v4119_v24 = vrot.slane %v4118_v17, 4 }
 0x6c0   :  { %v3924_v35 = vrot.slane %v3923_v61, 2  ;;  %v4120_v5 = vadd.f32 %v4119_v24, %v4118_v17 }
 0x6c2   :  { %v3925_v7 = vadd.f32 %v3924_v35, %v3923_v61  ;;  %v4121_v22 = vrot.slane %v4120_v5, 2 }
 0x6c4   :  { %v3926_v6 = vrot.slane %v3925_v7, 1  ;;  %v4122_v27 = vadd.f32 %v4121_v22, %v4120_v5 }
 0x6c6   :  { %v3927_v15 = vadd.f32 %v3926_v6, %v3925_v7  ;;  %v4123_v2 = vrot.slane %v4122_v27, 1  ;;  %v4157_v7 = vld [vmem:[%s12079_s5] sm:$0x1]  ;;  %s6043_s5 = smov 104  }
 0x6c8   :  { %4130 = vrot.lane.b32.xlu0 %v3927_v15, %s6039_s14  ;;  %4126 = vrot.lane.b32.xlu1 %v3927_v15, %s6040_s15  ;;  %v4124_v52 = vadd.f32 %v4123_v2, %v4122_v27  ;;  %v4159_v27 = vld [vmem:[%s12080_s6] sm:$0x1] }
 0x6cc   :  { %4134 = vrot.lane.b32.xlu0 %v3927_v15, %s6041_s16  ;;  %4140 = vrot.lane.b32.xlu1 %v4124_v52, %s6040_s15 }
 0x6d0   :  { %4148 = vrot.lane.b32.xlu0 %v4124_v52, %s6041_s16  ;;  %4144 = vrot.lane.b32.xlu1 %v4124_v52, %s6039_s14 }
 0x73a   :  { %v4131_v60 = vpop.permute.xlu0 %4130  ;;  %v4127_v34 = vpop.permute.xlu1 %4126 }
 0x73b   :  { %v4129_v62 = vadd.f32 %v4127_v34, %v3927_v15 }
 0x73d   :  { %v4133_v57 = vadd.f32 %v4131_v60, %v4129_v62 }
 0x73e   :  { %v4135_v53 = vpop.permute.xlu0 %4134  ;;  %v4141_v18 = vpop.permute.xlu1 %4140 }
 0x73f   :  { %v4137_v46 = vadd.f32 %v4135_v53, %v4133_v57  ;;  %v4143_v32 = vadd.f32 %v4141_v18, %v4124_v52  ;;  %v13144_v52 = vld [vmem:[#allocation32_spill] sm:$0xff] }
 0x741   :  { %v4138_v38 = vmul.f32 0.00048828125, %v4137_v46 }
 0x742   :  { %v4145_v29 = vpop.permute.xlu1 %4144  ;;  %v4149_v23 = vpop.permute.xlu0 %4148 }
 0x743   :  { %v4147_v19 = vadd.f32 %v4145_v29, %v4143_v32  ;;  %v4153_v61 = vmul.f32 %v4138_v38, %v4138_v38 }
 0x745   :  { %v4151_v17 = vadd.f32 %v4149_v23, %v4147_v19 }
 0x747   :  { %v4152_v24 = vmul.f32 0.00048828125, %v4151_v17 }
 0x749   :  { %v4154_v35 = vsub.f32 %v4152_v24, %v4153_v61 }
 0x74b   :  { %v4155_v5 = vadd.f32 1e-05, %v4154_v35 }
 0x74d   :  { %5979 = vrsqrt.f32 %v4155_v5 }
 0x757   :  { %v5980_v22 = vpop.eup %5979 }
 0x758   :  { %v4158_v6 = vmul.f32 %v5980_v22, %v4157_v7 }
 0x75a   :  { %4166 = vrot.lane.b32.xlu0 %v4158_v6, %s6037_s12  ;;  %4163 = vrot.lane.b32.xlu1 %v4158_v6, %s6033_s24  ;;  %v4160_v15 = vmul.f32 %v4158_v6, %v4138_v38 }
 0x75c   :  { %v4161_v2 = vsub.f32 %v4159_v27, %v4160_v15 }
 0x75e   :  { %4169 = vrot.lane.b32.xlu1 %v4158_v6, %s6042_s22  ;;  %v4179_v33 = vrot.slane %v4161_v2, %v13144_v52 }
 0x760   :  { %4180 = vrot.lane.b32.xlu0 %v4179_v33, %s6033_s24 }
 0x762   :  { %4183 = vrot.lane.b32.xlu1 %v4179_v33, %s6037_s12 }
 0x764   :  { %4186 = vrot.lane.b32.xlu0 %v4179_v33, %s6042_s22 }
 0x7cc   :  { %v4164_v60 = vpop.permute.xlu1 %4163  ;;  %v4167_v34 = vpop.permute.xlu0 %4166 }
 0x7cd   :  { %v4172_v62 = vsel %vm669_vm2, %v4158_v6, %v4164_v60 }
 0x7ce   :  { %v4173_v53 = vsel %vm3665_vm4, %v4172_v62, %v4167_v34 }
 0x7d0   :  { %v4170_v57 = vpop.permute.xlu1 %4169 }
 0x7d1   :  { %v4174_v46 = vsel %vm3730_vm5, %v4173_v53, %v4170_v57 }
 0x7d2   :  { %v4181_v18 = vpop.permute.xlu0 %4180  ;;  %v10562_v38 = vrot.slane %v4174_v46, %v13144_v52 }
 0x7d3   :  { %v4189_v32 = vsel %vm669_vm2, %v4161_v2, %v4181_v18 }
 0x7d4   :  { %v4184_v29 = vpop.permute.xlu1 %4183  ;;  %v4230_v17 = vmul.f32 %v10562_v38, %v10127_v39  ;;  %v4231_v61 = vmul.f32 %v10562_v38, %v10146_v12  ;;  %v4232_v24 = vmul.f32 %v10562_v38, %v10162_v28  ;;  %v4233_v35 = vmul.f32 %v10562_v38, %v10177_v31 }
 0x7d5   :  { %v4190_v19 = vsel %vm3665_vm4, %v4189_v32, %v4184_v29  ;;  %v4234_v5 = vmul.f32 %v10562_v38, %v10193_v42  ;;  %v4235_v22 = vmul.f32 %v10562_v38, %v10214_v36  ;;  %v4236_v39 = vmul.f32 %v10562_v38, %v10230_v11 }
 0x7d6   :  { %v4187_v23 = vpop.permute.xlu0 %4186  ;;  %v4237_v12 = vmul.f32 %v10562_v38, %v10241_v63  ;;  %v4238_v28 = vmul.f32 %v10562_v38, %v10257_v48  ;;  %v4239_v31 = vmul.f32 %v10562_v38, %v10278_v45  ;;  %v4240_v42 = vmul.f32 %v10562_v38, %v10294_v59 }
 0x7d7   :  { %v4191_v7 = vsel %vm3730_vm5, %v4190_v19, %v4187_v23  ;;  %v4241_v6 = vmul.f32 %v10562_v38, %v10307_v44  ;;  %v4242_v36 = vmul.f32 %v10562_v38, %v10322_v55  ;;  %v4243_v11 = vmul.f32 %v10562_v38, %v10338_v8 }
 0x7d8   :  { %v4244_v63 = vmul.f32 %v10562_v38, %v10354_v4  ;;  %v4245_v48 = vmul.f32 %v10562_v38, %v10367_v43  ;;  %v10599_v45 = vrot.slane %v4191_v7, %v13144_v52  ;;  %v4246_v59 = vmul.f32 %v10562_v38, %v10380_v25 }
 0x7d9   :  { %v4247_v44 = vmul.f32 %v10562_v38, %v10389_v1  ;;  %v4248_v55 = vmul.f32 %v10562_v38, %v10401_v14  ;;  %v4249_v8 = vmul.f32 %v10562_v38, %v10414_v56  ;;  %v4250_v4 = vmul.f32 %v10562_v38, %v10418_v54 }
 0x7da   :  { %v4251_v43 = vmul.f32 %v10562_v38, %v10425_v30  ;;  %v4252_v27 = vmul.f32 %v10562_v38, %v10448_v40  ;;  %v4253_v25 = vmul.f32 %v10562_v38, %v10459_v21  ;;  %v4254_v1 = vmul.f32 %v10562_v38, %v10474_v9 }
 0x7db   :  { %v4255_v14 = vmul.f32 %v10562_v38, %v10502_v47  ;;  %v4256_v56 = vmul.f32 %v10562_v38, %v10491_v41  ;;  %v4257_v54 = vmul.f32 %v10562_v38, %v10499_v37  ;;  %v4258_v30 = vmul.f32 %v10562_v38, %v10519_v49 }
 0x7dc   :  { %v4259_v40 = vmul.f32 %v10562_v38, %v10533_v3  ;;  %v10630_v21 = vadd.f32 %v10599_v45, %v4230_v17  ;;  %v10633_v9 = vadd.f32 %v10599_v45, %v4231_v61  ;;  %v10636_v47 = vadd.f32 %v10599_v45, %v4232_v24 }
 0x7dd   :  { %v10639_v41 = vadd.f32 %v10599_v45, %v4233_v35  ;;  %v10642_v37 = vadd.f32 %v10599_v45, %v4234_v5  ;;  %v10645_v49 = vadd.f32 %v10599_v45, %v4235_v22  ;;  %v10648_v3 = vadd.f32 %v10599_v45, %v4236_v39 }
 0x7de   :  { %v10651_v15 = vadd.f32 %v10599_v45, %v4237_v12  ;;  %v10654_v2 = vadd.f32 %v10599_v45, %v4238_v28  ;;  %v10657_v33 = vadd.f32 %v10599_v45, %v4239_v31  ;;  %v10660_v60 = vadd.f32 %v10599_v45, %v4240_v42  ;;  %v13145_v28 = vld [vmem:[#allocation62_spill] sm:$0xff]  ;;  %v13146_v42 = vld [vmem:[#allocation69_spill] sm:$0xff] }
 0x7df   :  { %v10663_v34 = vadd.f32 %v10599_v45, %v4241_v6  ;;  %v10666_v62 = vadd.f32 %v10599_v45, %v4242_v36  ;;  %v10669_v57 = vadd.f32 %v10599_v45, %v4243_v11  ;;  %v10672_v53 = vadd.f32 %v10599_v45, %v4244_v63  ;;  %v13147_v36 = vld [vmem:[#allocation151_spill] sm:$0xff]  ;;  %v13148_v63 = vld [vmem:[#allocation10_spill] sm:$0xff] }
 0x7e0   :  { %v10675_v18 = vadd.f32 %v10599_v45, %v4245_v48  ;;  %v10678_v46 = vadd.f32 %v10599_v45, %v4246_v59  ;;  %v10681_v32 = vadd.f32 %v10599_v45, %v4247_v44  ;;  %v10684_v29 = vadd.f32 %v10599_v45, %v4248_v55 }
 0x7e1   :  { %v10687_v19 = vadd.f32 %v10599_v45, %v4249_v8  ;;  %v10690_v23 = vadd.f32 %v10599_v45, %v4250_v4  ;;  %v10693_v17 = vadd.f32 %v10599_v45, %v4251_v43  ;;  %v10696_v61 = vadd.f32 %v10599_v45, %v4252_v27 }
 0x7e2   :  { %v10699_v24 = vadd.f32 %v10599_v45, %v4253_v25  ;;  %v10702_v35 = vadd.f32 %v10599_v45, %v4254_v1  ;;  %v10705_v5 = vadd.f32 %v10599_v45, %v4255_v14  ;;  %v10708_v7 = vadd.f32 %v10599_v45, %v4256_v56 }
 0x7e3   :  { %v10711_v22 = vadd.f32 %v10599_v45, %v4257_v54  ;;  %v10714_v39 = vadd.f32 %v10599_v45, %v4258_v30  ;;  %v10717_v12 = vadd.f32 %v10599_v45, %v4259_v40  ;;  %v4196_v31 = vmul.f32 %v10562_v38, %v13145_v28 }
 0x7e4   :  { %v4197_v6 = vmul.f32 %v10562_v38, %v13146_v42  ;;  %v4198_v11 = vmul.f32 %v10562_v38, %v13147_v36  ;;  %v4199_v48 = vmul.f32 %v10562_v38, %v13148_v63  ;;  %v4200_v59 = vmul.f32 %v10562_v38, %v9644_v16 }
 0x7e5   :  { %v4201_v44 = vmul.f32 %v10562_v38, %v9663_v58  ;;  %v4202_v55 = vmul.f32 %v10562_v38, %v9681_v51  ;;  %v4203_v8 = vmul.f32 %v10562_v38, %v9697_v13  ;;  %v4204_v4 = vmul.f32 %v10562_v38, %v9714_v0 }
 0x7e6   :  { %v4264_v43 = vadd.f32 %v10599_v45, %v4196_v31  ;;  %v4265_v27 = vadd.f32 %v10599_v45, %v4197_v6  ;;  %v4266_v25 = vadd.f32 %v10599_v45, %v4198_v11  ;;  %v4267_v16 = vadd.f32 %v10599_v45, %v4199_v48 }
 0x7e7   :  { %v4268_v1 = vadd.f32 %v10599_v45, %v4200_v59  ;;  %v4269_v58 = vadd.f32 %v10599_v45, %v4201_v44  ;;  %v4205_v51 = vmul.f32 %v10562_v38, %v9725_v20  ;;  %v10746_v13 = vadd.f32 %v10599_v45, %v4202_v55 }
 0x7e8   :  { %v10749_v0 = vadd.f32 %v10599_v45, %v4203_v8  ;;  %v10752_v14 = vadd.f32 %v10599_v45, %v4204_v4  ;;  %v10756_v56 = vmul.f32 %v10562_v38, %v9743_v50  ;;  %v10760_v54 = vmul.f32 %v10562_v38, %v9760_v26 }
 0x7e9   :  { %v10763_v30 = vadd.f32 %v10599_v45, %v4205_v51  ;;  %v4328_v20 = vmax.f32 %v4264_v43, 0.0  ;;  %v4329_v40 = vmax.f32 %v4265_v27, 0.0  ;;  %v4330_v28 = vmax.f32 %v4266_v25, 0.0 }
 0x7ea   :  { %v4331_v31 = vmax.f32 %v4267_v16, 0.0  ;;  %v4332_v42 = vmax.f32 %v4268_v1, 0.0  ;;  %v4333_v6 = vmax.f32 %v4269_v58, 0.0  ;;  %v4334_v36 = vmax.f32 %v10746_v13, 0.0 }
 0x7eb   :  { %v4335_v11 = vmax.f32 %v10749_v0, 0.0  ;;  %v4336_v50 = vmax.f32 %v10752_v14, 0.0  ;;  %v4362_v63 = vmax.f32 %v10630_v21, 0.0  ;;  %v4363_v26 = vmax.f32 %v10633_v9, 0.0 }
 0x7ec   :  { %v4364_v48 = vmax.f32 %v10636_v47, 0.0  ;;  %v4365_v59 = vmax.f32 %v10639_v41, 0.0  ;;  %v4366_v44 = vmax.f32 %v10642_v37, 0.0  ;;  %v4367_v55 = vmax.f32 %v10645_v49, 0.0 }
 0x7ed   :  { %v4368_v8 = vmax.f32 %v10648_v3, 0.0  ;;  %v4369_v4 = vmax.f32 %v10651_v15, 0.0  ;;  %v4370_v43 = vmax.f32 %v10654_v2, 0.0  ;;  %v4371_v27 = vmax.f32 %v10657_v33, 0.0 }
 0x7ee   :  { %v4372_v21 = vmax.f32 %v10660_v60, 0.0  ;;  %v4373_v9 = vmax.f32 %v10663_v34, 0.0  ;;  %v4374_v47 = vmax.f32 %v10666_v62, 0.0  ;;  %v4375_v41 = vmax.f32 %v10669_v57, 0.0 }
 0x7ef   :  { %v4376_v37 = vmax.f32 %v10672_v53, 0.0  ;;  %v4377_v49 = vmax.f32 %v10675_v18, 0.0  ;;  %v4378_v3 = vmax.f32 %v10678_v46, 0.0  ;;  %v4379_v15 = vmax.f32 %v10681_v32, 0.0 }
 0x7f0   :  { %v4380_v2 = vmax.f32 %v10684_v29, 0.0  ;;  %v4392_v25 = vpack.c.bf16 %v4329_v40, %v4328_v20  ;;  %v4393_v33 = vpack.c.bf16 %v4331_v31, %v4330_v28  ;;  %v4381_v60 = vmax.f32 %v10687_v19, 0.0  ;;  %v13149_v40 = vld [vmem:[#allocation174_spill] sm:$0xff] }
 0x7f1   :  { %v4382_v34 = vmax.f32 %v10690_v23, 0.0  ;;  %v4383_v62 = vmax.f32 %v10693_v17, 0.0  ;;  %v4384_v57 = vmax.f32 %v10696_v61, 0.0  ;;  %v4385_v53 = vmax.f32 %v10699_v24, 0.0 }
 0x7f2   :  { %v4386_v18 = vmax.f32 %v10702_v35, 0.0  ;;  %v4387_v46 = vmax.f32 %v10705_v5, 0.0  ;;  %5860 = vmatprep.mubr.msk.bf16.mxu0 %vm283_vm0, %v4392_v25  ;;  %v4394_v32 = vpack.c.bf16 %v4333_v6, %v4332_v42  ;;  %v4388_v29 = vmax.f32 %v10708_v7, 0.0  ;;  %v13154_v25 = vld [vmem:[#allocation74_spill] sm:$0xff] }
 0x7f3   :  { %v4389_v16 = vmax.f32 %v10711_v22, 0.0  ;;  %v4390_v19 = vmax.f32 %v10714_v39, 0.0  ;;  %v4391_v23 = vmax.f32 %v10717_v12, 0.0  ;;  %5861 = vmatmul.mubr.msk.bf16.vlgmr.msra.gmra.mrb[32].mxu0 %vm283_vm0, %v4393_v33  ;;  %v4337_v17 = vmax.f32 %v10763_v30, 0.0 }
 0x7f4   :  { %5864 = vmatprep.mubr.msk.bf16.mxu0 %vm283_vm0, %v4394_v32  ;;  %v10802_v61 = vpack.c.bf16 %v4363_v26, %v4362_v63  ;;  %v10804_v24 = vpack.c.bf16 %v4365_v59, %v4364_v48  ;;  %v10806_v35 = vpack.c.bf16 %v4367_v55, %v4366_v44  ;;  %v10808_v5 = vpack.c.bf16 %v4369_v4, %v4368_v8  ;;  %v13150_v8 = vld [vmem:[#allocation72_spill] sm:$0xff]  ;;  %v13151_v4 = vld [vmem:[#allocation186_spill] sm:$0xff] }
 0x7f5   :  { %v10810_v7 = vpack.c.bf16 %v4371_v27, %v4370_v43  ;;  %v10812_v22 = vpack.c.bf16 %v4373_v9, %v4372_v21  ;;  %v10814_v39 = vpack.c.bf16 %v4375_v41, %v4374_v47  ;;  %v10816_v12 = vpack.c.bf16 %v4377_v49, %v4376_v37  ;;  %v13153_v43 = vld [vmem:[#allocation97_spill] sm:$0xff] }
 0x7f6   :  { %v10818_v1 = vpack.c.bf16 %v4379_v15, %v4378_v3  ;;  %v10820_v58 = vpack.c.bf16 %v4381_v60, %v4380_v2  ;;  %v10822_v51 = vpack.c.bf16 %v4383_v62, %v4382_v34  ;;  %v10824_v13 = vpack.c.bf16 %v4385_v53, %v4384_v57  ;;  %v13155_v60 = vld [vmem:[#allocation177_spill] sm:$0xff]  ;;  %v13156_v62 = vld [vmem:[#allocation155_spill] sm:$0xff] }
 0x7f7   :  { %v10826_v0 = vpack.c.bf16 %v4387_v46, %v4386_v18  ;;  %v10828_v14 = vpack.c.bf16 %v4389_v16, %v4388_v29  ;;  %v10830_v30 = vpack.c.bf16 %v4391_v23, %v4390_v19  ;;  %v4208_v20 = vmul.f32 %v10562_v38, %v9775_v10  ;;  %v13157_v53 = vld [vmem:[#allocation21_spill] sm:$0xff] }
 0x7f8   :  { %v4209_v28 = vmul.f32 %v10562_v38, %v13149_v40  ;;  %v4274_v31 = vadd.f32 %v10599_v45, %v10756_v56  ;;  %v4275_v42 = vadd.f32 %v10599_v45, %v10760_v54  ;;  %v4395_v6 = vpack.c.bf16 %v4335_v11, %v4334_v36  ;;  %v13152_v36 = vld [vmem:[#allocation71_spill] sm:$0xff] }
 0x7f9   :  { %v4276_v63 = vadd.f32 %v10599_v45, %v4208_v20  ;;  %v4396_v48 = vpack.c.bf16 %v4337_v17, %v4336_v50  ;;  %v4210_v56 = vmul.f32 %v10562_v38, %v13150_v8  ;;  %v4211_v54 = vmul.f32 %v10562_v38, %v13151_v4 }
 0x7fa   :  { %v4277_v26 = vadd.f32 %v10599_v45, %v4209_v28  ;;  %v4338_v10 = vmax.f32 %v4274_v31, 0.0  ;;  %v4339_v59 = vmax.f32 %v4275_v42, 0.0  ;;  %v4212_v11 = vmul.f32 %v10562_v38, %v13152_v36  ;;  %v13158_v31 = vld [vmem:[#allocation153_spill] sm:$0xff] }
 0x7fb   :  { %5865 = vmatmul.mubr.msk.bf16.gmra.mrb[36].mxu0 %vm283_vm0, %v4395_v6  ;;  %v4340_v44 = vmax.f32 %v4276_v63, 0.0  ;;  %v4213_v50 = vmul.f32 %v10562_v38, %v13153_v43  ;;  %v4278_v27 = vadd.f32 %v10599_v45, %v4210_v56  ;;  %v4279_v21 = vadd.f32 %v10599_v45, %v4211_v54  ;;  %v13159_v6 = vld [vmem:[#allocation161_spill] sm:$0xff] }
 0x7fc   :  { %5868 = vmatprep.mubr.msk.bf16.mxu0 %vm283_vm0, %v4396_v48  ;;  %v4341_v55 = vmax.f32 %v4277_v26, 0.0  ;;  %v4397_v9 = vpack.c.bf16 %v4339_v59, %v4338_v10  ;;  %v4280_v47 = vadd.f32 %v10599_v45, %v4212_v11  ;;  %v4214_v33 = vmul.f32 %v10562_v38, %v13154_v25  ;;  %v13160_v26 = vld [vmem:[#allocation171_spill] sm:$0xff]  ;;  %v13161_v10 = vld [vmem:[#allocation158_spill] sm:$0xff] }
 0x7fd   :  { %v4281_v41 = vadd.f32 %v10599_v45, %v4213_v50  ;;  %v4342_v49 = vmax.f32 %v4278_v27, 0.0  ;;  %v4343_v3 = vmax.f32 %v4279_v21, 0.0  ;;  %v4215_v34 = vmul.f32 %v10562_v38, %v13155_v60  ;;  %v13162_v27 = vld [vmem:[#allocation11_spill] sm:$0xff] }
 0x7fe   :  { %v4398_v37 = vpack.c.bf16 %v4341_v55, %v4340_v44  ;;  %v4344_v15 = vmax.f32 %v4280_v47, 0.0  ;;  %v4216_v57 = vmul.f32 %v10562_v38, %v13156_v62  ;;  %v4217_v18 = vmul.f32 %v10562_v38, %v13157_v53 }
 0x7ff   :  { %v4345_v2 = vmax.f32 %v4281_v41, 0.0  ;;  %v4282_v46 = vadd.f32 %v10599_v45, %v4214_v33  ;;  %v4283_v32 = vadd.f32 %v10599_v45, %v4215_v34  ;;  %v4399_v29 = vpack.c.bf16 %v4343_v3, %v4342_v49  ;;  %v13164_v41 = vld [vmem:[#allocation73_spill] sm:$0xff]  ;;  %v13165_v49 = vld [vmem:[#allocation168_spill] sm:$0xff] }
 0x800   :  { %v4284_v16 = vadd.f32 %v10599_v45, %v4216_v57  ;;  %v4285_v19 = vadd.f32 %v10599_v45, %v4217_v18  ;;  %v4218_v42 = vmul.f32 %v10562_v38, %v13158_v31  ;;  %v4219_v63 = vmul.f32 %v10562_v38, %v13159_v6 }
 0x801   :  { %v4400_v23 = vpack.c.bf16 %v4345_v2, %v4344_v15  ;;  %v4346_v17 = vmax.f32 %v4282_v46, 0.0  ;;  %v4347_v20 = vmax.f32 %v4283_v32, 0.0  ;;  %v4220_v48 = vmul.f32 %v10562_v38, %v13160_v26  ;;  %v13166_v46 = vld [vmem:[#allocation70_spill] sm:$0xff] }
 0x802   :  { %v4348_v40 = vmax.f32 %v4284_v16, 0.0  ;;  %v4349_v28 = vmax.f32 %v4285_v19, 0.0  ;;  %v4221_v59 = vmul.f32 %v10562_v38, %v13161_v10  ;;  %v4286_v44 = vadd.f32 %v10599_v45, %v4218_v42  ;;  %v13168_v19 = vld [vmem:[#allocation68_spill] sm:$0xff] }
 0x803   :  { %5869 = vmatmul.mubr.msk.bf16.gmra.mrb[40].mxu0 %vm283_vm0, %v4397_v9  ;;  %v4287_v55 = vadd.f32 %v10599_v45, %v4219_v63  ;;  %v4401_v8 = vpack.c.bf16 %v4347_v20, %v4346_v17  ;;  %v4288_v56 = vadd.f32 %v10599_v45, %v4220_v48  ;;  %v4222_v21 = vmul.f32 %v10562_v38, %v13162_v27  ;;  %v13163_v9 = vld [vmem:[#allocation93_spill] sm:$0xff]  ;;  %v13169_v17 = vld [vmem:[#allocation167_spill] sm:$0xff] }
 0x804   :  { %5872 = vmatprep.mubr.msk.bf16.mxu0 %vm283_vm0, %v4398_v37  ;;  %v4289_v4 = vadd.f32 %v10599_v45, %v4221_v59  ;;  %v4402_v54 = vpack.c.bf16 %v4349_v28, %v4348_v40  ;;  %v4350_v36 = vmax.f32 %v4286_v44, 0.0  ;;  %v4223_v47 = vmul.f32 %v10562_v38, %v13163_v9 }
 0x805   :  { %v4351_v11 = vmax.f32 %v4287_v55, 0.0  ;;  %v4352_v43 = vmax.f32 %v4288_v56, 0.0  ;;  %v4224_v37 = vmul.f32 %v10562_v38, %v13164_v41  ;;  %v4225_v3 = vmul.f32 %v10562_v38, %v13165_v49 }
 0x806   :  { %v4353_v50 = vmax.f32 %v4289_v4, 0.0  ;;  %v4290_v15 = vadd.f32 %v10599_v45, %v4222_v21  ;;  %v4291_v2 = vadd.f32 %v10599_v45, %v4223_v47  ;;  %v4226_v32 = vmul.f32 %v10562_v38, %v13166_v46 }
 0x807   :  { %v4403_v25 = vpack.c.bf16 %v4351_v11, %v4350_v36  ;;  %v4292_v33 = vadd.f32 %v10599_v45, %v4224_v37  ;;  %v4293_v60 = vadd.f32 %v10599_v45, %v4225_v3  ;;  %v4229_v20 = vmul.f32 %v10562_v38, %v13169_v17 }
 0x808   :  { %v4404_v34 = vpack.c.bf16 %v4353_v50, %v4352_v43  ;;  %v4354_v62 = vmax.f32 %v4290_v15, 0.0  ;;  %v4355_v57 = vmax.f32 %v4291_v2, 0.0  ;;  %v4294_v40 = vadd.f32 %v10599_v45, %v4226_v32 }
 0x809   :  { %v4356_v53 = vmax.f32 %v4292_v33, 0.0  ;;  %v4357_v18 = vmax.f32 %v4293_v60, 0.0  ;;  %v4297_v6 = vadd.f32 %v10599_v45, %v4229_v20 }
 0x80a   :  { %v4405_v31 = vpack.c.bf16 %v4355_v57, %v4354_v62  ;;  %v4358_v26 = vmax.f32 %v4294_v40, 0.0 }
 0x80b   :  { %5873 = vmatmul.mubr.msk.bf16.gmra.mrb[44].mxu0 %vm283_vm0, %v4399_v29  ;;  %v13167_v29 = vld [vmem:[#allocation166_spill] sm:$0xff]  ;;  %v4406_v63 = vpack.c.bf16 %v4357_v18, %v4356_v53  ;;  %v4361_v59 = vmax.f32 %v4297_v6, 0.0 }
 0x80c   :  { %5876 = vmatprep.mubr.msk.bf16.mxu0 %vm283_vm0, %v4400_v23  ;;  %v4227_v16 = vmul.f32 %v10562_v38, %v13167_v29  ;;  %v4228_v23 = vmul.f32 %v10562_v38, %v13168_v19 }
 0x80e   :  { %v4295_v28 = vadd.f32 %v10599_v45, %v4227_v16  ;;  %v4296_v42 = vadd.f32 %v10599_v45, %v4228_v23 }
 0x810   :  { %v4359_v48 = vmax.f32 %v4295_v28, 0.0  ;;  %v4360_v10 = vmax.f32 %v4296_v42, 0.0 }
 0x812   :  { %v4407_v44 = vpack.c.bf16 %v4359_v48, %v4358_v26  ;;  %v4408_v38 = vpack.c.bf16 %v4361_v59, %v4360_v10 }
 0x813   :  { %5877 = vmatmul.mubr.msk.bf16.gmra.mrb[48].mxu0 %vm283_vm0, %v4401_v8 }
 0x814   :  { %5880 = vmatprep.mubr.msk.bf16.mxu0 %vm283_vm0, %v4402_v54 }
 0x81b   :  { %5881 = vmatmul.mubr.msk.bf16.gmra.mrb[52].mxu0 %vm283_vm0, %v4403_v25 }
 0x81c   :  { %5884 = vmatprep.mubr.msk.bf16.mxu0 %vm283_vm0, %v4404_v34 }
 0x823   :  { %5885 = vmatmul.mubr.msk.bf16.gmra.mrb[56].mxu0 %vm283_vm0, %v4405_v31 }
 0x824   :  { %5888 = vmatprep.mubr.msk.bf16.mxu0 %vm283_vm0, %v4406_v63 }
 0x82b   :  { %5889 = vmatmul.mubr.msk.bf16.gmra.mrb[60].mxu0 %vm283_vm0, %v4407_v44 }
 0x82c   :  { %5892 = vmatprep.mubr.msk.bf16.mxu0 %vm283_vm0, %v4408_v38 }
 0x833   :  { %5893 = vmatmul.mubr.msk.bf16.gmra.mrb[64].mxu0 %vm283_vm0, %v10802_v61 }
 0x834   :  { %5896 = vmatprep.mubr.msk.bf16.mxu0 %vm283_vm0, %v10804_v24 }
 0x83b   :  { %5897 = vmatmul.mubr.msk.bf16.gmra.mrb[68].mxu0 %vm283_vm0, %v10806_v35 }
 0x83c   :  { %5900 = vmatprep.mubr.msk.bf16.mxu0 %vm283_vm0, %v10808_v5 }
 0x843   :  { %5901 = vmatmul.mubr.msk.bf16.gmra.mrb[72].mxu0 %vm283_vm0, %v10810_v7 }
 0x844   :  { %5904 = vmatprep.mubr.msk.bf16.mxu0 %vm283_vm0, %v10812_v22 }
 0x84b   :  { %5905 = vmatmul.mubr.msk.bf16.gmra.mrb[76].mxu0 %vm283_vm0, %v10814_v39 }
 0x84c   :  { %5908 = vmatprep.mubr.msk.bf16.mxu0 %vm283_vm0, %v10816_v12 }
 0x853   :  { %5909 = vmatmul.mubr.msk.bf16.gmra.mrb[80].mxu0 %vm283_vm0, %v10818_v1 }
 0x854   :  { %5912 = vmatprep.mubr.msk.bf16.mxu0 %vm283_vm0, %v10820_v58 }
 0x85b   :  { %5913 = vmatmul.mubr.msk.bf16.gmra.mrb[84].mxu0 %vm283_vm0, %v10822_v51 }
 0x85c   :  { %5916 = vmatprep.mubr.msk.bf16.mxu0 %vm283_vm0, %v10824_v13 }
 0x863   :  { %5917 = vmatmul.mubr.msk.bf16.gmra.mrb[88].mxu0 %vm283_vm0, %v10826_v0 }
 0x864   :  { %5920 = vmatprep.mubr.msk.bf16.mxu0 %vm283_vm0, %v10828_v14 }
 0x86b   :  { %5921 = vmatmul.mubr.msk.bf16.gmra.mrb[92].mxu0 %vm283_vm0, %v10830_v30 }
 0x8c6   :  { %v10946_v45 = vpop.f32.mrb[32].mxu0 }
 0x8c7   :  { %v10948_v61 = vpop.f32.mrb[33].mxu0  ;;  %v4953_v7 = vmul.f32 %v10946_v45, %v10946_v45  ;;  %v4821_v58 = vsel %vm4817_vm6, %v10946_v45, 0.0 }
 0x8c8   :  { %v4951_v24 = vmul.f32 %v10948_v61, %v10948_v61  ;;  %v10952_v35 = vpop.f32.mrb[34].mxu0  ;;  %v4818_v22 = vsel %vm4817_vm6, %v10948_v61, 0.0 }
 0x8c9   :  { %v10954_v5 = vpop.f32.mrb[35].mxu0  ;;  %v4954_v13 = vmul.f32 %v10952_v35, %v10952_v35  ;;  %v5018_v55 = vsel %vm4817_vm6, %v4953_v7, 0.0  ;;  %v4823_v8 = vsel %vm4817_vm6, %v10952_v35, 0.0 }
 0x8ca   :  { %v4819_v39 = vsel %vm4817_vm6, %v10954_v5, 0.0  ;;  %v4952_v12 = vmul.f32 %v10954_v5, %v10954_v5  ;;  %v5015_v51 = vsel %vm4817_vm6, %v4951_v24, 0.0 }
 0x8cb   :  { %v4820_v1 = vadd.f32 %v4819_v39, %v4818_v22  ;;  %v5020_v11 = vsel %vm4817_vm6, %v4954_v13, 0.0 }
 0x8cc   :  { %v5016_v0 = vsel %vm4817_vm6, %v4952_v12, 0.0 }
 0x8cd   :  { %v4822_v14 = vadd.f32 %v4821_v58, %v4820_v1  ;;  %v5017_v30 = vadd.f32 %v5016_v0, %v5015_v51 }
 0x8ce   :  { %v10973_v56 = vpop.f32.mrb[36].mxu0 }
 0x8cf   :  { %v5019_v4 = vadd.f32 %v5018_v55, %v5017_v30  ;;  %v10975_v54 = vpop.f32.mrb[37].mxu0  ;;  %v4824_v36 = vadd.f32 %v4823_v8, %v4822_v14  ;;  %v4957_v41 = vmul.f32 %v10973_v56, %v10973_v56  ;;  %v4829_v25 = vsel %vm4817_vm6, %v10973_v56, 0.0 }
 0x8d0   :  { %v4825_v43 = vsel %vm4817_vm6, %v10975_v54, 0.0  ;;  %v4955_v50 = vmul.f32 %v10975_v54, %v10975_v54  ;;  %v10982_v27 = vpop.f32.mrb[38].mxu0 }
 0x8d1   :  { %v4826_v21 = vadd.f32 %v4825_v43, %v4824_v36  ;;  %v5021_v9 = vadd.f32 %v5020_v11, %v5019_v4  ;;  %v10984_v47 = vpop.f32.mrb[39].mxu0  ;;  %v4958_v33 = vmul.f32 %v10982_v27, %v10982_v27  ;;  %v5026_v57 = vsel %vm4817_vm6, %v4957_v41, 0.0 }
 0x8d2   :  { %v5022_v37 = vsel %vm4817_vm6, %v4955_v50, 0.0  ;;  %v4827_v49 = vsel %vm4817_vm6, %v10984_v47, 0.0  ;;  %v4956_v3 = vmul.f32 %v10984_v47, %v10984_v47  ;;  %v4831_v53 = vsel %vm4817_vm6, %v10982_v27, 0.0 }
 0x8d3   :  { %v5023_v15 = vadd.f32 %v5022_v37, %v5021_v9  ;;  %v4828_v2 = vadd.f32 %v4827_v49, %v4826_v21  ;;  %v5028_v16 = vsel %vm4817_vm6, %v4958_v33, 0.0 }
 0x8d4   :  { %v5024_v60 = vsel %vm4817_vm6, %v4956_v3, 0.0 }
 0x8d5   :  { %v4830_v34 = vadd.f32 %v4829_v25, %v4828_v2  ;;  %v5025_v62 = vadd.f32 %v5024_v60, %v5023_v15 }
 0x8d6   :  { %v11001_v18 = vpop.f32.mrb[40].mxu0 }
 0x8d7   :  { %v5027_v46 = vadd.f32 %v5026_v57, %v5025_v62  ;;  %v11003_v32 = vpop.f32.mrb[41].mxu0  ;;  %v4832_v29 = vadd.f32 %v4831_v53, %v4830_v34  ;;  %v4961_v31 = vmul.f32 %v11001_v18, %v11001_v18  ;;  %v4837_v10 = vsel %vm4817_vm6, %v11001_v18, 0.0 }
 0x8d8   :  { %v4833_v19 = vsel %vm4817_vm6, %v11003_v32, 0.0  ;;  %v4959_v23 = vmul.f32 %v11003_v32, %v11003_v32  ;;  %v11010_v17 = vpop.f32.mrb[42].mxu0 }
 0x8d9   :  { %v4834_v20 = vadd.f32 %v4833_v19, %v4832_v29  ;;  %v5029_v40 = vadd.f32 %v5028_v16, %v5027_v46  ;;  %v11012_v28 = vpop.f32.mrb[43].mxu0  ;;  %v4962_v59 = vmul.f32 %v11010_v17, %v11010_v17  ;;  %v5034_v7 = vsel %vm4817_vm6, %v4961_v31, 0.0 }
 0x8da   :  { %v5030_v42 = vsel %vm4817_vm6, %v4959_v23, 0.0  ;;  %v4835_v6 = vsel %vm4817_vm6, %v11012_v28, 0.0  ;;  %v4960_v63 = vmul.f32 %v11012_v28, %v11012_v28  ;;  %v4839_v22 = vsel %vm4817_vm6, %v11010_v17, 0.0 }
 0x8db   :  { %v5031_v26 = vadd.f32 %v5030_v42, %v5029_v40  ;;  %v4836_v48 = vadd.f32 %v4835_v6, %v4834_v20  ;;  %v5036_v51 = vsel %vm4817_vm6, %v4962_v59, 0.0 }
 0x8dc   :  { %v5032_v44 = vsel %vm4817_vm6, %v4960_v63, 0.0 }
 0x8dd   :  { %v4838_v38 = vadd.f32 %v4837_v10, %v4836_v48  ;;  %v5033_v24 = vadd.f32 %v5032_v44, %v5031_v26 }
 0x8de   :  { %v11029_v39 = vpop.f32.mrb[44].mxu0 }
 0x8df   :  { %v5035_v12 = vadd.f32 %v5034_v7, %v5033_v24  ;;  %v11031_v1 = vpop.f32.mrb[45].mxu0  ;;  %v4840_v58 = vadd.f32 %v4839_v22, %v4838_v38  ;;  %v4965_v4 = vmul.f32 %v11029_v39, %v11029_v39  ;;  %v4845_v9 = vsel %vm4817_vm6, %v11029_v39, 0.0 }
 0x8e0   :  { %v4841_v13 = vsel %vm4817_vm6, %v11031_v1, 0.0  ;;  %v4963_v0 = vmul.f32 %v11031_v1, %v11031_v1  ;;  %v11038_v14 = vpop.f32.mrb[46].mxu0 }
 0x8e1   :  { %v4842_v30 = vadd.f32 %v4841_v13, %v4840_v58  ;;  %v5037_v55 = vadd.f32 %v5036_v51, %v5035_v12  ;;  %v11040_v8 = vpop.f32.mrb[47].mxu0  ;;  %v4966_v41 = vmul.f32 %v11038_v14, %v11038_v14  ;;  %v5042_v15 = vsel %vm4817_vm6, %v4965_v4, 0.0 }
 0x8e2   :  { %v5038_v36 = vsel %vm4817_vm6, %v4963_v0, 0.0  ;;  %v4843_v11 = vsel %vm4817_vm6, %v11040_v8, 0.0  ;;  %v4964_v43 = vmul.f32 %v11040_v8, %v11040_v8  ;;  %v4847_v2 = vsel %vm4817_vm6, %v11038_v14, 0.0 }
 0x8e3   :  { %v5039_v50 = vadd.f32 %v5038_v36, %v5037_v55  ;;  %v4844_v21 = vadd.f32 %v4843_v11, %v4842_v30  ;;  %v5044_v62 = vsel %vm4817_vm6, %v4966_v41, 0.0 }
 0x8e4   :  { %v5040_v37 = vsel %vm4817_vm6, %v4964_v43, 0.0 }
 0x8e5   :  { %v4846_v49 = vadd.f32 %v4845_v9, %v4844_v21  ;;  %v5041_v3 = vadd.f32 %v5040_v37, %v5039_v50 }
 0x8e6   :  { %v11057_v25 = vpop.f32.mrb[48].mxu0 }
 0x8e7   :  { %v5043_v33 = vadd.f32 %v5042_v15, %v5041_v3  ;;  %v11059_v60 = vpop.f32.mrb[49].mxu0  ;;  %v4848_v34 = vadd.f32 %v4847_v2, %v4846_v49  ;;  %v4969_v23 = vmul.f32 %v11057_v25, %v11057_v25  ;;  %v4853_v63 = vsel %vm4817_vm6, %v11057_v25, 0.0 }
 0x8e8   :  { %v4849_v57 = vsel %vm4817_vm6, %v11059_v60, 0.0  ;;  %v4967_v53 = vmul.f32 %v11059_v60, %v11059_v60  ;;  %v11066_v46 = vpop.f32.mrb[50].mxu0 }
 0x8e9   :  { %v4850_v29 = vadd.f32 %v4849_v57, %v4848_v34  ;;  %v5045_v16 = vadd.f32 %v5044_v62, %v5043_v33  ;;  %v11068_v19 = vpop.f32.mrb[51].mxu0  ;;  %v4970_v26 = vmul.f32 %v11066_v46, %v11066_v46  ;;  %v5050_v44 = vsel %vm4817_vm6, %v4969_v23, 0.0 }
 0x8ea   :  { %v5046_v20 = vsel %vm4817_vm6, %v4967_v53, 0.0  ;;  %v4851_v40 = vsel %vm4817_vm6, %v11068_v19, 0.0  ;;  %v4968_v31 = vmul.f32 %v11068_v19, %v11068_v19  ;;  %v4855_v38 = vsel %vm4817_vm6, %v11066_v46, 0.0 }
 0x8eb   :  { %v5047_v42 = vadd.f32 %v5046_v20, %v5045_v16  ;;  %v4852_v6 = vadd.f32 %v4851_v40, %v4850_v29  ;;  %v5052_v58 = vsel %vm4817_vm6, %v4970_v26, 0.0 }
 0x8ec   :  { %v5048_v48 = vsel %vm4817_vm6, %v4968_v31, 0.0 }
 0x8ed   :  { %v4854_v10 = vadd.f32 %v4853_v63, %v4852_v6  ;;  %v5049_v59 = vadd.f32 %v5048_v48, %v5047_v42 }
 0x8ee   :  { %v11085_v24 = vpop.f32.mrb[52].mxu0 }
 0x8ef   :  { %v5051_v7 = vadd.f32 %v5050_v44, %v5049_v59  ;;  %v11087_v22 = vpop.f32.mrb[53].mxu0  ;;  %v4856_v12 = vadd.f32 %v4855_v38, %v4854_v10  ;;  %v4973_v36 = vmul.f32 %v11085_v24, %v11085_v24  ;;  %v4861_v41 = vsel %vm4817_vm6, %v11085_v24, 0.0 }
 0x8f0   :  { %v4857_v51 = vsel %vm4817_vm6, %v11087_v22, 0.0  ;;  %v4971_v13 = vmul.f32 %v11087_v22, %v11087_v22  ;;  %v11094_v0 = vpop.f32.mrb[54].mxu0 }
 0x8f1   :  { %v4858_v30 = vadd.f32 %v4857_v51, %v4856_v12  ;;  %v5053_v55 = vadd.f32 %v5052_v58, %v5051_v7  ;;  %v11096_v4 = vpop.f32.mrb[55].mxu0  ;;  %v4974_v37 = vmul.f32 %v11094_v0, %v11094_v0  ;;  %v5058_v2 = vsel %vm4817_vm6, %v4973_v36, 0.0 }
 0x8f2   :  { %v5054_v11 = vsel %vm4817_vm6, %v4971_v13, 0.0  ;;  %v4859_v43 = vsel %vm4817_vm6, %v11096_v4, 0.0  ;;  %v4972_v50 = vmul.f32 %v11096_v4, %v11096_v4  ;;  %v4863_v33 = vsel %vm4817_vm6, %v11094_v0, 0.0 }
 0x8f3   :  { %v5055_v21 = vadd.f32 %v5054_v11, %v5053_v55  ;;  %v4860_v9 = vadd.f32 %v4859_v43, %v4858_v30  ;;  %v5060_v29 = vsel %vm4817_vm6, %v4974_v37, 0.0 }
 0x8f4   :  { %v5056_v49 = vsel %vm4817_vm6, %v4972_v50, 0.0 }
 0x8f5   :  { %v4862_v3 = vadd.f32 %v4861_v41, %v4860_v9  ;;  %v5057_v15 = vadd.f32 %v5056_v49, %v5055_v21 }
 0x8f6   :  { %v11113_v34 = vpop.f32.mrb[56].mxu0 }
 0x8f7   :  { %v5059_v62 = vadd.f32 %v5058_v2, %v5057_v15  ;;  %v11115_v57 = vpop.f32.mrb[57].mxu0  ;;  %v4864_v53 = vadd.f32 %v4863_v33, %v4862_v3  ;;  %v4977_v6 = vmul.f32 %v11113_v34, %v11113_v34  ;;  %v4869_v44 = vsel %vm4817_vm6, %v11113_v34, 0.0 }
 0x8f8   :  { %v4865_v16 = vsel %vm4817_vm6, %v11115_v57, 0.0  ;;  %v4975_v23 = vmul.f32 %v11115_v57, %v11115_v57  ;;  %v11122_v20 = vpop.f32.mrb[58].mxu0 }
 0x8f9   :  { %v4866_v40 = vadd.f32 %v4865_v16, %v4864_v53  ;;  %v5061_v31 = vadd.f32 %v5060_v29, %v5059_v62  ;;  %v11124_v42 = vpop.f32.mrb[59].mxu0  ;;  %v4978_v38 = vmul.f32 %v11122_v20, %v11122_v20  ;;  %v5066_v51 = vsel %vm4817_vm6, %v4977_v6, 0.0 }
 0x8fa   :  { %v5062_v63 = vsel %vm4817_vm6, %v4975_v23, 0.0  ;;  %v4867_v26 = vsel %vm4817_vm6, %v11124_v42, 0.0  ;;  %v4976_v48 = vmul.f32 %v11124_v42, %v11124_v42  ;;  %v4871_v13 = vsel %vm4817_vm6, %v11122_v20, 0.0 }
 0x8fb   :  { %v5063_v10 = vadd.f32 %v5062_v63, %v5061_v31  ;;  %v4868_v59 = vadd.f32 %v4867_v26, %v4866_v40  ;;  %v5068_v43 = vsel %vm4817_vm6, %v4978_v38, 0.0 }
 0x8fc   :  { %v5064_v7 = vsel %vm4817_vm6, %v4976_v48, 0.0 }
 0x8fd   :  { %v4870_v12 = vadd.f32 %v4869_v44, %v4868_v59  ;;  %v5065_v58 = vadd.f32 %v5064_v7, %v5063_v10 }
 0x8fe   :  { %v11141_v30 = vpop.f32.mrb[60].mxu0 }
 0x8ff   :  { %v5067_v55 = vadd.f32 %v5066_v51, %v5065_v58  ;;  %v11143_v36 = vpop.f32.mrb[61].mxu0  ;;  %v4872_v11 = vadd.f32 %v4871_v13, %v4870_v12  ;;  %v4981_v3 = vmul.f32 %v11141_v30, %v11141_v30  ;;  %v4877_v29 = vsel %vm4817_vm6, %v11141_v30, 0.0 }
 0x900   :  { %v4873_v50 = vsel %vm4817_vm6, %v11143_v36, 0.0  ;;  %v4979_v21 = vmul.f32 %v11143_v36, %v11143_v36  ;;  %v11150_v9 = vpop.f32.mrb[62].mxu0 }
 0x901   :  { %v4874_v41 = vadd.f32 %v4873_v50, %v4872_v11  ;;  %v5069_v37 = vadd.f32 %v5068_v43, %v5067_v55  ;;  %v11152_v49 = vpop.f32.mrb[63].mxu0  ;;  %v4982_v16 = vmul.f32 %v11150_v9, %v11150_v9  ;;  %v5074_v6 = vsel %vm4817_vm6, %v4981_v3, 0.0 }
 0x902   :  { %v5070_v15 = vsel %vm4817_vm6, %v4979_v21, 0.0  ;;  %v4875_v2 = vsel %vm4817_vm6, %v11152_v49, 0.0  ;;  %v4980_v33 = vmul.f32 %v11152_v49, %v11152_v49  ;;  %v4879_v63 = vsel %vm4817_vm6, %v11150_v9, 0.0 }
 0x903   :  { %v5071_v62 = vadd.f32 %v5070_v15, %v5069_v37  ;;  %v4876_v53 = vadd.f32 %v4875_v2, %v4874_v41  ;;  %v5076_v44 = vsel %vm4817_vm6, %v4982_v16, 0.0 }
 0x904   :  { %v5072_v23 = vsel %vm4817_vm6, %v4980_v33, 0.0 }
 0x905   :  { %v4878_v40 = vadd.f32 %v4877_v29, %v4876_v53  ;;  %v5073_v31 = vadd.f32 %v5072_v23, %v5071_v62 }
 0x906   :  { %v11169_v26 = vpop.f32.mrb[64].mxu0 }
 0x907   :  { %v5075_v48 = vadd.f32 %v5074_v6, %v5073_v31  ;;  %v11171_v10 = vpop.f32.mrb[65].mxu0  ;;  %v4880_v59 = vadd.f32 %v4879_v63, %v4878_v40  ;;  %v4985_v55 = vmul.f32 %v11169_v26, %v11169_v26  ;;  %v4885_v37 = vsel %vm4817_vm6, %v11169_v26, 0.0 }
 0x908   :  { %v4881_v38 = vsel %vm4817_vm6, %v11171_v10, 0.0  ;;  %v4983_v7 = vmul.f32 %v11171_v10, %v11171_v10  ;;  %v11178_v12 = vpop.f32.mrb[66].mxu0 }
 0x909   :  { %v4882_v58 = vadd.f32 %v4881_v38, %v4880_v59  ;;  %v5077_v51 = vadd.f32 %v5076_v44, %v5075_v48  ;;  %v11180_v13 = vpop.f32.mrb[67].mxu0  ;;  %v4986_v3 = vmul.f32 %v11178_v12, %v11178_v12  ;;  %v5082_v62 = vsel %vm4817_vm6, %v4985_v55, 0.0 }
 0x90a   :  { %v5078_v11 = vsel %vm4817_vm6, %v4983_v7, 0.0  ;;  %v4883_v43 = vsel %vm4817_vm6, %v11180_v13, 0.0  ;;  %v4984_v50 = vmul.f32 %v11180_v13, %v11180_v13  ;;  %v4887_v53 = vsel %vm4817_vm6, %v11178_v12, 0.0 }
 0x90b   :  { %v5079_v21 = vadd.f32 %v5078_v11, %v5077_v51  ;;  %v4884_v41 = vadd.f32 %v4883_v43, %v4882_v58  ;;  %v5084_v31 = vsel %vm4817_vm6, %v4986_v3, 0.0 }
 0x90c   :  { %v5080_v15 = vsel %vm4817_vm6, %v4984_v50, 0.0 }
 0x90d   :  { %v4886_v2 = vadd.f32 %v4885_v37, %v4884_v41  ;;  %v5081_v33 = vadd.f32 %v5080_v15, %v5079_v21 }
 0x90e   :  { %v11197_v29 = vpop.f32.mrb[68].mxu0 }
 0x90f   :  { %v5083_v16 = vadd.f32 %v5082_v62, %v5081_v33  ;;  %v11199_v23 = vpop.f32.mrb[69].mxu0  ;;  %v4888_v40 = vadd.f32 %v4887_v53, %v4886_v2  ;;  %v4989_v7 = vmul.f32 %v11197_v29, %v11197_v29  ;;  %v4893_v50 = vsel %vm4817_vm6, %v11197_v29, 0.0 }
 0x910   :  { %v4889_v6 = vsel %vm4817_vm6, %v11199_v23, 0.0  ;;  %v4987_v63 = vmul.f32 %v11199_v23, %v11199_v23  ;;  %v11206_v48 = vpop.f32.mrb[70].mxu0 }
 0x911   :  { %v4890_v59 = vadd.f32 %v4889_v6, %v4888_v40  ;;  %v5085_v44 = vadd.f32 %v5084_v31, %v5083_v16  ;;  %v11208_v38 = vpop.f32.mrb[71].mxu0  ;;  %v4990_v21 = vmul.f32 %v11206_v48, %v11206_v48  ;;  %v5090_v15 = vsel %vm4817_vm6, %v4989_v7, 0.0 }
 0x912   :  { %v5086_v58 = vsel %vm4817_vm6, %v4987_v63, 0.0  ;;  %v4891_v51 = vsel %vm4817_vm6, %v11208_v38, 0.0  ;;  %v4988_v55 = vmul.f32 %v11208_v38, %v11208_v38  ;;  %v4895_v2 = vsel %vm4817_vm6, %v11206_v48, 0.0 }
 0x913   :  { %v5087_v11 = vadd.f32 %v5086_v58, %v5085_v44  ;;  %v4892_v43 = vadd.f32 %v4891_v51, %v4890_v59  ;;  %v5092_v40 = vsel %vm4817_vm6, %v4990_v21, 0.0 }
 0x914   :  { %v5088_v41 = vsel %vm4817_vm6, %v4988_v55, 0.0 }
 0x915   :  { %v4894_v37 = vadd.f32 %v4893_v50, %v4892_v43  ;;  %v5089_v3 = vadd.f32 %v5088_v41, %v5087_v11 }
 0x916   :  { %v11225_v33 = vpop.f32.mrb[72].mxu0 }
 0x917   :  { %13170 = vst [vmem:[#allocation76_spill] sm:$0xff] %v11225_v33  ;;  %v5091_v62 = vadd.f32 %v5090_v15, %v5089_v3  ;;  %v11227_v53 = vpop.f32.mrb[73].mxu0  ;;  %v4896_v16 = vadd.f32 %v4895_v2, %v4894_v37  ;;  %v4993_v58 = vmul.f32 %v11225_v33, %v11225_v33  ;;  %v4901_v21 = vsel %vm4817_vm6, %v11225_v33, 0.0 }
 0x918   :  { %13171 = vst [vmem:[#allocation42_spill] sm:$0xff] %v11227_v53  ;;  %v4897_v31 = vsel %vm4817_vm6, %v11227_v53, 0.0  ;;  %v4991_v6 = vmul.f32 %v11227_v53, %v11227_v53  ;;  %v11234_v63 = vpop.f32.mrb[74].mxu0 }
 0x919   :  { %13172 = vst [vmem:[#allocation81_spill] sm:$0xff] %v11234_v63  ;;  %v4898_v59 = vadd.f32 %v4897_v31, %v4896_v16  ;;  %v5093_v44 = vadd.f32 %v5092_v40, %v5091_v62  ;;  %v11236_v7 = vpop.f32.mrb[75].mxu0  ;;  %v4994_v41 = vmul.f32 %v11234_v63, %v11234_v63  ;;  %v5098_v2 = vsel %vm4817_vm6, %v4993_v58, 0.0 }
 0x91a   :  { %13173 = vst [vmem:[#allocation22_spill] sm:$0xff] %v11236_v7  ;;  %v5094_v51 = vsel %vm4817_vm6, %v4991_v6, 0.0  ;;  %v4899_v55 = vsel %vm4817_vm6, %v11236_v7, 0.0  ;;  %v4992_v11 = vmul.f32 %v11236_v7, %v11236_v7  ;;  %v4903_v62 = vsel %vm4817_vm6, %v11234_v63, 0.0 }
 0x91b   :  { %v5095_v43 = vadd.f32 %v5094_v51, %v5093_v44  ;;  %v4900_v50 = vadd.f32 %v4899_v55, %v4898_v59  ;;  %v5100_v59 = vsel %vm4817_vm6, %v4994_v41, 0.0 }
 0x91c   :  { %v5096_v37 = vsel %vm4817_vm6, %v4992_v11, 0.0 }
 0x91d   :  { %v4902_v3 = vadd.f32 %v4901_v21, %v4900_v50  ;;  %v5097_v15 = vadd.f32 %v5096_v37, %v5095_v43 }
 0x91e   :  { %v11253_v16 = vpop.f32.mrb[76].mxu0 }
 0x91f   :  { %13174 = vst [vmem:[#allocation18_spill] sm:$0xff] %v11253_v16  ;;  %v5099_v40 = vadd.f32 %v5098_v2, %v5097_v15  ;;  %v11255_v31 = vpop.f32.mrb[77].mxu0  ;;  %v4904_v6 = vadd.f32 %v4903_v62, %v4902_v3  ;;  %v4997_v50 = vmul.f32 %v11253_v16, %v11253_v16  ;;  %v4909_v2 = vsel %vm4817_vm6, %v11253_v16, 0.0 }
 0x920   :  { %13175 = vst [vmem:[#allocation79_spill] sm:$0xff] %v11255_v31  ;;  %v4905_v44 = vsel %vm4817_vm6, %v11255_v31, 0.0  ;;  %v4995_v51 = vmul.f32 %v11255_v31, %v11255_v31  ;;  %v11262_v55 = vpop.f32.mrb[78].mxu0 }
 0x921   :  { %13176 = vst [vmem:[#allocation28_spill] sm:$0xff] %v11262_v55  ;;  %v4906_v58 = vadd.f32 %v4905_v44, %v4904_v6  ;;  %v5101_v11 = vadd.f32 %v5100_v59, %v5099_v40  ;;  %v11264_v43 = vpop.f32.mrb[79].mxu0  ;;  %v4998_v62 = vmul.f32 %v11262_v55, %v11262_v55  ;;  %v5106_v44 = vsel %vm4817_vm6, %v4997_v50, 0.0 }
 0x922   :  { %13177 = vst [vmem:[#allocation83_spill] sm:$0xff] %v11264_v43  ;;  %v5102_v21 = vsel %vm4817_vm6, %v4995_v51, 0.0  ;;  %v4907_v41 = vsel %vm4817_vm6, %v11264_v43, 0.0  ;;  %v4996_v37 = vmul.f32 %v11264_v43, %v11264_v43  ;;  %v4911_v51 = vsel %vm4817_vm6, %v11262_v55, 0.0 }
 0x923   :  { %v5103_v3 = vadd.f32 %v5102_v21, %v5101_v11  ;;  %v4908_v15 = vadd.f32 %v4907_v41, %v4906_v58  ;;  %v5108_v21 = vsel %vm4817_vm6, %v4998_v62, 0.0 }
 0x924   :  { %v5104_v40 = vsel %vm4817_vm6, %v4996_v37, 0.0 }
 0x925   :  { %v4910_v6 = vadd.f32 %v4909_v2, %v4908_v15  ;;  %v5105_v59 = vadd.f32 %v5104_v40, %v5103_v3 }
 0x926   :  { %v11281_v31 = vpop.f32.mrb[80].mxu0 }
 0x927   :  { %13178 = vst [vmem:[#allocation105_spill] sm:$0xff] %v11281_v31  ;;  %v5107_v43 = vadd.f32 %v5106_v44, %v5105_v59  ;;  %v11283_v11 = vpop.f32.mrb[81].mxu0  ;;  %v4912_v58 = vadd.f32 %v4911_v51, %v4910_v6  ;;  %v5001_v40 = vmul.f32 %v11281_v31, %v11281_v31 }
 0x928   :  { %13179 = vst [vmem:[#allocation82_spill] sm:$0xff] %v11283_v11  ;;  %v4913_v41 = vsel %vm4817_vm6, %v11283_v11, 0.0  ;;  %v4999_v37 = vmul.f32 %v11283_v11, %v11283_v11  ;;  %v11290_v3 = vpop.f32.mrb[82].mxu0  ;;  %v4917_v11 = vsel %vm4817_vm6, %v11281_v31, 0.0 }
 0x929   :  { %13180 = vst [vmem:[#allocation86_spill] sm:$0xff] %v11290_v3  ;;  %v4914_v50 = vadd.f32 %v4913_v41, %v4912_v58  ;;  %v5109_v15 = vadd.f32 %v5108_v21, %v5107_v43  ;;  %v11292_v2 = vpop.f32.mrb[83].mxu0  ;;  %v5002_v43 = vmul.f32 %v11290_v3, %v11290_v3  ;;  %v4919_v55 = vsel %vm4817_vm6, %v11290_v3, 0.0 }
 0x92a   :  { %13181 = vst [vmem:[#allocation84_spill] sm:$0xff] %v11292_v2  ;;  %v5110_v59 = vsel %vm4817_vm6, %v4999_v37, 0.0  ;;  %v4915_v62 = vsel %vm4817_vm6, %v11292_v2, 0.0  ;;  %v5000_v6 = vmul.f32 %v11292_v2, %v11292_v2  ;;  %v5114_v37 = vsel %vm4817_vm6, %v5001_v40, 0.0 }
 0x92b   :  { %v5111_v44 = vadd.f32 %v5110_v59, %v5109_v15  ;;  %v4916_v51 = vadd.f32 %v4915_v62, %v4914_v50  ;;  %v5116_v59 = vsel %vm4817_vm6, %v5002_v43, 0.0 }
 0x92c   :  { %v5112_v58 = vsel %vm4817_vm6, %v5000_v6, 0.0 }
 0x92d   :  { %v4918_v21 = vadd.f32 %v4917_v11, %v4916_v51  ;;  %v5113_v41 = vadd.f32 %v5112_v58, %v5111_v44 }
 0x92e   :  { %v11309_v16 = vpop.f32.mrb[84].mxu0 }
 0x92f   :  { %13182 = vst [vmem:[#allocation109_spill] sm:$0xff] %v11309_v16  ;;  %v5115_v2 = vadd.f32 %v5114_v37, %v5113_v41  ;;  %v11311_v15 = vpop.f32.mrb[85].mxu0  ;;  %v4920_v50 = vadd.f32 %v4919_v55, %v4918_v21  ;;  %v5005_v58 = vmul.f32 %v11309_v16, %v11309_v16 }
 0x930   :  { %13183 = vst [vmem:[#allocation87_spill] sm:$0xff] %v11311_v15  ;;  %v4921_v62 = vsel %vm4817_vm6, %v11311_v15, 0.0  ;;  %v5003_v11 = vmul.f32 %v11311_v15, %v11311_v15  ;;  %v11318_v6 = vpop.f32.mrb[86].mxu0  ;;  %v4925_v15 = vsel %vm4817_vm6, %v11309_v16, 0.0 }
 0x931   :  { %13184 = vst [vmem:[#allocation108_spill] sm:$0xff] %v11318_v6  ;;  %v4922_v40 = vadd.f32 %v4921_v62, %v4920_v50  ;;  %v5117_v44 = vadd.f32 %v5116_v59, %v5115_v2  ;;  %v11320_v51 = vpop.f32.mrb[87].mxu0  ;;  %v5006_v2 = vmul.f32 %v11318_v6, %v11318_v6  ;;  %v4927_v3 = vsel %vm4817_vm6, %v11318_v6, 0.0 }
 0x932   :  { %13185 = vst [vmem:[#allocation91_spill] sm:$0xff] %v11320_v51  ;;  %v5118_v41 = vsel %vm4817_vm6, %v5003_v11, 0.0  ;;  %v4923_v55 = vsel %vm4817_vm6, %v11320_v51, 0.0  ;;  %v5004_v43 = vmul.f32 %v11320_v51, %v11320_v51  ;;  %v5122_v11 = vsel %vm4817_vm6, %v5005_v58, 0.0 }
 0x933   :  { %v5119_v21 = vadd.f32 %v5118_v41, %v5117_v44  ;;  %v4924_v37 = vadd.f32 %v4923_v55, %v4922_v40  ;;  %v5124_v41 = vsel %vm4817_vm6, %v5006_v2, 0.0 }
 0x934   :  { %v5120_v50 = vsel %vm4817_vm6, %v5004_v43, 0.0 }
 0x935   :  { %v4926_v59 = vadd.f32 %v4925_v15, %v4924_v37  ;;  %v5121_v62 = vadd.f32 %v5120_v50, %v5119_v21 }
 0x936   :  { %v11337_v31 = vpop.f32.mrb[88].mxu0 }
 0x937   :  { %13186 = vst [vmem:[#allocation111_spill] sm:$0xff] %v11337_v31  ;;  %v5123_v51 = vadd.f32 %v5122_v11, %v5121_v62  ;;  %v11339_v44 = vpop.f32.mrb[89].mxu0  ;;  %v4928_v40 = vadd.f32 %v4927_v3, %v4926_v59  ;;  %v5009_v50 = vmul.f32 %v11337_v31, %v11337_v31 }
 0x938   :  { %13187 = vst [vmem:[#allocation89_spill] sm:$0xff] %v11339_v44  ;;  %v4929_v55 = vsel %vm4817_vm6, %v11339_v44, 0.0  ;;  %v5007_v15 = vmul.f32 %v11339_v44, %v11339_v44  ;;  %v11346_v43 = vpop.f32.mrb[90].mxu0  ;;  %v4933_v44 = vsel %vm4817_vm6, %v11337_v31, 0.0 }
 0x939   :  { %13188 = vst [vmem:[#allocation34_spill] sm:$0xff] %v11346_v43  ;;  %v4930_v58 = vadd.f32 %v4929_v55, %v4928_v40  ;;  %v5125_v21 = vadd.f32 %v5124_v41, %v5123_v51  ;;  %v11348_v37 = vpop.f32.mrb[91].mxu0  ;;  %v5010_v51 = vmul.f32 %v11346_v43, %v11346_v43  ;;  %v4935_v6 = vsel %vm4817_vm6, %v11346_v43, 0.0 }
 0x93a   :  { %13189 = vst [vmem:[#allocation92_spill] sm:$0xff] %v11348_v37  ;;  %v5126_v62 = vsel %vm4817_vm6, %v5007_v15, 0.0  ;;  %v4931_v3 = vsel %vm4817_vm6, %v11348_v37, 0.0  ;;  %v5008_v2 = vmul.f32 %v11348_v37, %v11348_v37  ;;  %v5130_v15 = vsel %vm4817_vm6, %v5009_v50, 0.0 }
 0x93b   :  { %v5127_v59 = vadd.f32 %v5126_v62, %v5125_v21  ;;  %v4932_v11 = vadd.f32 %v4931_v3, %v4930_v58  ;;  %v5132_v62 = vsel %vm4817_vm6, %v5010_v51, 0.0 }
 0x93c   :  { %v5128_v40 = vsel %vm4817_vm6, %v5008_v2, 0.0 }
 0x93d   :  { %v4934_v41 = vadd.f32 %v4933_v44, %v4932_v11  ;;  %v5129_v55 = vadd.f32 %v5128_v40, %v5127_v59 }
 0x93e   :  { %v11365_v16 = vpop.f32.mrb[92].mxu0 }
 0x93f   :  { %13190 = vst [vmem:[#allocation40_spill] sm:$0xff] %v11365_v16  ;;  %v5131_v37 = vadd.f32 %v5130_v15, %v5129_v55  ;;  %v11367_v21 = vpop.f32.mrb[93].mxu0  ;;  %v4936_v58 = vadd.f32 %v4935_v6, %v4934_v41  ;;  %v5013_v40 = vmul.f32 %v11365_v16, %v11365_v16 }
 0x940   :  { %13191 = vst [vmem:[#allocation96_spill] sm:$0xff] %v11367_v21  ;;  %v4937_v3 = vsel %vm4817_vm6, %v11367_v21, 0.0  ;;  %v5011_v44 = vmul.f32 %v11367_v21, %v11367_v21  ;;  %v11374_v2 = vpop.f32.mrb[94].mxu0  ;;  %v4941_v21 = vsel %vm4817_vm6, %v11365_v16, 0.0 }
 0x941   :  { %v4938_v50 = vadd.f32 %v4937_v3, %v4936_v58  ;;  %v5133_v59 = vadd.f32 %v5132_v62, %v5131_v37  ;;  %v11376_v11 = vpop.f32.mrb[95].mxu0  ;;  %v5014_v37 = vmul.f32 %v11374_v2, %v11374_v2  ;;  %v4943_v43 = vsel %vm4817_vm6, %v11374_v2, 0.0 }
 0x942   :  { %13192 = vst [vmem:[#allocation45_spill] sm:$0xff] %v11376_v11  ;;  %v5134_v55 = vsel %vm4817_vm6, %v5011_v44, 0.0  ;;  %v4939_v6 = vsel %vm4817_vm6, %v11376_v11, 0.0  ;;  %v5012_v51 = vmul.f32 %v11376_v11, %v11376_v11  ;;  %v5138_v44 = vsel %vm4817_vm6, %v5013_v40, 0.0 }
 0x943   :  { %v5135_v41 = vadd.f32 %v5134_v55, %v5133_v59  ;;  %v4940_v15 = vadd.f32 %v4939_v6, %v4938_v50  ;;  %v5140_v59 = vsel %vm4817_vm6, %v5014_v37, 0.0 }
 0x944   :  { %v5136_v58 = vsel %vm4817_vm6, %v5012_v51, 0.0 }
 0x945   :  { %v4942_v62 = vadd.f32 %v4941_v21, %v4940_v15  ;;  %v5137_v3 = vadd.f32 %v5136_v58, %v5135_v41 }
 0x947   :  { %v4944_v31 = vadd.f32 %v4943_v43, %v4942_v62  ;;  %v5139_v63 = vadd.f32 %v5138_v44, %v5137_v3 }
 0x949   :  { %v4945_v50 = vrot.slane %v4944_v31, 4  ;;  %v5141_v55 = vadd.f32 %v5140_v59, %v5139_v63 }
 0x94b   :  { %v4946_v6 = vadd.f32 %v4945_v50, %v4944_v31  ;;  %v5142_v16 = vrot.slane %v5141_v55, 4 }
 0x94d   :  { %v4947_v11 = vrot.slane %v4946_v6, 2  ;;  %v5143_v33 = vadd.f32 %v5142_v16, %v5141_v55 }
 0x94f   :  { %v4948_v7 = vadd.f32 %v4947_v11, %v4946_v6  ;;  %v5144_v53 = vrot.slane %v5143_v33, 2 }
 0x951   :  { %v4949_v51 = vrot.slane %v4948_v7, 1  ;;  %v5145_v21 = vadd.f32 %v5144_v53, %v5143_v33 }
 0x953   :  { %v4950_v41 = vadd.f32 %v4949_v51, %v4948_v7  ;;  %v5146_v15 = vrot.slane %v5145_v21, 1  ;;  %v5180_v51 = vld [vmem:[%s12082_s8] sm:$0x1]  ;;  %s6045_s8 = smov [#allocation5]  }
 0x955   :  { %5153 = vrot.lane.b32.xlu0 %v4950_v41, %s6036_s3  ;;  %5149 = vrot.lane.b32.xlu1 %v4950_v41, %s6039_s14  ;;  %v5147_v43 = vadd.f32 %v5146_v15, %v5145_v21  ;;  %v5182_v15 = vld [vmem:[%s12083_s9] sm:$0x1]  ;;  %s5485_s9 = sshll.u32 %s6045_s8, 4  ;;  %s5486_s9 = int_to_ptr.vmem [resolvable:$true] %s5485_s9 }
 0x956   :  { %s6005_s27 = scalar_lea.vmem %s5486_s9, 8192  ;;  %p6010_p9 = scmp.lt.s32.totalorder %s5486_s9, %s5486_s9 }
 0x957   :  { %p6006_p8 = scmp.ne.s32.totalorder %s5486_s9, %s6005_s27  ;;  %p6011_p10 = scmp.lt.s32.totalorder %s6005_s27, %s6005_s27 }
 0x959   :  { %5157 = vrot.lane.b32.xlu0 %v4950_v41, %s6043_s5  ;;  %5163 = vrot.lane.b32.xlu1 %v5147_v43, %s6039_s14  ;;  %p6012_p11 = por %p6011_p10, %p6010_p9 }
 0x95b   :  { %p6013_p12 = pnand %p6012_p11, %p6006_p8 }
 0x95d   :  { %5171 = vrot.lane.b32.xlu0 %v5147_v43, %s6043_s5  ;;  %5167 = vrot.lane.b32.xlu1 %v5147_v43, %s6036_s3 }
 0x9c7   :  { %v5154_v63 = vpop.permute.xlu0 %5153  ;;  %v5150_v16 = vpop.permute.xlu1 %5149 }
 0x9c8   :  { %v5152_v31 = vadd.f32 %v5150_v16, %v4950_v41 }
 0x9ca   :  { %v5156_v11 = vadd.f32 %v5154_v63, %v5152_v31 }
 0x9cb   :  { %v5158_v40 = vpop.permute.xlu0 %5157  ;;  %v5164_v33 = vpop.permute.xlu1 %5163 }
 0x9cc   :  { %v5160_v53 = vadd.f32 %v5158_v40, %v5156_v11  ;;  %v5166_v7 = vadd.f32 %v5164_v33, %v5147_v43 }
 0x9ce   :  { %v5161_v58 = vmul.f32 0.00048828125, %v5160_v53 }
 0x9cf   :  { %v5168_v37 = vpop.permute.xlu1 %5167  ;;  %v5172_v3 = vpop.permute.xlu0 %5171 }
 0x9d0   :  { %v5170_v62 = vadd.f32 %v5168_v37, %v5166_v7  ;;  %v5176_v59 = vmul.f32 %v5161_v58, %v5161_v58 }
 0x9d2   :  { %v5174_v44 = vadd.f32 %v5172_v3, %v5170_v62 }
 0x9d4   :  { %v5175_v50 = vmul.f32 0.00048828125, %v5174_v44 }
 0x9d6   :  { %v5177_v55 = vsub.f32 %v5175_v50, %v5176_v59 }
 0x9d8   :  { %v5178_v6 = vadd.f32 1e-05, %v5177_v55 }
 0x9da   :  { %5981 = vrsqrt.f32 %v5178_v6  ;;  %v13193_v6 = vld [vmem:[#allocation42_spill] sm:$0xff] }
 0x9e4   :  { %v5982_v21 = vpop.eup %5981 }
 0x9e5   :  { %v5181_v41 = vmul.f32 %v5982_v21, %v5180_v51  ;;  %v13194_v51 = vld [vmem:[#allocation22_spill] sm:$0xff]  ;;  %v13195_v21 = vld [vmem:[#allocation76_spill] sm:$0xff] }
 0x9e7   :  { %5189 = vrot.lane.b32.xlu0 %v5181_v41, %s6044_s26  ;;  %5186 = vrot.lane.b32.xlu1 %v5181_v41, %s6037_s12  ;;  %v5183_v43 = vmul.f32 %v5181_v41, %v5161_v58 }
 0x9e9   :  { %v5184_v63 = vsub.f32 %v5182_v15, %v5183_v43  ;;  %v13197_v43 = vld [vmem:[#allocation79_spill] sm:$0xff] }
 0x9eb   :  { %5192 = vrot.lane.b32.xlu1 %v5181_v41, %s6035_s2  ;;  %v5203_v16 = vrot.slane %v5184_v63, %v13144_v52 }
 0x9ed   :  { %5204 = vrot.lane.b32.xlu0 %v5203_v16, %s6037_s12 }
 0x9ef   :  { %5207 = vrot.lane.b32.xlu1 %v5203_v16, %s6044_s26 }
 0x9f1   :  { %5210 = vrot.lane.b32.xlu0 %v5203_v16, %s6035_s2 }
 0xa59   :  { %v5187_v31 = vpop.permute.xlu1 %5186  ;;  %v5190_v11 = vpop.permute.xlu0 %5189 }
 0xa5a   :  { %v5195_v40 = vsel %vm3665_vm4, %v5181_v41, %v5187_v31  ;;  %v13199_v31 = vld [vmem:[#allocation18_spill] sm:$0xff] }
 0xa5b   :  { %v5196_v33 = vsel %vm283_vm0, %v5195_v40, %v5190_v11 }
 0xa5d   :  { %v5193_v53 = vpop.permute.xlu1 %5192 }
 0xa5e   :  { %v5198_v7 = vsel %vm5197_vm7, %v5196_v33, %v5193_v53  ;;  %v13200_v33 = vld [vmem:[#allocation28_spill] sm:$0xff] }
 0xa5f   :  { %v11413_v37 = vrot.slane %v5198_v7, %v13144_v52  ;;  %v5205_v58 = vpop.permute.xlu0 %5204  ;;  %v13202_v7 = vld [vmem:[#allocation82_spill] sm:$0xff] }
 0xa60   :  { %v5213_v59 = vsel %vm3665_vm4, %v5184_v63, %v5205_v58  ;;  %v13198_v63 = vld [vmem:[#allocation83_spill] sm:$0xff] }
 0xa61   :  { %v11417_v62 = vmul.f32 %v11413_v37, %v10948_v61  ;;  %v11421_v3 = vmul.f32 %v11413_v37, %v10954_v5  ;;  %v11425_v44 = vmul.f32 %v10946_v45, %v11413_v37  ;;  %v11430_v50 = vmul.f32 %v10952_v35, %v11413_v37  ;;  %v5208_v41 = vpop.permute.xlu1 %5207 }
 0xa62   :  { %v11434_v55 = vmul.f32 %v11413_v37, %v10975_v54  ;;  %v11438_v61 = vmul.f32 %v11413_v37, %v10984_v47  ;;  %v11442_v5 = vmul.f32 %v10973_v56, %v11413_v37  ;;  %v11446_v45 = vmul.f32 %v10982_v27, %v11413_v37 }
 0xa63   :  { %v11450_v35 = vmul.f32 %v11413_v37, %v11003_v32  ;;  %v11454_v54 = vmul.f32 %v11413_v37, %v11012_v28  ;;  %v11458_v47 = vmul.f32 %v11001_v18, %v11413_v37  ;;  %v11462_v56 = vmul.f32 %v11010_v17, %v11413_v37  ;;  %v5211_v40 = vpop.permute.xlu0 %5210 }
 0xa64   :  { %v11466_v27 = vmul.f32 %v11413_v37, %v11031_v1  ;;  %v11470_v32 = vmul.f32 %v11413_v37, %v11040_v8  ;;  %v11474_v28 = vmul.f32 %v11029_v39, %v11413_v37  ;;  %v11478_v18 = vmul.f32 %v11038_v14, %v11413_v37 }
 0xa65   :  { %v11482_v17 = vmul.f32 %v11413_v37, %v11059_v60  ;;  %v11486_v1 = vmul.f32 %v11413_v37, %v11068_v19  ;;  %v11490_v8 = vmul.f32 %v11057_v25, %v11413_v37  ;;  %v11494_v39 = vmul.f32 %v11066_v46, %v11413_v37 }
 0xa66   :  { %v11498_v14 = vmul.f32 %v11413_v37, %v11087_v22  ;;  %v11502_v60 = vmul.f32 %v11413_v37, %v11096_v4  ;;  %v11506_v19 = vmul.f32 %v11085_v24, %v11413_v37  ;;  %v11510_v25 = vmul.f32 %v11094_v0, %v11413_v37 }
 0xa67   :  { %v11514_v46 = vmul.f32 %v11413_v37, %v11115_v57  ;;  %v11518_v22 = vmul.f32 %v11413_v37, %v11124_v42  ;;  %v11522_v4 = vmul.f32 %v11113_v34, %v11413_v37  ;;  %v11526_v24 = vmul.f32 %v11122_v20, %v11413_v37 }
 0xa68   :  { %v11530_v0 = vmul.f32 %v11413_v37, %v11143_v36  ;;  %v11534_v57 = vmul.f32 %v11413_v37, %v11152_v49  ;;  %v11538_v42 = vmul.f32 %v11141_v30, %v11413_v37  ;;  %v11542_v34 = vmul.f32 %v11150_v9, %v11413_v37 }
 0xa69   :  { %v11546_v20 = vmul.f32 %v11413_v37, %v11171_v10  ;;  %v11550_v36 = vmul.f32 %v11413_v37, %v11180_v13  ;;  %v11554_v49 = vmul.f32 %v11169_v26, %v11413_v37  ;;  %v11558_v30 = vmul.f32 %v11178_v12, %v11413_v37 }
 0xa6a   :  { %v11562_v9 = vmul.f32 %v11413_v37, %v11199_v23  ;;  %v11566_v10 = vmul.f32 %v11413_v37, %v11208_v38  ;;  %v11570_v13 = vmul.f32 %v11197_v29, %v11413_v37  ;;  %v11574_v26 = vmul.f32 %v11206_v48, %v11413_v37  ;;  %v13196_v29 = vld [vmem:[#allocation81_spill] sm:$0xff] }
 0xa6b   :  { %v11578_v12 = vmul.f32 %v11413_v37, %v13193_v6  ;;  %v11582_v23 = vmul.f32 %v11413_v37, %v13194_v51  ;;  %v11586_v38 = vmul.f32 %v13195_v21, %v11413_v37  ;;  %v11590_v15 = vmul.f32 %v13196_v29, %v11413_v37  ;;  %v13204_v6 = vld [vmem:[#allocation84_spill] sm:$0xff]  ;;  %v13206_v21 = vld [vmem:[#allocation105_spill] sm:$0xff] }
 0xa6c   :  { %v11594_v48 = vmul.f32 %v11413_v37, %v13197_v43  ;;  %v11598_v16 = vmul.f32 %v11413_v37, %v13198_v63  ;;  %v11602_v11 = vmul.f32 %v13199_v31, %v11413_v37  ;;  %v11606_v53 = vmul.f32 %v13200_v33, %v11413_v37  ;;  %v13208_v43 = vld [vmem:[#allocation86_spill] sm:$0xff]  ;;  %v13210_v31 = vld [vmem:[#allocation87_spill] sm:$0xff] }
 0xa6d   :  { %v11610_v58 = vmul.f32 %v11413_v37, %v13202_v7  ;;  %v11614_v51 = vmul.f32 %v11413_v37, %v13204_v6  ;;  %v11618_v29 = vmul.f32 %v13206_v21, %v11413_v37  ;;  %v11622_v63 = vmul.f32 %v13208_v43, %v11413_v37  ;;  %v13213_v6 = vld [vmem:[#allocation109_spill] sm:$0xff]  ;;  %v13215_v21 = vld [vmem:[#allocation108_spill] sm:$0xff] }
 0xa6e   :  { %13201 = vst [vmem:[#allocation113_spill] sm:$0xff] %v11606_v53  ;;  %v11626_v33 = vmul.f32 %v11413_v37, %v13210_v31  ;;  %v13212_v53 = vld [vmem:[#allocation91_spill] sm:$0xff]  ;;  %v13217_v43 = vld [vmem:[#allocation89_spill] sm:$0xff] }
 0xa6f   :  { %13203 = vst [vmem:[#allocation102_spill] sm:$0xff] %v11610_v58  ;;  %13205 = vst [vmem:[#allocation41_spill] sm:$0xff] %v11614_v51  ;;  %v11630_v7 = vmul.f32 %v11413_v37, %v13212_v53  ;;  %v5214_v58 = vsel %vm283_vm0, %v5213_v59, %v5208_v41  ;;  %v11635_v51 = vmul.f32 %v13213_v6, %v11413_v37  ;;  %v13220_v59 = vld [vmem:[#allocation111_spill] sm:$0xff]  ;;  %v13221_v6 = vld [vmem:[#allocation34_spill] sm:$0xff] }
 0xa70   :  { %13207 = vst [vmem:[#allocation37_spill] sm:$0xff] %v11618_v29  ;;  %13209 = vst [vmem:[#allocation100_spill] sm:$0xff] %v11622_v63  ;;  %v11639_v29 = vmul.f32 %v13215_v21, %v11413_v37  ;;  %v11643_v63 = vmul.f32 %v11413_v37, %v13217_v43  ;;  %v5215_v31 = vsel %vm5197_vm7, %v5214_v58, %v5211_v40  ;;  %v13223_v40 = vld [vmem:[#allocation45_spill] sm:$0xff] }
 0xa71   :  { %13211 = vst [vmem:[#allocation179_spill] sm:$0xff] %v11626_v33  ;;  %13214 = vst [vmem:[#allocation39_spill] sm:$0xff] %v11635_v51  ;;  %v13218_v33 = vld [vmem:[#allocation92_spill] sm:$0xff]  ;;  %v11652_v41 = vmul.f32 %v13220_v59, %v11413_v37  ;;  %v11656_v51 = vmul.f32 %v13221_v6, %v11413_v37  ;;  %v11659_v21 = vrot.slane %v5215_v31, %v13144_v52 }
 0xa72   :  { %13216 = vst [vmem:[#allocation104_spill] sm:$0xff] %v11639_v29  ;;  %v11648_v53 = vmul.f32 %v11413_v37, %v13218_v33  ;;  %v13222_v29 = vld [vmem:[#allocation96_spill] sm:$0xff]  ;;  %v11667_v58 = vmul.f32 %v11413_v37, %v13223_v40  ;;  %v11675_v59 = vmul.f32 %v11374_v2, %v11413_v37 }
 0xa73   :  { %v11663_v43 = vmul.f32 %v11413_v37, %v13222_v29  ;;  %v13224_v33 = vld [vmem:[#allocation40_spill] sm:$0xff]  ;;  %v11679_v52 = vadd.f32 %v11659_v21, %v11417_v62  ;;  %v11683_v29 = vadd.f32 %v11659_v21, %v11421_v3  ;;  %v11687_v31 = vadd.f32 %v11659_v21, %v11425_v44 }
 0xa74   :  { %13219 = vst [vmem:[#allocation117_spill] sm:$0xff] %v11648_v53  ;;  %v11671_v53 = vmul.f32 %v13224_v33, %v11413_v37  ;;  %v11691_v6 = vadd.f32 %v11659_v21, %v11430_v50  ;;  %v11695_v2 = vadd.f32 %v11659_v21, %v11434_v55  ;;  %v11699_v37 = vadd.f32 %v11659_v21, %v11438_v61 }
 0xa75   :  { %v11703_v62 = vadd.f32 %v11659_v21, %v11442_v5  ;;  %v11707_v3 = vadd.f32 %v11659_v21, %v11446_v45  ;;  %v11711_v44 = vadd.f32 %v11659_v21, %v11450_v35  ;;  %v11715_v50 = vadd.f32 %v11659_v21, %v11454_v54 }
 0xa76   :  { %v11719_v55 = vadd.f32 %v11659_v21, %v11458_v47  ;;  %v11723_v61 = vadd.f32 %v11659_v21, %v11462_v56  ;;  %v11727_v5 = vadd.f32 %v11659_v21, %v11466_v27  ;;  %v11731_v45 = vadd.f32 %v11659_v21, %v11470_v32  ;;  %v13229_v40 = vld [vmem:[#allocation102_spill] sm:$0xff]  ;;  %v13231_v33 = vld [vmem:[#allocation41_spill] sm:$0xff] }
 0xa77   :  { %v11735_v35 = vadd.f32 %v11659_v21, %v11474_v28  ;;  %v11739_v54 = vadd.f32 %v11659_v21, %v11478_v18  ;;  %v11743_v47 = vadd.f32 %v11659_v21, %v11482_v17  ;;  %v11747_v56 = vadd.f32 %v11659_v21, %v11486_v1 }
 0xa78   :  { %v11751_v27 = vadd.f32 %v11659_v21, %v11490_v8  ;;  %v11755_v32 = vadd.f32 %v11659_v21, %v11494_v39  ;;  %v11759_v28 = vadd.f32 %v11659_v21, %v11498_v14  ;;  %v11763_v18 = vadd.f32 %v11659_v21, %v11502_v60 }
 0xa79   :  { %v11767_v17 = vadd.f32 %v11659_v21, %v11506_v19  ;;  %v11771_v1 = vadd.f32 %v11659_v21, %v11510_v25  ;;  %v11775_v8 = vadd.f32 %v11659_v21, %v11514_v46  ;;  %v11779_v39 = vadd.f32 %v11659_v21, %v11518_v22 }
 0xa7a   :  { %v11783_v14 = vadd.f32 %v11659_v21, %v11522_v4  ;;  %v11787_v60 = vadd.f32 %v11659_v21, %v11526_v24  ;;  %v11791_v19 = vadd.f32 %v11659_v21, %v11530_v0  ;;  %v11795_v25 = vadd.f32 %v11659_v21, %v11534_v57 }
 0xa7b   :  { %v11799_v46 = vadd.f32 %v11659_v21, %v11538_v42  ;;  %v11803_v22 = vadd.f32 %v11659_v21, %v11542_v34  ;;  %v11807_v4 = vadd.f32 %v11659_v21, %v11546_v20  ;;  %v11811_v24 = vadd.f32 %v11659_v21, %v11550_v36 }
 0xa7c   :  { %v11815_v0 = vadd.f32 %v11659_v21, %v11554_v49  ;;  %v11819_v57 = vadd.f32 %v11659_v21, %v11558_v30  ;;  %v11823_v42 = vadd.f32 %v11659_v21, %v11562_v9  ;;  %v11827_v34 = vadd.f32 %v11659_v21, %v11566_v10 }
 0xa7d   :  { %v11831_v20 = vadd.f32 %v11659_v21, %v11570_v13  ;;  %v11835_v36 = vadd.f32 %v11659_v21, %v11574_v26  ;;  %v11839_v49 = vadd.f32 %v11659_v21, %v11578_v12  ;;  %v11843_v30 = vadd.f32 %v11659_v21, %v11582_v23  ;;  %v13228_v23 = vld [vmem:[#allocation113_spill] sm:$0xff] }
 0xa7e   :  { %v11847_v9 = vadd.f32 %v11659_v21, %v11586_v38  ;;  %v11851_v10 = vadd.f32 %v11659_v21, %v11590_v15  ;;  %v11855_v13 = vadd.f32 %v11659_v21, %v11594_v48  ;;  %v11859_v26 = vadd.f32 %v11659_v21, %v11598_v16 }
 0xa7f   :  { %v11863_v12 = vadd.f32 %v11659_v21, %v11602_v11  ;;  %v11867_v38 = vadd.f32 %v11659_v21, %v13228_v23  ;;  %v11871_v15 = vadd.f32 %v11659_v21, %v13229_v40  ;;  %v11875_v48 = vadd.f32 %v11659_v21, %v13231_v33 }
 0xa80   :  { %13225 = vst [vmem:[#allocation94_spill] sm:$0xff] %v11855_v13  ;;  %13226 = vst [vmem:[#allocation110_spill] sm:$0xff] %v11859_v26  ;;  %v13233_v13 = vld [vmem:[#allocation37_spill] sm:$0xff]  ;;  %v13234_v26 = vld [vmem:[#allocation100_spill] sm:$0xff]  ;;  %v11891_v40 = vadd.f32 %v11659_v21, %v11630_v7  ;;  %v11911_v7 = vadd.f32 %v11659_v21, %v11652_v41  ;;  %v11931_v41 = vadd.f32 %v11659_v21, %v11675_v59  ;;  %v5362_v59 = vmax.f32 %v11719_v55, 0.0 }
 0xa81   :  { %13227 = vst [vmem:[#allocation106_spill] sm:$0xff] %v11863_v12  ;;  %13230 = vst [vmem:[#allocation178_spill] sm:$0xff] %v11871_v15  ;;  %v11879_v16 = vadd.f32 %v11659_v21, %v13233_v13  ;;  %v11883_v11 = vadd.f32 %v11659_v21, %v13234_v26  ;;  %v13236_v12 = vld [vmem:[#allocation179_spill] sm:$0xff]  ;;  %v11903_v26 = vadd.f32 %v11659_v21, %v11643_v63  ;;  %v5373_v55 = vmax.f32 %v11763_v18, 0.0 }
 0xa82   :  { %13232 = vst [vmem:[#allocation115_spill] sm:$0xff] %v11875_v48  ;;  %v11887_v23 = vadd.f32 %v11659_v21, %v13236_v12  ;;  %v13237_v15 = vld [vmem:[#allocation39_spill] sm:$0xff]  ;;  %v13238_v48 = vld [vmem:[#allocation104_spill] sm:$0xff]  ;;  %13240 = vst [vmem:[#allocation46_spill] sm:$0xff] %v11911_v7  ;;  %v11923_v63 = vadd.f32 %v11659_v21, %v11667_v58  ;;  %v5352_v7 = vmax.f32 %v11679_v52, 0.0  ;;  %v5357_v58 = vmax.f32 %v11699_v37, 0.0 }
 0xa83   :  { %13235 = vst [vmem:[#allocation58_spill] sm:$0xff] %v11883_v11  ;;  %v11895_v33 = vadd.f32 %v11659_v21, %v13237_v15  ;;  %v11899_v13 = vadd.f32 %v11659_v21, %v13238_v48  ;;  %v13239_v11 = vld [vmem:[#allocation117_spill] sm:$0xff]  ;;  %v11915_v15 = vadd.f32 %v11659_v21, %v11656_v51  ;;  %v11919_v48 = vadd.f32 %v11659_v21, %v11663_v43 }
 0xa84   :  { %v11907_v12 = vadd.f32 %v11659_v21, %v13239_v11  ;;  %13243 = vst [vmem:[#allocation114_spill] sm:$0xff] %v11923_v63  ;;  %v11927_v11 = vadd.f32 %v11659_v21, %v11671_v53  ;;  %v5353_v51 = vmax.f32 %v11683_v29, 0.0  ;;  %v5355_v43 = vmax.f32 %v11691_v6, 0.0  ;;  %5416 = vst.msk [vmem:[#allocation5] sm:$0xff] %vm4817_vm6, %v5352_v7 }
 0xa85   :  { %13241 = vst [vmem:[#allocation182_spill] sm:$0xff] %v11915_v15  ;;  %13242 = vst [vmem:[#allocation57_spill] sm:$0xff] %v11919_v48  ;;  %v5354_v15 = vmax.f32 %v11687_v31, 0.0  ;;  %v5356_v48 = vmax.f32 %v11695_v2, 0.0  ;;  %v5358_v63 = vmax.f32 %v11703_v62, 0.0  ;;  %v5359_v53 = vmax.f32 %v11707_v3, 0.0 }
 0xa86   :  { %13244 = vst [vmem:[#allocation66_spill] sm:$0xff] %v11927_v11  ;;  %v5360_v11 = vmax.f32 %v11711_v44, 0.0  ;;  %v5361_v21 = vmax.f32 %v11715_v50, 0.0  ;;  %v5363_v52 = vmax.f32 %v11723_v61, 0.0  ;;  %5417 = vst.msk [vmem:[#allocation5 + $0x8] sm:$0xff] %vm4817_vm6, %v5353_v51  ;;  %v5364_v29 = vmax.f32 %v11727_v5, 0.0 }
 0xa87   :  { %5418 = vst.msk [vmem:[#allocation5 + $0x10] sm:$0xff] %vm4817_vm6, %v5354_v15  ;;  %5419 = vst.msk [vmem:[#allocation5 + $0x18] sm:$0xff] %vm4817_vm6, %v5355_v43  ;;  %v5365_v31 = vmax.f32 %v11731_v45, 0.0  ;;  %v5366_v6 = vmax.f32 %v11735_v35, 0.0  ;;  %v5367_v2 = vmax.f32 %v11739_v54, 0.0  ;;  %v5368_v37 = vmax.f32 %v11743_v47, 0.0 }
 0xa88   :  { %5420 = vst.msk [vmem:[#allocation5 + $0x20] sm:$0xff] %vm4817_vm6, %v5356_v48  ;;  %5421 = vst.msk [vmem:[#allocation5 + $0x28] sm:$0xff] %vm4817_vm6, %v5357_v58  ;;  %v5369_v62 = vmax.f32 %v11747_v56, 0.0  ;;  %v5370_v3 = vmax.f32 %v11751_v27, 0.0  ;;  %v5371_v44 = vmax.f32 %v11755_v32, 0.0  ;;  %v5372_v50 = vmax.f32 %v11759_v28, 0.0 }
 0xa89   :  { %5422 = vst.msk [vmem:[#allocation5 + $0x30] sm:$0xff] %vm4817_vm6, %v5358_v63  ;;  %5423 = vst.msk [vmem:[#allocation5 + $0x38] sm:$0xff] %vm4817_vm6, %v5359_v53  ;;  %v5374_v61 = vmax.f32 %v11767_v17, 0.0  ;;  %v5375_v5 = vmax.f32 %v11771_v1, 0.0  ;;  %v5376_v45 = vmax.f32 %v11775_v8, 0.0  ;;  %v5377_v35 = vmax.f32 %v11779_v39, 0.0 }
 0xa8a   :  { %5424 = vst.msk [vmem:[#allocation5 + $0x40] sm:$0xff] %vm4817_vm6, %v5360_v11  ;;  %5425 = vst.msk [vmem:[#allocation5 + $0x48] sm:$0xff] %vm4817_vm6, %v5361_v21  ;;  %v5378_v54 = vmax.f32 %v11783_v14, 0.0  ;;  %v5379_v47 = vmax.f32 %v11787_v60, 0.0  ;;  %v5380_v56 = vmax.f32 %v11791_v19, 0.0  ;;  %v5381_v27 = vmax.f32 %v11795_v25, 0.0 }
 0xa8b   :  { %5426 = vst.msk [vmem:[#allocation5 + $0x50] sm:$0xff] %vm4817_vm6, %v5362_v59  ;;  %5427 = vst.msk [vmem:[#allocation5 + $0x58] sm:$0xff] %vm4817_vm6, %v5363_v52  ;;  %v5382_v32 = vmax.f32 %v11799_v46, 0.0  ;;  %v5383_v28 = vmax.f32 %v11803_v22, 0.0  ;;  %v5384_v18 = vmax.f32 %v11807_v4, 0.0  ;;  %v5385_v17 = vmax.f32 %v11811_v24, 0.0 }
 0xa8c   :  { %5428 = vst.msk [vmem:[#allocation5 + $0x60] sm:$0xff] %vm4817_vm6, %v5364_v29  ;;  %5429 = vst.msk [vmem:[#allocation5 + $0x68] sm:$0xff] %vm4817_vm6, %v5365_v31  ;;  %v5386_v1 = vmax.f32 %v11815_v0, 0.0  ;;  %v5387_v8 = vmax.f32 %v11819_v57, 0.0  ;;  %v5388_v39 = vmax.f32 %v11823_v42, 0.0  ;;  %v5389_v14 = vmax.f32 %v11827_v34, 0.0 }
 0xa8d   :  { %5430 = vst.msk [vmem:[#allocation5 + $0x70] sm:$0xff] %vm4817_vm6, %v5366_v6  ;;  %5431 = vst.msk [vmem:[#allocation5 + $0x78] sm:$0xff] %vm4817_vm6, %v5367_v2  ;;  %v5390_v60 = vmax.f32 %v11831_v20, 0.0  ;;  %v5391_v19 = vmax.f32 %v11835_v36, 0.0  ;;  %v5392_v25 = vmax.f32 %v11839_v49, 0.0  ;;  %v5393_v46 = vmax.f32 %v11843_v30, 0.0 }
 0xa8e   :  { %5432 = vst.msk [vmem:[#allocation5 + $0x80] sm:$0xff] %vm4817_vm6, %v5368_v37  ;;  %5433 = vst.msk [vmem:[#allocation5 + $0x88] sm:$0xff] %vm4817_vm6, %v5369_v62  ;;  %v5394_v22 = vmax.f32 %v11847_v9, 0.0  ;;  %v5395_v4 = vmax.f32 %v11851_v10, 0.0  ;;  %v13245_v24 = vld [vmem:[#allocation94_spill] sm:$0xff]  ;;  %v5399_v36 = vmax.f32 %v11867_v38, 0.0 }
 0xa8f   :  { %5434 = vst.msk [vmem:[#allocation5 + $0x90] sm:$0xff] %vm4817_vm6, %v5370_v3  ;;  %5435 = vst.msk [vmem:[#allocation5 + $0x98] sm:$0xff] %vm4817_vm6, %v5371_v44  ;;  %v5396_v0 = vmax.f32 %v13245_v24, 0.0  ;;  %v13246_v57 = vld [vmem:[#allocation110_spill] sm:$0xff]  ;;  %v13249_v9 = vld [vmem:[#allocation115_spill] sm:$0xff]  ;;  %v5402_v7 = vmax.f32 %v11879_v16, 0.0 }
 0xa90   :  { %5436 = vst.msk [vmem:[#allocation5 + $0xa0] sm:$0xff] %vm4817_vm6, %v5372_v50  ;;  %5437 = vst.msk [vmem:[#allocation5 + $0xa8] sm:$0xff] %vm4817_vm6, %v5373_v55  ;;  %v5397_v42 = vmax.f32 %v13246_v57, 0.0  ;;  %v13247_v34 = vld [vmem:[#allocation106_spill] sm:$0xff]  ;;  %v5401_v10 = vmax.f32 %v13249_v9, 0.0  ;;  %v5404_v38 = vmax.f32 %v11887_v23, 0.0 }
 0xa91   :  { %5438 = vst.msk [vmem:[#allocation5 + $0xb0] sm:$0xff] %vm4817_vm6, %v5374_v61  ;;  %5439 = vst.msk [vmem:[#allocation5 + $0xb8] sm:$0xff] %vm4817_vm6, %v5375_v5  ;;  %v5398_v20 = vmax.f32 %v13247_v34, 0.0  ;;  %v13248_v49 = vld [vmem:[#allocation178_spill] sm:$0xff]  ;;  %v5405_v63 = vmax.f32 %v11891_v40, 0.0  ;;  %v5406_v11 = vmax.f32 %v11895_v33, 0.0 }
 0xa92   :  { %5440 = vst.msk [vmem:[#allocation5 + $0xc0] sm:$0xff] %vm4817_vm6, %v5376_v45  ;;  %5441 = vst.msk [vmem:[#allocation5 + $0xc8] sm:$0xff] %vm4817_vm6, %v5377_v35  ;;  %v5400_v30 = vmax.f32 %v13248_v49, 0.0  ;;  %v13250_v15 = vld [vmem:[#allocation58_spill] sm:$0xff]  ;;  %v5407_v16 = vmax.f32 %v11899_v13, 0.0  ;;  %v5408_v51 = vmax.f32 %v11903_v26, 0.0 }
 0xa93   :  { %5442 = vst.msk [vmem:[#allocation5 + $0xd0] sm:$0xff] %vm4817_vm6, %v5378_v54  ;;  %5443 = vst.msk [vmem:[#allocation5 + $0xd8] sm:$0xff] %vm4817_vm6, %v5379_v47  ;;  %v5403_v48 = vmax.f32 %v13250_v15, 0.0  ;;  %v5409_v43 = vmax.f32 %v11907_v12, 0.0  ;;  %v13251_v58 = vld [vmem:[#allocation46_spill] sm:$0xff]  ;;  %v13253_v33 = vld [vmem:[#allocation57_spill] sm:$0xff] }
 0xa94   :  { %5444 = vst.msk [vmem:[#allocation5 + $0xe0] sm:$0xff] %vm4817_vm6, %v5380_v56  ;;  %5445 = vst.msk [vmem:[#allocation5 + $0xe8] sm:$0xff] %vm4817_vm6, %v5381_v27  ;;  %v5410_v23 = vmax.f32 %v13251_v58, 0.0  ;;  %v13252_v53 = vld [vmem:[#allocation182_spill] sm:$0xff]  ;;  %v5412_v13 = vmax.f32 %v13253_v33, 0.0  ;;  %v5415_v12 = vmax.f32 %v11931_v41, 0.0 }
 0xa95   :  { %5446 = vst.msk [vmem:[#allocation5 + $0xf0] sm:$0xff] %vm4817_vm6, %v5382_v32  ;;  %5447 = vst.msk [vmem:[#allocation5 + $0xf8] sm:$0xff] %vm4817_vm6, %v5383_v28  ;;  %v5411_v40 = vmax.f32 %v13252_v53, 0.0  ;;  %v13254_v21 = vld [vmem:[#allocation114_spill] sm:$0xff] }
 0xa96   :  { %5448 = vst.msk [vmem:[#allocation5 + $0x100] sm:$0xff] %vm4817_vm6, %v5384_v18  ;;  %5449 = vst.msk [vmem:[#allocation5 + $0x108] sm:$0xff] %vm4817_vm6, %v5385_v17  ;;  %v5413_v59 = vmax.f32 %v13254_v21, 0.0  ;;  %v13255_v52 = vld [vmem:[#allocation66_spill] sm:$0xff] }
 0xa97   :  { %5450 = vst.msk [vmem:[#allocation5 + $0x110] sm:$0xff] %vm4817_vm6, %v5386_v1  ;;  %5451 = vst.msk [vmem:[#allocation5 + $0x118] sm:$0xff] %vm4817_vm6, %v5387_v8  ;;  %v5414_v26 = vmax.f32 %v13255_v52, 0.0 }
 0xa98   :  { %5452 = vst.msk [vmem:[#allocation5 + $0x120] sm:$0xff] %vm4817_vm6, %v5388_v39  ;;  %5453 = vst.msk [vmem:[#allocation5 + $0x128] sm:$0xff] %vm4817_vm6, %v5389_v14 }
 0xa99   :  { %5454 = vst.msk [vmem:[#allocation5 + $0x130] sm:$0xff] %vm4817_vm6, %v5390_v60  ;;  %5455 = vst.msk [vmem:[#allocation5 + $0x138] sm:$0xff] %vm4817_vm6, %v5391_v19 }
 0xa9a   :  { %5456 = vst.msk [vmem:[#allocation5 + $0x140] sm:$0xff] %vm4817_vm6, %v5392_v25  ;;  %5457 = vst.msk [vmem:[#allocation5 + $0x148] sm:$0xff] %vm4817_vm6, %v5393_v46 }
 0xa9b   :  { %5458 = vst.msk [vmem:[#allocation5 + $0x150] sm:$0xff] %vm4817_vm6, %v5394_v22  ;;  %5459 = vst.msk [vmem:[#allocation5 + $0x158] sm:$0xff] %vm4817_vm6, %v5395_v4 }
 0xa9c   :  { %5460 = vst.msk [vmem:[#allocation5 + $0x160] sm:$0xff] %vm4817_vm6, %v5396_v0  ;;  %5461 = vst.msk [vmem:[#allocation5 + $0x168] sm:$0xff] %vm4817_vm6, %v5397_v42 }
 0xa9d   :  { %5462 = vst.msk [vmem:[#allocation5 + $0x170] sm:$0xff] %vm4817_vm6, %v5398_v20  ;;  %5463 = vst.msk [vmem:[#allocation5 + $0x178] sm:$0xff] %vm4817_vm6, %v5399_v36 }
 0xa9e   :  { %5464 = vst.msk [vmem:[#allocation5 + $0x180] sm:$0xff] %vm4817_vm6, %v5400_v30  ;;  %5465 = vst.msk [vmem:[#allocation5 + $0x188] sm:$0xff] %vm4817_vm6, %v5401_v10 }
 0xa9f   :  { %5466 = vst.msk [vmem:[#allocation5 + $0x190] sm:$0xff] %vm4817_vm6, %v5402_v7  ;;  %5467 = vst.msk [vmem:[#allocation5 + $0x198] sm:$0xff] %vm4817_vm6, %v5403_v48 }
 0xaa0   :  { %5468 = vst.msk [vmem:[#allocation5 + $0x1a0] sm:$0xff] %vm4817_vm6, %v5404_v38  ;;  %5469 = vst.msk [vmem:[#allocation5 + $0x1a8] sm:$0xff] %vm4817_vm6, %v5405_v63 }
 0xaa1   :  { %5470 = vst.msk [vmem:[#allocation5 + $0x1b0] sm:$0xff] %vm4817_vm6, %v5406_v11  ;;  %5471 = vst.msk [vmem:[#allocation5 + $0x1b8] sm:$0xff] %vm4817_vm6, %v5407_v16 }
 0xaa2   :  { %5472 = vst.msk [vmem:[#allocation5 + $0x1c0] sm:$0xff] %vm4817_vm6, %v5408_v51  ;;  %5473 = vst.msk [vmem:[#allocation5 + $0x1c8] sm:$0xff] %vm4817_vm6, %v5409_v43 }
 0xaa3   :  { %5474 = vst.msk [vmem:[#allocation5 + $0x1d0] sm:$0xff] %vm4817_vm6, %v5410_v23  ;;  %5475 = vst.msk [vmem:[#allocation5 + $0x1d8] sm:$0xff] %vm4817_vm6, %v5411_v40 }
 0xaa4   :  { %5476 = vst.msk [vmem:[#allocation5 + $0x1e0] sm:$0xff] %vm4817_vm6, %v5412_v13  ;;  %5477 = vst.msk [vmem:[#allocation5 + $0x1e8] sm:$0xff] %vm4817_vm6, %v5413_v59 }
 0xaa5   :  { %5478 = vst.msk [vmem:[#allocation5 + $0x1f0] sm:$0xff] %vm4817_vm6, %v5414_v26  ;;  %5479 = vst.msk [vmem:[#allocation5 + $0x1f8] sm:$0xff] %vm4817_vm6, %v5415_v12 }
 0xaa6   :  { %6016 = shalt.err (!%p6013_p12)
}
 0xaa7   :  { %s6017_s1 = scalar_lea.hbm %s12084_s10, 8192 }
 0xaa8   :  { %p6018_p13 = scmp.ne.s32.totalorder %s12084_s10, %s6017_s1  ;;  %p6021_p0 = scmp.lt.u32.totalorder %s6017_s1, %s12084_s10 }
 0xaaa   :  { %p6023_p1 = pnand %p6021_p0, %p6018_p13 }
 0xaac   :  { %6026 = shalt.err (!%p6023_p1)
}
 0xaad   :  { %s6046_s2 = smov 128  }
 0xaae   :  { %5491 = dma.vmem_to_hbm [thread:$0]  %s5486_s9, 8192, %s12084_s10, [#allocation4], %s6046_s2, %s6046_s2, %s6037_s12  }
 0xaaf   :  { %6029 = dma.done.wait [#allocation4], 8192  }
 0xab0   :  { %6030 = vsyncadd [#allocation4], 4294959104 }
 0xab1   :  { %5495 = vsyncpa [#allocation3], 1 }
 0xab2   :  { %5496 = vsyncpa [#allocation4], 1 }

</bundles_post_ra>
